<compile_context>
chip_gen: v7x
topology: tpu7x:2x2x1
jax: 0.10.0
libtpu: 0.0.40
codegen_flags: <defaults>
</compile_context>

<pallas_src>
import functools

import jax
import jax.numpy as jnp
from jax import lax
from jax.experimental import pallas as pl
from jax.experimental.pallas import tpu as pltpu


def _softmax_rows(s):
    """Numerically stable row softmax in f32."""
    m = jnp.max(s, axis=-1, keepdims=True)
    e = jnp.exp(s - m)
    return e * pl.reciprocal(jnp.sum(e, axis=-1, keepdims=True), approx=False)


def _uniform_from_hash(shape, salt):
    """Per-element uniforms in [0, 1) from a murmur-style int32 hash.

    Only plain jnp int32 ops, so this lowers both on real TPUs (VPU) and under
    Pallas interpret mode (pltpu.prng_* has no CPU/interpret rule).
    """
    r = lax.broadcasted_iota(jnp.int32, shape, 0)
    c = lax.broadcasted_iota(jnp.int32, shape, 1)
    x = salt + r * jnp.int32(shape[1]) + c
    # fmix32 finalizer; logical right shifts emulated via arithmetic shift+mask.
    x = x ^ ((x >> 16) & jnp.int32(0xFFFF))
    x = x * jnp.int32(-2048144789)            # 0x85EBCA6B
    x = x ^ ((x >> 13) & jnp.int32(0x7FFFF))
    x = x * jnp.int32(-1028477387)            # 0xC2B2AE35
    x = x ^ ((x >> 16) & jnp.int32(0xFFFF))
    # Low 24 bits are exact in f32 -> uniform in [0, 1).
    return (x & jnp.int32(0x00FFFFFF)).astype(jnp.float32) * jnp.float32(1.0 / (1 << 24))


def _softmax_matmul_kernel(s_ref, v_ref, o_ref):
    """Eval-mode kernel: row softmax over the score tile, then matmul with V."""
    p = _softmax_rows(s_ref[0].astype(jnp.float32))                 # (tq, S)
    # Dropout(p=0.1) is identity in eval mode.
    o_ref[0] = jnp.dot(
        p, v_ref[0].astype(jnp.float32),
        preferred_element_type=jnp.float32,
        precision=jax.lax.Precision.HIGHEST,   # keep f32-faithful to the torch ref
    ).astype(o_ref.dtype)


def _softmax_dropout_matmul_kernel(seed_ref, s_ref, v_ref, o_ref, *, drop_p):
    """Training-mode kernel: softmax -> inverted dropout -> matmul."""
    p = _softmax_rows(s_ref[0].astype(jnp.float32))                 # (tq, S)

    # Stateless dropout mask: per-grid-step salt so every tile draws an
    # independent mask.  NOTE: not bit-identical to PyTorch's RNG (expected).
    tile = pl.program_id(0) * pl.num_programs(1) + pl.program_id(1)
    salt = seed_ref[0] + tile * jnp.int32(-1640531527)              # 0x9E3779B9
    u = _uniform_from_hash(p.shape, salt)
    keep = u >= jnp.float32(drop_p)                                  # P(keep)=1-p
    p = jnp.where(keep, p * jnp.float32(1.0 / (1.0 - drop_p)), 0.0)

    o_ref[0] = jnp.dot(
        p, v_ref[0].astype(jnp.float32),
        preferred_element_type=jnp.float32,
        precision=jax.lax.Precision.HIGHEST,
    ).astype(o_ref.dtype)


def softmax_dropout_matmul(scores, values, *, drop_p=0.1, training=False, seed=0,
                           tq=None):
    """scores: (B, H, S, S); values: (B, H, S, D) -> (B, H, S, D)."""
    B, H, S, S2 = scores.shape
    assert S == S2
    Bv, Hv, Sv, D = values.shape
    assert (B, H, S) == (Bv, Hv, Sv)

    BH = B * H
    s2 = scores.reshape(BH, S, S)
    v2 = values.reshape(BH, S, D)

    # Full-S query tile by default: at S=384 a (1, S, S) f32 score block is
    # only 576 KB (1.2 MB double-buffered), well inside scoped VMEM on
    # v5e/v6e/v7x, and it collapses the grid to (B*H, 1) = 4 steps.
    if tq is None:
        tq = S
    tq = min(tq, S)
    n_q = pl.cdiv(S, tq)
    grid = (BH, n_q)   # q-tile axis innermost -> V block reused across q-tiles

    itemsize = jnp.dtype(scores.dtype).itemsize
    # Double-buffered working set; raise the scoped-VMEM limit only when a
    # large S actually needs it (v7x has only 64 MiB physical VMEM).
    vmem_need = 2 * (tq * S + S * D + tq * D) * itemsize
    vmem_limit = int(min(vmem_need + (4 << 20), 64 << 20)) if vmem_need > (24 << 20) else None

    cparams = pltpu.CompilerParams(
        dimension_semantics=("parallel", "arbitrary"),
        vmem_limit_bytes=vmem_limit)

    cost = pl.CostEstimate(
        flops=2 * BH * S * S * D,
        transcendentals=BH * S * S,
        bytes_accessed=(BH * S * S + 2 * BH * S * D) * itemsize)

    # index_maps take (*grid_indices, *scalar_prefetch_refs); `*_` absorbs the
    # seed ref in the training branch.
    s_spec = pl.BlockSpec((1, tq, S), lambda h, i, *_: (h, i, 0))
    v_spec = pl.BlockSpec((1, S, D), lambda h, i, *_: (h, 0, 0))
    o_spec = pl.BlockSpec((1, tq, D), lambda h, i, *_: (h, i, 0))
    out_shape = jax.ShapeDtypeStruct((BH, S, D), scores.dtype)

    if not training:
        out = pl.pallas_call(
            _softmax_matmul_kernel,
            out_shape=out_shape,
            grid_spec=pltpu.PrefetchScalarGridSpec(
                num_scalar_prefetch=0, grid=grid,
                in_specs=[s_spec, v_spec], out_specs=o_spec),
            compiler_params=cparams,
            cost_estimate=cost,
        )(s2, v2)
    else:
        kernel = functools.partial(_softmax_dropout_matmul_kernel, drop_p=drop_p)
        seed_arr = jnp.asarray([seed], dtype=jnp.int32)
        out = pl.pallas_call(
            kernel,
            out_shape=out_shape,
            grid_spec=pltpu.PrefetchScalarGridSpec(
                num_scalar_prefetch=1, grid=grid,
                in_specs=[s_spec, v_spec], out_specs=o_spec),
            compiler_params=cparams,
            cost_estimate=cost,
        )(seed_arr, s2, v2)

    return out.reshape(B, H, S, D)


if __name__ == "__main__":
    key = jax.random.PRNGKey(0)
    k1, k2 = jax.random.split(key)
    # Shapes implied by the module's forward: x94=(1,4,384,384), x84=(1,4,384,64)
    x94 = jax.random.normal(k1, (1, 4, 384, 384), dtype=jnp.float32)
    x84 = jax.random.normal(k2, (1, 4, 384, 64), dtype=jnp.float32)

    # Eval mode (dropout = identity): check against an f32-accurate reference.
    out = jax.block_until_ready(softmax_dropout_matmul(x94, x84, training=False))
    ref = jnp.einsum("bhqk,bhkd->bhqd", jax.nn.softmax(x94, axis=-1), x84,
                     precision=jax.lax.Precision.HIGHEST)
    assert out.shape == (1, 4, 384, 64)
    # Tolerance leaves headroom for MXU multi-pass f32 accumulation order.
    assert jnp.allclose(out, ref, atol=1e-4, rtol=1e-4)

    # Training mode (active dropout) smoke test — portable hash PRNG, so this
    # runs both on real TPUs and under Pallas interpret mode.
    out_train = jax.block_until_ready(
        softmax_dropout_matmul(x94, x84, training=True, seed=123))
    assert out_train.shape == (1, 4, 384, 64)
    assert bool(jnp.all(jnp.isfinite(out_train)))
    # Dropout must actually have zeroed some probabilities.
    assert not bool(jnp.allclose(out_train, out, atol=1e-4, rtol=1e-4))

    print("KERNEL_OK")
</pallas_src>

<mosaic_0001>
module attributes {stable_mosaic.version = 11 : i64} {
  func.func @_softmax_matmul_kernel(%arg0: i32, %arg1: i32, %arg2: memref<1x384x384xf32, #tpu.memory_space<vmem>>, %arg3: memref<1x384x64xf32, #tpu.memory_space<vmem>>, %arg4: memref<1x384x64xf32, #tpu.memory_space<vmem>>) attributes {dimension_semantics = [#tpu.dimension_semantics<parallel>, #tpu.dimension_semantics<arbitrary>], iteration_bounds = array<i64: 4, 1>, scalar_prefetch = 0 : i64, scratch_operands = 0 : i64, tpu.core_type = #tpu.core_type<tc>, window_params = [{transform_indices = @transform_0, window_bounds = array<i64: 1, 384, 384>}, {transform_indices = @transform_1, window_bounds = array<i64: 1, 384, 64>}, {transform_indices = @transform_2, window_bounds = array<i64: 1, 384, 64>}]} {
    %c0 = arith.constant 0 : index
    %c0_0 = arith.constant 0 : index
    %c0_1 = arith.constant 0 : index
    %0 = vector.load %arg2[%c0, %c0_0, %c0_1] : memref<1x384x384xf32, #tpu.memory_space<vmem>>, vector<1x384x384xf32>
    %1 = vector.shape_cast %0 : vector<1x384x384xf32> to vector<384x384xf32>
    %cst = arith.constant dense<0xFF800000> : vector<384xf32>
    %2 = vector.multi_reduction <maximumf>, %1, %cst [1] : vector<384x384xf32> to vector<384xf32>
    %3 = vector.shape_cast %2 : vector<384xf32> to vector<384x1xf32>
    %4 = vector.broadcast %3 : vector<384x1xf32> to vector<384x384xf32>
    %5 = arith.subf %1, %4 : vector<384x384xf32>
    %6 = math.exp %5 : vector<384x384xf32>
    %cst_2 = arith.constant dense<0.000000e+00> : vector<384xf32>
    %7 = vector.multi_reduction <add>, %6, %cst_2 [1] : vector<384x384xf32> to vector<384xf32>
    %8 = vector.shape_cast %7 : vector<384xf32> to vector<384x1xf32>
    %9 = tpu.reciprocal %8 : vector<384x1xf32> -> vector<384x1xf32>
    %10 = vector.broadcast %9 : vector<384x1xf32> to vector<384x384xf32>
    %11 = arith.mulf %6, %10 : vector<384x384xf32>
    %c0_3 = arith.constant 0 : index
    %c0_4 = arith.constant 0 : index
    %c0_5 = arith.constant 0 : index
    %12 = vector.load %arg3[%c0_3, %c0_4, %c0_5] : memref<1x384x64xf32, #tpu.memory_space<vmem>>, vector<1x384x64xf32>
    %13 = vector.shape_cast %12 : vector<1x384x64xf32> to vector<384x64xf32>
    %cst_6 = arith.constant dense<0.000000e+00> : vector<384x64xf32>
    %14 = tpu.matmul %11, %13, %cst_6 {dimension_numbers = #tpu.dot_dimension_numbers<[1], [0], [0], [1], [0, 0, 1, 1], [], []>, precision = #tpu.contract_precision<fp32>} : vector<384x384xf32>, vector<384x64xf32>, vector<384x64xf32> -> vector<384x64xf32>
    %c0_7 = arith.constant 0 : index
    %c0_8 = arith.constant 0 : index
    %c0_9 = arith.constant 0 : index
    %15 = vector.load %arg4[%c0_7, %c0_8, %c0_9] : memref<1x384x64xf32, #tpu.memory_space<vmem>>, vector<1x384x64xf32>
    %16 = vector.shape_cast %15 : vector<1x384x64xf32> to vector<384x64xf32>
    %17 = vector.shape_cast %14 : vector<384x64xf32> to vector<1x384x64xf32>
    tpu.vector_store %arg4[%c0_7, %c0_8, %c0_9], %17 {strides = array<i32>} : memref<1x384x64xf32, #tpu.memory_space<vmem>>, vector<1x384x64xf32>,
    return
  }
  func.func @transform_0(%arg0: i32, %arg1: i32) -> (i32, i32, i32) {
    %c0_i32 = arith.constant 0 : i32
    %c0_i32_0 = arith.constant 0 : i32
    return %arg0, %arg1, %c0_i32 : i32, i32, i32
  }
  func.func @transform_1(%arg0: i32, %arg1: i32) -> (i32, i32, i32) {
    %c0_i32 = arith.constant 0 : i32
    %c0_i32_0 = arith.constant 0 : i32
    %c0_i32_1 = arith.constant 0 : i32
    return %arg0, %c0_i32, %c0_i32_0 : i32, i32, i32
  }
  func.func @transform_2(%arg0: i32, %arg1: i32) -> (i32, i32, i32) {
    %c0_i32 = arith.constant 0 : i32
    %c0_i32_0 = arith.constant 0 : i32
    return %arg0, %arg1, %c0_i32 : i32, i32, i32
  }
}

</mosaic_0001>

<bundles_post_ra>
// kernel: tpu_custom_call.1
= control target key start
LH: loop header
LB: loop body
LE: loop exit
PB: predicated region body
PF: predicated region fallthrough
CT: control target
= control target key end

     0   :  { %7 = vsyncpa [#allocation3], 0  ;;  %s16342_s0 = inlined_call_operand.hbm [shape: f32[4,384,384], index: 0, kind: input, shape index: {}]   ;;  %s16343_s1 = inlined_call_operand.vmem [shape: f32[4,384,64], index: 1, kind: input, shape index: {}]   ;;  %s16344_s2 = inlined_call_operand.vmem [shape: f32[4,384,64], index: 2, kind: output, shape index: {}]  }
   0x1   :  { %9 = vsyncpa [#allocation3 + $0x1], 0  ;;  %s10303_s9 = smov 0   ;;  %s10305_s10 = smov 0  }
   0x2   :  { %s10307_s11 = smov 0   ;;  %s10309_s12 = smov 0  }
   0x3   :  { %s10311_s13 = smov 0   ;;  %s10313_s14 = smov 0  }
   0x4 LB: > { %s7725_s15 = sadd.s32 4294967295, %s10282_s14   ;;  %s27_s16 = sadd.s32 1, %s10278_s13  ;;  %s10282_s14 = sphi %s10313_s14, %s15_s14   ;;  %s10278_s13 = sphi %s10311_s13, %s19401_s13   ;;  %s10274_s12 = sphi %s10309_s12, %s19400_s12   ;;  %s10270_s11 = sphi %s10307_s11, %s19399_s11   ;;  %s10266_s10 = sphi %s10305_s10, %s19398_s10   ;;  %s10262_s9 = sphi %s10303_s9, %s19397_s9  }
   0x5   : > { %p29_p0 = scmp.ge.s32.totalorder %s27_s16, 4  ;;  %s36_s17 = sadd.s32 1, %s10270_s11 }
   0x6   : > { %p43_p1 = scmp.ne.s32.totalorder %s10270_s11, %s10266_s10  ;;  %p44_p2 = scmp.eq.s32.totalorder %s10282_s14, 0 }
   0x7   : > { %s19403_s16 = smov (%p29_p0, %s27_s16), 0  ;;  %p49_p4 = scmp.ne.s32.totalorder %s10266_s10, %s10262_s9 }
   0x8   : > { %p45_p3 = por %p44_p2, %p43_p1  ;;  %s31_s18 = ssub.s32 %s10278_s13, %s19403_s16 }
   0x9   : > { %p50_p5 = scmp.eq.s32.totalorder %s7725_s15, 0  ;;  %p34_p6 = scmp.eq.s32.totalorder %s31_s18, 0 }
   0xa   : > { %p9697_p8 = scmp.lt.s32.totalorder %s10282_s14, 4  ;;  %s127_s21 = sand.u32 1, %s10270_s11  }
   0xb   : > { %p10342_p7 = por %p50_p5, %p49_p4  ;;  %s9688_s22 = smul.u32 18432, %s10278_s13 }
   0xc   : > { %s10348_s20 = scalar_select %p34_p6, %s10270_s11, %s36_s17  }
   0xd   : > { %s9687_s23 = smul.u32 1152, %s127_s21  ;;  %s10355_s26 = scalar_lea.hbm %s16342_s0, %s9688_s22 }
   0xe   : > { %p10357_p9 = pnand %p9697_p8, %p45_p3  ;;  %s10363_s30 = scalar_lea.sflag [#allocation3], %s127_s21 }
   0xf   : > { %s131_s28 = scalar_lea.vmem [#allocation2], %s9687_s23  ;;  %s10202_s3 = scalar_lea.hbm %s10355_s26, 18432 }
  0x10   : > { %s141_s29 = sshll.u32 %s131_s28, 4  ;;  %p10203_p10 = scmp.ne.s32.totalorder %s10355_s26, %s10202_s3  ;;  %s10361_s29 = int_to_ptr.vmem [resolvable:$true] %s141_s29 }
  0x11   : > { %p10204_p11 = pneg %p10357_p9  ;;  %s10207_s6 = scalar_lea.hbm %s16342_s0, 73728 }
  0x12   : > { %p10208_p0 = scmp.lt.u32.totalorder %s10355_s26, %s16342_s0  ;;  %p10209_p1 = scmp.lt.u32.totalorder %s10207_s6, %s10202_s3 }
  0x13   : > { %p10205_p12 = pnand %p10204_p11, %p10203_p10  ;;  %p10211_p3 = scmp.lt.u32.totalorder %s10202_s3, %s10355_s26 }
  0x14   : > { %p10210_p2 = por %p10209_p1, %p10208_p0 }
  0x15   : > { %p10206_p13 = pneg %p10205_p12 }
  0x16   : > { %p10212_p4 = por %p10211_p3, %p10210_p2 }
  0x18   : > { %p10213_p5 = pnand %p10212_p4, %p10206_p13 }
  0x1a   : > { %10216 = shalt.err (!%p10213_p5)
}
  0x1b   : > { %s10217_s9 = scalar_lea.vmem %s10361_s29, 18432  ;;  %s10284_s15 = smov [#allocation2]  }
  0x1c   : > { %p10218_p6 = scmp.ne.s32.totalorder %s10361_s29, %s10217_s9  ;;  %s10222_s17 = sshll.u32 %s10284_s15, 4  ;;  %s10223_s17 = int_to_ptr.vmem [resolvable:$false] %s10222_s17 }
  0x1d   : > { %s10224_s18 = scalar_lea.vmem %s10223_s17, 36864  ;;  %p10225_p12 = scmp.lt.s32.totalorder %s10361_s29, %s10223_s17 }
  0x1e   : > { %p10220_p8 = pnand %p10218_p6, %p10204_p11  ;;  %p10226_p0 = scmp.lt.s32.totalorder %s10224_s18, %s10217_s9 }
  0x20   : > { %p10221_p10 = pneg %p10220_p8  ;;  %p10227_p1 = por %p10226_p0, %p10225_p12 }
  0x22   : > { %p10228_p2 = pnand %p10227_p1, %p10221_p10 }
  0x24   : > { %10231 = shalt.err (!%p10228_p2)
}
  0x25   : > { %s10285_s21 = smov 384   ;;  %s10286_s22 = smov 24  }
  0x26   : > { %9696 = dma.hbm_to_vmem [thread:$0]  (!%p10357_p9), %s10355_s26, 18432, %s10361_s29, %s10363_s30, %s10285_s21, %s10285_s21, %s10286_s22  }
  0x27   : > { %p7730_p11 = scmp.ge.s32.totalorder %s10282_s14, 1  ;;  %p157_p13 = scmp.lt.s32.totalorder %s10282_s14, 5 }
  0x29   : > { %p158_p3 = pnand %p7730_p11, %p157_p13 }
  0x2b   : > { %161 = sbr.rel (%p158_p3) target bundleno = 1499 (0x5db), region = 28 }
  0x32   : > { %s163_s23 = sand.u32 1, %s10266_s10  }
  0x33   : > { %s9689_s24 = smul.u32 1152, %s163_s23  ;;  %s164_s25 = scalar_lea.sflag [#allocation3], %s163_s23 }
  0x35   : > { %s10394_s28 = scalar_lea.vmem [#allocation2], %s9689_s24 }
  0x36   : > { %10257 = dma.done.wait (%p10342_p7), %s164_s25, 18432  }
  0x37   : > { %10259 = vsyncadd (%p10342_p7), %s164_s25, 4294948864  ;;  %v10401_v0 = vld [vmem:[%s10394_s28] sm:$0xff]  ;;  %v10404_v1 = vld [vmem:[%s10394_s28 + $0x8] sm:$0xff]  ;;  %p198_p7 = scmp.lt.s32.totalorder %s10274_s12, 3  ;;  %vm7569_vm0 = vcmask 523264  }
  0x38   : > { %v10407_v2 = vld [vmem:[%s10394_s28 + $0x10] sm:$0xff]  ;;  %v357_v3 = vmax.f32 %v10401_v0, %v10404_v1  ;;  %v10412_v4 = vld [vmem:[%s10394_s28 + $0x18] sm:$0xff]  ;;  %v10415_v5 = vld [vmem:[%s10394_s28 + $0x20] sm:$0xff] }
  0x39   : > { %v10418_v6 = vld [vmem:[%s10394_s28 + $0x28] sm:$0xff]  ;;  %v361_v7 = vmax.f32 %v10412_v4, %v10415_v5  ;;  %v10423_v8 = vld [vmem:[%s10394_s28 + $0x30] sm:$0xff]  ;;  %v10426_v9 = vld [vmem:[%s10394_s28 + $0x38] sm:$0xff]  ;;  %s19405_s12 = smov (!%p198_p7, %s10274_s12), 3 }
  0x3a   : > { %v10429_v10 = vld [vmem:[%s10394_s28 + $0x40] sm:$0xff]  ;;  %v358_v11 = vmax.f32 %v357_v3, %v10407_v2  ;;  %v365_v12 = vmax.f32 %v10423_v8, %v10426_v9  ;;  %v10438_v14 = vld [vmem:[%s10394_s28 + $0x68] sm:$0xff]  ;;  %v10444_v16 = vld [vmem:[%s10394_s28 + $0x50] sm:$0xff]  ;;  %s9690_s19 = smul.u32 384, %s19405_s12 }
  0x3b   : > { %v10435_v13 = vld [vmem:[%s10394_s28 + $0x60] sm:$0xff]  ;;  %v10441_v15 = vld [vmem:[%s10394_s28 + $0x48] sm:$0xff]  ;;  %v10447_v17 = vld [vmem:[%s10394_s28 + $0x58] sm:$0xff]  ;;  %v362_v18 = vmax.f32 %v361_v7, %v10418_v6 }
  0x3c   : > { %359 = vmax.xlane.f32.xlu0 %v358_v11  ;;  %v366_v19 = vmax.f32 %v365_v12, %v10429_v10  ;;  %v373_v20 = vmax.f32 %v10435_v13, %v10438_v14  ;;  %v369_v21 = vmax.f32 %v10441_v15, %v10444_v16  ;;  %v10456_v22 = vld [vmem:[%s10394_s28 + $0x70] sm:$0xff]  ;;  %v10462_v24 = vld [vmem:[%s10394_s28 + $0x98] sm:$0xff]  ;;  %v10469_v27 = vld [vmem:[%s10394_s28 + $0x80] sm:$0xff]  ;;  %s10772_s29 = scalar_lea.vmem %s16343_s1, %s9690_s19  ;;  %s16021_s4 = scalar_lea.vmem %s16344_s2, %s9690_s19 }
  0x3d   : > { %v10459_v23 = vld [vmem:[%s10394_s28 + $0x90] sm:$0xff]  ;;  %v10466_v26 = vld [vmem:[%s10394_s28 + $0x78] sm:$0xff]  ;;  %v10472_v28 = vld [vmem:[%s10394_s28 + $0x88] sm:$0xff] }
  0x3e   : > { %367 = vmax.xlane.f32.xlu1 %v366_v19  ;;  %v370_v25 = vmax.f32 %v369_v21, %v10447_v17  ;;  %v377_v29 = vmax.f32 %v10466_v26, %v10469_v27  ;;  %v374_v30 = vmax.f32 %v373_v20, %v10456_v22  ;;  %v10478_v31 = vld [vmem:[%s10394_s28 + $0xa0] sm:$0xff]  ;;  %v381_v32 = vmax.f32 %v10459_v23, %v10462_v24  ;;  %v10486_v34 = vld [vmem:[%s10394_s28 + $0xc8] sm:$0xff]  ;;  %v10492_v36 = vld [vmem:[%s10394_s28 + $0xb0] sm:$0xff] }
  0x3f   : > { %v10483_v33 = vld [vmem:[%s10394_s28 + $0xc0] sm:$0xff]  ;;  %v10489_v35 = vld [vmem:[%s10394_s28 + $0xa8] sm:$0xff]  ;;  %v10498_v39 = vld [vmem:[%s10394_s28 + $0xb8] sm:$0xff] }
  0x40   : > { %363 = vmax.xlane.f32.xlu0 %v362_v18  ;;  %v378_v37 = vmax.f32 %v377_v29, %v10472_v28  ;;  %v385_v38 = vmax.f32 %v10489_v35, %v10492_v36  ;;  %v382_v40 = vmax.f32 %v381_v32, %v10478_v31  ;;  %v389_v41 = vmax.f32 %v10483_v33, %v10486_v34  ;;  %v10504_v42 = vld [vmem:[%s10394_s28 + $0xd8] sm:$0xff]  ;;  %v10507_v43 = vld [vmem:[%s10394_s28 + $0xe0] sm:$0xff]  ;;  %v10510_v44 = vld [vmem:[%s10394_s28 + $0xd0] sm:$0xff] }
  0x41   : > { %v10513_v45 = vld [vmem:[%s10394_s28 + $0xf0] sm:$0xff]  ;;  %v10516_v46 = vld [vmem:[%s10394_s28 + $0xf8] sm:$0xff]  ;;  %v393_v48 = vmax.f32 %v10504_v42, %v10507_v43  ;;  %v10522_v49 = vld [vmem:[%s10394_s28 + $0xe8] sm:$0xff] }
  0x42   : > { %371 = vmax.xlane.f32.xlu1 %v370_v25  ;;  %v386_v47 = vmax.f32 %v385_v38, %v10498_v39  ;;  %v10525_v50 = vld [vmem:[%s10394_s28 + $0x108] sm:$0xff]  ;;  %v10528_v51 = vld [vmem:[%s10394_s28 + $0x110] sm:$0xff]  ;;  %v390_v52 = vmax.f32 %v389_v41, %v10510_v44  ;;  %v397_v53 = vmax.f32 %v10513_v45, %v10516_v46  ;;  %v10534_v54 = vld [vmem:[%s10394_s28 + $0x100] sm:$0xff] }
  0x43   : > { %v10537_v55 = vld [vmem:[%s10394_s28 + $0x120] sm:$0xff]  ;;  %v10540_v56 = vld [vmem:[%s10394_s28 + $0x128] sm:$0xff]  ;;  %v394_v57 = vmax.f32 %v393_v48, %v10522_v49  ;;  %v401_v58 = vmax.f32 %v10525_v50, %v10528_v51  ;;  %v10546_v59 = vld [vmem:[%s10394_s28 + $0x118] sm:$0xff] }
  0x44   : > { %375 = vmax.xlane.f32.xlu0 %v374_v30  ;;  %17248 = vst [vmem:[#allocation5_spill] sm:$0xff] %v10546_v59  ;;  %v10549_v60 = vld [vmem:[%s10394_s28 + $0x138] sm:$0xff]  ;;  %v10552_v61 = vld [vmem:[%s10394_s28 + $0x140] sm:$0xff]  ;;  %v398_v62 = vmax.f32 %v397_v53, %v10534_v54  ;;  %v405_v63 = vmax.f32 %v10537_v55, %v10540_v56  ;;  %v10558_v3 = vld [vmem:[%s10394_s28 + $0x130] sm:$0xff] }
  0x45   : > { %17249 = vst [vmem:[#allocation6_spill] sm:$0xff] %v10549_v60  ;;  %17250 = vst [vmem:[#allocation7_spill] sm:$0xff] %v10552_v61  ;;  %v10561_v7 = vld [vmem:[%s10394_s28 + $0x150] sm:$0xff]  ;;  %v10564_v11 = vld [vmem:[%s10394_s28 + $0x158] sm:$0xff]  ;;  %v402_v12 = vmax.f32 %v401_v58, %v10546_v59  ;;  %v409_v18 = vmax.f32 %v10549_v60, %v10552_v61 }
  0x46   : > { %379 = vmax.xlane.f32.xlu1 %v378_v37  ;;  %v10570_v19 = vld [vmem:[%s10394_s28 + $0x148] sm:$0xff]  ;;  %v10576_v21 = vld [vmem:[%s10394_s28 + $0x170] sm:$0xff]  ;;  %v406_v25 = vmax.f32 %v405_v63, %v10558_v3  ;;  %v413_v29 = vmax.f32 %v10561_v7, %v10564_v11  ;;  %v10582_v30 = vld [vmem:[%s10394_s28 + $0x160] sm:$0xff] }
  0x47   : > { %17251 = vst [vmem:[#allocation8_spill] sm:$0xff] %v10570_v19  ;;  %v10573_v20 = vld [vmem:[%s10394_s28 + $0x168] sm:$0xff]  ;;  %17253 = vst [vmem:[#allocation10_spill] sm:$0xff] %v10576_v21  ;;  %v10585_v32 = vld [vmem:[%s10394_s28 + $0x180] sm:$0xff]  ;;  %v410_v38 = vmax.f32 %v409_v18, %v10570_v19 }
  0x48   : > { %383 = vmax.xlane.f32.xlu0 %v382_v40  ;;  %17252 = vst [vmem:[#allocation9_spill] sm:$0xff] %v10573_v20  ;;  %17254 = vst [vmem:[#allocation11_spill] sm:$0xff] %v10585_v32  ;;  %v10588_v37 = vld [vmem:[%s10394_s28 + $0x188] sm:$0xff]  ;;  %v417_v40 = vmax.f32 %v10573_v20, %v10576_v21  ;;  %v10594_v41 = vld [vmem:[%s10394_s28 + $0x178] sm:$0xff] }
  0x49   : > { %17255 = vst [vmem:[#allocation12_spill] sm:$0xff] %v10588_v37  ;;  %17256 = vst [vmem:[#allocation13_spill] sm:$0xff] %v10594_v41  ;;  %v10600_v48 = vld [vmem:[%s10394_s28 + $0x1a0] sm:$0xff]  ;;  %v421_v53 = vmax.f32 %v10585_v32, %v10588_v37  ;;  %v10609_v58 = vld [vmem:[%s10394_s28 + $0x1b0] sm:$0xff] }
  0x4a   : > { %387 = vmax.xlane.f32.xlu1 %v386_v47  ;;  %v10597_v47 = vld [vmem:[%s10394_s28 + $0x198] sm:$0xff]  ;;  %17258 = vst [vmem:[#allocation15_spill] sm:$0xff] %v10600_v48  ;;  %17260 = vst [vmem:[#allocation17_spill] sm:$0xff] %v10609_v58  ;;  %v418_v63 = vmax.f32 %v417_v40, %v10594_v41  ;;  %v10618_v18 = vld [vmem:[%s10394_s28 + $0x1a8] sm:$0xff] }
  0x4b   : > { %17257 = vst [vmem:[#allocation14_spill] sm:$0xff] %v10597_v47  ;;  %17262 = vst [vmem:[#allocation19_spill] sm:$0xff] %v10618_v18  ;;  %v10626_v20 = vld [vmem:[%s10394_s28 + $0x1c0] sm:$0xff]  ;;  %v10632_v41 = vld [vmem:[%s10394_s28 + $0x1e8] sm:$0xff] }
  0x4c   : > { %391 = vmax.xlane.f32.xlu0 %v390_v52  ;;  %v414_v52 = vmax.f32 %v413_v29, %v10582_v30  ;;  %v271_v29 = vld [vmem:[%s10394_s28 + $0x1d0] sm:$0xff]  ;;  %17263 = vst [vmem:[#allocation20_spill] sm:$0xff] %v10626_v20  ;;  %v10629_v40 = vld [vmem:[%s10394_s28 + $0x1e0] sm:$0xff]  ;;  %17265 = vst [vmem:[#allocation22_spill] sm:$0xff] %v10632_v41 }
  0x4d   : > { %17264 = vst [vmem:[#allocation21_spill] sm:$0xff] %v10629_v40  ;;  %v272_v19 = vld [vmem:[%s10394_s28 + $0x1d8] sm:$0xff]  ;;  %v10642_v61 = vld [vmem:[%s10394_s28 + $0x1f0] sm:$0xff]  ;;  %v10813_v32 = vld [vmem:[%s10772_s29 + $0x20] sm:$0xff] }
  0x4e   : > { %395 = vmax.xlane.f32.xlu1 %v394_v57  ;;  %v10606_v57 = vld [vmem:[%s10394_s28 + $0x190] sm:$0xff]  ;;  %17266 = vst [vmem:[#allocation23_spill] sm:$0xff] %v10642_v61  ;;  %17288 = vst [vmem:[#allocation45_spill] sm:$0xff] %v10813_v32 }
  0x4f   : > { %17259 = vst [vmem:[#allocation16_spill] sm:$0xff] %v10606_v57  ;;  %v422_v21 = vmax.f32 %v421_v53, %v10606_v57  ;;  %v277_v53 = vld [vmem:[%s10394_s28 + $0x200] sm:$0xff]  ;;  %v10645_v60 = vld [vmem:[%s10394_s28 + $0x210] sm:$0xff] }
  0x50   : > { %399 = vmax.xlane.f32.xlu0 %v398_v62  ;;  %v10612_v62 = vld [vmem:[%s10394_s28 + $0x1b8] sm:$0xff]  ;;  %17267 = vst [vmem:[#allocation24_spill] sm:$0xff] %v10645_v60 }
  0x51   : > { %17261 = vst [vmem:[#allocation18_spill] sm:$0xff] %v10612_v62 }
  0x52   : > { %403 = vmax.xlane.f32.xlu1 %v402_v12  ;;  %v425_v12 = vmax.f32 %v10597_v47, %v10600_v48 }
  0x54   : > { %407 = vmax.xlane.f32.xlu0 %v406_v25  ;;  %v270_v25 = vld [vmem:[%s10394_s28 + $0x1c8] sm:$0xff]  ;;  %v426_v48 = vmax.f32 %v425_v12, %v10618_v18  ;;  %v10655_v18 = vld [vmem:[%s10394_s28 + $0x220] sm:$0xff] }
  0x55   : > { %v433_v47 = vmax.f32 %v270_v25, %v271_v29  ;;  %v278_v29 = vld [vmem:[%s10394_s28 + $0x208] sm:$0xff]  ;;  %17269 = vst [vmem:[#allocation26_spill] sm:$0xff] %v10655_v18 }
  0x56   : > { %411 = vmax.xlane.f32.xlu1 %v410_v38  ;;  %v429_v38 = vmax.f32 %v10609_v58, %v10612_v62  ;;  %v437_v58 = vmax.f32 %v10629_v40, %v10632_v41  ;;  %v10658_v41 = vld [vmem:[%s10394_s28 + $0x228] sm:$0xff]  ;;  %v10661_v40 = vld [vmem:[%s10394_s28 + $0x230] sm:$0xff] }
  0x57   : > { %v434_v12 = vmax.f32 %v433_v47, %v272_v19  ;;  %17270 = vst [vmem:[#allocation27_spill] sm:$0xff] %v10658_v41  ;;  %17271 = vst [vmem:[#allocation28_spill] sm:$0xff] %v10661_v40 }
  0x58   : > { %415 = vmax.xlane.f32.xlu0 %v414_v52  ;;  %v276_v52 = vld [vmem:[%s10394_s28 + $0x1f8] sm:$0xff]  ;;  %v430_v62 = vmax.f32 %v429_v38, %v10626_v20 }
  0x59   : > { %v441_v25 = vmax.f32 %v276_v52, %v277_v53  ;;  %v10673_v52 = vld [vmem:[%s10394_s28 + $0x248] sm:$0xff] }
  0x5a   : > { %419 = vmax.xlane.f32.xlu1 %v418_v63  ;;  %v10648_v63 = vld [vmem:[%s10394_s28 + $0x218] sm:$0xff]  ;;  %17274 = vst [vmem:[#allocation31_spill] sm:$0xff] %v10673_v52 }
  0x5b   : > { %17268 = vst [vmem:[#allocation25_spill] sm:$0xff] %v10648_v63  ;;  %v445_v38 = vmax.f32 %v10645_v60, %v10648_v63  ;;  %v442_v19 = vmax.f32 %v441_v25, %v278_v29  ;;  %v10679_v25 = vld [vmem:[%s10394_s28 + $0x250] sm:$0xff]  ;;  %v10682_v29 = vld [vmem:[%s10394_s28 + $0x258] sm:$0xff] }
  0x5c   : > { %423 = vmax.xlane.f32.xlu0 %v422_v21  ;;  %v438_v21 = vmax.f32 %v437_v58, %v10642_v61  ;;  %v10667_v58 = vld [vmem:[%s10394_s28 + $0x238] sm:$0xff]  ;;  %17275 = vst [vmem:[#allocation32_spill] sm:$0xff] %v10679_v25  ;;  %17276 = vst [vmem:[#allocation33_spill] sm:$0xff] %v10682_v29 }
  0x5d   : > { %v446_v47 = vmax.f32 %v445_v38, %v10655_v18  ;;  %17272 = vst [vmem:[#allocation29_spill] sm:$0xff] %v10667_v58  ;;  %v301_v18 = vld [vmem:[%s10394_s28 + $0x2c0] sm:$0xff] }
  0x5e   : > { %427 = vmax.xlane.f32.xlu1 %v426_v48  ;;  %v449_v48 = vmax.f32 %v10658_v41, %v10661_v40  ;;  %v296_v40 = vld [vmem:[%s10394_s28 + $0x298] sm:$0xff]  ;;  %v298_v41 = vld [vmem:[%s10394_s28 + $0x2a8] sm:$0xff] }
  0x60   : > { %431 = vmax.xlane.f32.xlu0 %v430_v62  ;;  %v10670_v62 = vld [vmem:[%s10394_s28 + $0x240] sm:$0xff]  ;;  %v450_v53 = vmax.f32 %v449_v48, %v10667_v58  ;;  %v10694_v48 = vld [vmem:[%s10394_s28 + $0x270] sm:$0xff] }
  0x61   : > { %17273 = vst [vmem:[#allocation30_spill] sm:$0xff] %v10670_v62  ;;  %17279 = vst [vmem:[#allocation36_spill] sm:$0xff] %v10694_v48  ;;  %v295_v58 = vld [vmem:[%s10394_s28 + $0x290] sm:$0xff] }
  0x62   : > { %435 = vmax.xlane.f32.xlu1 %v434_v12  ;;  %v453_v12 = vmax.f32 %v10670_v62, %v10673_v52  ;;  %v10697_v52 = vld [vmem:[%s10394_s28 + $0x278] sm:$0xff] }
  0x63   : > { %17280 = vst [vmem:[#allocation37_spill] sm:$0xff] %v10697_v52 }
  0x64   : > { %439 = vmax.xlane.f32.xlu0 %v438_v21  ;;  %v10685_v21 = vld [vmem:[%s10394_s28 + $0x260] sm:$0xff]  ;;  %v454_v38 = vmax.f32 %v453_v12, %v10679_v25  ;;  %v294_v25 = vld [vmem:[%s10394_s28 + $0x288] sm:$0xff] }
  0x65   : > { %17277 = vst [vmem:[#allocation34_spill] sm:$0xff] %v10685_v21  ;;  %v10703_v12 = vld [vmem:[%s10394_s28 + $0x280] sm:$0xff] }
  0x66   : > { %443 = vmax.xlane.f32.xlu1 %v442_v19  ;;  %v457_v19 = vmax.f32 %v10682_v29, %v10685_v21  ;;  %17281 = vst [vmem:[#allocation38_spill] sm:$0xff] %v10703_v12  ;;  %v465_v29 = vmax.f32 %v294_v25, %v295_v58  ;;  %v303_v58 = vld [vmem:[%s10394_s28 + $0x2d0] sm:$0xff]  ;;  %v304_v25 = vld [vmem:[%s10394_s28 + $0x2d8] sm:$0xff] }
  0x68   : > { %447 = vmax.xlane.f32.xlu0 %v446_v47  ;;  %v10691_v47 = vld [vmem:[%s10394_s28 + $0x268] sm:$0xff] }
  0x69   : > { %17278 = vst [vmem:[#allocation35_spill] sm:$0xff] %v10691_v47  ;;  %v458_v62 = vmax.f32 %v457_v19, %v10691_v47  ;;  %v466_v19 = vmax.f32 %v465_v29, %v296_v40  ;;  %v300_v47 = vld [vmem:[%s10394_s28 + $0x2b8] sm:$0xff]  ;;  %v477_v40 = vmax.f32 %v303_v58, %v304_v25  ;;  %v305_v29 = vld [vmem:[%s10394_s28 + $0x2e0] sm:$0xff] }
  0x6a   : > { %v312_v58 = vld [vmem:[%s10394_s28 + $0x318] sm:$0xff]  ;;  %v313_v25 = vld [vmem:[%s10394_s28 + $0x320] sm:$0xff] }
  0x6c   : > { %451 = vmax.xlane.f32.xlu0 %v450_v53  ;;  %v461_v53 = vmax.f32 %v10694_v48, %v10697_v52  ;;  %v299_v48 = vld [vmem:[%s10394_s28 + $0x2b0] sm:$0xff] }
  0x6e   : > { %v462_v21 = vmax.f32 %v461_v53, %v10703_v12  ;;  %v473_v53 = vmax.f32 %v300_v47, %v301_v18  ;;  %v302_v12 = vld [vmem:[%s10394_s28 + $0x2c8] sm:$0xff]  ;;  %v309_v18 = vld [vmem:[%s10394_s28 + $0x300] sm:$0xff] }
  0x6f   : > { %v310_v47 = vld [vmem:[%s10394_s28 + $0x308] sm:$0xff] }
  0x70   : > { %455 = vmax.xlane.f32.xlu0 %v454_v38  ;;  %v297_v38 = vld [vmem:[%s10394_s28 + $0x2a0] sm:$0xff] }
  0x71   : > { %v469_v52 = vmax.f32 %v297_v38, %v298_v41  ;;  %v306_v41 = vld [vmem:[%s10394_s28 + $0x2e8] sm:$0xff]  ;;  %v307_v38 = vld [vmem:[%s10394_s28 + $0x2f0] sm:$0xff] }
  0x74   : > { %459 = vmax.xlane.f32.xlu0 %v458_v62  ;;  %v470_v62 = vmax.f32 %v469_v52, %v299_v48  ;;  %v481_v52 = vmax.f32 %v306_v41, %v307_v38  ;;  %v308_v48 = vld [vmem:[%s10394_s28 + $0x2f8] sm:$0xff]  ;;  %v315_v41 = vld [vmem:[%s10394_s28 + $0x330] sm:$0xff] }
  0x75   : > { %v316_v38 = vld [vmem:[%s10394_s28 + $0x338] sm:$0xff] }
  0x78   : > { %463 = vmax.xlane.f32.xlu0 %v462_v21  ;;  %v474_v21 = vmax.f32 %v473_v53, %v302_v12  ;;  %v485_v12 = vmax.f32 %v309_v18, %v310_v47  ;;  %v311_v53 = vld [vmem:[%s10394_s28 + $0x310] sm:$0xff]  ;;  %v318_v18 = vld [vmem:[%s10394_s28 + $0x348] sm:$0xff] }
  0x79   : > { %v319_v47 = vld [vmem:[%s10394_s28 + $0x350] sm:$0xff] }
  0x7c   : > { %467 = vmax.xlane.f32.xlu0 %v466_v19  ;;  %v478_v19 = vmax.f32 %v477_v40, %v305_v29  ;;  %v489_v40 = vmax.f32 %v312_v58, %v313_v25  ;;  %v314_v29 = vld [vmem:[%s10394_s28 + $0x328] sm:$0xff]  ;;  %v321_v58 = vld [vmem:[%s10394_s28 + $0x360] sm:$0xff] }
  0x7d   : > { %v322_v25 = vld [vmem:[%s10394_s28 + $0x368] sm:$0xff] }
  0x80   : > { %471 = vmax.xlane.f32.xlu0 %v470_v62  ;;  %v482_v62 = vmax.f32 %v481_v52, %v308_v48  ;;  %v493_v52 = vmax.f32 %v315_v41, %v316_v38  ;;  %v317_v48 = vld [vmem:[%s10394_s28 + $0x340] sm:$0xff]  ;;  %v324_v41 = vld [vmem:[%s10394_s28 + $0x378] sm:$0xff] }
  0x81   : > { %v325_v38 = vld [vmem:[%s10394_s28 + $0x380] sm:$0xff] }
  0x84   : > { %475 = vmax.xlane.f32.xlu0 %v474_v21  ;;  %v486_v21 = vmax.f32 %v485_v12, %v311_v53  ;;  %v497_v12 = vmax.f32 %v318_v18, %v319_v47  ;;  %v320_v53 = vld [vmem:[%s10394_s28 + $0x358] sm:$0xff]  ;;  %v327_v18 = vld [vmem:[%s10394_s28 + $0x390] sm:$0xff] }
  0x85   : > { %v328_v47 = vld [vmem:[%s10394_s28 + $0x398] sm:$0xff] }
  0x88   : > { %479 = vmax.xlane.f32.xlu0 %v478_v19  ;;  %v490_v19 = vmax.f32 %v489_v40, %v314_v29  ;;  %v501_v40 = vmax.f32 %v321_v58, %v322_v25  ;;  %v323_v29 = vld [vmem:[%s10394_s28 + $0x370] sm:$0xff]  ;;  %v330_v58 = vld [vmem:[%s10394_s28 + $0x3a8] sm:$0xff] }
  0x89   : > { %v331_v25 = vld [vmem:[%s10394_s28 + $0x3b0] sm:$0xff] }
  0x8c   : > { %483 = vmax.xlane.f32.xlu0 %v482_v62  ;;  %v494_v62 = vmax.f32 %v493_v52, %v317_v48  ;;  %v505_v52 = vmax.f32 %v324_v41, %v325_v38  ;;  %v326_v48 = vld [vmem:[%s10394_s28 + $0x388] sm:$0xff]  ;;  %v333_v41 = vld [vmem:[%s10394_s28 + $0x3c0] sm:$0xff] }
  0x8d   : > { %v334_v38 = vld [vmem:[%s10394_s28 + $0x3c8] sm:$0xff] }
  0x90   : > { %487 = vmax.xlane.f32.xlu0 %v486_v21  ;;  %v498_v21 = vmax.f32 %v497_v12, %v320_v53  ;;  %v509_v12 = vmax.f32 %v327_v18, %v328_v47  ;;  %v329_v53 = vld [vmem:[%s10394_s28 + $0x3a0] sm:$0xff]  ;;  %v336_v18 = vld [vmem:[%s10394_s28 + $0x3d8] sm:$0xff] }
  0x91   : > { %v337_v47 = vld [vmem:[%s10394_s28 + $0x3e0] sm:$0xff] }
  0x94   : > { %491 = vmax.xlane.f32.xlu0 %v490_v19  ;;  %v502_v19 = vmax.f32 %v501_v40, %v323_v29  ;;  %v513_v40 = vmax.f32 %v330_v58, %v331_v25  ;;  %v332_v29 = vld [vmem:[%s10394_s28 + $0x3b8] sm:$0xff]  ;;  %v339_v58 = vld [vmem:[%s10394_s28 + $0x3f0] sm:$0xff] }
  0x95   : > { %v340_v25 = vld [vmem:[%s10394_s28 + $0x3f8] sm:$0xff] }
  0x98   : > { %495 = vmax.xlane.f32.xlu0 %v494_v62  ;;  %v506_v62 = vmax.f32 %v505_v52, %v326_v48  ;;  %v517_v52 = vmax.f32 %v333_v41, %v334_v38  ;;  %v335_v48 = vld [vmem:[%s10394_s28 + $0x3d0] sm:$0xff]  ;;  %v342_v41 = vld [vmem:[%s10394_s28 + $0x408] sm:$0xff] }
  0x99   : > { %v343_v38 = vld [vmem:[%s10394_s28 + $0x410] sm:$0xff] }
  0x9a   : > { %v529_v63 = vmax.f32 %v342_v41, %v343_v38  ;;  %v351_v41 = vld [vmem:[%s10394_s28 + $0x450] sm:$0xff]  ;;  %v352_v38 = vld [vmem:[%s10394_s28 + $0x458] sm:$0xff] }
  0x9b   : > { %v541_v61 = vmax.f32 %v351_v41, %v352_v38 }
  0x9c   : > { %499 = vmax.xlane.f32.xlu0 %v498_v21  ;;  %v510_v21 = vmax.f32 %v509_v12, %v329_v53  ;;  %v521_v12 = vmax.f32 %v336_v18, %v337_v47  ;;  %v338_v53 = vld [vmem:[%s10394_s28 + $0x3e8] sm:$0xff] }
  0x9d   : > { %v346_v18 = vld [vmem:[%s10394_s28 + $0x428] sm:$0xff] }
  0xa0   : > { %503 = vmax.xlane.f32.xlu0 %v502_v19  ;;  %v514_v19 = vmax.f32 %v513_v40, %v332_v29  ;;  %v525_v40 = vmax.f32 %v339_v58, %v340_v25  ;;  %v341_v29 = vld [vmem:[%s10394_s28 + $0x400] sm:$0xff] }
  0xa1   : > { %v349_v58 = vld [vmem:[%s10394_s28 + $0x440] sm:$0xff] }
  0xa4   : > { %507 = vmax.xlane.f32.xlu0 %v506_v62  ;;  %v518_v62 = vmax.f32 %v517_v52, %v335_v48  ;;  %v344_v52 = vld [vmem:[%s10394_s28 + $0x418] sm:$0xff]  ;;  %v345_v48 = vld [vmem:[%s10394_s28 + $0x420] sm:$0xff] }
  0xa5   : > { %v530_v47 = vmax.f32 %v529_v63, %v344_v52  ;;  %v1365_v63 = vld [vmem:[%s10772_s29] sm:$0xff] }
  0xa8   : > { %511 = vmax.xlane.f32.xlu0 %v510_v21  ;;  %v522_v21 = vmax.f32 %v521_v12, %v338_v53  ;;  %v347_v12 = vld [vmem:[%s10394_s28 + $0x430] sm:$0xff]  ;;  %v348_v53 = vld [vmem:[%s10394_s28 + $0x438] sm:$0xff] }
  0xac   : > { %515 = vmax.xlane.f32.xlu0 %v514_v19  ;;  %v526_v19 = vmax.f32 %v525_v40, %v341_v29  ;;  %v1366_v40 = vld [vmem:[%s10772_s29 + $0x8] sm:$0xff] }
  0xad   : > { %v350_v29 = vld [vmem:[%s10394_s28 + $0x448] sm:$0xff]  ;;  %v1417_v52 = vand.u32 4294901760, %v1366_v40 }
  0xb0   : > { %519 = vmax.xlane.f32.xlu0 %v518_v62  ;;  %v533_v62 = vmax.f32 %v345_v48, %v346_v18  ;;  %v10781_v18 = vsub.f32 %v1366_v40, %v1417_v52 }
  0xb2   : > { %v534_v25 = vmax.f32 %v533_v62, %v347_v12  ;;  %17283 = vst [vmem:[#allocation40_spill] sm:$0xff] %v10781_v18  ;;  %v10785_v62 = vld [vmem:[%s10772_s29 + $0x10] sm:$0xff]  ;;  %v10788_v12 = vld [vmem:[%s10772_s29 + $0x18] sm:$0xff] }
  0xb3   : > { %17284 = vst [vmem:[#allocation41_spill] sm:$0xff] %v10785_v62  ;;  %17285 = vst [vmem:[#allocation42_spill] sm:$0xff] %v10788_v12  ;;  %v16383_v40 = vand.u32 4294901760, %v10785_v62 }
  0xb4   : > { %523 = vmax.xlane.f32.xlu0 %v522_v21  ;;  %v537_v21 = vmax.f32 %v348_v53, %v349_v58  ;;  %v354_v53 = vld [vmem:[%s10394_s28 + $0x468] sm:$0xff]  ;;  %v355_v58 = vld [vmem:[%s10394_s28 + $0x470] sm:$0xff] }
  0xb5   : > { %v10805_v41 = vsub.f32 %v10785_v62, %v16383_v40  ;;  %v545_v37 = vmax.f32 %v354_v53, %v355_v58 }
  0xb6   : > { %v538_v60 = vmax.f32 %v537_v21, %v350_v29 }
  0xb7   : > { %17286 = vst [vmem:[#allocation43_spill] sm:$0xff] %v10805_v41  ;;  %v16390_v40 = vand.u32 4294901760, %v10805_v41 }
  0xb8   : > { %527 = vmax.xlane.f32.xlu0 %v526_v19  ;;  %v1414_v19 = vand.u32 4294901760, %v1365_v63 }
  0xb9   : > { %v2248_v53 = vsub.f32 %v10805_v41, %v16390_v40 }
  0xba   : > { %v10779_v48 = vsub.f32 %v1365_v63, %v1414_v19  ;;  %v16382_v63 = vand.u32 4294901760, %v10781_v18 }
  0xbc   : > { %531 = vmax.xlane.f32.xlu0 %v530_v47  ;;  %17282 = vst [vmem:[#allocation39_spill] sm:$0xff] %v10779_v48  ;;  %v353_v47 = vld [vmem:[%s10394_s28 + $0x460] sm:$0xff]  ;;  %v16378_v20 = vand.u32 4294901760, %v10779_v48  ;;  %v2241_v29 = vsub.f32 %v10781_v18, %v16382_v63  ;;  %v16387_v18 = vmov 0.0|0.0  }
  0xbd   : > { %v542_v57 = vmax.f32 %v541_v61, %v353_v47  ;;  %8791 = vmatprep.subr.bf16.mxu0 %v16387_v18  ;;  %8743 = vmatprep.subr.bf16.mxu1 %v16387_v18  ;;  %v10847_v18 = vld [vmem:[%s10772_s29 + $0x38] sm:$0xff] }
  0xbe   : > { %v2234_v21 = vsub.f32 %v10779_v48, %v16378_v20  ;;  %v10816_v20 = vld [vmem:[%s10772_s29 + $0x28] sm:$0xff]  ;;  %v356_v48 = vld [vmem:[%s10394_s28 + $0x478] sm:$0xff]  ;;  %v2242_v63 = vand.u32 4294901760, %v2241_v29 }
  0xbf   : > { %17289 = vst [vmem:[#allocation46_spill] sm:$0xff] %v10816_v20  ;;  %v16394_v61 = vand.u32 4294901760, %v10816_v20  ;;  %v546_v58 = vmax.f32 %v545_v37, %v356_v48  ;;  %v2249_v37 = vand.u32 4294901760, %v2248_v53 }
  0xc0   : > { %535 = vmax.xlane.f32.xlu0 %v534_v25  ;;  %v16386_v25 = vand.u32 4294901760, %v10788_v12  ;;  %v2235_v59 = vand.u32 4294901760, %v2234_v21 }
  0xc2   : > { %v10810_v38 = vsub.f32 %v10788_v12, %v16386_v25  ;;  %v10825_v47 = vpack.c.bf16 %v2242_v63, %v2235_v59  ;;  %v10841_v59 = vsub.f32 %v10816_v20, %v16394_v61  ;;  %v10844_v63 = vld [vmem:[%s10772_s29 + $0x30] sm:$0xff]  ;;  %v10857_v12 = vpack.c.bf16 %v1417_v52, %v1414_v19 }
  0xc3   : > { %v17296_v19 = vand.u32 4294901760, %v10844_v63 }
  0xc4   : > { %17287 = vst [vmem:[#allocation44_spill] sm:$0xff] %v10810_v38  ;;  %539 = vmax.xlane.f32.xlu0 %v538_v60  ;;  %v16389_v25 = vand.u32 4294901760, %v10810_v38  ;;  %v16391_v60 = vand.u32 4294901760, %v10813_v32  ;;  %17290 = vst [vmem:[#allocation47_spill] sm:$0xff] %v10825_v47  ;;  %8793 = vmatpush1.bf16.msra.mxu0 %v10825_v47 }
  0xc5   : > { %17292 = vst [vmem:[#allocation49_spill] sm:$0xff] %v10841_v59  ;;  %17294 = vst [vmem:[#allocation50_spill] sm:$0xff] %v10857_v12  ;;  %8745 = vmatpush1.bf16.msra.mxu1 %v10857_v12  ;;  %v10869_v52 = vsub.f32 %v10844_v63, %v17296_v19 }
  0xc6   : > { %v2255_v21 = vsub.f32 %v10810_v38, %v16389_v25  ;;  %v10836_v29 = vsub.f32 %v10813_v32, %v16391_v60  ;;  %v17293_v38 = vmov 0.0|0.0  }
  0xc7   : > { %8794 = vmatprep.subr.bf16.mxu0 %v17293_v38  ;;  %17297 = vst [vmem:[#allocation52_spill] sm:$0xff] %v10869_v52  ;;  %8746 = vmatprep.subr.bf16.mxu1 %v17293_v38 }
  0xc8   : > { %543 = vmax.xlane.f32.xlu0 %v542_v57  ;;  %17291 = vst [vmem:[#allocation48_spill] sm:$0xff] %v10836_v29  ;;  %v2256_v61 = vand.u32 4294901760, %v2255_v21  ;;  %v16402_v20 = vand.u32 4294901760, %v10836_v29 }
  0xc9   : > { %v360_v57 = vpop.xlane.xlu0 %359 }
  0xca   : > { %v549_v25 = vsub.f32 %v10401_v0, %v360_v57  ;;  %v550_v40 = vsub.f32 %v10404_v1, %v360_v57  ;;  %v551_v60 = vsub.f32 %v10407_v2, %v360_v57  ;;  %v10863_v57 = vpack.c.bf16 %v2256_v61, %v2249_v37 }
  0xcb   : > { %v368_v41 = vpop.xlane.xlu1 %367  ;;  %v10886_v19 = vsub.f32 %v10836_v29, %v16402_v20 }
  0xcc   : > { %v693_v47 = vmul.f32 1.442695, %v549_v25  ;;  %v695_v48 = vmul.f32 1.442695, %v550_v40  ;;  %v697_v62 = vmul.f32 1.442695, %v551_v60  ;;  %547 = vmax.xlane.f32.xlu0 %v546_v58  ;;  %v555_v0 = vsub.f32 %v10423_v8, %v368_v41  ;;  %8796 = vmatpush1.bf16.msra.mxu0 %v10863_v57 }
  0xcd   : > { %v364_v1 = vpop.xlane.xlu0 %363  ;;  %v556_v2 = vsub.f32 %v10426_v9, %v368_v41  ;;  %v557_v21 = vsub.f32 %v10429_v10, %v368_v41  ;;  %17295 = vst [vmem:[#allocation51_spill] sm:$0xff] %v10863_v57  ;;  %8797 = vmatprep.subr.bf16.mxu0 %v17293_v38 }
  0xce   : > { %9749 = vpow2.f32 %v693_v47  ;;  %v552_v40 = vsub.f32 %v10412_v4, %v364_v1  ;;  %v553_v25 = vsub.f32 %v10415_v5, %v364_v1  ;;  %v554_v8 = vsub.f32 %v10418_v6, %v364_v1 }
  0xcf   : > { %9751 = vpow2.f32 %v695_v48  ;;  %v705_v9 = vmul.f32 1.442695, %v555_v0  ;;  %v707_v10 = vmul.f32 1.442695, %v556_v2  ;;  %v709_v41 = vmul.f32 1.442695, %v557_v21  ;;  %v372_v60 = vpop.xlane.xlu1 %371 }
  0xd0   : > { %9753 = vpow2.f32 %v697_v62  ;;  %v699_v61 = vmul.f32 1.442695, %v552_v40  ;;  %v701_v58 = vmul.f32 1.442695, %v553_v25  ;;  %v703_v37 = vmul.f32 1.442695, %v554_v8 }
  0xd1   : > { %9755 = vpow2.f32 %v705_v9  ;;  %v376_v4 = vpop.xlane.xlu0 %375  ;;  %v558_v5 = vsub.f32 %v10441_v15, %v372_v60  ;;  %v559_v6 = vsub.f32 %v10444_v16, %v372_v60  ;;  %v560_v47 = vsub.f32 %v10447_v17, %v372_v60 }
  0xd2   : > { %9757 = vpow2.f32 %v699_v61  ;;  %v561_v48 = vsub.f32 %v10435_v13, %v376_v4  ;;  %v562_v0 = vsub.f32 %v10438_v14, %v376_v4  ;;  %v563_v62 = vsub.f32 %v10456_v22, %v376_v4 }
  0xd3   : > { %9759 = vpow2.f32 %v701_v58  ;;  %v711_v1 = vmul.f32 1.442695, %v558_v5  ;;  %v713_v2 = vmul.f32 1.442695, %v559_v6  ;;  %v380_v21 = vpop.xlane.xlu1 %379  ;;  %v715_v25 = vmul.f32 1.442695, %v560_v47 }
  0xd4   : > { %9761 = vpow2.f32 %v703_v37  ;;  %v717_v15 = vmul.f32 1.442695, %v561_v48  ;;  %v719_v16 = vmul.f32 1.442695, %v562_v0  ;;  %v721_v17 = vmul.f32 1.442695, %v563_v62 }
  0xd5   : > { %9763 = vpow2.f32 %v707_v10  ;;  %v384_v40 = vpop.xlane.xlu0 %383  ;;  %v564_v13 = vsub.f32 %v10466_v26, %v380_v21  ;;  %v565_v14 = vsub.f32 %v10469_v27, %v380_v21  ;;  %v566_v22 = vsub.f32 %v10472_v28, %v380_v21 }
  0xd6   : > { %9765 = vpow2.f32 %v709_v41  ;;  %v567_v8 = vsub.f32 %v10459_v23, %v384_v40  ;;  %v568_v9 = vsub.f32 %v10462_v24, %v384_v40  ;;  %v569_v60 = vsub.f32 %v10478_v31, %v384_v40 }
  0xd7   : > { %9767 = vpow2.f32 %v717_v15  ;;  %v10894_v61 = vmul.f32 1.442695, %v564_v13  ;;  %v10896_v58 = vmul.f32 1.442695, %v565_v14  ;;  %v388_v10 = vpop.xlane.xlu1 %387  ;;  %v10900_v28 = vmul.f32 1.442695, %v566_v22 }
  0xd8   : > { %v10898_v37 = vpop.eup %9749  ;;  %9769 = vpow2.f32 %v719_v16  ;;  %v729_v26 = vmul.f32 1.442695, %v567_v8  ;;  %v731_v27 = vmul.f32 1.442695, %v568_v9  ;;  %v570_v24 = vsub.f32 %v10489_v35, %v388_v10 }
  0xd9   : > { %v10902_v41 = vpop.eup %9751  ;;  %9771 = vpow2.f32 %v721_v17  ;;  %v392_v23 = vpop.xlane.xlu0 %391  ;;  %v571_v31 = vsub.f32 %v10492_v36, %v388_v10  ;;  %v572_v4 = vsub.f32 %v10498_v39, %v388_v10  ;;  %v733_v62 = vmul.f32 1.442695, %v569_v60 }
  0xda   : > { %v10907_v5 = vpop.eup %9753  ;;  %9773 = vpow2.f32 %v711_v1  ;;  %v573_v6 = vsub.f32 %v10483_v33, %v392_v23  ;;  %v574_v47 = vsub.f32 %v10486_v34, %v392_v23  ;;  %v575_v48 = vsub.f32 %v10510_v44, %v392_v23 }
  0xdb   : > { %17298 = vst [vmem:[#allocation53_spill] sm:$0xff] %v10907_v5  ;;  %v10912_v0 = vpop.eup %9755  ;;  %9775 = vpow2.f32 %v713_v2  ;;  %v981_v35 = vadd.f32 %v10902_v41, %v10898_v37  ;;  %v10916_v21 = vmul.f32 1.442695, %v570_v24  ;;  %v10920_v15 = vmul.f32 1.442695, %v571_v31  ;;  %v396_v33 = vpop.xlane.xlu1 %395 }
  0xdc   : > { %v10918_v36 = vpop.eup %9757  ;;  %9777 = vpow2.f32 %v715_v25  ;;  %v741_v39 = vmul.f32 1.442695, %v573_v6  ;;  %v743_v1 = vmul.f32 1.442695, %v574_v47  ;;  %v745_v44 = vmul.f32 1.442695, %v575_v48 }
  0xdd   : > { %v10922_v34 = vpop.eup %9759  ;;  %9779 = vpow2.f32 %v729_v26  ;;  %v982_v2 = vadd.f32 %v10907_v5, %v981_v35  ;;  %v400_v16 = vpop.xlane.xlu0 %399  ;;  %v10925_v17 = vmul.f32 1.442695, %v572_v4  ;;  %v576_v9 = vsub.f32 %v10504_v42, %v396_v33 }
  0xde   : > { %v10927_v40 = vpop.eup %9761  ;;  %9781 = vpow2.f32 %v731_v27  ;;  %v579_v13 = vsub.f32 %v10513_v45, %v400_v16  ;;  %v580_v14 = vsub.f32 %v10516_v46, %v400_v16  ;;  %v581_v22 = vsub.f32 %v10534_v54, %v400_v16 }
  0xdf   : > { %17299 = vst [vmem:[#allocation54_spill] sm:$0xff] %v10927_v40  ;;  %v10932_v25 = vpop.eup %9763  ;;  %9783 = vpow2.f32 %v733_v62  ;;  %983 = vadd.xlane.f32.xlu1 %v982_v2  ;;  %v985_v8 = vadd.f32 %v10922_v34, %v10918_v36  ;;  %v577_v60 = vsub.f32 %v10507_v43, %v396_v33  ;;  %v578_v46 = vsub.f32 %v10522_v49, %v396_v33  ;;  %v404_v49 = vpop.xlane.xlu1 %403 }
  0xe0   : > { %v10938_v10 = vpop.eup %9765  ;;  %9785 = vpow2.f32 %v741_v39  ;;  %v753_v26 = vmul.f32 1.442695, %v579_v13  ;;  %v755_v45 = vmul.f32 1.442695, %v580_v14  ;;  %v757_v54 = vmul.f32 1.442695, %v581_v22 }
  0xe1   : > { %17300 = vst [vmem:[#allocation55_spill] sm:$0xff] %v10938_v10  ;;  %v10941_v27 = vpop.eup %9767  ;;  %9787 = vpow2.f32 %v743_v1  ;;  %v986_v23 = vadd.f32 %v10927_v40, %v985_v8  ;;  %v408_v24 = vpop.xlane.xlu0 %407  ;;  %v989_v31 = vadd.f32 %v10932_v25, %v10912_v0  ;;  %v10955_v62 = vmul.f32 1.442695, %v576_v9 }
  0xe2   : > { %v10946_v42 = vpop.eup %9769  ;;  %9789 = vpow2.f32 %v745_v44  ;;  %v585_v43 = vsub.f32 %v10537_v55, %v408_v24  ;;  %v586_v4 = vsub.f32 %v10540_v56, %v408_v24  ;;  %v587_v6 = vsub.f32 %v10558_v3, %v408_v24 }
  0xe3   : > { %v10951_v47 = vpop.eup %9771  ;;  %9791 = vpow2.f32 %v10894_v61  ;;  %987 = vadd.xlane.f32.xlu1 %v986_v23  ;;  %v990_v48 = vadd.f32 %v10938_v10, %v989_v31  ;;  %v10957_v35 = vmul.f32 1.442695, %v577_v60  ;;  %v10962_v1 = vmul.f32 1.442695, %v578_v46  ;;  %v412_v46 = vpop.xlane.xlu1 %411 }
  0xe4   : > { %17301 = vst [vmem:[#allocation56_spill] sm:$0xff] %v10951_v47  ;;  %v10959_v39 = vpop.eup %9773  ;;  %9793 = vpow2.f32 %v10896_v58  ;;  %v765_v55 = vmul.f32 1.442695, %v585_v43  ;;  %v767_v56 = vmul.f32 1.442695, %v586_v4  ;;  %v997_v44 = vadd.f32 %v10946_v42, %v10941_v27 }
  0xe5   : > { %v10964_v3 = vpop.eup %9775  ;;  %9795 = vpow2.f32 %v10900_v28  ;;  %v769_v61 = vmul.f32 1.442695, %v587_v6  ;;  %v416_v33 = vpop.xlane.xlu0 %415  ;;  %v582_v2 = vsub.f32 %v10525_v50, %v404_v49  ;;  %v583_v50 = vsub.f32 %v10528_v51, %v404_v49  ;;  %v17308_v51 = vld [vmem:[#allocation11_spill] sm:$0xff] }
  0xe6   : > { %v10970_v16 = vpop.eup %9777  ;;  %9797 = vpow2.f32 %v753_v26  ;;  %v591_v58 = vsub.f32 %v10561_v7, %v416_v33  ;;  %v592_v13 = vsub.f32 %v10564_v11, %v416_v33  ;;  %v593_v14 = vsub.f32 %v10582_v30, %v416_v33  ;;  %v17305_v26 = vld [vmem:[#allocation5_spill] sm:$0xff] }
  0xe7   : > { %17302 = vst [vmem:[#allocation57_spill] sm:$0xff] %v10970_v16  ;;  %v10975_v22 = vpop.eup %9779  ;;  %9799 = vpow2.f32 %v755_v45  ;;  %991 = vadd.xlane.f32.xlu1 %v990_v48  ;;  %v993_v28 = vadd.f32 %v10964_v3, %v10959_v39  ;;  %v998_v8 = vadd.f32 %v10951_v47, %v997_v44  ;;  %v584_v11 = vsub.f32 %v17305_v26, %v404_v49  ;;  %v17310_v48 = vld [vmem:[#allocation16_spill] sm:$0xff] }
  0xe8   : > { %17303 = vst [vmem:[#allocation58_spill] sm:$0xff] %v10975_v22  ;;  %v10981_v9 = vpop.eup %9781  ;;  %9801 = vpow2.f32 %v757_v54  ;;  %v777_v60 = vmul.f32 1.442695, %v591_v58  ;;  %v779_v7 = vmul.f32 1.442695, %v592_v13  ;;  %v17309_v54 = vld [vmem:[#allocation12_spill] sm:$0xff] }
  0xe9   : > { %17304 = vst [vmem:[#allocation59_spill] sm:$0xff] %v10981_v9  ;;  %v10984_v30 = vpop.eup %9783  ;;  %9803 = vpow2.f32 %v765_v55  ;;  %v781_v45 = vmul.f32 1.442695, %v593_v14  ;;  %v994_v23 = vadd.f32 %v10970_v16, %v993_v28  ;;  %v424_v24 = vpop.xlane.xlu0 %423  ;;  %v10987_v31 = vmul.f32 1.442695, %v582_v2  ;;  %v17312_v2 = vld [vmem:[#allocation6_spill] sm:$0xff] }
  0xea   : > { %17306 = vst [vmem:[#allocation5_spill] sm:$0xff] %v10984_v30  ;;  %v10989_v43 = vpop.eup %9785  ;;  %9805 = vpow2.f32 %v767_v56  ;;  %v597_v4 = vsub.f32 %v17308_v51, %v424_v24  ;;  %v598_v6 = vsub.f32 %v17309_v54, %v424_v24  ;;  %v599_v33 = vsub.f32 %v17310_v48, %v424_v24  ;;  %v17315_v24 = vld [vmem:[#allocation7_spill] sm:$0xff]  ;;  %v17317_v48 = vld [vmem:[#allocation17_spill] sm:$0xff] }
  0xeb   : > { %17307 = vst [vmem:[#allocation60_spill] sm:$0xff] %v10989_v43  ;;  %v10994_v49 = vpop.eup %9787  ;;  %9807 = vpow2.f32 %v769_v61  ;;  %995 = vadd.xlane.f32.xlu1 %v994_v23  ;;  %v10996_v55 = vmul.f32 1.442695, %v583_v50  ;;  %v1005_v44 = vadd.f32 %v10981_v9, %v10975_v22  ;;  %v588_v58 = vsub.f32 %v17312_v2, %v412_v46 }
  0xec   : > { %17311 = vst [vmem:[#allocation11_spill] sm:$0xff] %v10994_v49  ;;  %v11001_v13 = vpop.eup %9789  ;;  %9809 = vpow2.f32 %v10916_v21  ;;  %v789_v56 = vmul.f32 1.442695, %v597_v4  ;;  %v791_v14 = vmul.f32 1.442695, %v598_v6  ;;  %v589_v51 = vsub.f32 %v17315_v24, %v412_v46  ;;  %v17318_v4 = vld [vmem:[#allocation18_spill] sm:$0xff] }
  0xed   : > { %17313 = vst [vmem:[#allocation12_spill] sm:$0xff] %v11001_v13  ;;  %v11004_v28 = vmul.f32 1.442695, %v584_v11  ;;  %v11006_v26 = vpop.eup %9791  ;;  %9811 = vpow2.f32 %v10920_v15  ;;  %v793_v61 = vmul.f32 1.442695, %v599_v33  ;;  %v432_v50 = vpop.xlane.xlu0 %431  ;;  %v1006_v23 = vadd.f32 %v10984_v30, %v1005_v44  ;;  %v17319_v11 = vld [vmem:[#allocation20_spill] sm:$0xff] }
  0xee   : > { %17314 = vst [vmem:[#allocation16_spill] sm:$0xff] %v11006_v26  ;;  %v11011_v54 = vpop.eup %9793  ;;  %9813 = vpow2.f32 %v10925_v17  ;;  %v603_v21 = vsub.f32 %v17317_v48, %v432_v50  ;;  %v604_v6 = vsub.f32 %v17318_v4, %v432_v50  ;;  %v605_v2 = vsub.f32 %v17319_v11, %v432_v50  ;;  %v17321_v33 = vld [vmem:[#allocation8_spill] sm:$0xff]  ;;  %v420_v4 = vpop.xlane.xlu1 %419 }
  0xef   : > { %17316 = vst [vmem:[#allocation6_spill] sm:$0xff] %v11011_v54  ;;  %v11017_v20 = vpop.eup %9795  ;;  %9815 = vpow2.f32 %v777_v60  ;;  %999 = vadd.xlane.f32.xlu1 %v998_v8  ;;  %v1001_v15 = vadd.f32 %v11011_v54, %v11006_v26  ;;  %v590_v44 = vsub.f32 %v17321_v33, %v412_v46  ;;  %v11022_v24 = vmul.f32 1.442695, %v588_v58  ;;  %v17325_v33 = vld [vmem:[#allocation21_spill] sm:$0xff]  ;;  %v17368_v26 = vld [vmem:[#allocation38_spill] sm:$0xff] }
  0xf0   : > { %17320 = vst [vmem:[#allocation7_spill] sm:$0xff] %v11017_v20  ;;  %v11024_v53 = vpop.eup %9797  ;;  %9817 = vpow2.f32 %v779_v7  ;;  %v801_v17 = vmul.f32 1.442695, %v603_v21  ;;  %v803_v48 = vmul.f32 1.442695, %v604_v6  ;;  %v1013_v46 = vadd.f32 %v10994_v49, %v10989_v43  ;;  %v17326_v21 = vld [vmem:[#allocation22_spill] sm:$0xff] }
  0xf1   : > { %17322 = vst [vmem:[#allocation17_spill] sm:$0xff] %v11024_v53  ;;  %v11026_v32 = vmul.f32 1.442695, %v589_v51  ;;  %v11028_v50 = vpop.eup %9799  ;;  %9819 = vpow2.f32 %v781_v45  ;;  %v805_v60 = vmul.f32 1.442695, %v605_v2  ;;  %v1002_v8 = vadd.f32 %v11017_v20, %v1001_v15  ;;  %v440_v11 = vpop.xlane.xlu0 %439  ;;  %v17327_v51 = vld [vmem:[#allocation23_spill] sm:$0xff] }
  0xf2   : > { %17323 = vst [vmem:[#allocation18_spill] sm:$0xff] %v11028_v50  ;;  %v11033_v58 = vpop.eup %9801  ;;  %9821 = vpow2.f32 %v789_v56  ;;  %v609_v7 = vsub.f32 %v17325_v33, %v440_v11  ;;  %v610_v6 = vsub.f32 %v17326_v21, %v440_v11  ;;  %v611_v30 = vsub.f32 %v17327_v51, %v440_v11  ;;  %v17329_v2 = vld [vmem:[#allocation9_spill] sm:$0xff]  ;;  %v17330_v20 = vld [vmem:[#allocation10_spill] sm:$0xff] }
  0xf3   : > { %17324 = vst [vmem:[#allocation20_spill] sm:$0xff] %v11033_v58  ;;  %v11038_v47 = vpop.eup %9803  ;;  %9823 = vpow2.f32 %v791_v14  ;;  %1003 = vadd.xlane.f32.xlu1 %v1002_v8  ;;  %v11040_v45 = vmul.f32 1.442695, %v590_v44  ;;  %v594_v15 = vsub.f32 %v17329_v2, %v420_v4  ;;  %v595_v16 = vsub.f32 %v17330_v20, %v420_v4  ;;  %v17333_v44 = vld [vmem:[#allocation13_spill] sm:$0xff]  ;;  %v428_v2 = vpop.xlane.xlu1 %427 }
  0xf4   : > { %17328 = vst [vmem:[#allocation8_spill] sm:$0xff] %v11038_v47  ;;  %v11044_v10 = vpop.eup %9805  ;;  %9825 = vpow2.f32 %v793_v61  ;;  %v813_v56 = vmul.f32 1.442695, %v609_v7  ;;  %v815_v40 = vmul.f32 1.442695, %v610_v6  ;;  %v11047_v33 = vadd.f32 %v11001_v13, %v1013_v46  ;;  %v17335_v61 = vld [vmem:[#allocation24_spill] sm:$0xff] }
  0xf5   : > { %17331 = vst [vmem:[#allocation21_spill] sm:$0xff] %v11044_v10  ;;  %v11049_v21 = vpop.eup %9807  ;;  %9827 = vpow2.f32 %v10955_v62  ;;  %v817_v14 = vmul.f32 1.442695, %v611_v30  ;;  %v448_v8 = vpop.xlane.xlu0 %447  ;;  %v596_v11 = vsub.f32 %v17333_v44, %v420_v4  ;;  %v11053_v51 = vmul.f32 1.442695, %v594_v15  ;;  %v17336_v6 = vld [vmem:[#allocation25_spill] sm:$0xff] }
  0xf6   : > { %17332 = vst [vmem:[#allocation22_spill] sm:$0xff] %v11049_v21  ;;  %v11055_v20 = vpop.eup %9809  ;;  %9829 = vpow2.f32 %v10957_v35  ;;  %v615_v7 = vsub.f32 %v17335_v61, %v448_v8  ;;  %v616_v46 = vsub.f32 %v17336_v6, %v448_v8  ;;  %v17337_v13 = vld [vmem:[#allocation26_spill] sm:$0xff]  ;;  %v11064_v62 = vmul.f32 1.442695, %v595_v16 }
  0xf7   : > { %17334 = vst [vmem:[#allocation23_spill] sm:$0xff] %v11055_v20  ;;  %v617_v5 = vsub.f32 %v17337_v13, %v448_v8  ;;  %v11061_v12 = vpop.eup %9811  ;;  %9831 = vpow2.f32 %v10962_v1  ;;  %1007 = vadd.xlane.f32.xlu1 %v1006_v23  ;;  %v11066_v30 = vmul.f32 1.442695, %v596_v11  ;;  %v1021_v4 = vadd.f32 %v11028_v50, %v11024_v53  ;;  %v17340_v61 = vld [vmem:[#allocation14_spill] sm:$0xff]  ;;  %v17342_v23 = vld [vmem:[#allocation15_spill] sm:$0xff] }
  0xf8   : > { %17338 = vst [vmem:[#allocation9_spill] sm:$0xff] %v11061_v12  ;;  %v11070_v15 = vpop.eup %9813  ;;  %9833 = vpow2.f32 %v801_v17  ;;  %v825_v35 = vmul.f32 1.442695, %v615_v7  ;;  %v827_v44 = vmul.f32 1.442695, %v616_v46  ;;  %v600_v6 = vsub.f32 %v17340_v61, %v428_v2  ;;  %v17344_v53 = vld [vmem:[#allocation27_spill] sm:$0xff] }
  0xf9   : > { %17339 = vst [vmem:[#allocation10_spill] sm:$0xff] %v11070_v15  ;;  %v11073_v13 = vpop.eup %9815  ;;  %9835 = vpow2.f32 %v803_v48  ;;  %v829_v8 = vmul.f32 1.442695, %v617_v5  ;;  %v1009_v1 = vadd.f32 %v11061_v12, %v11055_v20  ;;  %v452_v16 = vpop.xlane.xlu0 %451  ;;  %v601_v11 = vsub.f32 %v17342_v23, %v428_v2  ;;  %v17345_v17 = vld [vmem:[#allocation28_spill] sm:$0xff]  ;;  %v17346_v46 = vld [vmem:[#allocation29_spill] sm:$0xff]  ;;  %v17348_v20 = vld [vmem:[#allocation19_spill] sm:$0xff] }
  0xfa   : > { %17341 = vst [vmem:[#allocation13_spill] sm:$0xff] %v11073_v13  ;;  %v11078_v43 = vpop.eup %9817  ;;  %9837 = vpow2.f32 %v805_v60  ;;  %v618_v50 = vsub.f32 %v17344_v53, %v452_v16  ;;  %v619_v7 = vsub.f32 %v17345_v17, %v452_v16  ;;  %v620_v49 = vsub.f32 %v17346_v46, %v452_v16  ;;  %v436_v17 = vpop.xlane.xlu1 %435  ;;  %v17354_v46 = vld [vmem:[#allocation32_spill] sm:$0xff] }
  0xfb   : > { %17343 = vst [vmem:[#allocation24_spill] sm:$0xff] %v11078_v43  ;;  %v11083_v61 = vpop.eup %9819  ;;  %9839 = vpow2.f32 %v813_v56  ;;  %v1010_v5 = vadd.f32 %v11070_v15, %v1009_v1  ;;  %v11087_v48 = vadd.f32 %v11033_v58, %v1021_v4  ;;  %v602_v12 = vsub.f32 %v17348_v20, %v428_v2  ;;  %v10134_v15 = vld [vmem:[%s10394_s28 + $0x1d0] sm:$0xff] }
  0xfc   : > { %17347 = vst [vmem:[#allocation25_spill] sm:$0xff] %v11083_v61  ;;  %v11090_v23 = vpop.eup %9821  ;;  %9841 = vpow2.f32 %v815_v40  ;;  %v831_v60 = vmul.f32 1.442695, %v618_v50  ;;  %v833_v22 = vmul.f32 1.442695, %v619_v7  ;;  %v1029_v2 = vadd.f32 %v11044_v10, %v11038_v47  ;;  %v17352_v40 = vld [vmem:[#allocation30_spill] sm:$0xff] }
  0xfd   : > { %17349 = vst [vmem:[#allocation26_spill] sm:$0xff] %v11090_v23  ;;  %v11092_v53 = vmul.f32 1.442695, %v600_v6  ;;  %v11094_v16 = vpop.eup %9823  ;;  %9843 = vpow2.f32 %v817_v14  ;;  %1011 = vadd.xlane.f32.xlu1 %v1010_v5  ;;  %v835_v56 = vmul.f32 1.442695, %v620_v49  ;;  %v456_v1 = vpop.xlane.xlu0 %455  ;;  %v17353_v6 = vld [vmem:[#allocation31_spill] sm:$0xff]  ;;  %v607_v47 = vsub.f32 %v10134_v15, %v436_v17 }
  0xfe   : > { %17350 = vst [vmem:[#allocation14_spill] sm:$0xff] %v11094_v16  ;;  %v11096_v4 = vmul.f32 1.442695, %v601_v11  ;;  %v11100_v20 = vpop.eup %9825  ;;  %9845 = vpow2.f32 %v10987_v31  ;;  %v621_v50 = vsub.f32 %v17352_v40, %v456_v1  ;;  %v622_v7 = vsub.f32 %v17353_v6, %v456_v1  ;;  %v10133_v11 = vld [vmem:[%s10394_s28 + $0x1c8] sm:$0xff] }
  0xff   : > { %17351 = vst [vmem:[#allocation15_spill] sm:$0xff] %v11100_v20  ;;  %v623_v58 = vsub.f32 %v17354_v46, %v456_v1  ;;  %v11106_v14 = vpop.eup %9827  ;;  %9847 = vpow2.f32 %v10996_v55  ;;  %v11109_v49 = vmul.f32 1.442695, %v602_v12  ;;  %v606_v5 = vsub.f32 %v10133_v11, %v436_v17  ;;  %v10135_v46 = vld [vmem:[%s10394_s28 + $0x1d8] sm:$0xff] }
 0x100   : > { %17355 = vst [vmem:[#allocation27_spill] sm:$0xff] %v11106_v14  ;;  %v11113_v10 = vpop.eup %9829  ;;  %9849 = vpow2.f32 %v11004_v28  ;;  %v837_v31 = vmul.f32 1.442695, %v621_v50  ;;  %v11116_v40 = vmul.f32 1.442695, %v622_v7  ;;  %v11119_v1 = vadd.f32 %v11049_v21, %v1029_v2  ;;  %v17359_v50 = vld [vmem:[#allocation33_spill] sm:$0xff] }
 0x101   : > { %17356 = vst [vmem:[#allocation28_spill] sm:$0xff] %v11113_v10  ;;  %v11121_v6 = vpop.eup %9831  ;;  %9851 = vpow2.f32 %v825_v35  ;;  %1015 = vadd.xlane.f32.xlu1 %v11047_v33  ;;  %v11124_v12 = vmul.f32 1.442695, %v623_v58  ;;  %v1017_v55 = vadd.f32 %v11113_v10, %v11106_v14  ;;  %v460_v15 = vpop.xlane.xlu0 %459  ;;  %v608_v11 = vsub.f32 %v10135_v46, %v436_v17  ;;  %v17360_v2 = vld [vmem:[#allocation34_spill] sm:$0xff]  ;;  %v17362_v14 = vld [vmem:[#allocation35_spill] sm:$0xff] }
 0x102   : > { %17357 = vst [vmem:[#allocation29_spill] sm:$0xff] %v11121_v6  ;;  %v11129_v28 = vpop.eup %9833  ;;  %9853 = vpow2.f32 %v827_v44  ;;  %v624_v7 = vsub.f32 %v17359_v50, %v460_v15  ;;  %v625_v21 = vsub.f32 %v17360_v2, %v460_v15  ;;  %v11133_v9 = vmul.f32 1.442695, %v606_v5  ;;  %v444_v35 = vpop.xlane.xlu1 %443 }
 0x103   : > { %17358 = vst [vmem:[#allocation19_spill] sm:$0xff] %v11129_v28  ;;  %v11135_v33 = vpop.eup %9835  ;;  %9855 = vpow2.f32 %v829_v8  ;;  %v1018_v58 = vadd.f32 %v11121_v6, %v1017_v55  ;;  %v626_v10 = vsub.f32 %v17362_v14, %v460_v15  ;;  %v11139_v17 = vmul.f32 1.442695, %v607_v47  ;;  %v10136_v6 = vld [vmem:[%s10394_s28 + $0x1f8] sm:$0xff]  ;;  %v10137_v47 = vld [vmem:[%s10394_s28 + $0x200] sm:$0xff] }
 0x104   : > { %17361 = vst [vmem:[#allocation30_spill] sm:$0xff] %v11135_v33  ;;  %v11141_v46 = vpop.eup %9837  ;;  %9857 = vpow2.f32 %v831_v60  ;;  %v843_v44 = vmul.f32 1.442695, %v624_v7  ;;  %v845_v50 = vmul.f32 1.442695, %v625_v21  ;;  %v1037_v55 = vadd.f32 %v11078_v43, %v11073_v13  ;;  %v17366_v60 = vld [vmem:[#allocation36_spill] sm:$0xff] }
 0x105   : > { %17363 = vst [vmem:[#allocation31_spill] sm:$0xff] %v11141_v46  ;;  %v11143_v2 = vmul.f32 1.442695, %v608_v11  ;;  %v11145_v5 = vpop.eup %9839  ;;  %9859 = vpow2.f32 %v833_v22  ;;  %1019 = vadd.xlane.f32.xlu1 %v1018_v58  ;;  %v464_v8 = vpop.xlane.xlu0 %463  ;;  %v612_v14 = vsub.f32 %v10136_v6, %v444_v35  ;;  %v613_v15 = vsub.f32 %v10137_v47, %v444_v35  ;;  %v17367_v11 = vld [vmem:[#allocation37_spill] sm:$0xff]  ;;  %v10138_v6 = vld [vmem:[%s10394_s28 + $0x208] sm:$0xff] }
 0x106   : > { %17364 = vst [vmem:[#allocation32_spill] sm:$0xff] %v11145_v5  ;;  %v11151_v57 = vpop.eup %9841  ;;  %9861 = vpow2.f32 %v835_v56  ;;  %v627_v21 = vsub.f32 %v17366_v60, %v464_v8  ;;  %v628_v7 = vsub.f32 %v17367_v11, %v464_v8  ;;  %v629_v54 = vsub.f32 %v17368_v26, %v464_v8 }
 0x107   : > { %17365 = vst [vmem:[#allocation33_spill] sm:$0xff] %v11151_v57  ;;  %v11156_v22 = vpop.eup %9843  ;;  %9863 = vpow2.f32 %v11022_v24  ;;  %v847_v58 = vmul.f32 1.442695, %v626_v10  ;;  %v11160_v13 = vadd.f32 %v11083_v61, %v1037_v55  ;;  %v614_v43 = vsub.f32 %v10138_v6, %v444_v35 }
 0x108   : > { %17369 = vst [vmem:[#allocation34_spill] sm:$0xff] %v11156_v22  ;;  %v11163_v47 = vpop.eup %9845  ;;  %9865 = vpow2.f32 %v11026_v32  ;;  %v11166_v56 = vmul.f32 1.442695, %v627_v21  ;;  %v11168_v60 = vmul.f32 1.442695, %v628_v7  ;;  %v1045_v32 = vadd.f32 %v11094_v16, %v11090_v23  ;;  %v10139_v21 = vld [vmem:[%s10394_s28 + $0x288] sm:$0xff] }
 0x109   : > { %17370 = vst [vmem:[#allocation35_spill] sm:$0xff] %v11163_v47  ;;  %v11170_v26 = vmul.f32 1.442695, %v612_v14  ;;  %v11172_v8 = vpop.eup %9847  ;;  %9867 = vpow2.f32 %v11040_v45  ;;  %1023 = vadd.xlane.f32.xlu1 %v11087_v48  ;;  %v11176_v10 = vmul.f32 1.442695, %v629_v54  ;;  %v468_v24 = vpop.xlane.xlu0 %467  ;;  %v10140_v7 = vld [vmem:[%s10394_s28 + $0x290] sm:$0xff]  ;;  %v1053_v61 = vadd.f32 %v11135_v33, %v11129_v28 }
 0x10a   : > { %17371 = vst [vmem:[#allocation36_spill] sm:$0xff] %v11172_v8  ;;  %v11178_v35 = vmul.f32 1.442695, %v613_v15  ;;  %v11182_v55 = vpop.eup %9849  ;;  %9869 = vpow2.f32 %v837_v31  ;;  %v1025_v14 = vadd.f32 %v11172_v8, %v11163_v47  ;;  %v630_v11 = vsub.f32 %v10139_v21, %v468_v24  ;;  %v10141_v54 = vld [vmem:[%s10394_s28 + $0x298] sm:$0xff] }
 0x10b   : > { %17372 = vst [vmem:[#allocation37_spill] sm:$0xff] %v11182_v55  ;;  %v631_v45 = vsub.f32 %v10140_v7, %v468_v24  ;;  %v11188_v6 = vpop.eup %9851  ;;  %9871 = vpow2.f32 %v11116_v40  ;;  %v632_v48 = vsub.f32 %v10141_v54, %v468_v24  ;;  %v11192_v15 = vmul.f32 1.442695, %v614_v43 }
 0x10c   : > { %17373 = vst [vmem:[#allocation38_spill] sm:$0xff] %v11188_v6  ;;  %v11196_v31 = vpop.eup %9853  ;;  %9873 = vpow2.f32 %v11124_v12  ;;  %v1026_v21 = vadd.f32 %v11182_v55, %v1025_v14  ;;  %v855_v7 = vmul.f32 1.442695, %v630_v11  ;;  %v11201_v23 = vadd.f32 %v11100_v20, %v1045_v32  ;;  %v10142_v12 = vld [vmem:[%s10394_s28 + $0x2a0] sm:$0xff]  ;;  %v10143_v11 = vld [vmem:[%s10394_s28 + $0x2a8] sm:$0xff]  ;;  %v10144_v32 = vld [vmem:[%s10394_s28 + $0x2b0] sm:$0xff] }
 0x10d   : > { %17374 = vst [vmem:[#allocation61_spill] sm:$0xff] %v11196_v31  ;;  %v11203_v40 = vpop.eup %9855  ;;  %9875 = vpow2.f32 %v843_v44  ;;  %v857_v43 = vmul.f32 1.442695, %v631_v45  ;;  %v11205_v24 = vmul.f32 1.442695, %v632_v48  ;;  %v472_v54 = vpop.xlane.xlu0 %471  ;;  %v1061_v28 = vadd.f32 %v11151_v57, %v11145_v5 }
 0x10e   : > { %17375 = vst [vmem:[#allocation62_spill] sm:$0xff] %v11203_v40  ;;  %v11209_v33 = vpop.eup %9857  ;;  %9877 = vpow2.f32 %v845_v50  ;;  %1027 = vadd.xlane.f32.xlu1 %v1026_v21  ;;  %v633_v14 = vsub.f32 %v10142_v12, %v472_v54  ;;  %v634_v55 = vsub.f32 %v10143_v11, %v472_v54  ;;  %v635_v20 = vsub.f32 %v10144_v32, %v472_v54 }
 0x10f   : > { %17376 = vst [vmem:[#allocation63_spill] sm:$0xff] %v11209_v33  ;;  %v11214_v16 = vpop.eup %9859  ;;  %9879 = vpow2.f32 %v847_v58  ;;  %v11217_v44 = vadd.f32 %v11141_v46, %v1053_v61  ;;  %v11220_v45 = vadd.f32 %v11156_v22, %v1061_v28  ;;  %v1069_v50 = vadd.f32 %v11196_v31, %v11188_v6  ;;  %v10149_v6 = vld [vmem:[%s10394_s28 + $0x2d8] sm:$0xff] }
 0x110   : > { %17377 = vst [vmem:[#allocation64_spill] sm:$0xff] %v11214_v16  ;;  %v11224_v48 = vpop.eup %9861  ;;  %9881 = vpow2.f32 %v11053_v51  ;;  %v11227_v21 = vmul.f32 1.442695, %v633_v14  ;;  %v11229_v54 = vmul.f32 1.442695, %v634_v55  ;;  %v2263_v58 = vand.u32 4294901760, %v10886_v19 }
 0x111   : > { %17378 = vst [vmem:[#allocation65_spill] sm:$0xff] %v11224_v48  ;;  %v11232_v61 = vpop.eup %9863  ;;  %9883 = vpow2.f32 %v11064_v62  ;;  %v11235_v28 = vmul.f32 1.442695, %v635_v20  ;;  %v476_v12 = vpop.xlane.xlu0 %475  ;;  %v1073_v11 = vadd.f32 %v11214_v16, %v11209_v33  ;;  %v17380_v32 = vand.u32 4294901760, %v10841_v59  ;;  %v10145_v19 = vld [vmem:[%s10394_s28 + $0x2b8] sm:$0xff]  ;;  %v10146_v62 = vld [vmem:[%s10394_s28 + $0x2c0] sm:$0xff] }
 0x112   : > { %17379 = vst [vmem:[#allocation66_spill] sm:$0xff] %v11232_v61  ;;  %v11242_v14 = vpop.eup %9865  ;;  %9885 = vpow2.f32 %v11066_v30  ;;  %1031 = vadd.xlane.f32.xlu1 %v11119_v1  ;;  %v636_v55 = vsub.f32 %v10145_v19, %v476_v12  ;;  %v637_v22 = vsub.f32 %v10146_v62, %v476_v12  ;;  %v11249_v20 = vadd.f32 %v11203_v40, %v1069_v50  ;;  %v10147_v33 = vld [vmem:[%s10394_s28 + $0x2c8] sm:$0xff] }
 0x113   : > { %v2269_v51 = vsub.f32 %v10841_v59, %v17380_v32  ;;  %17381 = vst [vmem:[#allocation67_spill] sm:$0xff] %v11242_v14  ;;  %v11251_v46 = vpop.eup %9867  ;;  %9887 = vpow2.f32 %v11166_v56  ;;  %v1033_v32 = vadd.f32 %v11242_v14, %v11232_v61  ;;  %v638_v16 = vsub.f32 %v10147_v33, %v476_v12 }
 0x114   : > { %17382 = vst [vmem:[#allocation68_spill] sm:$0xff] %v11251_v46  ;;  %v11257_v1 = vpop.eup %9869  ;;  %9889 = vpow2.f32 %v11168_v60  ;;  %v11260_v19 = vmul.f32 1.442695, %v636_v55  ;;  %v11262_v50 = vmul.f32 1.442695, %v637_v22  ;;  %v11265_v62 = vadd.f32 %v11224_v48, %v1073_v11  ;;  %v10148_v55 = vld [vmem:[%s10394_s28 + $0x2d0] sm:$0xff] }
 0x115   : > { %v2270_v30 = vand.u32 4294901760, %v2269_v51  ;;  %17383 = vst [vmem:[#allocation69_spill] sm:$0xff] %v11257_v1  ;;  %v11267_v56 = vpop.eup %9871  ;;  %9891 = vpow2.f32 %v11176_v10  ;;  %v1034_v33 = vadd.f32 %v11251_v46, %v1033_v32  ;;  %v480_v12 = vpop.xlane.xlu0 %479  ;;  %v16450_v40 = vand.u32 4294901760, %v10869_v52  ;;  %v10150_v11 = vld [vmem:[%s10394_s28 + $0x2e0] sm:$0xff] }
 0x116   : > { %17384 = vst [vmem:[#allocation70_spill] sm:$0xff] %v11267_v56  ;;  %v11274_v60 = vpop.eup %9873  ;;  %9893 = vpow2.f32 %v855_v7  ;;  %v639_v22 = vsub.f32 %v10148_v55, %v480_v12  ;;  %v640_v31 = vsub.f32 %v10149_v6, %v480_v12  ;;  %v641_v48 = vsub.f32 %v10150_v11, %v480_v12 }
 0x117   : > { %v11271_v51 = vpack.c.bf16 %v2270_v30, %v2263_v58  ;;  %17385 = vst [vmem:[#allocation71_spill] sm:$0xff] %v11274_v60  ;;  %v11279_v5 = vpop.eup %9875  ;;  %9895 = vpow2.f32 %v857_v43  ;;  %1035 = vadd.xlane.f32.xlu1 %v1034_v33  ;;  %v1077_v10 = vadd.f32 %v11267_v56, %v11257_v1  ;;  %v11287_v58 = vsub.f32 %v10869_v52, %v16450_v40  ;;  %v10152_v40 = vld [vmem:[%s10394_s28 + $0x2f0] sm:$0xff]  ;;  %v10153_v1 = vld [vmem:[%s10394_s28 + $0x2f8] sm:$0xff] }
 0x118   : > { %17386 = vst [vmem:[#allocation72_spill] sm:$0xff] %v11279_v5  ;;  %v17387_v7 = vand.u32 4294901760, %v10847_v18  ;;  %v11294_v32 = vpop.eup %9877  ;;  %9897 = vpow2.f32 %v11205_v24  ;;  %v871_v43 = vmul.f32 1.442695, %v638_v16  ;;  %v11297_v30 = vmul.f32 1.442695, %v639_v22 }
 0x119   : > { %8799 = vmatpush1.bf16.msra.mxu0 %v11271_v51  ;;  %17389 = vst [vmem:[#allocation74_spill] sm:$0xff] %v11294_v32  ;;  %v11299_v33 = vmul.f32 1.442695, %v640_v31  ;;  %v11302_v12 = vpop.eup %9879  ;;  %9899 = vpow2.f32 %v11092_v53  ;;  %v11305_v55 = vmul.f32 1.442695, %v641_v48  ;;  %v484_v11 = vpop.xlane.xlu0 %483  ;;  %v1081_v16 = vadd.f32 %v11294_v32, %v11279_v5  ;;  %v10151_v31 = vld [vmem:[%s10394_s28 + $0x2e8] sm:$0xff] }
 0x11a   : > { %v11292_v6 = vsub.f32 %v10847_v18, %v17387_v7  ;;  %8800 = vmatprep.subr.bf16.mxu0 %v17293_v38  ;;  %17390 = vst [vmem:[#allocation75_spill] sm:$0xff] %v11302_v12  ;;  %v11308_v7 = vadd.f32 %v11274_v60, %v1077_v10  ;;  %v11312_v24 = vpop.eup %9881  ;;  %9901 = vpow2.f32 %v11096_v4  ;;  %v642_v22 = vsub.f32 %v10151_v31, %v484_v11  ;;  %v17393_v5 = vld [vmem:[#allocation41_spill] sm:$0xff]  ;;  %v17395_v32 = vld [vmem:[#allocation42_spill] sm:$0xff] }
 0x11b   : > { %17391 = vst [vmem:[#allocation76_spill] sm:$0xff] %v11312_v24  ;;  %v643_v46 = vsub.f32 %v10152_v40, %v484_v11  ;;  %v644_v53 = vsub.f32 %v10153_v1, %v484_v11  ;;  %v11318_v48 = vpop.eup %9883  ;;  %9903 = vpow2.f32 %v11109_v49  ;;  %1039 = vadd.xlane.f32.xlu1 %v11160_v13  ;;  %v2277_v10 = vand.u32 4294901760, %v11287_v58  ;;  %v11341_v58 = vld [vmem:[%s10772_s29 + $0x40] sm:$0xff] }
 0x11c   : > { %17388 = vst [vmem:[#allocation73_spill] sm:$0xff] %v11292_v6  ;;  %17392 = vst [vmem:[#allocation77_spill] sm:$0xff] %v11318_v48  ;;  %v16459_v60 = vand.u32 4294901760, %v11292_v6  ;;  %v17394_v4 = vand.u32 4294901760, %v17393_v5  ;;  %v17396_v31 = vand.u32 4294901760, %v17395_v32  ;;  %v11330_v40 = vpop.eup %9885  ;;  %9905 = vpow2.f32 %v11227_v21 }
 0x11d   : > { %17398 = vst [vmem:[#allocation42_spill] sm:$0xff] %v11330_v40  ;;  %v1041_v49 = vadd.f32 %v11318_v48, %v11312_v24  ;;  %v11335_v13 = vmul.f32 1.442695, %v642_v22  ;;  %v11338_v1 = vadd.f32 %v11302_v12, %v1081_v16  ;;  %v11343_v5 = vpop.eup %9887  ;;  %9907 = vpow2.f32 %v11229_v54  ;;  %v488_v21 = vpop.xlane.xlu0 %487  ;;  %v10159_v48 = vld [vmem:[%s10394_s28 + $0x328] sm:$0xff] }
 0x11e   : > { %v11328_v56 = vpack.c.bf16 %v17396_v31, %v17394_v4  ;;  %17399 = vst [vmem:[#allocation78_spill] sm:$0xff] %v11343_v5  ;;  %v11346_v32 = vmul.f32 1.442695, %v643_v46  ;;  %v11348_v11 = vmul.f32 1.442695, %v644_v53  ;;  %v2283_v22 = vsub.f32 %v11292_v6, %v16459_v60  ;;  %v11355_v4 = vld [vmem:[%s10772_s29 + $0x48] sm:$0xff]  ;;  %v11357_v16 = vpop.eup %9889 }
 0x11f   : > { %17400 = vst [vmem:[#allocation79_spill] sm:$0xff] %v11357_v16  ;;  %9909 = vpow2.f32 %v11235_v28  ;;  %v1042_v54 = vadd.f32 %v11330_v40, %v1041_v49  ;;  %v10154_v46 = vld [vmem:[%s10394_s28 + $0x300] sm:$0xff]  ;;  %v10155_v53 = vld [vmem:[%s10394_s28 + $0x308] sm:$0xff]  ;;  %v11364_v57 = vpop.eup %9891  ;;  %v1085_v60 = vadd.f32 %v11357_v16, %v11343_v5  ;;  %v10156_v49 = vld [vmem:[%s10394_s28 + $0x310] sm:$0xff] }
 0x120   : > { %17397 = vst [vmem:[#allocation41_spill] sm:$0xff] %v11328_v56  ;;  %8748 = vmatpush1.bf16.msra.mxu1 %v11328_v56  ;;  %v645_v31 = vsub.f32 %v10154_v46, %v488_v21  ;;  %v646_v12 = vsub.f32 %v10155_v53, %v488_v21  ;;  %17401 = vst [vmem:[#allocation80_spill] sm:$0xff] %v11364_v57  ;;  %9911 = vpow2.f32 %v11260_v19  ;;  %v2284_v56 = vand.u32 4294901760, %v2283_v22  ;;  %v11370_v28 = vpop.eup %9893 }
 0x121   : > { %8749 = vmatprep.subr.bf16.mxu1 %v17293_v38  ;;  %17402 = vst [vmem:[#allocation81_spill] sm:$0xff] %v11370_v28  ;;  %9913 = vpow2.f32 %v11262_v50  ;;  %1043 = vadd.xlane.f32.xlu1 %v1042_v54  ;;  %v647_v46 = vsub.f32 %v10156_v49, %v488_v21  ;;  %v11377_v40 = vpop.eup %9895  ;;  %v1086_v22 = vadd.f32 %v11364_v57, %v1085_v60  ;;  %v492_v5 = vpop.xlane.xlu0 %491  ;;  %v10157_v54 = vld [vmem:[%s10394_s28 + $0x318] sm:$0xff] }
 0x122   : > { %v11374_v53 = vmul.f32 1.442695, %v645_v31  ;;  %17403 = vst [vmem:[#allocation82_spill] sm:$0xff] %v11377_v40  ;;  %9915 = vpow2.f32 %v871_v43  ;;  %v11380_v24 = vmul.f32 1.442695, %v646_v12  ;;  %v11382_v16 = vpack.c.bf16 %v2284_v56, %v2277_v10  ;;  %v11384_v50 = vpop.eup %9897  ;;  %v10158_v31 = vld [vmem:[%s10394_s28 + $0x320] sm:$0xff] }
 0x123   : > { %17404 = vst [vmem:[#allocation83_spill] sm:$0xff] %v11384_v50  ;;  %9917 = vpow2.f32 %v11133_v9  ;;  %v648_v21 = vsub.f32 %v10157_v54, %v492_v5  ;;  %v649_v49 = vsub.f32 %v10158_v31, %v492_v5  ;;  %v650_v19 = vsub.f32 %v10159_v48, %v492_v5  ;;  %v11390_v61 = vpop.eup %9899  ;;  %1087 = vadd.xlane.f32.xlu0 %v1086_v22 }
 0x124   : > { %17405 = vst [vmem:[#allocation84_spill] sm:$0xff] %v11390_v61  ;;  %9919 = vpow2.f32 %v11139_v17  ;;  %v1089_v60 = vadd.f32 %v11377_v40, %v11370_v28  ;;  %8802 = vmatpush1.bf16.msra.mxu0 %v11382_v16  ;;  %v17406_v56 = vand.u32 4294901760, %v11341_v58  ;;  %v17408_v43 = vand.u32 4294901760, %v11355_v4  ;;  %v11406_v48 = vpop.eup %9901 }
 0x125   : > { %17410 = vst [vmem:[#allocation87_spill] sm:$0xff] %v11406_v48  ;;  %9921 = vpow2.f32 %v11143_v2  ;;  %1047 = vadd.xlane.f32.xlu1 %v11201_v23  ;;  %v11410_v17 = vmul.f32 1.442695, %v647_v46  ;;  %v11412_v10 = vmul.f32 1.442695, %v648_v21  ;;  %8803 = vmatprep.subr.bf16.mxu0 %v17293_v38  ;;  %v11417_v22 = vpop.eup %9903  ;;  %v1049_v54 = vadd.f32 %v11406_v48, %v11390_v61  ;;  %v496_v2 = vpop.xlane.xlu0 %495  ;;  %v10160_v21 = vld [vmem:[%s10394_s28 + $0x330] sm:$0xff] }
 0x126   : > { %v11399_v9 = vsub.f32 %v11341_v58, %v17406_v56  ;;  %v11404_v12 = vsub.f32 %v11355_v4, %v17408_v43  ;;  %v11414_v5 = vmul.f32 1.442695, %v649_v49  ;;  %17411 = vst [vmem:[#allocation88_spill] sm:$0xff] %v11417_v22  ;;  %9923 = vpow2.f32 %v11297_v30  ;;  %v11425_v46 = vpop.eup %9905  ;;  %v10161_v56 = vld [vmem:[%s10394_s28 + $0x338] sm:$0xff] }
 0x127   : > { %v11422_v31 = vmul.f32 1.442695, %v650_v19  ;;  %17412 = vst [vmem:[#allocation89_spill] sm:$0xff] %v11425_v46  ;;  %9925 = vpow2.f32 %v11299_v33  ;;  %v651_v49 = vsub.f32 %v10160_v21, %v496_v2  ;;  %v652_v43 = vsub.f32 %v10161_v56, %v496_v2  ;;  %v11433_v30 = vpop.eup %9907  ;;  %v10162_v21 = vld [vmem:[%s10394_s28 + $0x340] sm:$0xff] }
 0x128   : > { %17407 = vst [vmem:[#allocation85_spill] sm:$0xff] %v11399_v9  ;;  %17409 = vst [vmem:[#allocation86_spill] sm:$0xff] %v11404_v12  ;;  %v16471_v23 = vand.u32 4294901760, %v11399_v9  ;;  %v11431_v57 = vadd.f32 %v11384_v50, %v1089_v60  ;;  %9927 = vpow2.f32 %v11305_v55  ;;  %v1050_v19 = vadd.f32 %v11417_v22, %v1049_v54 }
 0x129   : > { %17413 = vst [vmem:[#allocation90_spill] sm:$0xff] %v11433_v30  ;;  %v11441_v33 = vpop.eup %9909  ;;  %9929 = vpow2.f32 %v11335_v13  ;;  %v1093_v60 = vadd.f32 %v11433_v30, %v11425_v46  ;;  %v653_v56 = vsub.f32 %v10162_v21, %v496_v2  ;;  %v11447_v55 = vmul.f32 1.442695, %v651_v49  ;;  %v500_v40 = vpop.xlane.xlu0 %499  ;;  %v10163_v49 = vld [vmem:[%s10394_s28 + $0x348] sm:$0xff] }
 0x12a   : > { %v2290_v28 = vsub.f32 %v11399_v9, %v16471_v23  ;;  %17414 = vst [vmem:[#allocation91_spill] sm:$0xff] %v11441_v33  ;;  %v11449_v54 = vpop.eup %9911  ;;  %9931 = vpow2.f32 %v11346_v32  ;;  %1051 = vadd.xlane.f32.xlu1 %v1050_v19  ;;  %v11452_v23 = vmul.f32 1.442695, %v652_v43  ;;  %v17416_v13 = vand.u32 4294901760, %v11404_v12  ;;  %v10164_v32 = vld [vmem:[%s10394_s28 + $0x350] sm:$0xff] }
 0x12b   : > { %17415 = vst [vmem:[#allocation92_spill] sm:$0xff] %v11449_v54  ;;  %v11457_v46 = vpop.eup %9913  ;;  %9933 = vpow2.f32 %v11348_v11  ;;  %v1094_v2 = vadd.f32 %v11441_v33, %v1093_v60  ;;  %v654_v21 = vsub.f32 %v10163_v49, %v500_v40  ;;  %v655_v19 = vsub.f32 %v10164_v32, %v500_v40  ;;  %v17420_v49 = vld [vmem:[#allocation45_spill] sm:$0xff]  ;;  %v17422_v33 = vld [vmem:[#allocation46_spill] sm:$0xff] }
 0x12c   : > { %v2291_v50 = vand.u32 4294901760, %v2290_v28  ;;  %v2297_v22 = vsub.f32 %v11404_v12, %v17416_v13  ;;  %17417 = vst [vmem:[#allocation93_spill] sm:$0xff] %v11457_v46  ;;  %v11463_v43 = vpop.eup %9915  ;;  %9935 = vpow2.f32 %v11170_v26  ;;  %v10165_v28 = vld [vmem:[%s10394_s28 + $0x358] sm:$0xff]  ;;  %v1097_v13 = vadd.f32 %v11457_v46, %v11449_v54 }
 0x12d   : > { %17418 = vst [vmem:[#allocation94_spill] sm:$0xff] %v11463_v43  ;;  %v656_v30 = vsub.f32 %v10165_v28, %v500_v40  ;;  %v11469_v48 = vpop.eup %9917  ;;  %9937 = vpow2.f32 %v11178_v35  ;;  %1095 = vadd.xlane.f32.xlu0 %v1094_v2  ;;  %v11472_v11 = vmul.f32 1.442695, %v653_v56  ;;  %v11474_v60 = vmul.f32 1.442695, %v654_v21  ;;  %v11483_v28 = vld [vmem:[%s10772_s29 + $0x50] sm:$0xff]  ;;  %v504_v2 = vpop.xlane.xlu0 %503 }
 0x12e   : > { %v2298_v61 = vand.u32 4294901760, %v2297_v22  ;;  %17419 = vst [vmem:[#allocation95_spill] sm:$0xff] %v11469_v48  ;;  %v17421_v32 = vand.u32 4294901760, %v17420_v49  ;;  %v17423_v26 = vand.u32 4294901760, %v17422_v33  ;;  %v11486_v22 = vld [vmem:[%s10772_s29 + $0x58] sm:$0xff]  ;;  %v11488_v54 = vpop.eup %9919  ;;  %9939 = vpow2.f32 %v11192_v15  ;;  %1055 = vadd.xlane.f32.xlu1 %v11217_v44  ;;  %v10167_v15 = vld [vmem:[%s10394_s28 + $0x368] sm:$0xff] }
 0x12f   : > { %17425 = vst [vmem:[#allocation46_spill] sm:$0xff] %v11488_v54  ;;  %v11492_v35 = vmul.f32 1.442695, %v655_v19  ;;  %v11494_v56 = vmul.f32 1.442695, %v656_v30  ;;  %v11498_v33 = vpop.eup %9921  ;;  %9941 = vpow2.f32 %v11374_v53  ;;  %v1057_v49 = vadd.f32 %v11488_v54, %v11469_v48 }
 0x130   : > { %v11480_v40 = vpack.c.bf16 %v17423_v26, %v17421_v32  ;;  %v11496_v21 = vpack.c.bf16 %v2298_v61, %v2291_v50  ;;  %17427 = vst [vmem:[#allocation97_spill] sm:$0xff] %v11498_v33  ;;  %v10166_v32 = vld [vmem:[%s10394_s28 + $0x360] sm:$0xff]  ;;  %v658_v46 = vsub.f32 %v10167_v15, %v504_v2  ;;  %v11506_v44 = vpop.eup %9923  ;;  %9943 = vpow2.f32 %v11380_v24  ;;  %v10168_v24 = vld [vmem:[%s10394_s28 + $0x370] sm:$0xff] }
 0x131   : > { %v657_v26 = vsub.f32 %v10166_v32, %v504_v2  ;;  %17428 = vst [vmem:[#allocation98_spill] sm:$0xff] %v11506_v44  ;;  %v11510_v61 = vadd.f32 %v11463_v43, %v1097_v13  ;;  %v11516_v30 = vpop.eup %9925  ;;  %9945 = vpow2.f32 %v11410_v17  ;;  %v1058_v19 = vadd.f32 %v11498_v33, %v1057_v49  ;;  %v508_v43 = vpop.xlane.xlu0 %507 }
 0x132   : > { %17424 = vst [vmem:[#allocation45_spill] sm:$0xff] %v11480_v40  ;;  %17426 = vst [vmem:[#allocation96_spill] sm:$0xff] %v11496_v21  ;;  %8751 = vmatpush1.bf16.msra.mxu1 %v11480_v40  ;;  %8805 = vmatpush1.bf16.msra.mxu0 %v11496_v21  ;;  %v659_v32 = vsub.f32 %v10168_v24, %v504_v2  ;;  %v11522_v15 = vpop.eup %9927  ;;  %9947 = vpow2.f32 %v11412_v10  ;;  %v1101_v50 = vadd.f32 %v11516_v30, %v11506_v44  ;;  %v10169_v2 = vld [vmem:[%s10394_s28 + $0x378] sm:$0xff]  ;;  %v10170_v24 = vld [vmem:[%s10394_s28 + $0x380] sm:$0xff] }
 0x133   : > { %8752 = vmatprep.subr.bf16.mxu1 %v17293_v38  ;;  %17429 = vst [vmem:[#allocation99_spill] sm:$0xff] %v11516_v30  ;;  %v909_v13 = vmul.f32 1.442695, %v657_v26  ;;  %8806 = vmatprep.subr.bf16.mxu0 %v17293_v38  ;;  %17430 = vst [vmem:[#allocation100_spill] sm:$0xff] %v11522_v15  ;;  %v911_v53 = vmul.f32 1.442695, %v658_v46  ;;  %v11532_v33 = vpop.eup %9929  ;;  %9949 = vpow2.f32 %v11414_v5  ;;  %v660_v26 = vsub.f32 %v10169_v2, %v508_v43 }
 0x134   : > { %v17431_v17 = vand.u32 4294901760, %v11483_v28  ;;  %17433 = vst [vmem:[#allocation102_spill] sm:$0xff] %v11532_v33  ;;  %1059 = vadd.xlane.f32.xlu1 %v1058_v19  ;;  %v661_v40 = vsub.f32 %v10170_v24, %v508_v43  ;;  %v10171_v10 = vld [vmem:[%s10394_s28 + $0x388] sm:$0xff]  ;;  %v11538_v54 = vpop.eup %9931  ;;  %9951 = vpow2.f32 %v11422_v31  ;;  %v1102_v46 = vadd.f32 %v11522_v15, %v1101_v50 }
 0x135   : > { %v662_v48 = vsub.f32 %v10171_v10, %v508_v43  ;;  %17434 = vst [vmem:[#allocation103_spill] sm:$0xff] %v11538_v54  ;;  %v17435_v44 = vand.u32 4294901760, %v11486_v22  ;;  %v11548_v5 = vpop.eup %9933  ;;  %9953 = vpow2.f32 %v11447_v55  ;;  %v913_v19 = vmul.f32 1.442695, %v659_v32  ;;  %v512_v50 = vpop.xlane.xlu0 %511  ;;  %v10173_v10 = vld [vmem:[%s10394_s28 + $0x398] sm:$0xff]  ;;  %v10174_v55 = vld [vmem:[%s10394_s28 + $0x3a0] sm:$0xff] }
 0x136   : > { %v11530_v49 = vsub.f32 %v11483_v28, %v17431_v17  ;;  %17437 = vst [vmem:[#allocation105_spill] sm:$0xff] %v11548_v5  ;;  %v915_v43 = vmul.f32 1.442695, %v660_v26  ;;  %v11551_v2 = vmul.f32 1.442695, %v661_v40  ;;  %v11553_v31 = vpop.eup %9935  ;;  %9955 = vpow2.f32 %v11452_v23  ;;  %1103 = vadd.xlane.f32.xlu0 %v1102_v46  ;;  %v10172_v23 = vld [vmem:[%s10394_s28 + $0x390] sm:$0xff] }
 0x137   : > { %v11546_v30 = vsub.f32 %v11486_v22, %v17435_v44  ;;  %17438 = vst [vmem:[#allocation106_spill] sm:$0xff] %v11553_v31  ;;  %v1105_v44 = vadd.f32 %v11538_v54, %v11532_v33  ;;  %v11562_v32 = vpop.eup %9937  ;;  %9957 = vpow2.f32 %v11472_v11  ;;  %v919_v40 = vmul.f32 1.442695, %v662_v48 }
 0x138   : > { %17432 = vst [vmem:[#allocation101_spill] sm:$0xff] %v11530_v49  ;;  %v16490_v17 = vand.u32 4294901760, %v11530_v49  ;;  %17439 = vst [vmem:[#allocation107_spill] sm:$0xff] %v11562_v32  ;;  %1063 = vadd.xlane.f32.xlu1 %v11220_v45  ;;  %v663_v26 = vsub.f32 %v10172_v23, %v512_v50  ;;  %v664_v46 = vsub.f32 %v10173_v10, %v512_v50  ;;  %v11568_v15 = vpop.eup %9939  ;;  %9959 = vpow2.f32 %v11474_v60  ;;  %v11581_v10 = vld [vmem:[%s10772_s29 + $0x60] sm:$0xff] }
 0x139   : > { %17436 = vst [vmem:[#allocation104_spill] sm:$0xff] %v11546_v30  ;;  %17440 = vst [vmem:[#allocation108_spill] sm:$0xff] %v11568_v15  ;;  %v665_v33 = vsub.f32 %v10174_v55, %v512_v50  ;;  %v11575_v54 = vadd.f32 %v11548_v5, %v1105_v44  ;;  %v11577_v45 = vpop.eup %9941  ;;  %9961 = vpow2.f32 %v11492_v35  ;;  %v516_v44 = vpop.xlane.xlu0 %515  ;;  %v17443_v55 = vand.u32 4294901760, %v11546_v30 }
 0x13a   : > { %v2304_v24 = vsub.f32 %v11530_v49, %v16490_v17  ;;  %v1065_v17 = vadd.f32 %v11562_v32, %v11553_v31  ;;  %17441 = vst [vmem:[#allocation109_spill] sm:$0xff] %v11577_v45  ;;  %v921_v48 = vmul.f32 1.442695, %v663_v26  ;;  %v923_v11 = vmul.f32 1.442695, %v664_v46  ;;  %v11583_v60 = vpop.eup %9943 }
 0x13b   : > { %17442 = vst [vmem:[#allocation110_spill] sm:$0xff] %v11583_v60  ;;  %9963 = vpow2.f32 %v11494_v56  ;;  %v2311_v5 = vsub.f32 %v11546_v30, %v17443_v55  ;;  %v17444_v35 = vand.u32 4294901760, %v10844_v63  ;;  %v17445_v26 = vand.u32 4294901760, %v10847_v18  ;;  %v10175_v56 = vld [vmem:[%s10394_s28 + $0x3a8] sm:$0xff]  ;;  %v10177_v63 = vld [vmem:[%s10394_s28 + $0x3b8] sm:$0xff] }
 0x13c   : > { %v2305_v23 = vand.u32 4294901760, %v2304_v24  ;;  %v1066_v50 = vadd.f32 %v11568_v15, %v1065_v17  ;;  %v11596_v24 = vpop.eup %9945  ;;  %9965 = vpow2.f32 %v909_v13  ;;  %v1109_v31 = vadd.f32 %v11583_v60, %v11577_v45  ;;  %v10176_v17 = vld [vmem:[%s10394_s28 + $0x3b0] sm:$0xff] }
 0x13d   : > { %v11594_v46 = vpack.c.bf16 %v17445_v26, %v17444_v35  ;;  %17447 = vst [vmem:[#allocation112_spill] sm:$0xff] %v11596_v24  ;;  %v666_v32 = vsub.f32 %v10175_v56, %v516_v44  ;;  %v667_v15 = vsub.f32 %v10176_v17, %v516_v44  ;;  %v11602_v14 = vpop.eup %9947  ;;  %9967 = vpow2.f32 %v911_v53  ;;  %v11612_v53 = vld [vmem:[%s10772_s29 + $0x68] sm:$0xff] }
 0x13e   : > { %17448 = vst [vmem:[#allocation113_spill] sm:$0xff] %v11602_v14  ;;  %1067 = vadd.xlane.f32.xlu1 %v1066_v50  ;;  %v668_v55 = vsub.f32 %v10177_v63, %v516_v44  ;;  %v2312_v18 = vand.u32 4294901760, %v2311_v5  ;;  %v11607_v13 = vpop.eup %9949  ;;  %9969 = vpow2.f32 %v913_v19  ;;  %v1110_v26 = vadd.f32 %v11596_v24, %v1109_v31  ;;  %v520_v44 = vpop.xlane.xlu0 %519  ;;  %v10178_v31 = vld [vmem:[%s10394_s28 + $0x3c0] sm:$0xff]  ;;  %v10179_v24 = vld [vmem:[%s10394_s28 + $0x3c8] sm:$0xff] }
 0x13f   : > { %17446 = vst [vmem:[#allocation111_spill] sm:$0xff] %v11594_v46  ;;  %8754 = vmatpush1.bf16.msra.mxu1 %v11594_v46  ;;  %17449 = vst [vmem:[#allocation114_spill] sm:$0xff] %v11607_v13  ;;  %v925_v56 = vmul.f32 1.442695, %v665_v33  ;;  %v927_v17 = vmul.f32 1.442695, %v666_v32  ;;  %v11614_v50 = vpop.eup %9951  ;;  %9971 = vpow2.f32 %v915_v43  ;;  %v1113_v19 = vadd.f32 %v11607_v13, %v11602_v14 }
 0x140   : > { %8755 = vmatprep.subr.bf16.mxu1 %v17293_v38  ;;  %17450 = vst [vmem:[#allocation115_spill] sm:$0xff] %v11614_v50  ;;  %v929_v5 = vmul.f32 1.442695, %v667_v15  ;;  %v11616_v63 = vpack.c.bf16 %v2312_v18, %v2305_v23  ;;  %v11620_v35 = vpop.eup %9953  ;;  %1111 = vadd.xlane.f32.xlu0 %v1110_v26  ;;  %9973 = vpow2.f32 %v11551_v2  ;;  %v931_v33 = vmul.f32 1.442695, %v668_v55  ;;  %v10180_v15 = vld [vmem:[%s10394_s28 + $0x3d0] sm:$0xff] }
 0x141   : > { %17452 = vst [vmem:[#allocation117_spill] sm:$0xff] %v11620_v35  ;;  %v669_v32 = vsub.f32 %v10178_v31, %v520_v44  ;;  %v670_v45 = vsub.f32 %v10179_v24, %v520_v44  ;;  %v11625_v60 = vpop.eup %9955  ;;  %9975 = vpow2.f32 %v919_v40  ;;  %v671_v43 = vsub.f32 %v10180_v15, %v520_v44 }
 0x142   : > { %17451 = vst [vmem:[#allocation116_spill] sm:$0xff] %v11616_v63  ;;  %17453 = vst [vmem:[#allocation118_spill] sm:$0xff] %v11625_v60  ;;  %1071 = vadd.xlane.f32.xlu1 %v11249_v20  ;;  %8808 = vmatpush1.bf16.msra.mxu0 %v11616_v63  ;;  %v16505_v23 = vand.u32 4294901760, %v11612_v53  ;;  %v17454_v18 = vand.u32 4294901760, %v11581_v10  ;;  %v11636_v55 = vpop.eup %9957  ;;  %9977 = vpow2.f32 %v921_v48  ;;  %v1117_v40 = vadd.f32 %v11625_v60, %v11620_v35  ;;  %v524_v31 = vpop.xlane.xlu0 %523  ;;  %v10182_v35 = vld [vmem:[%s10394_s28 + $0x3e0] sm:$0xff] }
 0x143   : > { %17456 = vst [vmem:[#allocation120_spill] sm:$0xff] %v11636_v55  ;;  %v933_v20 = vmul.f32 1.442695, %v669_v32  ;;  %v11641_v24 = vadd.f32 %v11614_v50, %v1113_v19  ;;  %8809 = vmatprep.subr.bf16.mxu0 %v17293_v38  ;;  %v11644_v26 = vpop.eup %9959  ;;  %9979 = vpow2.f32 %v923_v11  ;;  %v935_v44 = vmul.f32 1.442695, %v670_v45  ;;  %v10181_v32 = vld [vmem:[%s10394_s28 + $0x3d8] sm:$0xff] }
 0x144   : > { %v11634_v2 = vsub.f32 %v11581_v10, %v17454_v18  ;;  %17457 = vst [vmem:[#allocation121_spill] sm:$0xff] %v11644_v26  ;;  %v11650_v48 = vsub.f32 %v11612_v53, %v16505_v23  ;;  %v11652_v18 = vpop.eup %9961  ;;  %9981 = vpow2.f32 %v925_v56  ;;  %v1118_v19 = vadd.f32 %v11636_v55, %v1117_v40  ;;  %v10183_v45 = vld [vmem:[%s10394_s28 + $0x3e8] sm:$0xff] }
 0x145   : > { %17459 = vst [vmem:[#allocation123_spill] sm:$0xff] %v11652_v18  ;;  %v672_v50 = vsub.f32 %v10181_v32, %v524_v31  ;;  %v673_v60 = vsub.f32 %v10182_v35, %v524_v31  ;;  %v11657_v14 = vpop.eup %9963  ;;  %9983 = vpow2.f32 %v927_v17  ;;  %v674_v11 = vsub.f32 %v10183_v45, %v524_v31 }
 0x146   : > { %17455 = vst [vmem:[#allocation119_spill] sm:$0xff] %v11634_v2  ;;  %v16507_v15 = vand.u32 4294901760, %v11634_v2  ;;  %17458 = vst [vmem:[#allocation122_spill] sm:$0xff] %v11650_v48  ;;  %1075 = vadd.xlane.f32.xlu1 %v11265_v62  ;;  %v11665_v56 = vpop.eup %9965  ;;  %1119 = vadd.xlane.f32.xlu0 %v1118_v19  ;;  %9985 = vpow2.f32 %v929_v5  ;;  %v937_v35 = vmul.f32 1.442695, %v671_v43  ;;  %v17462_v32 = vand.u32 4294901760, %v11341_v58 }
 0x147   : > { %17460 = vst [vmem:[#allocation124_spill] sm:$0xff] %v11657_v14  ;;  %17461 = vst [vmem:[#allocation125_spill] sm:$0xff] %v11665_v56  ;;  %v939_v40 = vmul.f32 1.442695, %v672_v50  ;;  %v17463_v62 = vand.u32 4294901760, %v11355_v4  ;;  %v11673_v31 = vpop.eup %9967  ;;  %9987 = vpow2.f32 %v931_v33  ;;  %v17466_v55 = vand.u32 4294901760, %v11650_v48 }
 0x148   : > { %v2318_v23 = vsub.f32 %v11634_v2, %v16507_v15  ;;  %17465 = vst [vmem:[#allocation127_spill] sm:$0xff] %v11673_v31  ;;  %v941_v45 = vmul.f32 1.442695, %v673_v60  ;;  %v528_v15 = vpop.xlane.xlu0 %527  ;;  %v11678_v5 = vpop.eup %9969  ;;  %9989 = vpow2.f32 %v933_v20  ;;  %v1125_v58 = vadd.f32 %v11673_v31, %v11665_v56  ;;  %v10184_v4 = vld [vmem:[%s10394_s28 + $0x3f0] sm:$0xff]  ;;  %v10185_v43 = vld [vmem:[%s10394_s28 + $0x3f8] sm:$0xff] }
 0x149   : > { %v11671_v17 = vpack.c.bf16 %v17463_v62, %v17462_v32  ;;  %v2325_v19 = vsub.f32 %v11650_v48, %v17466_v55  ;;  %17467 = vst [vmem:[#allocation128_spill] sm:$0xff] %v11678_v5  ;;  %v675_v50 = vsub.f32 %v10184_v4, %v528_v15  ;;  %v676_v32 = vsub.f32 %v10185_v43, %v528_v15  ;;  %v11685_v60 = vpop.eup %9971 }
 0x14a   : > { %v2319_v13 = vand.u32 4294901760, %v2318_v23  ;;  %17468 = vst [vmem:[#allocation129_spill] sm:$0xff] %v11685_v60  ;;  %1079 = vadd.xlane.f32.xlu1 %v11308_v7  ;;  %9991 = vpow2.f32 %v935_v44  ;;  %v943_v33 = vmul.f32 1.442695, %v674_v11  ;;  %v10186_v23 = vld [vmem:[%s10394_s28 + $0x400] sm:$0xff]  ;;  %v11690_v62 = vpop.eup %9973  ;;  %v1126_v4 = vadd.f32 %v11678_v5, %v1125_v58  ;;  %v11696_v7 = vld [vmem:[%s10772_s29 + $0x70] sm:$0xff] }
 0x14b   : > { %17464 = vst [vmem:[#allocation126_spill] sm:$0xff] %v11671_v17  ;;  %8757 = vmatpush1.bf16.msra.mxu1 %v11671_v17  ;;  %v677_v55 = vsub.f32 %v10186_v23, %v528_v15  ;;  %v2326_v20 = vand.u32 4294901760, %v2325_v19  ;;  %17469 = vst [vmem:[#allocation130_spill] sm:$0xff] %v11690_v62  ;;  %9993 = vpow2.f32 %v937_v35  ;;  %v945_v43 = vmul.f32 1.442695, %v675_v50  ;;  %v11699_v44 = vld [vmem:[%s10772_s29 + $0x78] sm:$0xff]  ;;  %v11701_v15 = vpop.eup %9975 }
 0x14c   : > { %8758 = vmatprep.subr.bf16.mxu1 %v17293_v38  ;;  %v1121_v56 = vadd.f32 %v11652_v18, %v11644_v26  ;;  %17470 = vst [vmem:[#allocation131_spill] sm:$0xff] %v11701_v15  ;;  %9995 = vpow2.f32 %v939_v40  ;;  %v947_v11 = vmul.f32 1.442695, %v676_v32  ;;  %v532_v23 = vpop.xlane.xlu0 %531  ;;  %v11705_v35 = vpop.eup %9977  ;;  %1127 = vadd.xlane.f32.xlu0 %v1126_v4  ;;  %v10187_v58 = vld [vmem:[%s10394_s28 + $0x408] sm:$0xff]  ;;  %v10188_v5 = vld [vmem:[%s10394_s28 + $0x410] sm:$0xff]  ;;  %v10189_v18 = vld [vmem:[%s10394_s28 + $0x418] sm:$0xff] }
 0x14d   : > { %v949_v19 = vmul.f32 1.442695, %v677_v55  ;;  %v11703_v31 = vpack.c.bf16 %v2326_v20, %v2319_v13  ;;  %17472 = vst [vmem:[#allocation133_spill] sm:$0xff] %v11705_v35  ;;  %9997 = vpow2.f32 %v941_v45  ;;  %v678_v50 = vsub.f32 %v10187_v58, %v532_v23  ;;  %v11710_v46 = vpop.eup %9979  ;;  %v10191_v58 = vld [vmem:[%s10394_s28 + $0x428] sm:$0xff] }
 0x14e   : > { %v679_v26 = vsub.f32 %v10188_v5, %v532_v23  ;;  %v680_v17 = vsub.f32 %v10189_v18, %v532_v23  ;;  %17473 = vst [vmem:[#allocation134_spill] sm:$0xff] %v11710_v46  ;;  %1083 = vadd.xlane.f32.xlu1 %v11338_v1  ;;  %9999 = vpow2.f32 %v943_v33  ;;  %v16519_v13 = vand.u32 4294901760, %v11696_v7  ;;  %v11722_v5 = vpop.eup %9981  ;;  %v10190_v23 = vld [vmem:[%s10394_s28 + $0x420] sm:$0xff] }
 0x14f   : > { %17471 = vst [vmem:[#allocation132_spill] sm:$0xff] %v11703_v31  ;;  %8811 = vmatpush1.bf16.msra.mxu0 %v11703_v31  ;;  %v16518_v40 = vand.u32 4294901760, %v11699_v44  ;;  %v17474_v32 = vand.u32 4294901760, %v11483_v28  ;;  %v17475_v45 = vand.u32 4294901760, %v11486_v22  ;;  %17477 = vst [vmem:[#allocation136_spill] sm:$0xff] %v11722_v5  ;;  %10001 = vpow2.f32 %v945_v43  ;;  %v11727_v20 = vpop.eup %9983 }
 0x150   : > { %v1133_v1 = vadd.f32 %v11710_v46, %v11705_v35  ;;  %v951_v18 = vmul.f32 1.442695, %v678_v50  ;;  %v953_v33 = vmul.f32 1.442695, %v679_v26  ;;  %8812 = vmatprep.subr.bf16.mxu0 %v17293_v38  ;;  %17478 = vst [vmem:[#allocation137_spill] sm:$0xff] %v11727_v20  ;;  %10003 = vpow2.f32 %v947_v11  ;;  %v536_v28 = vpop.xlane.xlu0 %535  ;;  %v11743_v26 = vpop.eup %9985  ;;  %v11774_v46 = vld [vmem:[%s10772_s29 + $0x80] sm:$0xff] }
 0x151   : > { %v11720_v55 = vpack.c.bf16 %v17475_v45, %v17474_v32  ;;  %v11730_v22 = vadd.f32 %v11657_v14, %v1121_v56  ;;  %v11735_v4 = vsub.f32 %v11696_v7, %v16519_v13  ;;  %v11740_v43 = vsub.f32 %v11699_v44, %v16518_v40  ;;  %17481 = vst [vmem:[#allocation140_spill] sm:$0xff] %v11743_v26  ;;  %v11749_v32 = vpop.eup %9987  ;;  %v10192_v45 = vld [vmem:[%s10394_s28 + $0x430] sm:$0xff] }
 0x152   : > { %10005 = vpow2.f32 %v949_v19  ;;  %v1134_v11 = vadd.f32 %v11722_v5, %v1133_v1  ;;  %v681_v56 = vsub.f32 %v10190_v23, %v536_v28  ;;  %v682_v50 = vsub.f32 %v10191_v58, %v536_v28  ;;  %17482 = vst [vmem:[#allocation141_spill] sm:$0xff] %v11749_v32  ;;  %1091 = vadd.xlane.f32.xlu1 %v11431_v57  ;;  %v11755_v19 = vpop.eup %9989 }
 0x153   : > { %17476 = vst [vmem:[#allocation135_spill] sm:$0xff] %v11720_v55  ;;  %17479 = vst [vmem:[#allocation138_spill] sm:$0xff] %v11735_v4  ;;  %8760 = vmatpush1.bf16.msra.mxu1 %v11720_v55  ;;  %10007 = vpow2.f32 %v951_v18  ;;  %v683_v40 = vsub.f32 %v10192_v45, %v536_v28  ;;  %v16524_v13 = vand.u32 4294901760, %v11735_v4  ;;  %v16525_v14 = vand.u32 4294901760, %v11740_v43 }
 0x154   : > { %17480 = vst [vmem:[#allocation139_spill] sm:$0xff] %v11740_v43  ;;  %8761 = vmatprep.subr.bf16.mxu1 %v17293_v38  ;;  %17483 = vst [vmem:[#allocation142_spill] sm:$0xff] %v11755_v19  ;;  %1135 = vadd.xlane.f32.xlu0 %v1134_v11  ;;  %10009 = vpow2.f32 %v953_v33  ;;  %v955_v1 = vmul.f32 1.442695, %v680_v17  ;;  %v957_v23 = vmul.f32 1.442695, %v681_v56  ;;  %v11757_v5 = vpop.eup %9991  ;;  %v540_v18 = vpop.xlane.xlu0 %539  ;;  %v1129_v33 = vadd.f32 %v11690_v62, %v11685_v60 }
 0x155   : > { %v959_v58 = vmul.f32 1.442695, %v682_v50  ;;  %17484 = vst [vmem:[#allocation143_spill] sm:$0xff] %v11757_v5  ;;  %v961_v57 = vmul.f32 1.442695, %v683_v40  ;;  %v2332_v28 = vsub.f32 %v11735_v4, %v16524_v13  ;;  %v2339_v45 = vsub.f32 %v11740_v43, %v16525_v14  ;;  %v11767_v17 = vpop.eup %9993  ;;  %v10193_v40 = vld [vmem:[%s10394_s28 + $0x438] sm:$0xff] }
 0x156   : > { %17485 = vst [vmem:[#allocation144_spill] sm:$0xff] %v11767_v17  ;;  %10011 = vpow2.f32 %v957_v23  ;;  %v1141_v11 = vadd.f32 %v11757_v5, %v11755_v19  ;;  %v684_v56 = vsub.f32 %v10193_v40, %v540_v18  ;;  %v10194_v50 = vld [vmem:[%s10394_s28 + $0x440] sm:$0xff]  ;;  %v11776_v13 = vpop.eup %9995  ;;  %1099 = vadd.xlane.f32.xlu1 %v11510_v61  ;;  %v10195_v14 = vld [vmem:[%s10394_s28 + $0x448] sm:$0xff]  ;;  %v11797_v8 = vadd.f32 %v11701_v15, %v1129_v33  ;;  %v1383_v15 = vld [vmem:[%s10772_s29 + $0x90] sm:$0xff] }
 0x157   : > { %v685_v35 = vsub.f32 %v10194_v50, %v540_v18  ;;  %17486 = vst [vmem:[#allocation145_spill] sm:$0xff] %v11776_v13  ;;  %10013 = vpow2.f32 %v959_v58  ;;  %v686_v60 = vsub.f32 %v10195_v14, %v540_v18  ;;  %v2333_v62 = vand.u32 4294901760, %v2332_v28  ;;  %v11780_v55 = vpop.eup %9997  ;;  %v11784_v5 = vld [vmem:[%s10772_s29 + $0x88] sm:$0xff] }
 0x158   : > { %v2340_v23 = vand.u32 4294901760, %v2339_v45  ;;  %17487 = vst [vmem:[#allocation146_spill] sm:$0xff] %v11780_v55  ;;  %10015 = vpow2.f32 %v961_v57  ;;  %v1142_v40 = vadd.f32 %v11767_v17, %v1141_v11  ;;  %v963_v50 = vmul.f32 1.442695, %v684_v56  ;;  %v11786_v47 = vpop.eup %9999  ;;  %v544_v58 = vpop.xlane.xlu0 %543  ;;  %v10196_v57 = vld [vmem:[%s10394_s28 + $0x450] sm:$0xff]  ;;  %v10197_v11 = vld [vmem:[%s10394_s28 + $0x458] sm:$0xff] }
 0x159   : > { %v965_v19 = vmul.f32 1.442695, %v685_v35  ;;  %17488 = vst [vmem:[#allocation147_spill] sm:$0xff] %v11786_v47  ;;  %10017 = vpow2.f32 %v955_v1  ;;  %v967_v61 = vmul.f32 1.442695, %v686_v60  ;;  %v16536_v18 = vand.u32 4294901760, %v11774_v46  ;;  %v11791_v28 = vpop.eup %10001 }
 0x15a   : > { %v11788_v14 = vpack.c.bf16 %v2340_v23, %v2333_v62  ;;  %17490 = vst [vmem:[#allocation149_spill] sm:$0xff] %v11791_v28  ;;  %1143 = vadd.xlane.f32.xlu0 %v1142_v40  ;;  %v687_v45 = vsub.f32 %v10196_v57, %v544_v58  ;;  %v688_v17 = vsub.f32 %v10197_v11, %v544_v58  ;;  %v10198_v56 = vld [vmem:[%s10394_s28 + $0x460] sm:$0xff]  ;;  %v11799_v31 = vpop.eup %10003  ;;  %10019 = vpow2.f32 %v963_v50 }
 0x15b   : > { %v689_v35 = vsub.f32 %v10198_v56, %v544_v58  ;;  %17491 = vst [vmem:[#allocation150_spill] sm:$0xff] %v11799_v31  ;;  %1107 = vadd.xlane.f32.xlu1 %v11575_v54  ;;  %v16538_v60 = vand.u32 4294901760, %v11784_v5  ;;  %v11807_v62 = vsub.f32 %v11774_v46, %v16536_v18  ;;  %v17493_v1 = vand.u32 4294901760, %v11581_v10  ;;  %v10199_v56 = vld [vmem:[%s10394_s28 + $0x468] sm:$0xff]  ;;  %v10201_v18 = vld [vmem:[%s10394_s28 + $0x478] sm:$0xff] }
 0x15c   : > { %17489 = vst [vmem:[#allocation148_spill] sm:$0xff] %v11788_v14  ;;  %8814 = vmatpush1.bf16.msra.mxu0 %v11788_v14  ;;  %v17494_v23 = vand.u32 4294901760, %v11612_v53  ;;  %v11815_v40 = vpop.eup %10005  ;;  %10021 = vpow2.f32 %v965_v19  ;;  %v969_v54 = vmul.f32 1.442695, %v687_v45  ;;  %v971_v50 = vmul.f32 1.442695, %v688_v17  ;;  %v548_v53 = vpop.xlane.xlu0 %547 }
 0x15d   : > { %17492 = vst [vmem:[#allocation151_spill] sm:$0xff] %v11807_v62  ;;  %17496 = vst [vmem:[#allocation153_spill] sm:$0xff] %v11815_v40  ;;  %v973_v58 = vmul.f32 1.442695, %v689_v35  ;;  %8815 = vmatprep.subr.bf16.mxu0 %v17293_v38  ;;  %v11818_v57 = vpop.eup %10007  ;;  %v1149_v10 = vadd.f32 %v11799_v31, %v11791_v28  ;;  %v11826_v19 = vsub.f32 %v11784_v5, %v16538_v60  ;;  %v17500_v28 = vand.u32 4294901760, %v11807_v62 }
 0x15e   : > { %v11813_v33 = vpack.c.bf16 %v17494_v23, %v17493_v1  ;;  %17497 = vst [vmem:[#allocation154_spill] sm:$0xff] %v11818_v57  ;;  %v1137_v17 = vadd.f32 %v11743_v26, %v11727_v20  ;;  %v11831_v45 = vpop.eup %10009  ;;  %10023 = vpow2.f32 %v969_v54  ;;  %v690_v35 = vsub.f32 %v10199_v56, %v548_v53  ;;  %v10200_v1 = vld [vmem:[%s10394_s28 + $0x470] sm:$0xff]  ;;  %v1384_v56 = vld [vmem:[%s10772_s29 + $0x98] sm:$0xff] }
 0x15f   : > { %17498 = vst [vmem:[#allocation155_spill] sm:$0xff] %v11826_v19  ;;  %17499 = vst [vmem:[#allocation156_spill] sm:$0xff] %v11831_v45  ;;  %v691_v23 = vsub.f32 %v10200_v1, %v548_v53  ;;  %v692_v11 = vsub.f32 %v10201_v18, %v548_v53  ;;  %1115 = vadd.xlane.f32.xlu1 %v11641_v24  ;;  %10025 = vpow2.f32 %v971_v50  ;;  %v16544_v54 = vand.u32 4294901760, %v11826_v19 }
 0x160   : > { %17495 = vst [vmem:[#allocation152_spill] sm:$0xff] %v11813_v33  ;;  %8763 = vmatpush1.bf16.msra.mxu1 %v11813_v33  ;;  %v1150_v60 = vadd.f32 %v11815_v40, %v1149_v10  ;;  %v2346_v31 = vsub.f32 %v11807_v62, %v17500_v28  ;;  %v11845_v20 = vpop.eup %10011  ;;  %10027 = vpow2.f32 %v973_v58  ;;  %v975_v18 = vmul.f32 1.442695, %v690_v35  ;;  %v11853_v10 = vld [vmem:[%s10772_s29 + $0xa0] sm:$0xff] }
 0x161   : > { %8764 = vmatprep.subr.bf16.mxu1 %v17293_v38  ;;  %17501 = vst [vmem:[#allocation157_spill] sm:$0xff] %v11845_v20  ;;  %v977_v53 = vmul.f32 1.442695, %v691_v23  ;;  %v979_v1 = vmul.f32 1.442695, %v692_v11  ;;  %v11847_v26 = vpop.eup %10013  ;;  %10029 = vpow2.f32 %v967_v61  ;;  %v2353_v50 = vsub.f32 %v11826_v19, %v16544_v54 }
 0x162   : > { %17502 = vst [vmem:[#allocation158_spill] sm:$0xff] %v11847_v26  ;;  %1151 = vadd.xlane.f32.xlu0 %v1150_v60  ;;  %v2347_v24 = vand.u32 4294901760, %v2346_v31  ;;  %v1468_v28 = vand.u32 4294901760, %v1383_v15  ;;  %v11855_v40 = vpop.eup %10015  ;;  %10031 = vpow2.f32 %v975_v18  ;;  %v1471_v58 = vand.u32 4294901760, %v1384_v56  ;;  %v11866_v60 = vld [vmem:[%s10772_s29 + $0xa8] sm:$0xff] }
 0x163   : > { %17503 = vst [vmem:[#allocation159_spill] sm:$0xff] %v11855_v40  ;;  %v17504_v35 = vand.u32 4294901760, %v11696_v7  ;;  %v17505_v11 = vand.u32 4294901760, %v11699_v44  ;;  %v1145_v31 = vadd.f32 %v11780_v55, %v11776_v13  ;;  %v11868_v23 = vpop.eup %10017  ;;  %1123 = vadd.xlane.f32.xlu1 %v11730_v22  ;;  %10033 = vpow2.f32 %v977_v53  ;;  %v11881_v13 = vld [vmem:[%s10772_s29 + $0xb0] sm:$0xff]  ;;  %v11884_v55 = vld [vmem:[%s10772_s29 + $0xb8] sm:$0xff] }
 0x164   : > { %17507 = vst [vmem:[#allocation161_spill] sm:$0xff] %v11868_v23  ;;  %v2354_v18 = vand.u32 4294901760, %v2353_v50  ;;  %v11871_v54 = vsub.f32 %v1383_v15, %v1468_v28  ;;  %v1157_v7 = vadd.f32 %v11847_v26, %v11845_v20  ;;  %10035 = vpow2.f32 %v979_v1  ;;  %v11886_v22 = vpop.eup %10019 }
 0x165   : > { %v11861_v61 = vpack.c.bf16 %v17505_v11, %v17504_v35  ;;  %v1138_v44 = vadd.f32 %v11749_v32, %v1137_v17  ;;  %v11876_v35 = vsub.f32 %v1384_v56, %v1471_v58  ;;  %17510 = vst [vmem:[#allocation164_spill] sm:$0xff] %v11886_v22  ;;  %v1477_v17 = vand.u32 4294901760, %v11866_v60 }
 0x166   : > { %17508 = vst [vmem:[#allocation162_spill] sm:$0xff] %v11871_v54  ;;  %v11888_v15 = vpack.c.bf16 %v2354_v18, %v2347_v24  ;;  %v1158_v1 = vadd.f32 %v11855_v40, %v1157_v7  ;;  %v11894_v56 = vpop.eup %10021  ;;  %v1146_v11 = vadd.f32 %v11786_v47, %v1145_v31  ;;  %v17513_v32 = vand.u32 4294901760, %v11853_v10 }
 0x167   : > { %17506 = vst [vmem:[#allocation160_spill] sm:$0xff] %v11861_v61  ;;  %17509 = vst [vmem:[#allocation163_spill] sm:$0xff] %v11876_v35  ;;  %8766 = vmatpush1.bf16.msra.mxu1 %v11861_v61  ;;  %v17515_v18 = vand.u32 4294901760, %v11774_v46  ;;  %v17516_v7 = vand.u32 4294901760, %v11784_v5  ;;  %1131 = vadd.xlane.f32.xlu1 %v11797_v8  ;;  %v17518_v50 = vand.u32 4294901760, %v11871_v54  ;;  %v11915_v40 = vsub.f32 %v11866_v60, %v1477_v17 }
 0x168   : > { %17511 = vst [vmem:[#allocation165_spill] sm:$0xff] %v11888_v15  ;;  %8767 = vmatprep.subr.bf16.mxu1 %v17293_v38  ;;  %17512 = vst [vmem:[#allocation166_spill] sm:$0xff] %v11894_v56  ;;  %v11901_v24 = vsub.f32 %v11853_v10, %v17513_v32  ;;  %8817 = vmatpush1.bf16.msra.mxu0 %v11888_v15  ;;  %v11919_v46 = vpop.eup %10023  ;;  %v17521_v5 = vand.u32 4294901760, %v11876_v35  ;;  %v1153_v60 = vadd.f32 %v11831_v45, %v11818_v57  ;;  %v1390_v45 = vld [vmem:[%s10772_s29 + $0xc8] sm:$0xff]  ;;  %v11967_v15 = vld [vmem:[%s10772_s29 + $0xd0] sm:$0xff] }
 0x169   : > { %v11907_v53 = vpack.c.bf16 %v17516_v7, %v17515_v18  ;;  %v2360_v31 = vsub.f32 %v11871_v54, %v17518_v50  ;;  %17519 = vst [vmem:[#allocation169_spill] sm:$0xff] %v11915_v40  ;;  %17520 = vst [vmem:[#allocation170_spill] sm:$0xff] %v11919_v46  ;;  %8818 = vmatprep.subr.bf16.mxu0 %v17293_v38  ;;  %1159 = vadd.xlane.f32.xlu0 %v1158_v1  ;;  %v11931_v7 = vld [vmem:[%s10772_s29 + $0xc0] sm:$0xff]  ;;  %v11933_v47 = vpop.eup %10025  ;;  %v17526_v18 = vand.u32 4294901760, %v11884_v55 }
 0x16a   : > { %17514 = vst [vmem:[#allocation167_spill] sm:$0xff] %v11901_v24  ;;  %v2367_v8 = vsub.f32 %v11876_v35, %v17521_v5  ;;  %v11928_v50 = vpack.c.bf16 %v1471_v58, %v1468_v28  ;;  %17523 = vst [vmem:[#allocation172_spill] sm:$0xff] %v11933_v47  ;;  %v17524_v5 = vand.u32 4294901760, %v11881_v13  ;;  %v11947_v58 = vpop.eup %10027  ;;  %v1161_v57 = vadd.f32 %v11894_v56, %v11886_v22 }
 0x16b   : > { %17517 = vst [vmem:[#allocation168_spill] sm:$0xff] %v11907_v53  ;;  %v2361_v32 = vand.u32 4294901760, %v2360_v31  ;;  %8769 = vmatpush1.bf16.msra.mxu1 %v11907_v53  ;;  %v11945_v28 = vsub.f32 %v11884_v55, %v17526_v18  ;;  %17528 = vst [vmem:[#allocation175_spill] sm:$0xff] %v11947_v58  ;;  %v17529_v31 = vand.u32 4294901760, %v11901_v24  ;;  %v11958_v53 = vpop.eup %10029  ;;  %1139 = vadd.xlane.f32.xlu1 %v1138_v44  ;;  %v17531_v18 = vand.u32 4294901760, %v11915_v40 }
 0x16c   : > { %17522 = vst [vmem:[#allocation171_spill] sm:$0xff] %v11928_v50  ;;  %v11940_v1 = vsub.f32 %v11881_v13, %v17524_v5  ;;  %v2368_v26 = vand.u32 4294901760, %v2367_v8  ;;  %8770 = vmatprep.subr.bf16.mxu1 %v17293_v38  ;;  %v1165_v5 = vadd.f32 %v11933_v47, %v11919_v46  ;;  %17530 = vst [vmem:[#allocation176_spill] sm:$0xff] %v11958_v53  ;;  %v1486_v33 = vand.u32 4294901760, %v11931_v7  ;;  %v11969_v22 = vpop.eup %10031 }
 0x16d   : > { %17527 = vst [vmem:[#allocation174_spill] sm:$0xff] %v11945_v28  ;;  %v2374_v20 = vsub.f32 %v11901_v24, %v17529_v31  ;;  %v2381_v8 = vsub.f32 %v11915_v40, %v17531_v18  ;;  %17532 = vst [vmem:[#allocation177_spill] sm:$0xff] %v11969_v22  ;;  %v1154_v44 = vadd.f32 %v11868_v23, %v1153_v60  ;;  %v11975_v14 = vpop.eup %10033  ;;  %v17535_v63 = vand.u32 4294901760, %v11945_v28 }
 0x16e   : > { %17525 = vst [vmem:[#allocation173_spill] sm:$0xff] %v11940_v1  ;;  %v16568_v61 = vand.u32 4294901760, %v11940_v1  ;;  %v11971_v46 = vpack.c.bf16 %v2368_v26, %v2361_v32  ;;  %v1166_v56 = vadd.f32 %v11947_v58, %v1165_v5  ;;  %17534 = vst [vmem:[#allocation179_spill] sm:$0xff] %v11975_v14  ;;  %v1489_v26 = vand.u32 4294901760, %v1390_v45  ;;  %v11987_v32 = vpop.eup %10035 }
 0x16f   : > { %v2375_v47 = vand.u32 4294901760, %v2374_v20  ;;  %v2382_v18 = vand.u32 4294901760, %v2381_v8  ;;  %v2395_v21 = vsub.f32 %v11945_v28, %v17535_v63  ;;  %8772 = vmatpush1.bf16.msra.mxu1 %v11928_v50  ;;  %v11985_v20 = vld [vmem:[%s10772_s29 + $0xd8] sm:$0xff]  ;;  %17536 = vst [vmem:[#allocation180_spill] sm:$0xff] %v11987_v32  ;;  %v1162_v60 = vadd.f32 %v11958_v53, %v1161_v57  ;;  %1147 = vadd.xlane.f32.xlu1 %v1146_v11 }
 0x170   : > { %17533 = vst [vmem:[#allocation178_spill] sm:$0xff] %v11971_v46  ;;  %v2388_v31 = vsub.f32 %v11940_v1, %v16568_v61  ;;  %8820 = vmatpush1.bf16.msra.mxu0 %v11971_v46  ;;  %1167 = vadd.xlane.f32.xlu0 %v1166_v56  ;;  %v11992_v5 = vsub.f32 %v11931_v7, %v1486_v33  ;;  %v17538_v8 = vand.u32 4294901760, %v11853_v10  ;;  %v16574_v61 = vand.u32 4294901760, %v11967_v15  ;;  %v12005_v56 = vld [vmem:[%s10772_s29 + $0xe0] sm:$0xff]  ;;  %v984_v7 = vpop.xlane.xlu1 %983 }
 0x171   : > { %8821 = vmatprep.subr.bf16.mxu0 %v17293_v38  ;;  %v12000_v58 = vpack.c.bf16 %v2382_v18, %v2375_v47  ;;  %v2396_v50 = vand.u32 4294901760, %v2395_v21  ;;  %v12002_v57 = vsub.f32 %v1390_v45, %v1489_v26  ;;  %8773 = vmatprep.subr.bf16.mxu1 %v17293_v38  ;;  %v1495_v11 = vand.u32 4294901760, %v11985_v20  ;;  %v12018_v21 = vld [vmem:[%s10772_s29 + $0xe8] sm:$0xff]  ;;  %v12021_v45 = vld [vmem:[%s10772_s29 + $0xf0] sm:$0xff] }
 0x172   : > { %17537 = vst [vmem:[#allocation181_spill] sm:$0xff] %v11992_v5  ;;  %v11996_v63 = vpack.c.bf16 %v1477_v17, %v17538_v8  ;;  %v2389_v23 = vand.u32 4294901760, %v2388_v31  ;;  %v1169_v17 = vadd.f32 %v11975_v14, %v11969_v22  ;;  %v12015_v47 = vsub.f32 %v11967_v15, %v16574_v61 }
 0x173   : > { %17540 = vst [vmem:[#allocation183_spill] sm:$0xff] %v12000_v58  ;;  %17541 = vst [vmem:[#allocation184_spill] sm:$0xff] %v12002_v57  ;;  %10037 = vrcp.f32 %v984_v7  ;;  %v16581_v18 = vand.u32 4294901760, %v12002_v57  ;;  %v17544_v8 = vand.u32 4294901760, %v11881_v13  ;;  %v17545_v10 = vand.u32 4294901760, %v11884_v55  ;;  %v1396_v13 = vld [vmem:[%s10772_s29 + $0xf8] sm:$0xff]  ;;  %1155 = vadd.xlane.f32.xlu1 %v1154_v44 }
 0x174   : > { %17539 = vst [vmem:[#allocation182_spill] sm:$0xff] %v11996_v63  ;;  %17542 = vst [vmem:[#allocation185_spill] sm:$0xff] %v12015_v47  ;;  %v12023_v31 = vpack.c.bf16 %v2396_v50, %v2389_v23  ;;  %8775 = vmatpush1.bf16.msra.mxu1 %v11996_v63  ;;  %8823 = vmatpush1.bf16.msra.mxu0 %v12000_v58  ;;  %v17547_v61 = vand.u32 4294901760, %v11992_v5  ;;  %v12040_v50 = vsub.f32 %v11985_v20, %v1495_v11  ;;  %v988_v14 = vpop.xlane.xlu1 %987 }
 0x175   : > { %v12031_v53 = vpack.c.bf16 %v17545_v10, %v17544_v8  ;;  %8776 = vmatprep.subr.bf16.mxu1 %v17293_v38  ;;  %v1498_v7 = vand.u32 4294901760, %v12005_v56  ;;  %8824 = vmatprep.subr.bf16.mxu0 %v17293_v38  ;;  %v2409_v55 = vsub.f32 %v12002_v57, %v16581_v18  ;;  %v1501_v10 = vand.u32 4294901760, %v12018_v21 }
 0x176   : > { %17543 = vst [vmem:[#allocation186_spill] sm:$0xff] %v12023_v31  ;;  %v2402_v22 = vsub.f32 %v11992_v5, %v17547_v61  ;;  %17548 = vst [vmem:[#allocation188_spill] sm:$0xff] %v12040_v50  ;;  %v12049_v61 = vpack.c.bf16 %v1489_v26, %v1486_v33  ;;  %v1504_v8 = vand.u32 4294901760, %v12021_v45  ;;  %v17550_v20 = vand.u32 4294901760, %v12015_v47 }
 0x177   : > { %17546 = vst [vmem:[#allocation187_spill] sm:$0xff] %v12031_v53  ;;  %v16584_v44 = vand.u32 4294901760, %v12040_v50  ;;  %v12057_v58 = vsub.f32 %v12005_v56, %v1498_v7  ;;  %v2410_v46 = vand.u32 4294901760, %v2409_v55  ;;  %10039 = vrcp.f32 %v988_v14  ;;  %1163 = vadd.xlane.f32.xlu1 %v1162_v60 }
 0x178   : > { %17549 = vst [vmem:[#allocation189_spill] sm:$0xff] %v12049_v61  ;;  %v2403_v23 = vand.u32 4294901760, %v2402_v22  ;;  %v2416_v63 = vsub.f32 %v12015_v47, %v17550_v20  ;;  %8778 = vmatpush1.bf16.msra.mxu1 %v12031_v53  ;;  %v12061_v33 = vsub.f32 %v12018_v21, %v1501_v10  ;;  %v1507_v26 = vand.u32 4294901760, %v1396_v13  ;;  %8826 = vmatpush1.bf16.msra.mxu0 %v12023_v31 }
 0x179   : > { %17551 = vst [vmem:[#allocation190_spill] sm:$0xff] %v12057_v58  ;;  %v2423_v20 = vsub.f32 %v12040_v50, %v16584_v44  ;;  %8779 = vmatprep.subr.bf16.mxu1 %v17293_v38  ;;  %v16587_v56 = vand.u32 4294901760, %v12057_v58  ;;  %v12070_v55 = vsub.f32 %v12021_v45, %v1504_v8  ;;  %8827 = vmatprep.subr.bf16.mxu0 %v17293_v38  ;;  %v992_v44 = vpop.xlane.xlu1 %991 }
 0x17a   : > { %17552 = vst [vmem:[#allocation191_spill] sm:$0xff] %v12061_v33  ;;  %v2417_v22 = vand.u32 4294901760, %v2416_v63  ;;  %v12073_v14 = vpack.c.bf16 %v2410_v46, %v2403_v23  ;;  %v1170_v21 = vadd.f32 %v11987_v32, %v1169_v17  ;;  %v16586_v63 = vand.u32 4294901760, %v12061_v33 }
 0x17b   : > { %17553 = vst [vmem:[#allocation192_spill] sm:$0xff] %v12070_v55  ;;  %v12077_v18 = vsub.f32 %v1396_v13, %v1507_v26  ;;  %v2424_v53 = vand.u32 4294901760, %v2423_v20  ;;  %v2430_v31 = vsub.f32 %v12057_v58, %v16587_v56  ;;  %v16588_v45 = vand.u32 4294901760, %v12070_v55 }
 0x17c   : > { %10041 = vrcp.f32 %v992_v44  ;;  %v2437_v46 = vsub.f32 %v12061_v33, %v16586_v63  ;;  %8781 = vmatpush1.bf16.msra.mxu1 %v12049_v61  ;;  %v17555_v17 = vand.u32 4294901760, %v11967_v15  ;;  %8829 = vmatpush1.bf16.msra.mxu0 %v12073_v14 }
 0x17d   : > { %17554 = vst [vmem:[#allocation193_spill] sm:$0xff] %v12077_v18  ;;  %v16589_v60 = vand.u32 4294901760, %v12077_v18  ;;  %v12093_v13 = vpack.c.bf16 %v2424_v53, %v2417_v22  ;;  %v2431_v20 = vand.u32 4294901760, %v2430_v31  ;;  %8782 = vmatprep.subr.bf16.mxu1 %v17293_v38  ;;  %v2444_v44 = vsub.f32 %v12070_v55, %v16588_v45  ;;  %v12099_v63 = vpop.eup %10037  ;;  %1171 = vadd.xlane.f32.xlu1 %v1170_v21 }
 0x17e   : > { %v12090_v23 = vpack.c.bf16 %v1495_v11, %v17555_v17  ;;  %17557 = vst [vmem:[#allocation195_spill] sm:$0xff] %v12099_v63  ;;  %8830 = vmatprep.subr.bf16.mxu0 %v17293_v38  ;;  %v2438_v56 = vand.u32 4294901760, %v2437_v46  ;;  %v996_v11 = vpop.xlane.xlu1 %995  ;;  %v1222_v31 = vmul.f32 %v12099_v63, %v10902_v41  ;;  %v1221_v22 = vmul.f32 %v12099_v63, %v10898_v37 }
 0x17f   : > { %v2451_v15 = vsub.f32 %v12077_v18, %v16589_v60  ;;  %v2445_v53 = vand.u32 4294901760, %v2444_v44  ;;  %10043 = vrcp.f32 %v996_v11  ;;  %v12110_v21 = vpack.c.bf16 %v1501_v10, %v1498_v7 }
 0x180   : > { %17556 = vst [vmem:[#allocation194_spill] sm:$0xff] %v12090_v23  ;;  %8784 = vmatpush1.bf16.msra.mxu1 %v12090_v23  ;;  %v12112_v45 = vpack.c.bf16 %v1507_v26, %v1504_v8  ;;  %8832 = vmatpush1.bf16.msra.mxu0 %v12093_v13  ;;  %v12115_v46 = vpack.c.bf16 %v2438_v56, %v2431_v20  ;;  %v12117_v60 = vand.u32 4294901760, %v1222_v31  ;;  %v12120_v41 = vand.u32 4294901760, %v1221_v22 }
 0x181   : > { %v2452_v17 = vand.u32 4294901760, %v2451_v15  ;;  %17558 = vst [vmem:[#allocation196_spill] sm:$0xff] %v12110_v21  ;;  %8785 = vmatprep.subr.bf16.mxu1 %v17293_v38  ;;  %v12124_v44 = vpop.eup %10039  ;;  %8833 = vmatprep.subr.bf16.mxu0 %v17293_v38 }
 0x182   : > { %17559 = vst [vmem:[#allocation197_spill] sm:$0xff] %v12112_v45  ;;  %17560 = vst [vmem:[#allocation198_spill] sm:$0xff] %v12117_v60  ;;  %2455 = vmatprep.mubr.f32.mxu0 %v12117_v60  ;;  %v1000_v56 = vpop.xlane.xlu1 %999  ;;  %v1225_v20 = vmul.f32 %v12124_v44, %v10922_v34  ;;  %v1224_v15 = vmul.f32 %v12124_v44, %v10918_v36  ;;  %v12141_v11 = vsub.f32 %v1222_v31, %v12117_v60  ;;  %v17570_v34 = vld [vmem:[#allocation40_spill] sm:$0xff] }
 0x183   : > { %17561 = vst [vmem:[#allocation199_spill] sm:$0xff] %v12120_v41  ;;  %17562 = vst [vmem:[#allocation200_spill] sm:$0xff] %v12124_v44  ;;  %v12127_v7 = vpack.c.bf16 %v2452_v17, %v2445_v53  ;;  %v12144_v53 = vsub.f32 %v1221_v22, %v12120_v41  ;;  %10045 = vrcp.f32 %v1000_v56  ;;  %v17569_v44 = vld [vmem:[#allocation39_spill] sm:$0xff] }
 0x184   : > { %17563 = vst [vmem:[#allocation201_spill] sm:$0xff] %v12141_v11  ;;  %8787 = vmatpush1.bf16.msra.mxu1 %v12110_v21  ;;  %8835 = vmatpush1.bf16.msra.mxu0 %v12115_v46  ;;  %v12154_v36 = vand.u32 4294901760, %v1225_v20  ;;  %v12157_v31 = vand.u32 4294901760, %v1224_v15  ;;  %v16595_v22 = vand.u32 4294901760, %v12141_v11  ;;  %v8840_v63 = vpack.c.bf16 %v17570_v34, %v17569_v44 }
 0x185   : > { %17564 = vst [vmem:[#allocation202_spill] sm:$0xff] %v12144_v53  ;;  %8788 = vmatprep.subr.bf16.mxu1 %v17293_v38  ;;  %8836 = vmatprep.subr.bf16.mxu0 %v17293_v38  ;;  %v17568_v60 = vand.u32 4294901760, %v12144_v53 }
 0x186   : > { %17565 = vst [vmem:[#allocation203_spill] sm:$0xff] %v12154_v36  ;;  %17566 = vst [vmem:[#allocation204_spill] sm:$0xff] %v12157_v31  ;;  %v12161_v8 = vpop.eup %10041  ;;  %v1004_v10 = vpop.xlane.xlu1 %1003  ;;  %v1512_v37 = vsub.f32 %v12141_v11, %v16595_v22  ;;  %v12184_v17 = vsub.f32 %v1225_v20, %v12154_v36  ;;  %v12187_v22 = vsub.f32 %v1224_v15, %v12157_v31 }
 0x187   : > { %17567 = vst [vmem:[#allocation205_spill] sm:$0xff] %v12161_v8  ;;  %v1228_v56 = vmul.f32 %v12161_v8, %v10932_v25  ;;  %v1518_v32 = vsub.f32 %v12144_v53, %v17568_v60  ;;  %v1227_v26 = vmul.f32 %v12161_v8, %v10912_v0  ;;  %10047 = vrcp.f32 %v1004_v10  ;;  %v17578_v8 = vld [vmem:[#allocation43_spill] sm:$0xff]  ;;  %v17579_v10 = vld [vmem:[#allocation44_spill] sm:$0xff] }
 0x188   : > { %8790 = vmatpush1.bf16.msra.mxu1 %v12112_v45  ;;  %17571 = vst [vmem:[#allocation206_spill] sm:$0xff] %v12184_v17  ;;  %17572 = vst [vmem:[#allocation207_spill] sm:$0xff] %v12187_v22  ;;  %8838 = vmatpush1.bf16.msra.mxu0 %v12127_v7  ;;  %v1513_v25 = vand.u32 4294901760, %v1512_v37  ;;  %v16605_v20 = vand.u32 4294901760, %v12187_v22  ;;  %v8843_v45 = vpack.c.bf16 %v17579_v10, %v17578_v8  ;;  %v17584_v10 = vld [vmem:[#allocation47_spill] sm:$0xff] }
 0x189   : > { %v12190_v21 = vand.u32 4294901760, %v1228_v56  ;;  %v1519_v60 = vand.u32 4294901760, %v1518_v32  ;;  %v12192_v23 = vand.u32 4294901760, %v1227_v26  ;;  %9223 = vmatprep.subr.bf16.mxu1 %v17293_v38  ;;  %v12195_v0 = vpop.eup %10043  ;;  %8839 = vmatprep.subr.bf16.mxu0 %v17293_v38 }
 0x18a   : > { %17575 = vst [vmem:[#allocation210_spill] sm:$0xff] %v12195_v0  ;;  %1514 = vmatprep.mubr.f32.mxu1 %v1513_v25  ;;  %v1008_v15 = vpop.xlane.xlu1 %1007  ;;  %v1231_v37 = vmul.f32 %v12195_v0, %v10964_v3  ;;  %v1230_v32 = vmul.f32 %v12195_v0, %v10959_v39  ;;  %v17580_v25 = vand.u32 4294901760, %v12184_v17  ;;  %v1533_v39 = vsub.f32 %v12187_v22, %v16605_v20 }
 0x18b   : > { %17573 = vst [vmem:[#allocation208_spill] sm:$0xff] %v12190_v21  ;;  %17574 = vst [vmem:[#allocation209_spill] sm:$0xff] %v12192_v23  ;;  %v12205_v34 = vsub.f32 %v1228_v56, %v12190_v21  ;;  %v12208_v44 = vsub.f32 %v1227_v26, %v12192_v23  ;;  %2457 = vmatmul.mubr.f32.vlgmr.msra.gmra.mrb[0].mxu0 %v12120_v41  ;;  %10049 = vrcp.f32 %v1008_v15  ;;  %1520 = vmatmul.mubr.f32.vlgmr.msra.gmra.mrb[0].mxu1 %v1519_v60 }
 0x18c   : > { %v1527_v3 = vsub.f32 %v12184_v17, %v17580_v25  ;;  %8841 = vmatpush1.bf16.msra.mxu0 %v8840_v63  ;;  %2462 = vmatprep.mubr.f32.mxu0 %v12154_v36  ;;  %v12220_v26 = vand.u32 4294901760, %v1231_v37  ;;  %v12222_v56 = vand.u32 4294901760, %v1230_v32  ;;  %v1534_v8 = vand.u32 4294901760, %v1533_v39 }
 0x18d   : > { %17576 = vst [vmem:[#allocation211_spill] sm:$0xff] %v12205_v34  ;;  %17577 = vst [vmem:[#allocation212_spill] sm:$0xff] %v12208_v44  ;;  %v16610_v41 = vand.u32 4294901760, %v12205_v34  ;;  %v16609_v15 = vand.u32 4294901760, %v12208_v44  ;;  %v12226_v60 = vpop.eup %10045  ;;  %8842 = vmatprep.subr.bf16.mxu0 %v17293_v38  ;;  %9239 = vmatpush1.bf16.msra.mxu1 %v17584_v10  ;;  %v8846_v39 = vpack.c.bf16 %v10841_v59, %v10836_v29 }
 0x18e   : > { %17581 = vst [vmem:[#allocation213_spill] sm:$0xff] %v12220_v26  ;;  %17582 = vst [vmem:[#allocation214_spill] sm:$0xff] %v12222_v56  ;;  %v1528_v25 = vand.u32 4294901760, %v1527_v3  ;;  %v1234_v20 = vmul.f32 %v12226_v60, %v10946_v42  ;;  %v1233_v0 = vmul.f32 %v12226_v60, %v10941_v27  ;;  %9224 = vmatprep.subr.bf16.mxu1 %v17293_v38  ;;  %v1012_v42 = vpop.xlane.xlu1 %1011 }
 0x18f   : > { %17583 = vst [vmem:[#allocation215_spill] sm:$0xff] %v12226_v60  ;;  %v1542_v63 = vsub.f32 %v12205_v34, %v16610_v41  ;;  %v1548_v36 = vsub.f32 %v12208_v44, %v16609_v15  ;;  %2464 = vmatmul.mubr.f32.gmra.mrb[2].mxu0 %v12157_v31  ;;  %v12243_v10 = vsub.f32 %v1231_v37, %v12220_v26  ;;  %10051 = vrcp.f32 %v1012_v42  ;;  %v17593_v60 = vld [vmem:[#allocation51_spill] sm:$0xff] }
 0x190   : > { %1529 = vmatprep.mubr.f32.mxu1 %v1528_v25  ;;  %v12246_v3 = vsub.f32 %v1230_v32, %v12222_v56  ;;  %8844 = vmatpush1.bf16.msra.mxu0 %v8843_v45  ;;  %v12251_v27 = vand.u32 4294901760, %v1234_v20  ;;  %v12253_v41 = vand.u32 4294901760, %v1233_v0  ;;  %v17590_v25 = vld [vmem:[#allocation6_spill] sm:$0xff] }
 0x191   : > { %17585 = vst [vmem:[#allocation47_spill] sm:$0xff] %v12243_v10  ;;  %2469 = vmatprep.mubr.f32.mxu0 %v12190_v21  ;;  %v1543_v15 = vand.u32 4294901760, %v1542_v63  ;;  %v12255_v31 = vpop.eup %10047  ;;  %8845 = vmatprep.subr.bf16.mxu0 %v17293_v38  ;;  %v1549_v37 = vand.u32 4294901760, %v1548_v36  ;;  %v16618_v45 = vand.u32 4294901760, %v12243_v10  ;;  %v17591_v63 = vld [vmem:[#allocation16_spill] sm:$0xff] }
 0x192   : > { %17586 = vst [vmem:[#allocation216_spill] sm:$0xff] %v12246_v3  ;;  %17587 = vst [vmem:[#allocation217_spill] sm:$0xff] %v12251_v27  ;;  %1535 = vmatmul.mubr.f32.gmra.mrb[2].mxu1 %v1534_v8  ;;  %v16619_v32 = vand.u32 4294901760, %v12246_v3  ;;  %v1237_v21 = vmul.f32 %v12255_v31, %v17590_v25  ;;  %v1236_v59 = vmul.f32 %v12255_v31, %v17591_v63 }
 0x193   : > { %17588 = vst [vmem:[#allocation218_spill] sm:$0xff] %v12253_v41  ;;  %17589 = vst [vmem:[#allocation219_spill] sm:$0xff] %v12255_v31  ;;  %1544 = vmatprep.mubr.f32.mxu1 %v1543_v15  ;;  %v12265_v29 = vsub.f32 %v1234_v20, %v12251_v27  ;;  %9240 = vmatpush1.bf16.msra.mxu1 %v17593_v60  ;;  %v1557_v8 = vsub.f32 %v12243_v10, %v16618_v45  ;;  %v1016_v20 = vpop.xlane.xlu1 %1015 }
 0x194   : > { %2471 = vmatmul.mubr.f32.gmra.mrb[4].mxu0 %v12192_v23  ;;  %v1563_v36 = vsub.f32 %v12246_v3, %v16619_v32  ;;  %v12276_v15 = vsub.f32 %v1233_v0, %v12253_v41  ;;  %9225 = vmatprep.subr.bf16.mxu1 %v17293_v38  ;;  %v8849_v60 = vpack.c.bf16 %v11292_v6, %v10869_v52  ;;  %v12282_v42 = vand.u32 4294901760, %v1237_v21  ;;  %v17598_v23 = vld [vmem:[#allocation59_spill] sm:$0xff]  ;;  %v17599_v52 = vld [vmem:[#allocation58_spill] sm:$0xff] }
 0x195   : > { %17592 = vst [vmem:[#allocation6_spill] sm:$0xff] %v12265_v29  ;;  %2476 = vmatprep.mubr.f32.mxu0 %v12220_v26  ;;  %8847 = vmatpush1.bf16.msra.mxu0 %v8846_v39  ;;  %v12284_v25 = vand.u32 4294901760, %v1236_v59  ;;  %v16631_v63 = vand.u32 4294901760, %v12265_v29  ;;  %v12287_v45 = vpop.eup %10049  ;;  %10053 = vrcp.f32 %v1016_v20  ;;  %v1558_v0 = vand.u32 4294901760, %v1557_v8 }
 0x196   : > { %17594 = vst [vmem:[#allocation16_spill] sm:$0xff] %v12276_v15  ;;  %17595 = vst [vmem:[#allocation51_spill] sm:$0xff] %v12282_v42  ;;  %1550 = vmatmul.mubr.f32.gmra.mrb[4].mxu1 %v1549_v37  ;;  %8848 = vmatprep.subr.bf16.mxu0 %v17293_v38  ;;  %v1564_v32 = vand.u32 4294901760, %v1563_v36  ;;  %v16629_v39 = vand.u32 4294901760, %v12276_v15  ;;  %v1240_v6 = vmul.f32 %v12287_v45, %v17598_v23 }
 0x197   : > { %17596 = vst [vmem:[#allocation220_spill] sm:$0xff] %v12284_v25  ;;  %17597 = vst [vmem:[#allocation221_spill] sm:$0xff] %v12287_v45  ;;  %v1572_v26 = vsub.f32 %v12265_v29, %v16631_v63  ;;  %v1239_v31 = vmul.f32 %v12287_v45, %v17599_v52  ;;  %v12299_v61 = vsub.f32 %v1237_v21, %v12282_v42  ;;  %9241 = vmatpush1.bf16.msra.mxu1 %v11271_v51  ;;  %v1020_v52 = vpop.xlane.xlu1 %1019  ;;  %v17608_v63 = vld [vmem:[#allocation23_spill] sm:$0xff] }
 0x198   : > { %2478 = vmatmul.mubr.f32.gmra.mrb[6].mxu0 %v12222_v56  ;;  %1559 = vmatprep.mubr.f32.mxu1 %v1558_v0  ;;  %v1578_v37 = vsub.f32 %v12276_v15, %v16629_v39  ;;  %v8852_v8 = vpack.c.bf16 %v11404_v12, %v11399_v9  ;;  %v12309_v23 = vsub.f32 %v1236_v59, %v12284_v25  ;;  %v12312_v36 = vand.u32 4294901760, %v1240_v6 }
 0x199   : > { %17600 = vst [vmem:[#allocation59_spill] sm:$0xff] %v12299_v61  ;;  %2483 = vmatprep.mubr.f32.mxu0 %v12251_v27  ;;  %8850 = vmatpush1.bf16.msra.mxu0 %v8849_v60  ;;  %v1573_v21 = vand.u32 4294901760, %v1572_v26  ;;  %v12314_v51 = vand.u32 4294901760, %v1239_v31  ;;  %v16630_v20 = vand.u32 4294901760, %v12299_v61  ;;  %10055 = vrcp.f32 %v1020_v52  ;;  %v12329_v52 = vpop.eup %10051 }
 0x19a   : > { %17601 = vst [vmem:[#allocation58_spill] sm:$0xff] %v12309_v23  ;;  %17602 = vst [vmem:[#allocation222_spill] sm:$0xff] %v12312_v36  ;;  %1565 = vmatmul.mubr.f32.gmra.mrb[6].mxu1 %v1564_v32  ;;  %8851 = vmatprep.subr.bf16.mxu0 %v17293_v38  ;;  %v1579_v0 = vand.u32 4294901760, %v1578_v37  ;;  %v16636_v39 = vand.u32 4294901760, %v12309_v23  ;;  %v12323_v26 = vsub.f32 %v1240_v6, %v12312_v36 }
 0x19b   : > { %17603 = vst [vmem:[#allocation223_spill] sm:$0xff] %v12314_v51  ;;  %1574 = vmatprep.mubr.f32.mxu1 %v1573_v21  ;;  %v1587_v59 = vsub.f32 %v12299_v61, %v16630_v20  ;;  %v12326_v60 = vsub.f32 %v1239_v31, %v12314_v51  ;;  %9226 = vmatprep.subr.bf16.mxu1 %v17293_v38  ;;  %17606 = vst [vmem:[#allocation226_spill] sm:$0xff] %v12329_v52  ;;  %v1024_v6 = vpop.xlane.xlu1 %1023  ;;  %v17607_v21 = vld [vmem:[#allocation9_spill] sm:$0xff] }
 0x19c   : > { %17604 = vst [vmem:[#allocation224_spill] sm:$0xff] %v12323_v26  ;;  %2485 = vmatmul.mubr.f32.gmra.mrb[8].mxu0 %v12253_v41  ;;  %v1593_v32 = vsub.f32 %v12309_v23, %v16636_v39  ;;  %v8855_v37 = vpack.c.bf16 %v11546_v30, %v11530_v49  ;;  %9242 = vmatpush1.bf16.msra.mxu1 %v11382_v16  ;;  %v16639_v27 = vand.u32 4294901760, %v12323_v26  ;;  %10057 = vrcp.f32 %v1024_v6 }
 0x19d   : > { %17605 = vst [vmem:[#allocation225_spill] sm:$0xff] %v12326_v60  ;;  %2490 = vmatprep.mubr.f32.mxu0 %v12282_v42  ;;  %8853 = vmatpush1.bf16.msra.mxu0 %v8852_v8  ;;  %v1588_v31 = vand.u32 4294901760, %v1587_v59  ;;  %v1243_v20 = vmul.f32 %v12329_v52, %v17607_v21  ;;  %v1242_v41 = vmul.f32 %v12329_v52, %v17608_v63  ;;  %v16646_v16 = vand.u32 4294901760, %v12326_v60  ;;  %v17734_v52 = vld [vmem:[#allocation38_spill] sm:$0xff] }
 0x19e   : > { %1580 = vmatmul.mubr.f32.gmra.mrb[8].mxu1 %v1579_v0  ;;  %v1594_v39 = vand.u32 4294901760, %v1593_v32  ;;  %8854 = vmatprep.subr.bf16.mxu0 %v17293_v38  ;;  %v1602_v59 = vsub.f32 %v12323_v26, %v16639_v27  ;;  %v17612_v32 = vld [vmem:[#allocation96_spill] sm:$0xff] }
 0x19f   : > { %1589 = vmatprep.mubr.f32.mxu1 %v1588_v31  ;;  %v12346_v42 = vand.u32 4294901760, %v1243_v20  ;;  %v12348_v8 = vand.u32 4294901760, %v1242_v41  ;;  %9227 = vmatprep.subr.bf16.mxu1 %v17293_v38  ;;  %v12354_v63 = vpop.eup %10053  ;;  %v1608_v0 = vsub.f32 %v12326_v60, %v16646_v16  ;;  %v17613_v31 = vld [vmem:[#allocation11_spill] sm:$0xff]  ;;  %v17614_v27 = vld [vmem:[#allocation60_spill] sm:$0xff] }
 0x1a0   : > { %17611 = vst [vmem:[#allocation227_spill] sm:$0xff] %v12354_v63  ;;  %2492 = vmatmul.mubr.f32.gmra.mrb[10].mxu0 %v12284_v25  ;;  %9243 = vmatpush1.bf16.msra.mxu1 %v17612_v32  ;;  %v1603_v6 = vand.u32 4294901760, %v1602_v59  ;;  %v1246_v21 = vmul.f32 %v12354_v63, %v17613_v31  ;;  %v1245_v56 = vmul.f32 %v12354_v63, %v17614_v27  ;;  %v1028_v25 = vpop.xlane.xlu1 %1027 }
 0x1a1   : > { %17609 = vst [vmem:[#allocation9_spill] sm:$0xff] %v12346_v42  ;;  %17610 = vst [vmem:[#allocation23_spill] sm:$0xff] %v12348_v8  ;;  %2497 = vmatprep.mubr.f32.mxu0 %v12312_v36  ;;  %8856 = vmatpush1.bf16.msra.mxu0 %v8855_v37  ;;  %v12367_v30 = vsub.f32 %v1243_v20, %v12346_v42  ;;  %v1609_v49 = vand.u32 4294901760, %v1608_v0  ;;  %v12371_v32 = vsub.f32 %v1242_v41, %v12348_v8  ;;  %v17620_v20 = vld [vmem:[#allocation116_spill] sm:$0xff] }
 0x1a2   : > { %1595 = vmatmul.mubr.f32.gmra.mrb[10].mxu1 %v1594_v39  ;;  %8857 = vmatprep.subr.bf16.mxu0 %v17293_v38  ;;  %10059 = vrcp.f32 %v1028_v25  ;;  %v12373_v37 = vand.u32 4294901760, %v1246_v21  ;;  %v12375_v59 = vand.u32 4294901760, %v1245_v56  ;;  %v17621_v25 = vld [vmem:[#allocation28_spill] sm:$0xff]  ;;  %v17623_v36 = vpack.c.bf16 %v11650_v48, %v11634_v2  ;;  %v17631_v2 = vld [vmem:[#allocation17_spill] sm:$0xff] }
 0x1a3   : > { %17615 = vst [vmem:[#allocation96_spill] sm:$0xff] %v12367_v30  ;;  %17616 = vst [vmem:[#allocation11_spill] sm:$0xff] %v12371_v32  ;;  %1604 = vmatprep.mubr.f32.mxu1 %v1603_v6  ;;  %v16653_v31 = vand.u32 4294901760, %v12367_v30  ;;  %9228 = vmatprep.subr.bf16.mxu1 %v17293_v38  ;;  %v12379_v27 = vpop.eup %10055  ;;  %v16655_v39 = vand.u32 4294901760, %v12371_v32  ;;  %v17622_v6 = vld [vmem:[#allocation27_spill] sm:$0xff] }
 0x1a4   : > { %17617 = vst [vmem:[#allocation60_spill] sm:$0xff] %v12373_v37  ;;  %17618 = vst [vmem:[#allocation228_spill] sm:$0xff] %v12375_v59  ;;  %2499 = vmatmul.mubr.f32.gmra.mrb[12].mxu0 %v12314_v51  ;;  %9244 = vmatpush1.bf16.msra.mxu1 %v17620_v20  ;;  %v1249_v0 = vmul.f32 %v12379_v27, %v17621_v25  ;;  %v1248_v16 = vmul.f32 %v12379_v27, %v17622_v6  ;;  %v1032_v51 = vpop.xlane.xlu1 %1031 }
 0x1a5   : > { %17619 = vst [vmem:[#allocation229_spill] sm:$0xff] %v12379_v27  ;;  %2504 = vmatprep.mubr.f32.mxu0 %v12346_v42  ;;  %v1617_v41 = vsub.f32 %v12367_v30, %v16653_v31  ;;  %8859 = vmatpush1.bf16.msra.mxu0 %v17623_v36  ;;  %v1623_v20 = vsub.f32 %v12371_v32, %v16655_v39  ;;  %10061 = vrcp.f32 %v1032_v51  ;;  %v17629_v39 = vld [vmem:[#allocation132_spill] sm:$0xff]  ;;  %v17630_v51 = vld [vmem:[#allocation18_spill] sm:$0xff] }
 0x1a6   : > { %1610 = vmatmul.mubr.f32.gmra.mrb[12].mxu1 %v1609_v49  ;;  %v12399_v42 = vsub.f32 %v1246_v21, %v12373_v37  ;;  %v12402_v31 = vsub.f32 %v1245_v56, %v12375_v59  ;;  %8860 = vmatprep.subr.bf16.mxu0 %v17293_v38  ;;  %v12405_v6 = vand.u32 4294901760, %v1249_v0  ;;  %v12407_v48 = vand.u32 4294901760, %v1248_v16  ;;  %v12410_v49 = vpop.eup %10057 }
 0x1a7   : > { %v1618_v25 = vand.u32 4294901760, %v1617_v41  ;;  %9229 = vmatprep.subr.bf16.mxu1 %v17293_v38  ;;  %17628 = vst [vmem:[#allocation231_spill] sm:$0xff] %v12410_v49  ;;  %v1624_v36 = vand.u32 4294901760, %v1623_v20  ;;  %v1252_v41 = vmul.f32 %v12410_v49, %v17630_v51  ;;  %v1251_v12 = vmul.f32 %v12410_v49, %v17631_v2 }
 0x1a8   : > { %17624 = vst [vmem:[#allocation116_spill] sm:$0xff] %v12399_v42  ;;  %17625 = vst [vmem:[#allocation28_spill] sm:$0xff] %v12402_v31  ;;  %2506 = vmatmul.mubr.f32.gmra.mrb[14].mxu0 %v12348_v8  ;;  %v16662_v21 = vand.u32 4294901760, %v12399_v42  ;;  %v16661_v56 = vand.u32 4294901760, %v12402_v31  ;;  %9245 = vmatpush1.bf16.msra.mxu1 %v17629_v39  ;;  %v12422_v9 = vsub.f32 %v1249_v0, %v12405_v6  ;;  %v1036_v2 = vpop.xlane.xlu1 %1035 }
 0x1a9   : > { %17626 = vst [vmem:[#allocation27_spill] sm:$0xff] %v12405_v6  ;;  %17627 = vst [vmem:[#allocation230_spill] sm:$0xff] %v12407_v48  ;;  %2511 = vmatprep.mubr.f32.mxu0 %v12373_v37  ;;  %1619 = vmatprep.mubr.f32.mxu1 %v1618_v25  ;;  %v17633_v25 = vpack.c.bf16 %v11740_v43, %v11735_v4  ;;  %v12434_v51 = vsub.f32 %v1248_v16, %v12407_v48  ;;  %v12436_v37 = vand.u32 4294901760, %v1252_v41  ;;  %v17637_v16 = vld [vmem:[#allocation148_spill] sm:$0xff] }
 0x1aa   : > { %17632 = vst [vmem:[#allocation132_spill] sm:$0xff] %v12422_v9  ;;  %1625 = vmatmul.mubr.f32.gmra.mrb[14].mxu1 %v1624_v36  ;;  %v1632_v20 = vsub.f32 %v12399_v42, %v16662_v21  ;;  %v1638_v39 = vsub.f32 %v12402_v31, %v16661_v56  ;;  %v12438_v0 = vand.u32 4294901760, %v1251_v12  ;;  %v16671_v36 = vand.u32 4294901760, %v12422_v9  ;;  %9230 = vmatprep.subr.bf16.mxu1 %v17293_v38 }
 0x1ab   : > { %8862 = vmatpush1.bf16.msra.mxu0 %v17633_v25  ;;  %17634 = vst [vmem:[#allocation18_spill] sm:$0xff] %v12434_v51  ;;  %17635 = vst [vmem:[#allocation17_spill] sm:$0xff] %v12436_v37  ;;  %10063 = vrcp.f32 %v1036_v2  ;;  %v16673_v25 = vand.u32 4294901760, %v12434_v51  ;;  %v12453_v4 = vsub.f32 %v1252_v41, %v12436_v37  ;;  %v17643_v41 = vpack.c.bf16 %v11826_v19, %v11807_v62 }
 0x1ac   : > { %17636 = vst [vmem:[#allocation232_spill] sm:$0xff] %v12438_v0  ;;  %8863 = vmatprep.subr.bf16.mxu0 %v17293_v38  ;;  %2513 = vmatmul.mubr.f32.gmra.mrb[16].mxu0 %v12375_v59  ;;  %v1633_v56 = vand.u32 4294901760, %v1632_v20  ;;  %v1639_v21 = vand.u32 4294901760, %v1638_v39  ;;  %v12446_v8 = vpop.eup %10059  ;;  %v1647_v43 = vsub.f32 %v12422_v9, %v16671_v36  ;;  %v12456_v59 = vsub.f32 %v1251_v12, %v12438_v0  ;;  %v17641_v20 = vld [vmem:[#allocation36_spill] sm:$0xff]  ;;  %v1040_v36 = vpop.xlane.xlu1 %1039 }
 0x1ad   : > { %9246 = vmatpush1.bf16.msra.mxu1 %v17637_v16  ;;  %17638 = vst [vmem:[#allocation148_spill] sm:$0xff] %v12446_v8  ;;  %2518 = vmatprep.mubr.f32.mxu0 %v12405_v6  ;;  %17639 = vst [vmem:[#allocation233_spill] sm:$0xff] %v12453_v4  ;;  %v1255_v39 = vmul.f32 %v12446_v8, %v17641_v20  ;;  %v1653_v2 = vsub.f32 %v12434_v51, %v16673_v25  ;;  %v17642_v16 = vld [vmem:[#allocation35_spill] sm:$0xff]  ;;  %v16680_v49 = vand.u32 4294901760, %v12453_v4 }
 0x1ae   : > { %17640 = vst [vmem:[#allocation234_spill] sm:$0xff] %v12456_v59  ;;  %9231 = vmatprep.subr.bf16.mxu1 %v17293_v38  ;;  %1634 = vmatprep.mubr.f32.mxu1 %v1633_v56  ;;  %v1254_v6 = vmul.f32 %v12446_v8, %v17642_v16  ;;  %v1648_v12 = vand.u32 4294901760, %v1647_v43  ;;  %v16682_v56 = vand.u32 4294901760, %v12456_v59  ;;  %10065 = vrcp.f32 %v1040_v36  ;;  %v17646_v8 = vld [vmem:[#allocation165_spill] sm:$0xff] }
 0x1af   : > { %8865 = vmatpush1.bf16.msra.mxu0 %v17643_v41  ;;  %1640 = vmatmul.mubr.f32.gmra.mrb[16].mxu1 %v1639_v21  ;;  %v12473_v20 = vand.u32 4294901760, %v1255_v39  ;;  %v1654_v25 = vand.u32 4294901760, %v1653_v2  ;;  %v12478_v41 = vpop.eup %10061  ;;  %v1662_v43 = vsub.f32 %v12453_v4, %v16680_v49  ;;  %v17648_v36 = vld [vmem:[#allocation21_spill] sm:$0xff] }
 0x1b0   : > { %8866 = vmatprep.subr.bf16.mxu0 %v17293_v38  ;;  %2520 = vmatmul.mubr.f32.gmra.mrb[18].mxu0 %v12407_v48  ;;  %v12475_v16 = vand.u32 4294901760, %v1254_v6  ;;  %17647 = vst [vmem:[#allocation165_spill] sm:$0xff] %v12478_v41  ;;  %v1668_v21 = vsub.f32 %v12456_v59, %v16682_v56  ;;  %v1258_v2 = vmul.f32 %v12478_v41, %v17648_v36  ;;  %v17649_v48 = vld [vmem:[#allocation8_spill] sm:$0xff]  ;;  %v1044_v36 = vpop.xlane.xlu1 %1043 }
 0x1b1   : > { %17644 = vst [vmem:[#allocation36_spill] sm:$0xff] %v12473_v20  ;;  %9247 = vmatpush1.bf16.msra.mxu1 %v17646_v8  ;;  %2525 = vmatprep.mubr.f32.mxu0 %v12436_v37  ;;  %v1257_v19 = vmul.f32 %v12478_v41, %v17649_v48  ;;  %v12492_v8 = vsub.f32 %v1255_v39, %v12473_v20  ;;  %v1663_v49 = vand.u32 4294901760, %v1662_v43  ;;  %10067 = vrcp.f32 %v1044_v36  ;;  %v17661_v41 = vld [vmem:[#allocation178_spill] sm:$0xff] }
 0x1b2   : > { %17645 = vst [vmem:[#allocation35_spill] sm:$0xff] %v12475_v16  ;;  %1649 = vmatprep.mubr.f32.mxu1 %v1648_v12  ;;  %v12495_v37 = vsub.f32 %v1254_v6, %v12475_v16  ;;  %v17652_v12 = vpack.c.bf16 %v11876_v35, %v11871_v54  ;;  %v1669_v62 = vand.u32 4294901760, %v1668_v21  ;;  %v12502_v56 = vand.u32 4294901760, %v1258_v2  ;;  %9232 = vmatprep.subr.bf16.mxu1 %v17293_v38  ;;  %v17660_v35 = vld [vmem:[#allocation66_spill] sm:$0xff] }
 0x1b3   : > { %17650 = vst [vmem:[#allocation21_spill] sm:$0xff] %v12492_v8  ;;  %1655 = vmatmul.mubr.f32.gmra.mrb[18].mxu1 %v1654_v25  ;;  %v12504_v48 = vand.u32 4294901760, %v1257_v19  ;;  %v16688_v39 = vand.u32 4294901760, %v12492_v8  ;;  %v17658_v36 = vpack.c.bf16 %v11915_v40, %v11901_v24 }
 0x1b4   : > { %17651 = vst [vmem:[#allocation8_spill] sm:$0xff] %v12495_v37  ;;  %8868 = vmatpush1.bf16.msra.mxu0 %v17652_v12  ;;  %17653 = vst [vmem:[#allocation235_spill] sm:$0xff] %v12502_v56  ;;  %v16689_v6 = vand.u32 4294901760, %v12495_v37  ;;  %1664 = vmatprep.mubr.f32.mxu1 %v1663_v49  ;;  %v12519_v12 = vsub.f32 %v1258_v2, %v12502_v56  ;;  %v17659_v49 = vld [vmem:[#allocation67_spill] sm:$0xff]  ;;  %v1048_v2 = vpop.xlane.xlu1 %1047 }
 0x1b5   : > { %8869 = vmatprep.subr.bf16.mxu0 %v17293_v38  ;;  %2527 = vmatmul.mubr.f32.gmra.mrb[20].mxu0 %v12438_v0  ;;  %17654 = vst [vmem:[#allocation236_spill] sm:$0xff] %v12504_v48  ;;  %v12510_v25 = vpop.eup %10063  ;;  %v1677_v43 = vsub.f32 %v12492_v8, %v16688_v39  ;;  %v12522_v0 = vsub.f32 %v1257_v19, %v12504_v48  ;;  %10069 = vrcp.f32 %v1048_v2 }
 0x1b6   : > { %2532 = vmatprep.mubr.f32.mxu0 %v12473_v20  ;;  %17655 = vst [vmem:[#allocation237_spill] sm:$0xff] %v12510_v25  ;;  %v1683_v21 = vsub.f32 %v12495_v37, %v16689_v6  ;;  %17656 = vst [vmem:[#allocation238_spill] sm:$0xff] %v12519_v12  ;;  %v1261_v20 = vmul.f32 %v12510_v25, %v17659_v49  ;;  %v1260_v39 = vmul.f32 %v12510_v25, %v17660_v35 }
 0x1b7   : > { %17657 = vst [vmem:[#allocation239_spill] sm:$0xff] %v12522_v0  ;;  %1670 = vmatmul.mubr.f32.gmra.mrb[20].mxu1 %v1669_v62  ;;  %v1678_v6 = vand.u32 4294901760, %v1677_v43  ;;  %v16697_v19 = vand.u32 4294901760, %v12519_v12  ;;  %v16699_v35 = vand.u32 4294901760, %v12522_v0 }
 0x1b8   : > { %8871 = vmatpush1.bf16.msra.mxu0 %v17658_v36  ;;  %v1684_v54 = vand.u32 4294901760, %v1683_v21  ;;  %9248 = vmatpush1.bf16.msra.mxu1 %v17661_v41  ;;  %v12536_v62 = vand.u32 4294901760, %v1261_v20  ;;  %v12538_v36 = vand.u32 4294901760, %v1260_v39  ;;  %v12542_v49 = vpop.eup %10065  ;;  %v17665_v41 = vpack.c.bf16 %v11945_v28, %v11940_v1  ;;  %v17666_v21 = vld [vmem:[#allocation24_spill] sm:$0xff] }
 0x1b9   : > { %8872 = vmatprep.subr.bf16.mxu0 %v17293_v38  ;;  %2534 = vmatmul.mubr.f32.gmra.mrb[22].mxu0 %v12475_v16  ;;  %17664 = vst [vmem:[#allocation178_spill] sm:$0xff] %v12542_v49  ;;  %v1692_v43 = vsub.f32 %v12519_v12, %v16697_v19  ;;  %v1264_v2 = vmul.f32 %v12542_v49, %v17666_v21  ;;  %v17667_v16 = vld [vmem:[#allocation13_spill] sm:$0xff] }
 0x1ba   : > { %2539 = vmatprep.mubr.f32.mxu0 %v12502_v56  ;;  %17662 = vst [vmem:[#allocation67_spill] sm:$0xff] %v12536_v62  ;;  %17663 = vst [vmem:[#allocation66_spill] sm:$0xff] %v12538_v36  ;;  %9233 = vmatprep.subr.bf16.mxu1 %v17293_v38  ;;  %v1698_v56 = vsub.f32 %v12522_v0, %v16699_v35  ;;  %v1263_v40 = vmul.f32 %v12542_v49, %v17667_v16 }
 0x1bb   : > { %1679 = vmatprep.mubr.f32.mxu1 %v1678_v6  ;;  %v12558_v6 = vsub.f32 %v1261_v20, %v12536_v62  ;;  %v1693_v19 = vand.u32 4294901760, %v1692_v43  ;;  %v12562_v28 = vsub.f32 %v1260_v39, %v12538_v36  ;;  %v17672_v20 = vld [vmem:[#allocation183_spill] sm:$0xff]  ;;  %v17673_v39 = vpack.c.bf16 %v12002_v57, %v11992_v5  ;;  %v17679_v5 = vld [vmem:[#allocation186_spill] sm:$0xff] }
 0x1bc   : > { %8874 = vmatpush1.bf16.msra.mxu0 %v17665_v41  ;;  %1685 = vmatmul.mubr.f32.gmra.mrb[22].mxu1 %v1684_v54  ;;  %v1052_v54 = vpop.xlane.xlu1 %1051  ;;  %v12566_v41 = vand.u32 4294901760, %v1264_v2  ;;  %v1699_v21 = vand.u32 4294901760, %v1698_v56  ;;  %v12568_v35 = vand.u32 4294901760, %v1263_v40 }
 0x1bd   : > { %17668 = vst [vmem:[#allocation24_spill] sm:$0xff] %v12558_v6  ;;  %2541 = vmatmul.mubr.f32.gmra.mrb[24].mxu0 %v12504_v48  ;;  %17669 = vst [vmem:[#allocation13_spill] sm:$0xff] %v12562_v28  ;;  %8875 = vmatprep.subr.bf16.mxu0 %v17293_v38  ;;  %v16704_v16 = vand.u32 4294901760, %v12558_v6  ;;  %10071 = vrcp.f32 %v1052_v54  ;;  %v16710_v43 = vand.u32 4294901760, %v12562_v28  ;;  %v12576_v48 = vpop.eup %10067 }
 0x1be   : > { %2546 = vmatprep.mubr.f32.mxu0 %v12536_v62  ;;  %17670 = vst [vmem:[#allocation240_spill] sm:$0xff] %v12566_v41  ;;  %17671 = vst [vmem:[#allocation241_spill] sm:$0xff] %v12568_v35  ;;  %9249 = vmatpush1.bf16.msra.mxu1 %v17672_v20  ;;  %v12582_v62 = vsub.f32 %v1264_v2, %v12566_v41  ;;  %v12585_v20 = vsub.f32 %v1263_v40, %v12568_v35 }
 0x1bf   : > { %1694 = vmatprep.mubr.f32.mxu1 %v1693_v19  ;;  %17674 = vst [vmem:[#allocation183_spill] sm:$0xff] %v12576_v48  ;;  %v1707_v56 = vsub.f32 %v12558_v6, %v16704_v16  ;;  %v17677_v19 = vld [vmem:[#allocation77_spill] sm:$0xff]  ;;  %9234 = vmatprep.subr.bf16.mxu1 %v17293_v38 }
 0x1c0   : > { %8877 = vmatpush1.bf16.msra.mxu0 %v17673_v39  ;;  %1700 = vmatmul.mubr.f32.gmra.mrb[24].mxu1 %v1699_v21  ;;  %17675 = vst [vmem:[#allocation242_spill] sm:$0xff] %v12582_v62  ;;  %17676 = vst [vmem:[#allocation243_spill] sm:$0xff] %v12585_v20  ;;  %v1267_v54 = vmul.f32 %v12576_v48, %v17677_v19  ;;  %v1713_v21 = vsub.f32 %v12562_v28, %v16710_v43  ;;  %v17678_v39 = vld [vmem:[#allocation76_spill] sm:$0xff]  ;;  %v1056_v40 = vpop.xlane.xlu1 %1055  ;;  %v16714_v57 = vand.u32 4294901760, %v12582_v62 }
 0x1c1   : > { %8878 = vmatprep.subr.bf16.mxu0 %v17293_v38  ;;  %2548 = vmatmul.mubr.f32.gmra.mrb[26].mxu0 %v12538_v36  ;;  %v1266_v16 = vmul.f32 %v12576_v48, %v17678_v39  ;;  %v1708_v2 = vand.u32 4294901760, %v1707_v56  ;;  %v16716_v36 = vand.u32 4294901760, %v12585_v20  ;;  %10073 = vrcp.f32 %v1056_v40 }
 0x1c2   : > { %2553 = vmatprep.mubr.f32.mxu0 %v12566_v41  ;;  %9250 = vmatpush1.bf16.msra.mxu1 %v17679_v5  ;;  %v12601_v19 = vand.u32 4294901760, %v1267_v54  ;;  %v1714_v1 = vand.u32 4294901760, %v1713_v21  ;;  %v17682_v39 = vpack.c.bf16 %v12040_v50, %v12015_v47  ;;  %v12609_v41 = vpop.eup %10069  ;;  %v1722_v56 = vsub.f32 %v12582_v62, %v16714_v57  ;;  %v17684_v21 = vld [vmem:[#allocation14_spill] sm:$0xff] }
 0x1c3   : > { %v12603_v43 = vand.u32 4294901760, %v1266_v16  ;;  %9235 = vmatprep.subr.bf16.mxu1 %v17293_v38  ;;  %17683 = vst [vmem:[#allocation186_spill] sm:$0xff] %v12609_v41  ;;  %1709 = vmatprep.mubr.f32.mxu1 %v1708_v2  ;;  %v1728_v5 = vsub.f32 %v12585_v20, %v16716_v36  ;;  %v1270_v40 = vmul.f32 %v12609_v41, %v17684_v21 }
 0x1c4   : > { %17680 = vst [vmem:[#allocation77_spill] sm:$0xff] %v12601_v19  ;;  %8880 = vmatpush1.bf16.msra.mxu0 %v17682_v39  ;;  %1715 = vmatmul.mubr.f32.gmra.mrb[26].mxu1 %v1714_v1  ;;  %v17685_v39 = vld [vmem:[#allocation26_spill] sm:$0xff]  ;;  %v12624_v2 = vsub.f32 %v1267_v54, %v12601_v19  ;;  %v1723_v57 = vand.u32 4294901760, %v1722_v56  ;;  %v17690_v54 = vpack.c.bf16 %v12061_v33, %v12057_v58 }
 0x1c5   : > { %17681 = vst [vmem:[#allocation76_spill] sm:$0xff] %v12603_v43  ;;  %8881 = vmatprep.subr.bf16.mxu0 %v17293_v38  ;;  %2555 = vmatmul.mubr.f32.gmra.mrb[28].mxu0 %v12568_v35  ;;  %v1269_v50 = vmul.f32 %v12609_v41, %v17685_v39  ;;  %v1729_v47 = vand.u32 4294901760, %v1728_v5  ;;  %v12628_v36 = vsub.f32 %v1266_v16, %v12603_v43  ;;  %v1060_v35 = vpop.xlane.xlu1 %1059  ;;  %v12631_v1 = vand.u32 4294901760, %v1270_v40 }
 0x1c6   : > { %17686 = vst [vmem:[#allocation14_spill] sm:$0xff] %v12624_v2  ;;  %2560 = vmatprep.mubr.f32.mxu0 %v12601_v19  ;;  %9251 = vmatpush1.bf16.msra.mxu1 %v12073_v14  ;;  %v16724_v21 = vand.u32 4294901760, %v12624_v2  ;;  %10075 = vrcp.f32 %v1060_v35  ;;  %v17694_v35 = vld [vmem:[#allocation87_spill] sm:$0xff] }
 0x1c7   : > { %17687 = vst [vmem:[#allocation26_spill] sm:$0xff] %v12628_v36  ;;  %17688 = vst [vmem:[#allocation244_spill] sm:$0xff] %v12631_v1  ;;  %v12633_v24 = vand.u32 4294901760, %v1269_v50  ;;  %9236 = vmatprep.subr.bf16.mxu1 %v17293_v38  ;;  %1724 = vmatprep.mubr.f32.mxu1 %v1723_v57  ;;  %v16728_v16 = vand.u32 4294901760, %v12628_v36  ;;  %v12642_v14 = vpop.eup %10071  ;;  %v12649_v5 = vsub.f32 %v1270_v40, %v12631_v1  ;;  %v1088_v57 = vpop.xlane.xlu0 %1087 }
 0x1c8   : > { %8883 = vmatpush1.bf16.msra.mxu0 %v17690_v54  ;;  %17691 = vst [vmem:[#allocation246_spill] sm:$0xff] %v12642_v14  ;;  %1730 = vmatmul.mubr.f32.gmra.mrb[28].mxu1 %v1729_v47  ;;  %v1737_v56 = vsub.f32 %v12624_v2, %v16724_v21  ;;  %v1273_v54 = vmul.f32 %v12642_v14, %v17694_v35 }
 0x1c9   : > { %17689 = vst [vmem:[#allocation245_spill] sm:$0xff] %v12633_v24  ;;  %8884 = vmatprep.subr.bf16.mxu0 %v17293_v38  ;;  %2562 = vmatmul.mubr.f32.gmra.mrb[30].mxu0 %v12603_v43  ;;  %17692 = vst [vmem:[#allocation247_spill] sm:$0xff] %v12649_v5  ;;  %v12652_v39 = vsub.f32 %v1269_v50, %v12633_v24  ;;  %v1743_v47 = vsub.f32 %v12628_v36, %v16728_v16  ;;  %v17695_v43 = vld [vmem:[#allocation84_spill] sm:$0xff]  ;;  %v1064_v40 = vpop.xlane.xlu1 %1063  ;;  %v16733_v50 = vand.u32 4294901760, %v12649_v5 }
 0x1ca   : > { %2567 = vmatprep.mubr.f32.mxu0 %v12631_v1  ;;  %v1272_v19 = vmul.f32 %v12642_v14, %v17695_v43  ;;  %9252 = vmatpush1.bf16.msra.mxu1 %v12093_v13  ;;  %v1738_v21 = vand.u32 4294901760, %v1737_v56  ;;  %v17696_v1 = vpack.c.bf16 %v12077_v18, %v12070_v55  ;;  %10077 = vrcp.f32 %v1064_v40  ;;  %v17700_v56 = vld [vmem:[#allocation30_spill] sm:$0xff]  ;;  %v17701_v40 = vld [vmem:[#allocation19_spill] sm:$0xff] }
 0x1cb   : > { %17693 = vst [vmem:[#allocation248_spill] sm:$0xff] %v12652_v39  ;;  %v16734_v33 = vand.u32 4294901760, %v12652_v39  ;;  %9237 = vmatprep.subr.bf16.mxu1 %v17293_v38  ;;  %v12669_v35 = vand.u32 4294901760, %v1273_v54  ;;  %v1744_v16 = vand.u32 4294901760, %v1743_v47  ;;  %v12674_v13 = vpop.eup %10073  ;;  %10079 = vrcp.f32 %v1088_v57 }
 0x1cc   : > { %8886 = vmatpush1.bf16.msra.mxu0 %v17696_v1  ;;  %v12671_v58 = vand.u32 4294901760, %v1272_v19  ;;  %17699 = vst [vmem:[#allocation249_spill] sm:$0xff] %v12674_v13  ;;  %1739 = vmatprep.mubr.f32.mxu1 %v1738_v21  ;;  %v1752_v43 = vsub.f32 %v12649_v5, %v16733_v50  ;;  %v1276_v47 = vmul.f32 %v12674_v13, %v17700_v56 }
 0x1cd   : > { %17697 = vst [vmem:[#allocation87_spill] sm:$0xff] %v12669_v35  ;;  %8887 = vmatprep.subr.bf16.mxu0 %v17293_v38  ;;  %2569 = vmatmul.mubr.f32.gmra.mrb[32].mxu0 %v12633_v24  ;;  %v1758_v1 = vsub.f32 %v12652_v39, %v16734_v33  ;;  %v1275_v57 = vmul.f32 %v12674_v13, %v17701_v40  ;;  %v1068_v33 = vpop.xlane.xlu1 %1067 }
 0x1ce   : > { %17698 = vst [vmem:[#allocation84_spill] sm:$0xff] %v12671_v58  ;;  %2574 = vmatprep.mubr.f32.mxu0 %v12669_v35  ;;  %1745 = vmatmul.mubr.f32.gmra.mrb[30].mxu1 %v1744_v16  ;;  %v12689_v24 = vsub.f32 %v1273_v54, %v12669_v35  ;;  %v1753_v21 = vand.u32 4294901760, %v1752_v43  ;;  %v12692_v50 = vsub.f32 %v1272_v19, %v12671_v58  ;;  %v12695_v55 = vand.u32 4294901760, %v1276_v47 }
 0x1cf   : > { %v1759_v18 = vand.u32 4294901760, %v1758_v1  ;;  %9253 = vmatpush1.bf16.msra.mxu1 %v12115_v46  ;;  %v12697_v16 = vand.u32 4294901760, %v1275_v57  ;;  %10081 = vrcp.f32 %v1068_v33  ;;  %v17709_v33 = vld [vmem:[#allocation46_spill] sm:$0xff] }
 0x1d0   : > { %17702 = vst [vmem:[#allocation30_spill] sm:$0xff] %v12689_v24  ;;  %17703 = vst [vmem:[#allocation19_spill] sm:$0xff] %v12692_v50  ;;  %v16740_v56 = vand.u32 4294901760, %v12689_v24  ;;  %9238 = vmatprep.subr.bf16.mxu1 %v17293_v38  ;;  %1754 = vmatprep.mubr.f32.mxu1 %v1753_v21  ;;  %v16744_v54 = vand.u32 4294901760, %v12692_v50  ;;  %v12703_v43 = vpop.eup %10075  ;;  %v12710_v19 = vsub.f32 %v1276_v47, %v12695_v55 }
 0x1d1   : > { %17704 = vst [vmem:[#allocation250_spill] sm:$0xff] %v12695_v55  ;;  %17705 = vst [vmem:[#allocation251_spill] sm:$0xff] %v12697_v16  ;;  %2576 = vmatmul.mubr.f32.gmra.mrb[34].mxu0 %v12671_v58  ;;  %v12713_v1 = vsub.f32 %v1275_v57, %v12697_v16  ;;  %v1279_v40 = vmul.f32 %v12703_v43, %v17709_v33  ;;  %v17710_v58 = vld [vmem:[#allocation95_spill] sm:$0xff]  ;;  %v1072_v35 = vpop.xlane.xlu1 %1071 }
 0x1d2   : > { %17706 = vst [vmem:[#allocation252_spill] sm:$0xff] %v12703_v43  ;;  %2581 = vmatprep.mubr.f32.mxu0 %v12695_v55  ;;  %1760 = vmatmul.mubr.f32.gmra.mrb[32].mxu1 %v1759_v18  ;;  %v1767_v46 = vsub.f32 %v12689_v24, %v16740_v56  ;;  %17707 = vst [vmem:[#allocation253_spill] sm:$0xff] %v12710_v19  ;;  %v1773_v21 = vsub.f32 %v12692_v50, %v16744_v54  ;;  %v16749_v47 = vand.u32 4294901760, %v12710_v19 }
 0x1d3   : > { %17708 = vst [vmem:[#allocation254_spill] sm:$0xff] %v12713_v1  ;;  %v1278_v18 = vmul.f32 %v12703_v43, %v17710_v58  ;;  %9254 = vmatpush1.bf16.msra.mxu1 %v12127_v7  ;;  %v16752_v55 = vand.u32 4294901760, %v12713_v1  ;;  %10083 = vrcp.f32 %v1072_v35  ;;  %v12726_v57 = vand.u32 4294901760, %v1279_v40  ;;  %v1096_v35 = vpop.xlane.xlu0 %1095  ;;  %v17716_v43 = vld [vmem:[#allocation32_spill] sm:$0xff] }
 0x1d4   : > { %v1768_v56 = vand.u32 4294901760, %v1767_v46  ;;  %v1774_v33 = vand.u32 4294901760, %v1773_v21  ;;  %v12730_v54 = vpop.eup %10077  ;;  %v1782_v58 = vsub.f32 %v12710_v19, %v16749_v47  ;;  %v17715_v21 = vld [vmem:[#allocation33_spill] sm:$0xff] }
 0x1d5   : > { %2583 = vmatmul.mubr.f32.gmra.mrb[36].mxu0 %v12697_v16  ;;  %17711 = vst [vmem:[#allocation46_spill] sm:$0xff] %v12726_v57  ;;  %v12728_v13 = vand.u32 4294901760, %v1278_v18  ;;  %17713 = vst [vmem:[#allocation255_spill] sm:$0xff] %v12730_v54  ;;  %v1788_v7 = vsub.f32 %v12713_v1, %v16752_v55  ;;  %v12738_v46 = vpop.eup %10079  ;;  %v1282_v16 = vmul.f32 %v12730_v54, %v17715_v21  ;;  %v1076_v47 = vpop.xlane.xlu1 %1075 }
 0x1d6   : > { %1769 = vmatprep.mubr.f32.mxu1 %v1768_v56  ;;  %17714 = vst [vmem:[#allocation256_spill] sm:$0xff] %v12738_v46  ;;  %2588 = vmatprep.mubr.f32.mxu0 %v12726_v57  ;;  %v1281_v56 = vmul.f32 %v12730_v54, %v17716_v43  ;;  %v12746_v14 = vsub.f32 %v1279_v40, %v12726_v57  ;;  %v1783_v41 = vand.u32 4294901760, %v1782_v58  ;;  %10085 = vrcp.f32 %v1076_v47  ;;  %v17721_v40 = vld [vmem:[#allocation79_spill] sm:$0xff]  ;;  %v17727_v54 = vld [vmem:[#allocation106_spill] sm:$0xff] }
 0x1d7   : > { %17712 = vst [vmem:[#allocation95_spill] sm:$0xff] %v12728_v13  ;;  %1775 = vmatmul.mubr.f32.gmra.mrb[34].mxu1 %v1774_v33  ;;  %v1789_v48 = vand.u32 4294901760, %v1788_v7  ;;  %v12749_v55 = vsub.f32 %v1278_v18, %v12728_v13  ;;  %v12752_v49 = vand.u32 4294901760, %v1282_v16  ;;  %10087 = vrcp.f32 %v1096_v35  ;;  %v17725_v43 = vld [vmem:[#allocation107_spill] sm:$0xff] }
 0x1d8   : > { %17717 = vst [vmem:[#allocation33_spill] sm:$0xff] %v12746_v14  ;;  %v12754_v33 = vand.u32 4294901760, %v1281_v56  ;;  %v16759_v21 = vand.u32 4294901760, %v12746_v14  ;;  %1784 = vmatprep.mubr.f32.mxu1 %v1783_v41  ;;  %v1300_v58 = vmul.f32 %v12738_v46, %v17721_v40 }
 0x1d9   : > { %17718 = vst [vmem:[#allocation32_spill] sm:$0xff] %v12749_v55  ;;  %2590 = vmatmul.mubr.f32.gmra.mrb[38].mxu0 %v12728_v13  ;;  %17719 = vst [vmem:[#allocation257_spill] sm:$0xff] %v12752_v49  ;;  %v12760_v7 = vpop.eup %10081  ;;  %v12767_v47 = vsub.f32 %v1282_v16, %v12752_v49  ;;  %v1080_v41 = vpop.xlane.xlu1 %1079  ;;  %v17726_v40 = vand.u32 4294901760, %v12749_v55 }
 0x1da   : > { %17720 = vst [vmem:[#allocation258_spill] sm:$0xff] %v12754_v33  ;;  %17722 = vst [vmem:[#allocation79_spill] sm:$0xff] %v12760_v7  ;;  %2595 = vmatprep.mubr.f32.mxu0 %v12752_v49  ;;  %v1797_v18 = vsub.f32 %v12746_v14, %v16759_v21  ;;  %v12770_v35 = vsub.f32 %v1281_v56, %v12754_v33  ;;  %v1285_v13 = vmul.f32 %v12760_v7, %v17725_v43 }
 0x1db   : > { %1790 = vmatmul.mubr.f32.gmra.mrb[36].mxu1 %v1789_v48  ;;  %17723 = vst [vmem:[#allocation259_spill] sm:$0xff] %v12767_v47  ;;  %v1803_v57 = vsub.f32 %v12749_v55, %v17726_v40  ;;  %v1284_v48 = vmul.f32 %v12760_v7, %v17727_v54  ;;  %10089 = vrcp.f32 %v1080_v41  ;;  %v16771_v16 = vand.u32 4294901760, %v12767_v47  ;;  %v17732_v41 = vld [vmem:[#allocation78_spill] sm:$0xff] }
 0x1dc   : > { %17724 = vst [vmem:[#allocation260_spill] sm:$0xff] %v12770_v35  ;;  %v1798_v21 = vand.u32 4294901760, %v1797_v18  ;;  %v16770_v56 = vand.u32 4294901760, %v12770_v35  ;;  %v12782_v49 = vand.u32 4294901760, %v1285_v13  ;;  %v12786_v43 = vand.u32 4294901760, %v1300_v58 }
 0x1dd   : > { %2597 = vmatmul.mubr.f32.gmra.mrb[40].mxu0 %v12754_v33  ;;  %v1804_v25 = vand.u32 4294901760, %v1803_v57  ;;  %v12784_v27 = vand.u32 4294901760, %v1284_v48  ;;  %v12788_v63 = vpop.eup %10083  ;;  %v1812_v54 = vsub.f32 %v12767_v47, %v16771_v16  ;;  %v1299_v40 = vmul.f32 %v12738_v46, %v17732_v41  ;;  %v1084_v57 = vpop.xlane.xlu1 %1083  ;;  %v17733_v33 = vld [vmem:[#allocation61_spill] sm:$0xff] }
 0x1de   : > { %17728 = vst [vmem:[#allocation107_spill] sm:$0xff] %v12782_v49  ;;  %17730 = vst [vmem:[#allocation261_spill] sm:$0xff] %v12786_v43  ;;  %1799 = vmatprep.mubr.f32.mxu1 %v1798_v21  ;;  %v1818_v18 = vsub.f32 %v12770_v35, %v16770_v56  ;;  %2602 = vmatprep.mubr.f32.mxu0 %v12782_v49  ;;  %v1288_v7 = vmul.f32 %v12788_v63, %v17733_v33  ;;  %10091 = vrcp.f32 %v1084_v57 }
 0x1df   : > { %17729 = vst [vmem:[#allocation106_spill] sm:$0xff] %v12784_v27  ;;  %17731 = vst [vmem:[#allocation262_spill] sm:$0xff] %v12788_v63  ;;  %1805 = vmatmul.mubr.f32.gmra.mrb[38].mxu1 %v1804_v25  ;;  %v1287_v21 = vmul.f32 %v12788_v63, %v17734_v52  ;;  %v12804_v45 = vsub.f32 %v1285_v13, %v12782_v49  ;;  %v1813_v56 = vand.u32 4294901760, %v1812_v54  ;;  %v12831_v63 = vand.u32 4294901760, %v1299_v40 }
 0x1e0   : > { %v1819_v16 = vand.u32 4294901760, %v1818_v18  ;;  %v12808_v41 = vsub.f32 %v1284_v48, %v12784_v27  ;;  %v12810_v46 = vand.u32 4294901760, %v1288_v7  ;;  %v12816_v35 = vsub.f32 %v1300_v58, %v12786_v43  ;;  %v12818_v52 = vpop.eup %10085  ;;  %v17742_v18 = vld [vmem:[#allocation64_spill] sm:$0xff]  ;;  %v17743_v58 = vld [vmem:[#allocation63_spill] sm:$0xff] }
 0x1e1   : > { %17735 = vst [vmem:[#allocation78_spill] sm:$0xff] %v12804_v45  ;;  %2604 = vmatmul.mubr.f32.gmra.mrb[42].mxu0 %v12784_v27  ;;  %v12812_v25 = vand.u32 4294901760, %v1287_v21  ;;  %v16782_v33 = vand.u32 4294901760, %v12804_v45  ;;  %17740 = vst [vmem:[#allocation265_spill] sm:$0xff] %v12818_v52  ;;  %1814 = vmatprep.mubr.f32.mxu1 %v1813_v56  ;;  %v12821_v57 = vpop.eup %10087  ;;  %v1092_v48 = vpop.xlane.xlu1 %1091  ;;  %v1291_v27 = vmul.f32 %v12818_v52, %v17742_v18 }
 0x1e2   : > { %17736 = vst [vmem:[#allocation61_spill] sm:$0xff] %v12808_v41  ;;  %17737 = vst [vmem:[#allocation38_spill] sm:$0xff] %v12810_v46  ;;  %v16790_v13 = vand.u32 4294901760, %v12808_v41  ;;  %2609 = vmatprep.mubr.f32.mxu0 %v12810_v46  ;;  %v1290_v49 = vmul.f32 %v12818_v52, %v17743_v58  ;;  %v1104_v56 = vpop.xlane.xlu0 %1103  ;;  %10093 = vrcp.f32 %v1092_v48  ;;  %v12838_v43 = vsub.f32 %v1288_v7, %v12810_v46 }
 0x1e3   : > { %17738 = vst [vmem:[#allocation263_spill] sm:$0xff] %v12812_v25  ;;  %17739 = vst [vmem:[#allocation264_spill] sm:$0xff] %v12816_v35  ;;  %1820 = vmatmul.mubr.f32.gmra.mrb[40].mxu1 %v1819_v16  ;;  %v1827_v54 = vsub.f32 %v12804_v45, %v16782_v33  ;;  %v12841_v33 = vsub.f32 %v1287_v21, %v12812_v25  ;;  %v12843_v45 = vand.u32 4294901760, %v1291_v27  ;;  %10095 = vrcp.f32 %v1104_v56 }
 0x1e4   : > { %17741 = vst [vmem:[#allocation266_spill] sm:$0xff] %v12821_v57  ;;  %17744 = vst [vmem:[#allocation64_spill] sm:$0xff] %v12831_v63  ;;  %v1833_v16 = vsub.f32 %v12808_v41, %v16790_v13  ;;  %v12845_v58 = vand.u32 4294901760, %v1290_v49  ;;  %v16797_v55 = vand.u32 4294901760, %v12838_v43  ;;  %v17750_v41 = vld [vmem:[#allocation90_spill] sm:$0xff] }
 0x1e5   : > { %2611 = vmatmul.mubr.f32.gmra.mrb[44].mxu0 %v12812_v25  ;;  %17745 = vst [vmem:[#allocation63_spill] sm:$0xff] %v12838_v43  ;;  %17746 = vst [vmem:[#allocation267_spill] sm:$0xff] %v12841_v33  ;;  %v1828_v18 = vand.u32 4294901760, %v1827_v54  ;;  %v12848_v48 = vpop.eup %10089  ;;  %v16802_v13 = vand.u32 4294901760, %v12841_v33  ;;  %v1306_v7 = vmul.f32 %v12821_v57, %v17750_v41  ;;  %v1100_v21 = vpop.xlane.xlu1 %1099  ;;  %v12856_v54 = vsub.f32 %v1291_v27, %v12843_v45  ;;  %v17753_v25 = vld [vmem:[#allocation70_spill] sm:$0xff]  ;;  %v17754_v27 = vld [vmem:[#allocation69_spill] sm:$0xff] }
 0x1e6   : > { %17747 = vst [vmem:[#allocation268_spill] sm:$0xff] %v12843_v45  ;;  %17748 = vst [vmem:[#allocation269_spill] sm:$0xff] %v12845_v58  ;;  %v1834_v47 = vand.u32 4294901760, %v1833_v16  ;;  %2616 = vmatprep.mubr.f32.mxu0 %v12843_v45  ;;  %v12859_v52 = vsub.f32 %v1290_v49, %v12845_v58  ;;  %v1294_v16 = vmul.f32 %v12848_v48, %v17753_v25  ;;  %10097 = vrcp.f32 %v1100_v21 }
 0x1e7   : > { %17749 = vst [vmem:[#allocation270_spill] sm:$0xff] %v12848_v48  ;;  %1829 = vmatprep.mubr.f32.mxu1 %v1828_v18  ;;  %17751 = vst [vmem:[#allocation90_spill] sm:$0xff] %v12856_v54  ;;  %v1842_v41 = vsub.f32 %v12838_v43, %v16797_v55  ;;  %v1848_v56 = vsub.f32 %v12841_v33, %v16802_v13  ;;  %v1293_v18 = vmul.f32 %v12848_v48, %v17754_v27  ;;  %v1112_v55 = vpop.xlane.xlu0 %1111  ;;  %v17759_v33 = vld [vmem:[#allocation89_spill] sm:$0xff] }
 0x1e8   : > { %17752 = vst [vmem:[#allocation271_spill] sm:$0xff] %v12859_v52  ;;  %1835 = vmatmul.mubr.f32.gmra.mrb[42].mxu1 %v1834_v47  ;;  %v16810_v49 = vand.u32 4294901760, %v12856_v54  ;;  %v12875_v47 = vand.u32 4294901760, %v1294_v16  ;;  %v12878_v21 = vsub.f32 %v1299_v40, %v12831_v63  ;;  %v12886_v27 = vmul.f32 %v12821_v57, %v17759_v33 }
 0x1e9   : > { %2618 = vmatmul.mubr.f32.gmra.mrb[46].mxu0 %v12845_v58  ;;  %v12880_v58 = vpop.eup %10091  ;;  %v1843_v45 = vand.u32 4294901760, %v1842_v41  ;;  %v1849_v46 = vand.u32 4294901760, %v1848_v56  ;;  %v12882_v13 = vand.u32 4294901760, %v1293_v18  ;;  %v1108_v48 = vpop.xlane.xlu1 %1107  ;;  %v12897_v41 = vand.u32 4294901760, %v1306_v7  ;;  %v17763_v56 = vld [vmem:[#allocation74_spill] sm:$0xff] }
 0x1ea   : > { %2921 = vmatprep.mubr.f32.mxu0 %v12141_v11  ;;  %17755 = vst [vmem:[#allocation70_spill] sm:$0xff] %v12875_v47  ;;  %17756 = vst [vmem:[#allocation69_spill] sm:$0xff] %v12878_v21  ;;  %v1857_v25 = vsub.f32 %v12856_v54, %v16810_v49  ;;  %v17760_v11 = vand.u32 4294901760, %v12859_v52  ;;  %v12895_v63 = vsub.f32 %v1294_v16, %v12875_v47  ;;  %10099 = vrcp.f32 %v1108_v48  ;;  %v17764_v49 = vld [vmem:[#allocation72_spill] sm:$0xff] }
 0x1eb   : > { %17757 = vst [vmem:[#allocation272_spill] sm:$0xff] %v12880_v58  ;;  %17758 = vst [vmem:[#allocation273_spill] sm:$0xff] %v12882_v13  ;;  %1844 = vmatprep.mubr.f32.mxu1 %v1843_v45  ;;  %v12901_v33 = vsub.f32 %v1293_v18, %v12882_v13  ;;  %v1297_v57 = vmul.f32 %v12880_v58, %v17763_v56  ;;  %v1296_v54 = vmul.f32 %v12880_v58, %v17764_v49  ;;  %v17770_v18 = vld [vmem:[#allocation82_spill] sm:$0xff]  ;;  %v17771_v58 = vld [vmem:[#allocation81_spill] sm:$0xff] }
 0x1ec   : > { %v1863_v40 = vsub.f32 %v12859_v52, %v17760_v11  ;;  %17761 = vst [vmem:[#allocation89_spill] sm:$0xff] %v12897_v41  ;;  %10101 = vrcp.f32 %v1112_v55  ;;  %1850 = vmatmul.mubr.f32.gmra.mrb[44].mxu1 %v1849_v46  ;;  %v17765_v11 = vld [vmem:[#allocation50_spill] sm:$0xff]  ;;  %v1858_v16 = vand.u32 4294901760, %v1857_v25  ;;  %v16822_v45 = vand.u32 4294901760, %v12895_v63  ;;  %v12909_v48 = vpop.eup %10093 }
 0x1ed   : > { %2924 = vmatmul.mubr.f32.vlgmr.msra.gmra.mrb[0].mxu0 %v12144_v53  ;;  %17762 = vst [vmem:[#allocation274_spill] sm:$0xff] %v12901_v33  ;;  %17766 = vst [vmem:[#allocation74_spill] sm:$0xff] %v12909_v48  ;;  %v12913_v53 = vand.u32 4294901760, %v1297_v57  ;;  %v12916_v56 = vand.u32 4294901760, %v1296_v54  ;;  %v17769_v55 = vand.u32 4294901760, %v12816_v35  ;;  %v1116_v49 = vpop.xlane.xlu1 %1115  ;;  %v17772_v13 = vand.u32 4294901760, %v12901_v33 }
 0x1ee   : > { %8889 = vmatpush1.bf16.msra.mxu0 %v17765_v11  ;;  %v1864_v47 = vand.u32 4294901760, %v1863_v40  ;;  %2930 = vmatprep.mubr.f32.mxu0 %v12184_v17  ;;  %v1872_v25 = vsub.f32 %v12895_v63, %v16822_v45  ;;  %v1303_v11 = vmul.f32 %v12909_v48, %v17770_v18  ;;  %v1302_v17 = vmul.f32 %v12909_v48, %v17771_v58  ;;  %v12944_v40 = vpop.eup %10095 }
 0x1ef   : > { %17767 = vst [vmem:[#allocation72_spill] sm:$0xff] %v12913_v53  ;;  %8890 = vmatprep.subr.bf16.mxu0 %v17293_v38  ;;  %17768 = vst [vmem:[#allocation275_spill] sm:$0xff] %v12916_v56  ;;  %v12921_v46 = vsub.f32 %v12816_v35, %v17769_v55  ;;  %1859 = vmatprep.mubr.f32.mxu1 %v1858_v16  ;;  %v1878_v55 = vsub.f32 %v12901_v33, %v17772_v13  ;;  %v12952_v13 = vand.u32 4294901760, %v12886_v27 }
 0x1f0   : > { %v12936_v16 = vsub.f32 %v1297_v57, %v12913_v53  ;;  %v12939_v35 = vsub.f32 %v1296_v54, %v12916_v56  ;;  %v12942_v45 = vsub.f32 %v1306_v7, %v12897_v41  ;;  %17776 = vst [vmem:[#allocation277_spill] sm:$0xff] %v12944_v40  ;;  %1865 = vmatmul.mubr.f32.gmra.mrb[46].mxu1 %v1864_v47  ;;  %v1873_v58 = vand.u32 4294901760, %v1872_v25  ;;  %v12954_v57 = vpop.eup %10097  ;;  %v17781_v41 = vld [vmem:[#allocation41_spill] sm:$0xff] }
 0x1f1   : > { %2933 = vmatmul.mubr.f32.gmra.mrb[2].mxu0 %v12187_v22  ;;  %v12947_v18 = vand.u32 4294901760, %v1303_v11  ;;  %v12949_v48 = vand.u32 4294901760, %v1302_v17  ;;  %17779 = vst [vmem:[#allocation280_spill] sm:$0xff] %v12952_v13  ;;  %17780 = vst [vmem:[#allocation281_spill] sm:$0xff] %v12954_v57  ;;  %10103 = vrcp.f32 %v1116_v49  ;;  %v1879_v54 = vand.u32 4294901760, %v1878_v55  ;;  %v1120_v49 = vpop.xlane.xlu0 %1119 }
 0x1f2   : > { %17773 = vst [vmem:[#allocation82_spill] sm:$0xff] %v12936_v16  ;;  %17774 = vst [vmem:[#allocation81_spill] sm:$0xff] %v12939_v35  ;;  %2939 = vmatprep.mubr.f32.mxu0 %v12205_v34  ;;  %v16835_v7 = vand.u32 4294901760, %v12936_v16  ;;  %v16836_v22 = vand.u32 4294901760, %v12939_v35  ;;  %8892 = vmatpush1.bf16.msra.mxu0 %v17781_v41  ;;  %v17784_v34 = vld [vmem:[#allocation93_spill] sm:$0xff]  ;;  %v17786_v41 = vld [vmem:[#allocation99_spill] sm:$0xff]  ;;  %10105 = vrcp.f32 %v1120_v49 }
 0x1f3   : > { %17775 = vst [vmem:[#allocation276_spill] sm:$0xff] %v12942_v45  ;;  %17777 = vst [vmem:[#allocation278_spill] sm:$0xff] %v12947_v18  ;;  %1874 = vmatprep.mubr.f32.mxu1 %v1873_v58  ;;  %v12960_v47 = vsub.f32 %v1303_v11, %v12947_v18  ;;  %v12963_v25 = vsub.f32 %v1302_v17, %v12949_v48  ;;  %8893 = vmatprep.subr.bf16.mxu0 %v17293_v38  ;;  %v17785_v58 = vld [vmem:[#allocation92_spill] sm:$0xff]  ;;  %v1903_v18 = vand.u32 4294901760, %v12921_v46  ;;  %v17798_v46 = vld [vmem:[#allocation103_spill] sm:$0xff] }
 0x1f4   : > { %17778 = vst [vmem:[#allocation279_spill] sm:$0xff] %v12949_v48  ;;  %v1309_v56 = vmul.f32 %v12954_v57, %v17784_v34  ;;  %v1887_v55 = vsub.f32 %v12936_v16, %v16835_v7  ;;  %v1893_v11 = vsub.f32 %v12939_v35, %v16836_v22  ;;  %v1308_v17 = vmul.f32 %v12954_v57, %v17785_v58  ;;  %v12990_v53 = vpop.eup %10099 }
 0x1f5   : > { %17782 = vst [vmem:[#allocation282_spill] sm:$0xff] %v12960_v47  ;;  %17783 = vst [vmem:[#allocation283_spill] sm:$0xff] %v12963_v25  ;;  %2942 = vmatmul.mubr.f32.gmra.mrb[4].mxu0 %v12208_v44  ;;  %v1312_v48 = vmul.f32 %v12944_v40, %v17786_v41  ;;  %1880 = vmatmul.mubr.f32.gmra.mrb[48].mxu1 %v1879_v54  ;;  %v17787_v34 = vand.u32 4294901760, %v12878_v21  ;;  %v12986_v7 = vsub.f32 %v12886_v27, %v12952_v13  ;;  %v17791_v54 = vld [vmem:[#allocation45_spill] sm:$0xff] }
 0x1f6   : > { %2948 = vmatprep.mubr.f32.mxu0 %v12243_v10  ;;  %v12988_v22 = vand.u32 4294901760, %v1309_v56  ;;  %17790 = vst [vmem:[#allocation99_spill] sm:$0xff] %v12990_v53  ;;  %v1888_v58 = vand.u32 4294901760, %v1887_v55  ;;  %v1894_v57 = vand.u32 4294901760, %v1893_v11  ;;  %8895 = vmatpush1.bf16.msra.mxu0 %v17791_v54  ;;  %v17792_v10 = vld [vmem:[#allocation98_spill] sm:$0xff]  ;;  %v13000_v13 = vand.u32 4294901760, %v1308_v17  ;;  %v1124_v55 = vpop.xlane.xlu1 %1123 }
 0x1f7   : > { %v1908_v44 = vsub.f32 %v12878_v21, %v17787_v34  ;;  %17788 = vst [vmem:[#allocation93_spill] sm:$0xff] %v12986_v7  ;;  %v1311_v35 = vmul.f32 %v12944_v40, %v17792_v10  ;;  %v12996_v34 = vpop.eup %10101  ;;  %8896 = vmatprep.subr.bf16.mxu0 %v17293_v38  ;;  %v17795_v11 = vand.u32 4294901760, %v12960_v47  ;;  %v13010_v49 = vand.u32 4294901760, %v1312_v48  ;;  %v1128_v21 = vpop.xlane.xlu0 %1127 }
 0x1f8   : > { %17789 = vst [vmem:[#allocation92_spill] sm:$0xff] %v12988_v22  ;;  %17793 = vst [vmem:[#allocation98_spill] sm:$0xff] %v12996_v34  ;;  %1889 = vmatprep.mubr.f32.mxu1 %v1888_v58  ;;  %v13008_v10 = vsub.f32 %v1309_v56, %v12988_v22  ;;  %v1315_v27 = vmul.f32 %v12990_v53, %v17798_v46  ;;  %v17799_v40 = vand.u32 4294901760, %v12942_v45  ;;  %v17801_v56 = vld [vmem:[#allocation111_spill] sm:$0xff]  ;;  %v17802_v22 = vld [vmem:[#allocation110_spill] sm:$0xff]  ;;  %10107 = vrcp.f32 %v1124_v55 }
 0x1f9   : > { %17794 = vst [vmem:[#allocation284_spill] sm:$0xff] %v13000_v13  ;;  %2951 = vmatmul.mubr.f32.gmra.mrb[6].mxu0 %v12246_v3  ;;  %v1917_v41 = vsub.f32 %v12960_v47, %v17795_v11  ;;  %17797 = vst [vmem:[#allocation286_spill] sm:$0xff] %v13010_v49  ;;  %1895 = vmatmul.mubr.f32.gmra.mrb[50].mxu1 %v1894_v57  ;;  %v1909_v58 = vand.u32 4294901760, %v1908_v44  ;;  %v13019_v11 = vand.u32 4294901760, %v1311_v35  ;;  %v17803_v57 = vand.u32 4294901760, %v12963_v25  ;;  %v17805_v44 = vld [vmem:[#allocation102_spill] sm:$0xff] }
 0x1fa   : > { %17796 = vst [vmem:[#allocation285_spill] sm:$0xff] %v13008_v10  ;;  %2957 = vmatprep.mubr.f32.mxu0 %v12265_v29  ;;  %1904 = vmatprep.mubr.f32.mxu1 %v1903_v18  ;;  %v1932_v3 = vsub.f32 %v12942_v45, %v17799_v40  ;;  %v1318_v47 = vmul.f32 %v12996_v34, %v17802_v22  ;;  %v13040_v29 = vand.u32 4294901760, %v1315_v27  ;;  %10109 = vrcp.f32 %v1128_v21  ;;  %v17812_v22 = vld [vmem:[#allocation109_spill] sm:$0xff]  ;;  %v1132_v21 = vpop.xlane.xlu1 %1131 }
 0x1fb   : > { %17800 = vst [vmem:[#allocation103_spill] sm:$0xff] %v13019_v11  ;;  %8898 = vmatpush1.bf16.msra.mxu0 %v17801_v56  ;;  %v1923_v46 = vsub.f32 %v12963_v25, %v17803_v57  ;;  %v13028_v18 = vsub.f32 %v1308_v17, %v13000_v13  ;;  %v1314_v54 = vmul.f32 %v12990_v53, %v17805_v44  ;;  %v13033_v40 = vpop.eup %10103  ;;  %v1918_v56 = vand.u32 4294901760, %v1917_v41  ;;  %v17813_v53 = vld [vmem:[#allocation126_spill] sm:$0xff] }
 0x1fc   : > { %8899 = vmatprep.subr.bf16.mxu0 %v17293_v38  ;;  %17806 = vst [vmem:[#allocation102_spill] sm:$0xff] %v13033_v40  ;;  %v13038_v55 = vsub.f32 %v1312_v48, %v13010_v49  ;;  %17808 = vst [vmem:[#allocation288_spill] sm:$0xff] %v13040_v29  ;;  %v17809_v17 = vand.u32 4294901760, %v12986_v7  ;;  %v13047_v44 = vsub.f32 %v1311_v35, %v13019_v11  ;;  %v13049_v41 = vand.u32 4294901760, %v1318_v47  ;;  %v17815_v49 = vld [vmem:[#allocation114_spill] sm:$0xff] }
 0x1fd   : > { %17804 = vst [vmem:[#allocation110_spill] sm:$0xff] %v13028_v18  ;;  %2960 = vmatmul.mubr.f32.gmra.mrb[8].mxu0 %v12276_v15  ;;  %1910 = vmatmul.mubr.f32.gmra.mrb[52].mxu1 %v1909_v58  ;;  %v1317_v48 = vmul.f32 %v12996_v34, %v17812_v22  ;;  %v1924_v15 = vand.u32 4294901760, %v1923_v46  ;;  %v1933_v35 = vand.u32 4294901760, %v1932_v3  ;;  %v13066_v46 = vsub.f32 %v1315_v27, %v13040_v29  ;;  %v13068_v58 = vpop.eup %10105  ;;  %v1136_v34 = vpop.xlane.xlu0 %1135  ;;  %v17822_v27 = vld [vmem:[#allocation135_spill] sm:$0xff]  ;;  %v17851_v29 = vld [vmem:[#allocation168_spill] sm:$0xff] }
 0x1fe   : > { %17807 = vst [vmem:[#allocation287_spill] sm:$0xff] %v13038_v55  ;;  %2966 = vmatprep.mubr.f32.mxu0 %v12299_v61  ;;  %v1938_v57 = vsub.f32 %v12986_v7, %v17809_v17  ;;  %1919 = vmatprep.mubr.f32.mxu1 %v1918_v56  ;;  %17810 = vst [vmem:[#allocation289_spill] sm:$0xff] %v13047_v44  ;;  %v13055_v61 = vand.u32 4294901760, %v1314_v54  ;;  %v1321_v17 = vmul.f32 %v13033_v40, %v17815_v49 }
 0x1ff   : > { %17811 = vst [vmem:[#allocation290_spill] sm:$0xff] %v13049_v41  ;;  %8901 = vmatpush1.bf16.msra.mxu0 %v17813_v53  ;;  %v17816_v56 = vand.u32 4294901760, %v13008_v10  ;;  %17817 = vst [vmem:[#allocation114_spill] sm:$0xff] %v13066_v46  ;;  %v13073_v3 = vsub.f32 %v1318_v47, %v13049_v41  ;;  %v13075_v11 = vand.u32 4294901760, %v1317_v48  ;;  %10111 = vrcp.f32 %v1132_v21 }
 0x200   : > { %17814 = vst [vmem:[#allocation109_spill] sm:$0xff] %v13055_v61  ;;  %8902 = vmatprep.subr.bf16.mxu0 %v17293_v38  ;;  %17818 = vst [vmem:[#allocation291_spill] sm:$0xff] %v13068_v58  ;;  %v1939_v49 = vand.u32 4294901760, %v1938_v57  ;;  %v13084_v57 = vsub.f32 %v1314_v54, %v13055_v61  ;;  %10113 = vrcp.f32 %v1136_v34  ;;  %v1140_v54 = vpop.xlane.xlu1 %1139  ;;  %v17836_v41 = vand.u32 4294901760, %v13066_v46  ;;  %v17838_v34 = vld [vmem:[#allocation123_spill] sm:$0xff] }
 0x201   : > { %2969 = vmatmul.mubr.f32.gmra.mrb[10].mxu0 %v12309_v23  ;;  %v1947_v22 = vsub.f32 %v13008_v10, %v17816_v56  ;;  %1925 = vmatmul.mubr.f32.gmra.mrb[54].mxu1 %v1924_v15  ;;  %17819 = vst [vmem:[#allocation292_spill] sm:$0xff] %v13073_v3  ;;  %17820 = vst [vmem:[#allocation293_spill] sm:$0xff] %v13075_v11  ;;  %v17821_v56 = vld [vmem:[#allocation113_spill] sm:$0xff]  ;;  %v17823_v15 = vand.u32 4294901760, %v13028_v18  ;;  %v17826_v23 = vand.u32 4294901760, %v13038_v55  ;;  %10115 = vrcp.f32 %v1140_v54 }
 0x202   : > { %2975 = vmatprep.mubr.f32.mxu0 %v12323_v26  ;;  %1934 = vmatprep.mubr.f32.mxu1 %v1933_v35  ;;  %v1320_v53 = vmul.f32 %v13033_v40, %v17821_v56  ;;  %17824 = vst [vmem:[#allocation113_spill] sm:$0xff] %v13084_v57  ;;  %v13086_v35 = vand.u32 4294901760, %v1321_v17 }
 0x203   : > { %8904 = vmatpush1.bf16.msra.mxu0 %v17822_v27  ;;  %v1953_v26 = vsub.f32 %v13028_v18, %v17823_v15  ;;  %v1948_v47 = vand.u32 4294901760, %v1947_v22  ;;  %v1962_v56 = vsub.f32 %v13038_v55, %v17826_v23  ;;  %v17827_v27 = vld [vmem:[#allocation118_spill] sm:$0xff]  ;;  %v13096_v15 = vpop.eup %10107  ;;  %v13104_v23 = vsub.f32 %v1317_v48, %v13075_v11  ;;  %v17841_v11 = vld [vmem:[#allocation160_spill] sm:$0xff] }
 0x204   : > { %17825 = vst [vmem:[#allocation294_spill] sm:$0xff] %v13086_v35  ;;  %8905 = vmatprep.subr.bf16.mxu0 %v17293_v38  ;;  %v1324_v40 = vmul.f32 %v13068_v58, %v17827_v27  ;;  %17828 = vst [vmem:[#allocation118_spill] sm:$0xff] %v13096_v15  ;;  %v13106_v21 = vand.u32 4294901760, %v1320_v53  ;;  %v17832_v27 = vld [vmem:[#allocation152_spill] sm:$0xff] }
 0x205   : > { %2978 = vmatmul.mubr.f32.gmra.mrb[12].mxu0 %v12326_v60  ;;  %1940 = vmatmul.mubr.f32.gmra.mrb[56].mxu1 %v1939_v49  ;;  %v17829_v60 = vand.u32 4294901760, %v13047_v44  ;;  %17830 = vst [vmem:[#allocation295_spill] sm:$0xff] %v13104_v23  ;;  %v1954_v61 = vand.u32 4294901760, %v1953_v26  ;;  %v13111_v49 = vsub.f32 %v1321_v17, %v13086_v35  ;;  %v1963_v48 = vand.u32 4294901760, %v1962_v56 }
 0x206   : > { %2984 = vmatprep.mubr.f32.mxu0 %v12367_v30  ;;  %1949 = vmatprep.mubr.f32.mxu1 %v1948_v47  ;;  %17831 = vst [vmem:[#allocation296_spill] sm:$0xff] %v13106_v21  ;;  %v17834_v47 = vld [vmem:[#allocation117_spill] sm:$0xff]  ;;  %v13122_v26 = vand.u32 4294901760, %v1324_v40  ;;  %v1327_v17 = vmul.f32 %v13096_v15, %v17838_v34  ;;  %v17839_v35 = vand.u32 4294901760, %v13073_v3  ;;  %v17842_v34 = vand.u32 4294901760, %v13084_v57 }
 0x207   : > { %v1968_v22 = vsub.f32 %v13047_v44, %v17829_v60  ;;  %8907 = vmatpush1.bf16.msra.mxu0 %v17832_v27  ;;  %17833 = vst [vmem:[#allocation297_spill] sm:$0xff] %v13111_v49  ;;  %v1323_v30 = vmul.f32 %v13068_v58, %v17834_v47  ;;  %v13116_v60 = vpop.eup %10109  ;;  %v1977_v27 = vsub.f32 %v13066_v46, %v17836_v41  ;;  %v1144_v47 = vpop.xlane.xlu0 %1143 }
 0x208   : > { %8908 = vmatprep.subr.bf16.mxu0 %v17293_v38  ;;  %17835 = vst [vmem:[#allocation117_spill] sm:$0xff] %v13116_v60  ;;  %17837 = vst [vmem:[#allocation298_spill] sm:$0xff] %v13122_v26  ;;  %v1992_v56 = vsub.f32 %v13073_v3, %v17839_v35  ;;  %v13132_v41 = vsub.f32 %v1320_v53, %v13106_v21  ;;  %v13146_v53 = vsub.f32 %v1324_v40, %v13122_v26 }
 0x209   : > { %2987 = vmatmul.mubr.f32.gmra.mrb[14].mxu0 %v12371_v32  ;;  %1955 = vmatmul.mubr.f32.gmra.mrb[58].mxu1 %v1954_v61  ;;  %v1969_v58 = vand.u32 4294901760, %v1968_v22  ;;  %v1983_v61 = vsub.f32 %v13084_v57, %v17842_v34  ;;  %v17844_v22 = vld [vmem:[#allocation121_spill] sm:$0xff]  ;;  %v1978_v35 = vand.u32 4294901760, %v1977_v27  ;;  %v13148_v32 = vand.u32 4294901760, %v1327_v17  ;;  %v13152_v21 = vpop.eup %10111 }
 0x20a   : > { %2993 = vmatprep.mubr.f32.mxu0 %v12399_v42  ;;  %1964 = vmatprep.mubr.f32.mxu1 %v1963_v48  ;;  %17840 = vst [vmem:[#allocation123_spill] sm:$0xff] %v13132_v41  ;;  %v13139_v42 = vand.u32 4294901760, %v1323_v30  ;;  %v1326_v48 = vmul.f32 %v13096_v15, %v17844_v22  ;;  %17845 = vst [vmem:[#allocation121_spill] sm:$0xff] %v13146_v53  ;;  %10117 = vrcp.f32 %v1144_v47  ;;  %v1148_v22 = vpop.xlane.xlu1 %1147  ;;  %v1993_v54 = vand.u32 4294901760, %v1992_v56 }
 0x20b   : > { %8910 = vmatpush1.bf16.msra.mxu0 %v17841_v11  ;;  %17846 = vst [vmem:[#allocation300_spill] sm:$0xff] %v13148_v32  ;;  %v17847_v11 = vld [vmem:[#allocation127_spill] sm:$0xff]  ;;  %v17849_v15 = vand.u32 4294901760, %v13104_v23  ;;  %v1984_v47 = vand.u32 4294901760, %v1983_v61  ;;  %v17858_v61 = vld [vmem:[#allocation130_spill] sm:$0xff]  ;;  %10119 = vrcp.f32 %v1148_v22 }
 0x20c   : > { %17843 = vst [vmem:[#allocation299_spill] sm:$0xff] %v13139_v42  ;;  %8911 = vmatprep.subr.bf16.mxu0 %v17293_v38  ;;  %v1330_v34 = vmul.f32 %v13116_v60, %v17847_v11  ;;  %17848 = vst [vmem:[#allocation127_spill] sm:$0xff] %v13152_v21  ;;  %v13162_v11 = vpop.eup %10113  ;;  %v13168_v56 = vsub.f32 %v1323_v30, %v13139_v42 }
 0x20d   : > { %2996 = vmatmul.mubr.f32.gmra.mrb[16].mxu0 %v12402_v31  ;;  %1970 = vmatmul.mubr.f32.gmra.mrb[60].mxu1 %v1969_v58  ;;  %v1998_v27 = vsub.f32 %v13104_v23, %v17849_v15  ;;  %v17850_v31 = vld [vmem:[#allocation125_spill] sm:$0xff]  ;;  %v17853_v58 = vand.u32 4294901760, %v13111_v49  ;;  %v13176_v15 = vsub.f32 %v1327_v17, %v13148_v32  ;;  %v17862_v32 = vld [vmem:[#allocation171_spill] sm:$0xff]  ;;  %v13191_v42 = vpop.eup %10115 }
 0x20e   : > { %3002 = vmatprep.mubr.f32.mxu0 %v12422_v9  ;;  %1979 = vmatprep.mubr.f32.mxu1 %v1978_v35  ;;  %v1329_v26 = vmul.f32 %v13116_v60, %v17850_v31  ;;  %17852 = vst [vmem:[#allocation125_spill] sm:$0xff] %v13162_v11  ;;  %17854 = vst [vmem:[#allocation301_spill] sm:$0xff] %v13168_v56  ;;  %v13170_v35 = vand.u32 4294901760, %v1326_v48  ;;  %v13178_v40 = vand.u32 4294901760, %v1330_v34  ;;  %v17861_v31 = vld [vmem:[#allocation129_spill] sm:$0xff] }
 0x20f   : > { %8913 = vmatpush1.bf16.msra.mxu0 %v17851_v29  ;;  %v2007_v9 = vsub.f32 %v13111_v49, %v17853_v58  ;;  %17856 = vst [vmem:[#allocation303_spill] sm:$0xff] %v13176_v15  ;;  %v1333_v29 = vmul.f32 %v13152_v21, %v17858_v61  ;;  %v1999_v30 = vand.u32 4294901760, %v1998_v27  ;;  %v17859_v58 = vand.u32 4294901760, %v13132_v41  ;;  %17863 = vst [vmem:[#allocation129_spill] sm:$0xff] %v13191_v42  ;;  %v1152_v61 = vpop.xlane.xlu0 %1151  ;;  %v17865_v27 = vld [vmem:[#allocation134_spill] sm:$0xff] }
 0x210   : > { %17855 = vst [vmem:[#allocation302_spill] sm:$0xff] %v13170_v35  ;;  %8914 = vmatprep.subr.bf16.mxu0 %v17293_v38  ;;  %17857 = vst [vmem:[#allocation304_spill] sm:$0xff] %v13178_v40  ;;  %v1332_v17 = vmul.f32 %v13152_v21, %v17861_v31  ;;  %v17866_v31 = vand.u32 4294901760, %v13146_v53  ;;  %10121 = vrcp.f32 %v1152_v61 }
 0x211   : > { %3005 = vmatmul.mubr.f32.gmra.mrb[18].mxu0 %v12434_v51  ;;  %1985 = vmatmul.mubr.f32.gmra.mrb[62].mxu1 %v1984_v47  ;;  %v2013_v60 = vsub.f32 %v13132_v41, %v17859_v58  ;;  %v13186_v51 = vand.u32 4294901760, %v1329_v26  ;;  %v2008_v22 = vand.u32 4294901760, %v2007_v9  ;;  %v13206_v9 = vsub.f32 %v1330_v34, %v13178_v40  ;;  %v17873_v34 = vld [vmem:[#allocation182_spill] sm:$0xff] }
 0x212   : > { %3011 = vmatprep.mubr.f32.mxu0 %v12453_v4  ;;  %1994 = vmatprep.mubr.f32.mxu1 %v1993_v54  ;;  %v13195_v54 = vsub.f32 %v1326_v48, %v13170_v35  ;;  %v1336_v4 = vmul.f32 %v13162_v11, %v17865_v27  ;;  %v2022_v58 = vsub.f32 %v13146_v53, %v17866_v31  ;;  %v13208_v47 = vand.u32 4294901760, %v1333_v29  ;;  %v17869_v48 = vld [vmem:[#allocation133_spill] sm:$0xff]  ;;  %v17872_v31 = vld [vmem:[#allocation140_spill] sm:$0xff] }
 0x213   : > { %17860 = vst [vmem:[#allocation130_spill] sm:$0xff] %v13186_v51  ;;  %8916 = vmatpush1.bf16.msra.mxu0 %v17862_v32  ;;  %17867 = vst [vmem:[#allocation134_spill] sm:$0xff] %v13206_v9  ;;  %v1335_v27 = vmul.f32 %v13162_v11, %v17869_v48  ;;  %v13214_v21 = vsub.f32 %v1329_v26, %v13186_v51  ;;  %v1339_v32 = vmul.f32 %v13191_v42, %v17872_v31  ;;  %v1160_v61 = vpop.xlane.xlu0 %1159 }
 0x214   : > { %17864 = vst [vmem:[#allocation305_spill] sm:$0xff] %v13195_v54  ;;  %8917 = vmatprep.subr.bf16.mxu0 %v17293_v38  ;;  %17868 = vst [vmem:[#allocation306_spill] sm:$0xff] %v13208_v47  ;;  %v13221_v40 = vpop.eup %10117  ;;  %v2014_v35 = vand.u32 4294901760, %v2013_v60  ;;  %v2023_v26 = vand.u32 4294901760, %v2022_v58  ;;  %v17877_v31 = vand.u32 4294901760, %v13176_v15  ;;  %v13236_v60 = vsub.f32 %v1333_v29, %v13208_v47 }
 0x215   : > { %3014 = vmatmul.mubr.f32.gmra.mrb[20].mxu0 %v12456_v59  ;;  %2000 = vmatmul.mubr.f32.gmra.mrb[64].mxu1 %v1999_v30  ;;  %17870 = vst [vmem:[#allocation133_spill] sm:$0xff] %v13214_v21  ;;  %v13216_v59 = vand.u32 4294901760, %v1332_v17  ;;  %17874 = vst [vmem:[#allocation140_spill] sm:$0xff] %v13221_v40  ;;  %v1156_v30 = vpop.xlane.xlu1 %1155  ;;  %v13245_v51 = vand.u32 4294901760, %v1339_v32  ;;  %v13248_v11 = vpop.eup %10119 }
 0x216   : > { %3020 = vmatprep.mubr.f32.mxu0 %v12492_v8  ;;  %2009 = vmatprep.mubr.f32.mxu1 %v2008_v22  ;;  %v17875_v8 = vand.u32 4294901760, %v13168_v56  ;;  %v13227_v22 = vand.u32 4294901760, %v1336_v4  ;;  %17878 = vst [vmem:[#allocation309_spill] sm:$0xff] %v13236_v60  ;;  %10123 = vrcp.f32 %v1156_v30  ;;  %17883 = vst [vmem:[#allocation313_spill] sm:$0xff] %v13248_v11  ;;  %v17886_v30 = vld [vmem:[#allocation137_spill] sm:$0xff] }
 0x217   : > { %17871 = vst [vmem:[#allocation307_spill] sm:$0xff] %v13216_v59  ;;  %8919 = vmatpush1.bf16.msra.mxu0 %v17873_v34  ;;  %v2037_v34 = vsub.f32 %v13176_v15, %v17877_v31  ;;  %v13243_v58 = vsub.f32 %v1332_v17, %v13216_v59  ;;  %17881 = vst [vmem:[#allocation312_spill] sm:$0xff] %v13245_v51  ;;  %v17882_v31 = vld [vmem:[#allocation187_spill] sm:$0xff]  ;;  %10125 = vrcp.f32 %v1160_v61 }
 0x218   : > { %v2028_v48 = vsub.f32 %v13168_v56, %v17875_v8  ;;  %17876 = vst [vmem:[#allocation308_spill] sm:$0xff] %v13227_v22  ;;  %8920 = vmatprep.subr.bf16.mxu0 %v17293_v38  ;;  %v13239_v8 = vand.u32 4294901760, %v1335_v27  ;;  %v13254_v47 = vsub.f32 %v1336_v4, %v13227_v22  ;;  %v17888_v59 = vld [vmem:[#allocation143_spill] sm:$0xff]  ;;  %v1168_v22 = vpop.xlane.xlu0 %1167 }
 0x219   : > { %3023 = vmatmul.mubr.f32.gmra.mrb[22].mxu0 %v12495_v37  ;;  %2015 = vmatmul.mubr.f32.gmra.mrb[66].mxu1 %v2014_v35  ;;  %17880 = vst [vmem:[#allocation311_spill] sm:$0xff] %v13243_v58  ;;  %v17884_v35 = vand.u32 4294901760, %v13195_v54  ;;  %v2038_v17 = vand.u32 4294901760, %v2037_v34  ;;  %v17887_v37 = vand.u32 4294901760, %v13206_v9 }
 0x21a   : > { %3029 = vmatprep.mubr.f32.mxu0 %v12519_v12  ;;  %17879 = vst [vmem:[#allocation310_spill] sm:$0xff] %v13239_v8  ;;  %2024 = vmatprep.mubr.f32.mxu1 %v2023_v26  ;;  %v2029_v29 = vand.u32 4294901760, %v2028_v48  ;;  %17885 = vst [vmem:[#allocation314_spill] sm:$0xff] %v13254_v47  ;;  %v1338_v26 = vmul.f32 %v13191_v42, %v17886_v30  ;;  %v13268_v4 = vsub.f32 %v1335_v27, %v13239_v8  ;;  %v17892_v48 = vld [vmem:[#allocation189_spill] sm:$0xff]  ;;  %v17894_v27 = vld [vmem:[#allocation142_spill] sm:$0xff] }
 0x21b   : > { %8922 = vmatpush1.bf16.msra.mxu0 %v17882_v31  ;;  %v2043_v12 = vsub.f32 %v13195_v54, %v17884_v35  ;;  %v2052_v31 = vsub.f32 %v13206_v9, %v17887_v37  ;;  %v1342_v35 = vmul.f32 %v13221_v40, %v17888_v59  ;;  %v17890_v30 = vand.u32 4294901760, %v13214_v21  ;;  %v1164_v59 = vpop.xlane.xlu1 %1163  ;;  %v17900_v8 = vld [vmem:[#allocation194_spill] sm:$0xff] }
 0x21c   : > { %8923 = vmatprep.subr.bf16.mxu0 %v17293_v38  ;;  %17889 = vst [vmem:[#allocation137_spill] sm:$0xff] %v13268_v4  ;;  %v13275_v37 = vsub.f32 %v1339_v32, %v13245_v51  ;;  %v17896_v42 = vand.u32 4294901760, %v13236_v60  ;;  %10127 = vrcp.f32 %v1164_v59 }
 0x21d   : > { %3032 = vmatmul.mubr.f32.gmra.mrb[24].mxu0 %v12522_v0  ;;  %2030 = vmatmul.mubr.f32.gmra.mrb[68].mxu1 %v2029_v29  ;;  %v2058_v34 = vsub.f32 %v13214_v21, %v17890_v30  ;;  %v2044_v61 = vand.u32 4294901760, %v2043_v12  ;;  %v13284_v30 = vpop.eup %10121  ;;  %v2053_v32 = vand.u32 4294901760, %v2052_v31  ;;  %v13290_v12 = vand.u32 4294901760, %v1342_v35  ;;  %v17898_v29 = vld [vmem:[#allocation146_spill] sm:$0xff] }
 0x21e   : > { %3038 = vmatprep.mubr.f32.mxu0 %v12558_v6  ;;  %2039 = vmatprep.mubr.f32.mxu1 %v2038_v17  ;;  %17891 = vst [vmem:[#allocation143_spill] sm:$0xff] %v13275_v37  ;;  %v13279_v6 = vand.u32 4294901760, %v1338_v26  ;;  %v1341_v17 = vmul.f32 %v13221_v40, %v17894_v27  ;;  %17895 = vst [vmem:[#allocation142_spill] sm:$0xff] %v13284_v30  ;;  %v1345_v0 = vmul.f32 %v13248_v11, %v17898_v29 }
 0x21f   : > { %8925 = vmatpush1.bf16.msra.mxu0 %v17892_v48  ;;  %v2067_v48 = vsub.f32 %v13236_v60, %v17896_v42  ;;  %17897 = vst [vmem:[#allocation316_spill] sm:$0xff] %v13290_v12  ;;  %v2059_v40 = vand.u32 4294901760, %v2058_v34  ;;  %v13301_v42 = vld [vmem:[%s10772_s29 + $0x100] sm:$0xff]  ;;  %10129 = vrcp.f32 %v1168_v22 }
 0x220   : > { %17893 = vst [vmem:[#allocation315_spill] sm:$0xff] %v13279_v6  ;;  %8926 = vmatprep.subr.bf16.mxu0 %v17293_v38  ;;  %v13308_v27 = vsub.f32 %v1338_v26, %v13279_v6  ;;  %v13310_v59 = vand.u32 4294901760, %v1341_v17  ;;  %v17904_v34 = vld [vmem:[#allocation145_spill] sm:$0xff]  ;;  %v17908_v26 = vld [vmem:[#allocation150_spill] sm:$0xff] }
 0x221   : > { %3041 = vmatmul.mubr.f32.gmra.mrb[26].mxu0 %v12562_v28  ;;  %2045 = vmatmul.mubr.f32.gmra.mrb[70].mxu1 %v2044_v61  ;;  %v17899_v28 = vand.u32 4294901760, %v13243_v58  ;;  %v17901_v61 = vand.u32 4294901760, %v13254_v47  ;;  %v2068_v51 = vand.u32 4294901760, %v2067_v48 }
 0x222   : > { %3047 = vmatprep.mubr.f32.mxu0 %v12582_v62  ;;  %2054 = vmatprep.mubr.f32.mxu1 %v2053_v32  ;;  %17902 = vst [vmem:[#allocation146_spill] sm:$0xff] %v13308_v27  ;;  %17903 = vst [vmem:[#allocation317_spill] sm:$0xff] %v13310_v59  ;;  %v1344_v32 = vmul.f32 %v13248_v11, %v17904_v34  ;;  %v1348_v62 = vmul.f32 %v13284_v30, %v17908_v26  ;;  %v17909_v34 = vand.u32 4294901760, %v13268_v4 }
 0x223   : > { %v2073_v31 = vsub.f32 %v13243_v58, %v17899_v28  ;;  %8928 = vmatpush1.bf16.msra.mxu0 %v17900_v8  ;;  %v2082_v29 = vsub.f32 %v13254_v47, %v17901_v61  ;;  %v13315_v28 = vpop.eup %10123  ;;  %v13319_v8 = vsub.f32 %v1342_v35, %v13290_v12  ;;  %v13321_v61 = vand.u32 4294901760, %v1345_v0  ;;  %v17911_v47 = vld [vmem:[#allocation149_spill] sm:$0xff] }
 0x224   : > { %8929 = vmatprep.subr.bf16.mxu0 %v17293_v38  ;;  %17905 = vst [vmem:[#allocation145_spill] sm:$0xff] %v13315_v28  ;;  %v2088_v11 = vsub.f32 %v13268_v4, %v17909_v34  ;;  %v17910_v35 = vand.u32 4294901760, %v13275_v37  ;;  %v1347_v26 = vmul.f32 %v13284_v30, %v17911_v47  ;;  %v13339_v58 = vpop.eup %10125  ;;  %v13343_v22 = vsub.f32 %v1341_v17, %v13310_v59  ;;  %v17920_v47 = vld [vmem:[#allocation154_spill] sm:$0xff] }
 0x225   : > { %3050 = vmatmul.mubr.f32.gmra.mrb[28].mxu0 %v12585_v20  ;;  %17906 = vst [vmem:[#allocation318_spill] sm:$0xff] %v13319_v8  ;;  %17907 = vst [vmem:[#allocation319_spill] sm:$0xff] %v13321_v61  ;;  %2060 = vmatmul.mubr.f32.gmra.mrb[72].mxu1 %v2059_v40  ;;  %v1172_v20 = vpop.xlane.xlu1 %1171  ;;  %v2074_v48 = vand.u32 4294901760, %v2073_v31  ;;  %v13336_v40 = vld [vmem:[%s10772_s29 + $0x108] sm:$0xff]  ;;  %v2083_v34 = vand.u32 4294901760, %v2082_v29  ;;  %v13351_v31 = vsub.f32 %v1345_v0, %v13321_v61 }
 0x226   : > { %3056 = vmatprep.mubr.f32.mxu0 %v12624_v2  ;;  %2069 = vmatprep.mubr.f32.mxu1 %v2068_v51  ;;  %v2097_v12 = vsub.f32 %v13275_v37, %v17910_v35  ;;  %v17912_v2 = vld [vmem:[#allocation196_spill] sm:$0xff]  ;;  %17913 = vst [vmem:[#allocation150_spill] sm:$0xff] %v13339_v58  ;;  %17914 = vst [vmem:[#allocation149_spill] sm:$0xff] %v13343_v22  ;;  %v13345_v51 = vand.u32 4294901760, %v1344_v32  ;;  %v13353_v35 = vand.u32 4294901760, %v1348_v62  ;;  %10131 = vrcp.f32 %v1172_v20  ;;  %v17921_v61 = vld [vmem:[#allocation158_spill] sm:$0xff] }
 0x227   : > { %8931 = vmatpush1.bf16.msra.mxu0 %v17912_v2  ;;  %17916 = vst [vmem:[#allocation321_spill] sm:$0xff] %v13351_v31  ;;  %v17918_v2 = vld [vmem:[#allocation156_spill] sm:$0xff]  ;;  %v2089_v17 = vand.u32 4294901760, %v2088_v11  ;;  %v16941_v6 = vand.u32 4294901760, %v13336_v40  ;;  %v1350_v0 = vmul.f32 %v13315_v28, %v17920_v47  ;;  %v1354_v59 = vmul.f32 %v13339_v58, %v17921_v61  ;;  %v17922_v37 = vld [vmem:[#allocation197_spill] sm:$0xff]  ;;  %v13380_v61 = vpop.eup %10127 }
 0x228   : > { %17915 = vst [vmem:[#allocation320_spill] sm:$0xff] %v13345_v51  ;;  %8932 = vmatprep.subr.bf16.mxu0 %v17293_v38  ;;  %17917 = vst [vmem:[#allocation322_spill] sm:$0xff] %v13353_v35  ;;  %v1351_v29 = vmul.f32 %v13315_v28, %v17918_v2  ;;  %v2098_v30 = vand.u32 4294901760, %v2097_v12  ;;  %v17923_v20 = vand.u32 4294901760, %v13308_v27  ;;  %v17925_v12 = vand.u32 4294901760, %v13301_v42 }
 0x229   : > { %3059 = vmatmul.mubr.f32.gmra.mrb[30].mxu0 %v12628_v36  ;;  %2075 = vmatmul.mubr.f32.gmra.mrb[74].mxu1 %v2074_v48  ;;  %v13359_v36 = vand.u32 4294901760, %v1347_v26  ;;  %v13371_v48 = vsub.f32 %v1344_v32, %v13345_v51  ;;  %17927 = vst [vmem:[#allocation323_spill] sm:$0xff] %v13380_v61  ;;  %v17928_v47 = vand.u32 4294901760, %v13319_v8  ;;  %v13388_v32 = vsub.f32 %v1348_v62, %v13353_v35 }
 0x22a   : > { %3065 = vmatprep.mubr.f32.mxu0 %v12649_v5  ;;  %2084 = vmatprep.mubr.f32.mxu1 %v2083_v34  ;;  %v2103_v2 = vsub.f32 %v13308_v27, %v17923_v20  ;;  %v13377_v34 = vpack.c.bf16 %v16941_v6, %v17925_v12  ;;  %v13396_v6 = vand.u32 4294901760, %v1350_v0  ;;  %v13398_v28 = vand.u32 4294901760, %v1354_v59  ;;  %v13409_v5 = vpop.eup %10129 }
 0x22b   : > { %17919 = vst [vmem:[#allocation156_spill] sm:$0xff] %v13359_v36  ;;  %8934 = vmatpush1.bf16.msra.mxu0 %v17922_v37  ;;  %17924 = vst [vmem:[#allocation154_spill] sm:$0xff] %v13371_v48  ;;  %v2112_v20 = vsub.f32 %v13319_v8, %v17928_v47  ;;  %v13390_v37 = vand.u32 4294901760, %v1351_v29  ;;  %v13394_v12 = vsub.f32 %v1347_v26, %v13359_v36  ;;  %v17935_v11 = vand.u32 4294901760, %v13343_v22 }
 0x22c   : > { %17926 = vst [vmem:[#allocation158_spill] sm:$0xff] %v13377_v34  ;;  %8935 = vmatprep.subr.bf16.mxu0 %v17293_v38  ;;  %17929 = vst [vmem:[#allocation324_spill] sm:$0xff] %v13388_v32  ;;  %9032 = vmatprep.subr.bf16.mxu1 %v13377_v34  ;;  %v2104_v62 = vand.u32 4294901760, %v2103_v2  ;;  %v17938_v36 = vand.u32 4294901760, %v13351_v31 }
 0x22d   : > { %3068 = vmatmul.mubr.f32.gmra.mrb[32].mxu0 %v12652_v39  ;;  %17930 = vst [vmem:[#allocation325_spill] sm:$0xff] %v13390_v37  ;;  %2090 = vmatmul.mubr.f32.gmra.mrb[76].mxu1 %v2089_v17  ;;  %17931 = vst [vmem:[#allocation326_spill] sm:$0xff] %v13394_v12  ;;  %v17934_v39 = vld [vmem:[#allocation157_spill] sm:$0xff]  ;;  %v2118_v17 = vsub.f32 %v13343_v22, %v17935_v11  ;;  %v2113_v38 = vand.u32 4294901760, %v2112_v20  ;;  %v13425_v20 = vsub.f32 %v1354_v59, %v13398_v28 }
 0x22e   : > { %3074 = vmatprep.mubr.f32.mxu0 %v12689_v24  ;;  %2099 = vmatprep.mubr.f32.mxu1 %v2098_v30  ;;  %17932 = vst [vmem:[#allocation327_spill] sm:$0xff] %v13396_v6  ;;  %17933 = vst [vmem:[#allocation328_spill] sm:$0xff] %v13398_v28  ;;  %v1353_v47 = vmul.f32 %v13339_v58, %v17934_v39  ;;  %v17936_v30 = vld [vmem:[#allocation166_spill] sm:$0xff]  ;;  %v2127_v39 = vsub.f32 %v13351_v31, %v17938_v36  ;;  %v17947_v59 = vand.u32 4294901760, %v13388_v32 }
 0x22f   : > { %v1357_v26 = vmul.f32 %v13380_v61, %v17936_v30  ;;  %17937 = vst [vmem:[#allocation157_spill] sm:$0xff] %v13409_v5  ;;  %v13417_v58 = vsub.f32 %v1351_v29, %v13390_v37  ;;  %v13422_v30 = vsub.f32 %v1350_v0, %v13396_v6  ;;  %17941 = vst [vmem:[#allocation330_spill] sm:$0xff] %v13425_v20  ;;  %v2119_v2 = vand.u32 4294901760, %v2118_v17  ;;  %v17948_v6 = vld [vmem:[#allocation172_spill] sm:$0xff] }
 0x230   : > { %v13427_v24 = vand.u32 4294901760, %v1353_v47  ;;  %v13429_v36 = vpop.eup %10131  ;;  %v17944_v29 = vand.u32 4294901760, %v13371_v48  ;;  %v2128_v0 = vand.u32 4294901760, %v2127_v39  ;;  %v1360_v17 = vmul.f32 %v13409_v5, %v17948_v6 }
 0x231   : > { %3077 = vmatmul.mubr.f32.gmra.mrb[34].mxu0 %v12692_v50  ;;  %17939 = vst [vmem:[#allocation166_spill] sm:$0xff] %v13417_v58  ;;  %2105 = vmatmul.mubr.f32.gmra.mrb[78].mxu1 %v2104_v62  ;;  %17940 = vst [vmem:[#allocation329_spill] sm:$0xff] %v13422_v30  ;;  %v13434_v50 = vand.u32 4294901760, %v1357_v26 }
 0x232   : > { %3083 = vmatprep.mubr.f32.mxu0 %v12710_v19  ;;  %2114 = vmatprep.mubr.f32.mxu1 %v2113_v38  ;;  %17942 = vst [vmem:[#allocation331_spill] sm:$0xff] %v13427_v24  ;;  %17943 = vst [vmem:[#allocation332_spill] sm:$0xff] %v13429_v36  ;;  %v2133_v62 = vsub.f32 %v13371_v48, %v17944_v29  ;;  %v17946_v38 = vld [vmem:[#allocation164_spill] sm:$0xff]  ;;  %v2142_v19 = vsub.f32 %v13388_v32, %v17947_v59  ;;  %v17949_v29 = vand.u32 4294901760, %v13394_v12 }
 0x233   : > { %17945 = vst [vmem:[#allocation333_spill] sm:$0xff] %v13434_v50  ;;  %v1356_v11 = vmul.f32 %v13380_v61, %v17946_v38  ;;  %v13455_v28 = vsub.f32 %v1357_v26, %v13434_v50  ;;  %v13465_v39 = vand.u32 4294901760, %v1360_v17  ;;  %v17958_v26 = vld [vmem:[#allocation259_spill] sm:$0xff] }
 0x234   : > { %v2148_v38 = vsub.f32 %v13394_v12, %v17949_v29  ;;  %v2134_v59 = vand.u32 4294901760, %v2133_v62  ;;  %v2143_v37 = vand.u32 4294901760, %v2142_v19  ;;  %v17955_v29 = vand.u32 4294901760, %v13417_v58 }
 0x235   : > { %3086 = vmatmul.mubr.f32.gmra.mrb[36].mxu0 %v12713_v1  ;;  %2120 = vmatmul.mubr.f32.gmra.mrb[80].mxu1 %v2119_v2  ;;  %v13452_v1 = vsub.f32 %v1353_v47, %v13427_v24  ;;  %17951 = vst [vmem:[#allocation172_spill] sm:$0xff] %v13455_v28  ;;  %v13457_v6 = vand.u32 4294901760, %v1356_v11  ;;  %v17953_v2 = vld [vmem:[#allocation170_spill] sm:$0xff]  ;;  %v17957_v47 = vld [vmem:[#allocation179_spill] sm:$0xff] }
 0x236   : > { %3092 = vmatprep.mubr.f32.mxu0 %v12746_v14  ;;  %2129 = vmatprep.mubr.f32.mxu1 %v2128_v0  ;;  %v1359_v0 = vmul.f32 %v13409_v5, %v17953_v2  ;;  %v17954_v14 = vld [vmem:[#allocation32_spill] sm:$0xff]  ;;  %v2157_v61 = vsub.f32 %v13417_v58, %v17955_v29  ;;  %17956 = vst [vmem:[#allocation170_spill] sm:$0xff] %v13465_v39  ;;  %v2149_v50 = vand.u32 4294901760, %v2148_v38  ;;  %v17959_v2 = vand.u32 4294901760, %v13422_v30  ;;  %v1399_v24 = vld [vmem:[%s10772_s29 + $0x110] sm:$0xff] }
 0x237   : > { %17950 = vst [vmem:[#allocation164_spill] sm:$0xff] %v13452_v1  ;;  %17952 = vst [vmem:[#allocation334_spill] sm:$0xff] %v13457_v6  ;;  %v1363_v62 = vmul.f32 %v13429_v36, %v17957_v47  ;;  %v17960_v5 = vand.u32 4294901760, %v13425_v20 }
 0x238   : > { %v2163_v19 = vsub.f32 %v13422_v30, %v17959_v2  ;;  %v13481_v47 = vand.u32 4294901760, %v1359_v0  ;;  %v2158_v35 = vand.u32 4294901760, %v2157_v61  ;;  %v13487_v2 = vsub.f32 %v1360_v17, %v13465_v39 }
 0x239   : > { %3095 = vmatmul.mubr.f32.gmra.mrb[38].mxu0 %v17954_v14  ;;  %2135 = vmatmul.mubr.f32.gmra.mrb[82].mxu1 %v2134_v59  ;;  %v2172_v29 = vsub.f32 %v13425_v20, %v17960_v5  ;;  %v13479_v59 = vsub.f32 %v1356_v11, %v13457_v6  ;;  %v13489_v51 = vand.u32 4294901760, %v1363_v62  ;;  %v17967_v5 = vld [vmem:[#allocation78_spill] sm:$0xff]  ;;  %v1400_v14 = vld [vmem:[%s10772_s29 + $0x118] sm:$0xff]  ;;  %v17968_v20 = vand.u32 4294901760, %v13452_v1 }
 0x23a   : > { %3101 = vmatprep.mubr.f32.mxu0 %v17958_v26  ;;  %2144 = vmatprep.mubr.f32.mxu1 %v2143_v37  ;;  %17962 = vst [vmem:[#allocation335_spill] sm:$0xff] %v13481_v47  ;;  %v17963_v37 = vld [vmem:[#allocation177_spill] sm:$0xff]  ;;  %v17964_v26 = vld [vmem:[#allocation260_spill] sm:$0xff]  ;;  %v2164_v11 = vand.u32 4294901760, %v2163_v19 }
 0x23b   : > { %17961 = vst [vmem:[#allocation179_spill] sm:$0xff] %v13479_v59  ;;  %v1362_v38 = vmul.f32 %v13429_v36, %v17963_v37  ;;  %17965 = vst [vmem:[#allocation177_spill] sm:$0xff] %v13487_v2  ;;  %v2173_v6 = vand.u32 4294901760, %v2172_v29  ;;  %v2178_v37 = vsub.f32 %v13452_v1, %v17968_v20  ;;  %v13502_v36 = vsub.f32 %v1359_v0, %v13481_v47 }
 0x23c   : > { %17966 = vst [vmem:[#allocation336_spill] sm:$0xff] %v13489_v51  ;;  %v13509_v19 = vsub.f32 %v1363_v62, %v13489_v51  ;;  %v4914_v29 = vand.u32 4294901760, %v1399_v24  ;;  %v4917_v20 = vand.u32 4294901760, %v1400_v14  ;;  %v17974_v47 = vand.u32 4294901760, %v13479_v59  ;;  %v17976_v51 = vld [vmem:[#allocation267_spill] sm:$0xff] }
 0x23d   : > { %3104 = vmatmul.mubr.f32.gmra.mrb[40].mxu0 %v17964_v26  ;;  %2150 = vmatmul.mubr.f32.gmra.mrb[84].mxu1 %v2149_v50  ;;  %v17969_v26 = vand.u32 4294901760, %v13455_v28  ;;  %17970 = vst [vmem:[#allocation337_spill] sm:$0xff] %v13502_v36  ;;  %v13504_v50 = vand.u32 4294901760, %v1362_v38  ;;  %v2179_v0 = vand.u32 4294901760, %v2178_v37  ;;  %v17978_v37 = vld [vmem:[#allocation90_spill] sm:$0xff] }
 0x23e   : > { %3110 = vmatprep.mubr.f32.mxu0 %v17967_v5  ;;  %2159 = vmatprep.mubr.f32.mxu1 %v2158_v35  ;;  %v17972_v5 = vld [vmem:[#allocation61_spill] sm:$0xff]  ;;  %17973 = vst [vmem:[#allocation339_spill] sm:$0xff] %v13509_v19  ;;  %v13514_v17 = vsub.f32 %v1400_v14, %v4917_v20  ;;  %v16980_v35 = vand.u32 4294901760, %v13502_v36 }
 0x23f   : > { %v2187_v61 = vsub.f32 %v13455_v28, %v17969_v26  ;;  %17971 = vst [vmem:[#allocation338_spill] sm:$0xff] %v13504_v50  ;;  %v13512_v26 = vsub.f32 %v1399_v24, %v4914_v29  ;;  %v13521_v62 = vsub.f32 %v1362_v38, %v13504_v50  ;;  %v17977_v24 = vand.u32 4294901760, %v13487_v2 }
 0x240   : > { %v2208_v38 = vsub.f32 %v13502_v36, %v16980_v35 }
 0x241   : > { %3113 = vmatmul.mubr.f32.gmra.mrb[42].mxu0 %v17972_v5  ;;  %2165 = vmatmul.mubr.f32.gmra.mrb[86].mxu1 %v2164_v11  ;;  %v2193_v5 = vsub.f32 %v13479_v59, %v17974_v47  ;;  %17975 = vst [vmem:[#allocation340_spill] sm:$0xff] %v13521_v62  ;;  %v2188_v11 = vand.u32 4294901760, %v2187_v61  ;;  %v2202_v14 = vsub.f32 %v13487_v2, %v17977_v24 }
 0x242   : > { %3119 = vmatprep.mubr.f32.mxu0 %v12838_v43  ;;  %2174 = vmatprep.mubr.f32.mxu1 %v2173_v6  ;;  %v16982_v6 = vand.u32 4294901760, %v13509_v19  ;;  %v16983_v43 = vand.u32 4294901760, %v13521_v62 }
 0x243   : > { %v2194_v47 = vand.u32 4294901760, %v2193_v5  ;;  %v2203_v61 = vand.u32 4294901760, %v2202_v14  ;;  %v2209_v5 = vand.u32 4294901760, %v2208_v38 }
 0x244   : > { %v2217_v24 = vsub.f32 %v13509_v19, %v16982_v6 }
 0x245   : > { %3122 = vmatmul.mubr.f32.gmra.mrb[44].mxu0 %v17976_v51  ;;  %2180 = vmatmul.mubr.f32.gmra.mrb[88].mxu1 %v2179_v0  ;;  %v1401_v0 = vld [vmem:[%s10772_s29 + $0x120] sm:$0xff] }
 0x246   : > { %3128 = vmatprep.mubr.f32.mxu0 %v17978_v37  ;;  %2189 = vmatprep.mubr.f32.mxu1 %v2188_v11  ;;  %v1402_v37 = vld [vmem:[%s10772_s29 + $0x128] sm:$0xff]  ;;  %v2223_v11 = vsub.f32 %v13521_v62, %v16983_v43  ;;  %v2218_v35 = vand.u32 4294901760, %v2217_v24  ;;  %v4920_v14 = vand.u32 4294901760, %v1401_v0  ;;  %v17980_v43 = vld [vmem:[#allocation264_spill] sm:$0xff]  ;;  %v13552_v24 = vpack.c.bf16 %v4917_v20, %v4914_v29  ;;  %v1405_v20 = vld [vmem:[%s10772_s29 + $0x140] sm:$0xff] }
 0x248   : > { %v2224_v38 = vand.u32 4294901760, %v2223_v11  ;;  %17982 = vst [vmem:[#allocation267_spill] sm:$0xff] %v13552_v24  ;;  %v17986_v11 = vld [vmem:[#allocation72_spill] sm:$0xff] }
 0x249   : > { %3131 = vmatmul.mubr.f32.gmra.mrb[46].mxu0 %v12859_v52  ;;  %2195 = vmatmul.mubr.f32.gmra.mrb[90].mxu1 %v2194_v47  ;;  %v4923_v52 = vand.u32 4294901760, %v1402_v37  ;;  %v13545_v47 = vsub.f32 %v1401_v0, %v4920_v14  ;;  %v17984_v0 = vld [vmem:[#allocation273_spill] sm:$0xff] }
 0x24a   : > { %3137 = vmatprep.mubr.f32.mxu0 %v12895_v63  ;;  %2204 = vmatprep.mubr.f32.mxu1 %v2203_v61  ;;  %v17979_v61 = vld [vmem:[#allocation81_spill] sm:$0xff] }
 0x24b   : > { %v13547_v6 = vsub.f32 %v1402_v37, %v4923_v52  ;;  %v17985_v37 = vld [vmem:[#allocation282_spill] sm:$0xff] }
 0x24d   : > { %3140 = vmatmul.mubr.f32.gmra.mrb[48].mxu0 %v12901_v33  ;;  %2210 = vmatmul.mubr.f32.gmra.mrb[92].mxu1 %v2209_v5  ;;  %v17981_v33 = vld [vmem:[#allocation70_spill] sm:$0xff]  ;;  %v17983_v5 = vld [vmem:[#allocation69_spill] sm:$0xff] }
 0x24e   : > { %3146 = vmatprep.mubr.f32.mxu0 %v12936_v16  ;;  %2219 = vmatprep.mubr.f32.mxu1 %v2218_v35  ;;  %v1403_v16 = vld [vmem:[%s10772_s29 + $0x130] sm:$0xff]  ;;  %v1404_v35 = vld [vmem:[%s10772_s29 + $0x138] sm:$0xff] }
 0x24f   : > { %v4929_v29 = vand.u32 4294901760, %v1404_v35 }
 0x251   : > { %3149 = vmatmul.mubr.f32.gmra.mrb[50].mxu0 %v17979_v61  ;;  %2225 = vmatmul.mubr.f32.gmra.mrb[94].mxu1 %v2224_v38  ;;  %v13562_v38 = vpack.c.bf16 %v4923_v52, %v4920_v14  ;;  %v13573_v52 = vsub.f32 %v1404_v35, %v4929_v29 }
 0x252   : > { %3155 = vmatprep.mubr.f32.mxu0 %v17980_v43  ;;  %2623 = vmatprep.mubr.f32.mxu1 %v17981_v33  ;;  %v4926_v33 = vand.u32 4294901760, %v1403_v16  ;;  %v17988_v43 = vld [vmem:[#allocation275_spill] sm:$0xff] }
 0x253   : > { %17987 = vst [vmem:[#allocation81_spill] sm:$0xff] %v13562_v38 }
 0x254   : > { %v13576_v14 = vpack.c.bf16 %v4929_v29, %v4926_v33 }
 0x255   : > { %3158 = vmatmul.mubr.f32.gmra.mrb[52].mxu0 %v17983_v5  ;;  %2625 = vmatmul.mubr.f32.vlgmr.msra.gmra.mrb[48].mxu1 %v17984_v0  ;;  %v1406_v5 = vld [vmem:[%s10772_s29 + $0x148] sm:$0xff]  ;;  %v17989_v0 = vld [vmem:[#allocation261_spill] sm:$0xff] }
 0x256   : > { %3164 = vmatprep.mubr.f32.mxu0 %v17985_v37  ;;  %2630 = vmatprep.mubr.f32.mxu1 %v17986_v11  ;;  %v13571_v11 = vsub.f32 %v1403_v16, %v4926_v33  ;;  %17990 = vst [vmem:[#allocation341_spill] sm:$0xff] %v13576_v14  ;;  %v13579_v37 = vld [vmem:[%s10772_s29 + $0x150] sm:$0xff]  ;;  %v17992_v16 = vld [vmem:[#allocation278_spill] sm:$0xff] }
 0x257   : > { %9034 = vmatpush3.bf16.msra.mxu1 %v13377_v34  ;;  %v4932_v34 = vand.u32 4294901760, %v1405_v20 }
 0x258   : > { %9036 = vmatprep.subr.bf16.mxu1 %v13552_v24 }
 0x259   : > { %3167 = vmatmul.mubr.f32.gmra.mrb[54].mxu0 %v12963_v25  ;;  %2632 = vmatmul.mubr.f32.gmra.mrb[50].mxu1 %v17988_v43  ;;  %v4935_v25 = vand.u32 4294901760, %v1406_v5  ;;  %v13583_v43 = vld [vmem:[%s10772_s29 + $0x158] sm:$0xff] }
 0x25a   : > { %3173 = vmatprep.mubr.f32.mxu0 %v12942_v45  ;;  %2637 = vmatprep.mubr.f32.mxu1 %v17989_v0  ;;  %v17991_v0 = vld [vmem:[#allocation64_spill] sm:$0xff]  ;;  %v17999_v45 = vld [vmem:[#allocation279_spill] sm:$0xff] }
 0x25b   : > { %9038 = vmatpush3.bf16.msra.mxu1 %v13552_v24  ;;  %v13593_v29 = vpack.c.bf16 %v4935_v25, %v4932_v34  ;;  %v18000_v24 = vld [vmem:[#allocation89_spill] sm:$0xff] }
 0x25c   : > { %9040 = vmatprep.subr.bf16.mxu1 %v13562_v38 }
 0x25d   : > { %3176 = vmatmul.mubr.f32.gmra.mrb[56].mxu0 %v12986_v7  ;;  %2639 = vmatmul.mubr.f32.gmra.mrb[52].mxu1 %v17991_v0  ;;  %17994 = vst [vmem:[#allocation343_spill] sm:$0xff] %v13593_v29  ;;  %v13597_v7 = vld [vmem:[%s10772_s29 + $0x160] sm:$0xff]  ;;  %v17995_v0 = vand.u32 4294901760, %v13301_v42 }
 0x25e   : > { %3182 = vmatprep.mubr.f32.mxu0 %v13008_v10  ;;  %2644 = vmatprep.mubr.f32.mxu1 %v17992_v16  ;;  %v13590_v35 = vpop.f32.mrb[0].mxu1  ;;  %v17997_v16 = vand.u32 4294901760, %v13336_v40 }
 0x25f   : > { %9042 = vmatpush3.bf16.msra.mxu1 %v13562_v38  ;;  %17993 = vst [vmem:[#allocation342_spill] sm:$0xff] %v13590_v35  ;;  %v13602_v10 = vsub.f32 %v13301_v42, %v17995_v0  ;;  %v1523_v35 = vpop.f32.mrb[1].mxu1  ;;  %v13611_v38 = vld [vmem:[%s10772_s29 + $0x168] sm:$0xff]  ;;  %v18002_v0 = vand.u32 4294901760, %v13583_v43  ;;  %v18004_v42 = vld [vmem:[#allocation280_spill] sm:$0xff] }
 0x260   : > { %9044 = vmatprep.subr.bf16.mxu1 %v13576_v14  ;;  %v13607_v33 = vsub.f32 %v13336_v40, %v17997_v16  ;;  %v18001_v40 = vand.u32 4294901760, %v13579_v37 }
 0x261   : > { %17996 = vst [vmem:[#allocation344_spill] sm:$0xff] %v13602_v10  ;;  %3185 = vmatmul.mubr.f32.gmra.mrb[58].mxu0 %v13028_v18  ;;  %2646 = vmatmul.mubr.f32.gmra.mrb[54].mxu1 %v17999_v45  ;;  %v13627_v18 = vld [vmem:[%s10772_s29 + $0x170] sm:$0xff]  ;;  %v13642_v45 = vsub.f32 %v1405_v20, %v4932_v34 }
 0x262   : > { %17998 = vst [vmem:[#allocation345_spill] sm:$0xff] %v13607_v33  ;;  %3191 = vmatprep.mubr.f32.mxu0 %v13038_v55  ;;  %2651 = vmatprep.mubr.f32.mxu1 %v18000_v24  ;;  %v13623_v16 = vpack.c.bf16 %v18002_v0, %v18001_v40  ;;  %v18006_v40 = vld [vmem:[#allocation92_spill] sm:$0xff]  ;;  %v13644_v24 = vsub.f32 %v1406_v5, %v4935_v25  ;;  %v18011_v35 = vand.u32 4294901760, %v13607_v33  ;;  %v18014_v20 = vand.u32 4294901760, %v13627_v18 }
 0x263   : > { %9046 = vmatpush3.bf16.msra.mxu1 %v13576_v14  ;;  %v13633_v14 = vld [vmem:[%s10772_s29 + $0x178] sm:$0xff] }
 0x264   : > { %9048 = vmatprep.subr.bf16.mxu1 %v13593_v29  ;;  %18003 = vst [vmem:[#allocation346_spill] sm:$0xff] %v13623_v16  ;;  %v5479_v34 = vsub.f32 %v13607_v33, %v18011_v35 }
 0x265   : > { %3194 = vmatmul.mubr.f32.gmra.mrb[60].mxu0 %v13047_v44  ;;  %2653 = vmatmul.mubr.f32.gmra.mrb[56].mxu1 %v18004_v42  ;;  %v13637_v55 = vpop.f32.mrb[2].mxu1  ;;  %v18007_v44 = vand.u32 4294901760, %v13597_v7  ;;  %v18008_v42 = vand.u32 4294901760, %v13611_v38 }
 0x266   : > { %3200 = vmatprep.mubr.f32.mxu0 %v13066_v46  ;;  %18005 = vst [vmem:[#allocation347_spill] sm:$0xff] %v13637_v55  ;;  %2658 = vmatprep.mubr.f32.mxu1 %v18006_v40  ;;  %v1538_v0 = vpop.f32.mrb[3].mxu1  ;;  %v17006_v55 = vand.u32 4294901760, %v13633_v14 }
 0x267   : > { %9050 = vmatpush3.bf16.msra.mxu1 %v13593_v29  ;;  %v13651_v46 = vpack.c.bf16 %v18008_v42, %v18007_v44  ;;  %v18010_v0 = vand.u32 4294901760, %v13602_v10  ;;  %v18013_v44 = vld [vmem:[#allocation286_spill] sm:$0xff] }
 0x268   : > { %9052 = vmatprep.subr.bf16.mxu1 %v13623_v16  ;;  %v13672_v42 = vpack.c.bf16 %v17006_v55, %v18014_v20  ;;  %v18021_v20 = vld [vmem:[#allocation290_spill] sm:$0xff] }
 0x269   : > { %18009 = vst [vmem:[#allocation348_spill] sm:$0xff] %v13651_v46  ;;  %v5472_v40 = vsub.f32 %v13602_v10, %v18010_v0  ;;  %3203 = vmatmul.mubr.f32.gmra.mrb[62].mxu0 %v13084_v57  ;;  %2660 = vmatmul.mubr.f32.gmra.mrb[58].mxu1 %v13000_v13  ;;  %v13663_v25 = vpop.f32.mrb[4].mxu1  ;;  %v5480_v0 = vand.u32 4294901760, %v5479_v34  ;;  %v18016_v13 = vld [vmem:[#allocation103_spill] sm:$0xff] }
 0x26a   : > { %3209 = vmatprep.mubr.f32.mxu0 %v13073_v3  ;;  %18012 = vst [vmem:[#allocation349_spill] sm:$0xff] %v13663_v25  ;;  %2665 = vmatprep.mubr.f32.mxu1 %v18013_v44  ;;  %v1553_v5 = vpop.f32.mrb[5].mxu1  ;;  %18015 = vst [vmem:[#allocation350_spill] sm:$0xff] %v13672_v42  ;;  %v18151_v3 = vand.u32 4294901760, %v13573_v52 }
 0x26b   : > { %9054 = vmatpush3.bf16.msra.mxu1 %v13623_v16  ;;  %v5473_v35 = vand.u32 4294901760, %v5472_v40  ;;  %v18018_v5 = vld [vmem:[#allocation288_spill] sm:$0xff]  ;;  %v18019_v40 = vld [vmem:[#allocation109_spill] sm:$0xff] }
 0x26c   : > { %9056 = vmatprep.subr.bf16.mxu1 %v13651_v46 }
 0x26d   : > { %3212 = vmatmul.mubr.f32.gmra.mrb[64].mxu0 %v13104_v23  ;;  %2667 = vmatmul.mubr.f32.gmra.mrb[60].mxu1 %v18016_v13  ;;  %v13677_v25 = vpop.f32.mrb[6].mxu1  ;;  %v13682_v16 = vpack.c.bf16 %v5480_v0, %v5473_v35  ;;  %v18024_v0 = vld [vmem:[#allocation294_spill] sm:$0xff] }
 0x26e   : > { %3218 = vmatprep.mubr.f32.mxu0 %v13111_v49  ;;  %18017 = vst [vmem:[#allocation351_spill] sm:$0xff] %v13677_v25  ;;  %2672 = vmatprep.mubr.f32.mxu1 %v18018_v5  ;;  %v1568_v44 = vpop.f32.mrb[7].mxu1  ;;  %v18031_v5 = vld [vmem:[#allocation311_spill] sm:$0xff]  ;;  %v18033_v13 = vld [vmem:[#allocation314_spill] sm:$0xff] }
 0x26f   : > { %9058 = vmatpush3.bf16.msra.mxu1 %v13651_v46  ;;  %v18022_v44 = vld [vmem:[#allocation293_spill] sm:$0xff]  ;;  %v18050_v46 = vld [vmem:[#allocation195_spill] sm:$0xff] }
 0x270   : > { %9060 = vmatprep.subr.bf16.mxu1 %v13672_v42 }
 0x271   : > { %3221 = vmatmul.mubr.f32.gmra.mrb[66].mxu0 %v13132_v41  ;;  %2674 = vmatmul.mubr.f32.gmra.mrb[62].mxu1 %v18019_v40  ;;  %v13687_v34 = vpop.f32.mrb[8].mxu1 }
 0x272   : > { %3227 = vmatprep.mubr.f32.mxu0 %v13146_v53  ;;  %18020 = vst [vmem:[#allocation352_spill] sm:$0xff] %v13687_v34  ;;  %2679 = vmatprep.mubr.f32.mxu1 %v18021_v20  ;;  %v1583_v55 = vpop.f32.mrb[9].mxu1  ;;  %v18025_v34 = vld [vmem:[#allocation296_spill] sm:$0xff]  ;;  %v18027_v20 = vld [vmem:[#allocation298_spill] sm:$0xff] }
 0x273   : > { %9062 = vmatpush3.bf16.msra.mxu1 %v13672_v42  ;;  %v18037_v42 = vld [vmem:[#allocation143_spill] sm:$0xff] }
 0x274   : > { %9064 = vmatprep.subr.bf16.mxu1 %v13682_v16 }
 0x275   : > { %3230 = vmatmul.mubr.f32.gmra.mrb[68].mxu0 %v13168_v56  ;;  %2681 = vmatmul.mubr.f32.gmra.mrb[64].mxu1 %v18022_v44  ;;  %v13695_v35 = vpop.f32.mrb[10].mxu1  ;;  %v18028_v44 = vld [vmem:[#allocation299_spill] sm:$0xff] }
 0x276   : > { %3236 = vmatprep.mubr.f32.mxu0 %v13176_v15  ;;  %18023 = vst [vmem:[#allocation353_spill] sm:$0xff] %v13695_v35  ;;  %2686 = vmatprep.mubr.f32.mxu1 %v18024_v0  ;;  %v1598_v25 = vpop.f32.mrb[11].mxu1  ;;  %v18125_v56 = vld [vmem:[#allocation335_spill] sm:$0xff] }
 0x277   : > { %v18030_v25 = vld [vmem:[#allocation300_spill] sm:$0xff] }
 0x279   : > { %3239 = vmatmul.mubr.f32.gmra.mrb[70].mxu0 %v13195_v54  ;;  %2688 = vmatmul.mubr.f32.gmra.mrb[66].mxu1 %v18025_v34  ;;  %v13701_v55 = vpop.f32.mrb[12].mxu1  ;;  %v18032_v34 = vld [vmem:[#allocation302_spill] sm:$0xff]  ;;  %v18124_v54 = vld [vmem:[#allocation148_spill] sm:$0xff] }
 0x27a   : > { %3245 = vmatprep.mubr.f32.mxu0 %v13206_v9  ;;  %18026 = vst [vmem:[#allocation354_spill] sm:$0xff] %v13701_v55  ;;  %2693 = vmatprep.mubr.f32.mxu1 %v18027_v20  ;;  %v1613_v40 = vpop.f32.mrb[13].mxu1  ;;  %v18034_v55 = vld [vmem:[#allocation304_spill] sm:$0xff] }
 0x27d   : > { %3248 = vmatmul.mubr.f32.gmra.mrb[72].mxu0 %v13214_v21  ;;  %2695 = vmatmul.mubr.f32.gmra.mrb[68].mxu1 %v18028_v44  ;;  %v13707_v35 = vpop.f32.mrb[14].mxu1  ;;  %v18036_v44 = vld [vmem:[#allocation130_spill] sm:$0xff] }
 0x27e   : > { %3254 = vmatprep.mubr.f32.mxu0 %v13236_v60  ;;  %18029 = vst [vmem:[#allocation355_spill] sm:$0xff] %v13707_v35  ;;  %2700 = vmatprep.mubr.f32.mxu1 %v18030_v25  ;;  %v1628_v0 = vpop.f32.mrb[15].mxu1  ;;  %v18038_v35 = vld [vmem:[#allocation306_spill] sm:$0xff] }
 0x281   : > { %3257 = vmatmul.mubr.f32.gmra.mrb[74].mxu0 %v18031_v5  ;;  %2702 = vmatmul.mubr.f32.gmra.mrb[70].mxu1 %v18032_v34  ;;  %v18040_v34 = vld [vmem:[#allocation307_spill] sm:$0xff]  ;;  %v18078_v5 = vld [vmem:[#allocation156_spill] sm:$0xff] }
 0x282   : > { %3263 = vmatprep.mubr.f32.mxu0 %v18033_v13  ;;  %2707 = vmatprep.mubr.f32.mxu1 %v18034_v55  ;;  %v13714_v40 = vpop.f32.mrb[16].mxu1  ;;  %v18041_v55 = vld [vmem:[#allocation308_spill] sm:$0xff] }
 0x283   : > { %18035 = vst [vmem:[#allocation356_spill] sm:$0xff] %v13714_v40  ;;  %v1643_v20 = vpop.f32.mrb[17].mxu1 }
 0x285   : > { %3266 = vmatmul.mubr.f32.gmra.mrb[76].mxu0 %v13268_v4  ;;  %2709 = vmatmul.mubr.f32.gmra.mrb[72].mxu1 %v18036_v44  ;;  %v18043_v44 = vld [vmem:[#allocation310_spill] sm:$0xff] }
 0x286   : > { %3272 = vmatprep.mubr.f32.mxu0 %v18037_v42  ;;  %2714 = vmatprep.mubr.f32.mxu1 %v18038_v35  ;;  %v13720_v0 = vpop.f32.mrb[18].mxu1  ;;  %v18044_v35 = vld [vmem:[#allocation312_spill] sm:$0xff]  ;;  %v18073_v4 = vld [vmem:[#allocation10_spill] sm:$0xff] }
 0x287   : > { %18039 = vst [vmem:[#allocation357_spill] sm:$0xff] %v13720_v0  ;;  %v1658_v25 = vpop.f32.mrb[19].mxu1 }
 0x289   : > { %3275 = vmatmul.mubr.f32.gmra.mrb[78].mxu0 %v13308_v27  ;;  %2716 = vmatmul.mubr.f32.gmra.mrb[74].mxu1 %v18040_v34  ;;  %v18046_v34 = vld [vmem:[#allocation315_spill] sm:$0xff]  ;;  %v18063_v27 = vld [vmem:[#allocation320_spill] sm:$0xff] }
 0x28a   : > { %3281 = vmatprep.mubr.f32.mxu0 %v13319_v8  ;;  %2721 = vmatprep.mubr.f32.mxu1 %v18041_v55  ;;  %v13726_v20 = vpop.f32.mrb[20].mxu1  ;;  %v18047_v55 = vld [vmem:[#allocation316_spill] sm:$0xff] }
 0x28b   : > { %18042 = vst [vmem:[#allocation358_spill] sm:$0xff] %v13726_v20  ;;  %v1673_v40 = vpop.f32.mrb[21].mxu1 }
 0x28d   : > { %3284 = vmatmul.mubr.f32.gmra.mrb[80].mxu0 %v13343_v22  ;;  %2723 = vmatmul.mubr.f32.gmra.mrb[76].mxu1 %v18043_v44  ;;  %v18049_v44 = vld [vmem:[#allocation53_spill] sm:$0xff]  ;;  %v18056_v22 = vld [vmem:[#allocation319_spill] sm:$0xff] }
 0x28e   : > { %3290 = vmatprep.mubr.f32.mxu0 %v13351_v31  ;;  %2728 = vmatprep.mubr.f32.mxu1 %v18044_v35  ;;  %v1223_v29 = vmul.f32 %v18050_v46, %v18049_v44  ;;  %v18051_v35 = vld [vmem:[#allocation317_spill] sm:$0xff] }
 0x28f   : > { %v13732_v25 = vpop.f32.mrb[22].mxu1  ;;  %v18055_v31 = vld [vmem:[#allocation205_spill] sm:$0xff] }
 0x290   : > { %18045 = vst [vmem:[#allocation359_spill] sm:$0xff] %v13732_v25  ;;  %v1688_v0 = vpop.f32.mrb[23].mxu1  ;;  %v18053_v25 = vld [vmem:[#allocation200_spill] sm:$0xff]  ;;  %v13755_v44 = vand.u32 4294901760, %v1223_v29 }
 0x291   : > { %3293 = vmatmul.mubr.f32.gmra.mrb[82].mxu0 %v13371_v48  ;;  %2730 = vmatmul.mubr.f32.gmra.mrb[78].mxu1 %v18046_v34  ;;  %v18052_v0 = vld [vmem:[#allocation54_spill] sm:$0xff]  ;;  %v18054_v34 = vld [vmem:[#allocation55_spill] sm:$0xff] }
 0x292   : > { %3299 = vmatprep.mubr.f32.mxu0 %v13388_v32  ;;  %2735 = vmatprep.mubr.f32.mxu1 %v18047_v55  ;;  %v1226_v48 = vmul.f32 %v18053_v25, %v18052_v0  ;;  %v1229_v32 = vmul.f32 %v18055_v31, %v18054_v34  ;;  %v18057_v55 = vld [vmem:[#allocation57_spill] sm:$0xff]  ;;  %18060 = vst [vmem:[#allocation195_spill] sm:$0xff] %v13755_v44  ;;  %v18064_v25 = vld [vmem:[#allocation330_spill] sm:$0xff] }
 0x293   : > { %v13738_v40 = vpop.f32.mrb[24].mxu1  ;;  %v18067_v0 = vld [vmem:[#allocation322_spill] sm:$0xff]  ;;  %v13778_v13 = vsub.f32 %v1223_v29, %v13755_v44 }
 0x294   : > { %18048 = vst [vmem:[#allocation360_spill] sm:$0xff] %v13738_v40  ;;  %v1703_v20 = vpop.f32.mrb[25].mxu1  ;;  %v18058_v40 = vld [vmem:[#allocation210_spill] sm:$0xff]  ;;  %v13761_v31 = vand.u32 4294901760, %v1226_v48  ;;  %v13763_v34 = vand.u32 4294901760, %v1229_v32 }
 0x295   : > { %3302 = vmatmul.mubr.f32.gmra.mrb[84].mxu0 %v13394_v12  ;;  %2737 = vmatmul.mubr.f32.gmra.mrb[80].mxu1 %v18051_v35  ;;  %v1232_v20 = vmul.f32 %v18058_v40, %v18057_v55  ;;  %v18061_v35 = vld [vmem:[#allocation56_spill] sm:$0xff]  ;;  %v18069_v40 = vld [vmem:[#allocation7_spill] sm:$0xff]  ;;  %18076 = vst [vmem:[#allocation57_spill] sm:$0xff] %v13778_v13 }
 0x296   : > { %3308 = vmatprep.mubr.f32.mxu0 %v13417_v58  ;;  %2742 = vmatprep.mubr.f32.mxu1 %v18056_v22  ;;  %v18062_v58 = vld [vmem:[#allocation215_spill] sm:$0xff]  ;;  %18065 = vst [vmem:[#allocation54_spill] sm:$0xff] %v13761_v31  ;;  %18066 = vst [vmem:[#allocation200_spill] sm:$0xff] %v13763_v34  ;;  %v18071_v22 = vld [vmem:[#allocation5_spill] sm:$0xff] }
 0x297   : > { %v13752_v8 = vpop.f32.mrb[26].mxu1  ;;  %v1235_v12 = vmul.f32 %v18062_v58, %v18061_v35  ;;  %v13766_v55 = vand.u32 4294901760, %v1232_v20  ;;  %v18074_v58 = vld [vmem:[#allocation226_spill] sm:$0xff] }
 0x298   : > { %18059 = vst [vmem:[#allocation53_spill] sm:$0xff] %v13752_v8  ;;  %v1718_v46 = vpop.f32.mrb[27].mxu1  ;;  %v18070_v8 = vld [vmem:[#allocation219_spill] sm:$0xff]  ;;  %v1244_v35 = vmul.f32 %v18074_v58, %v18073_v4  ;;  %v18081_v4 = vld [vmem:[#allocation325_spill] sm:$0xff] }
 0x299   : > { %3311 = vmatmul.mubr.f32.gmra.mrb[86].mxu0 %v13422_v30  ;;  %2744 = vmatmul.mubr.f32.gmra.mrb[82].mxu1 %v18063_v27  ;;  %18068 = vst [vmem:[#allocation55_spill] sm:$0xff] %v13766_v55  ;;  %v1238_v46 = vmul.f32 %v18070_v8, %v18069_v40  ;;  %v18072_v30 = vld [vmem:[#allocation221_spill] sm:$0xff]  ;;  %v13785_v8 = vsub.f32 %v1226_v48, %v13761_v31 }
 0x29a   : > { %3317 = vmatprep.mubr.f32.mxu0 %v18064_v25  ;;  %2749 = vmatprep.mubr.f32.mxu1 %v18067_v0  ;;  %v1241_v42 = vmul.f32 %v18072_v30, %v18071_v22  ;;  %v13780_v0 = vand.u32 4294901760, %v1235_v12  ;;  %v13788_v22 = vsub.f32 %v1229_v32, %v13763_v34  ;;  %v13792_v30 = vsub.f32 %v1232_v20, %v13766_v55 }
 0x29b   : > { %v13774_v27 = vpop.f32.mrb[28].mxu1  ;;  %18079 = vst [vmem:[#allocation56_spill] sm:$0xff] %v13785_v8  ;;  %v13798_v40 = vand.u32 4294901760, %v1244_v35 }
 0x29c   : > { %18075 = vst [vmem:[#allocation205_spill] sm:$0xff] %v13774_v27  ;;  %v1733_v25 = vpop.f32.mrb[29].mxu1  ;;  %18077 = vst [vmem:[#allocation210_spill] sm:$0xff] %v13780_v0  ;;  %v13796_v29 = vand.u32 4294901760, %v1241_v42  ;;  %v13805_v32 = vsub.f32 %v1235_v12, %v13780_v0  ;;  %v18088_v27 = vld [vmem:[#allocation327_spill] sm:$0xff] }
 0x29d   : > { %3320 = vmatmul.mubr.f32.gmra.mrb[88].mxu0 %v13452_v1  ;;  %2751 = vmatmul.mubr.f32.gmra.mrb[84].mxu1 %v18078_v5  ;;  %18080 = vst [vmem:[#allocation215_spill] sm:$0xff] %v13788_v22  ;;  %18082 = vst [vmem:[#allocation7_spill] sm:$0xff] %v13792_v30  ;;  %v13794_v25 = vand.u32 4294901760, %v1238_v46  ;;  %v18090_v1 = vld [vmem:[#allocation227_spill] sm:$0xff]  ;;  %v18096_v5 = vand.u32 4294901760, %v13778_v13 }
 0x29e   : > { %3326 = vmatprep.mubr.f32.mxu0 %v13455_v28  ;;  %2756 = vmatprep.mubr.f32.mxu1 %v18081_v4  ;;  %18084 = vst [vmem:[#allocation5_spill] sm:$0xff] %v13796_v29  ;;  %18085 = vst [vmem:[#allocation221_spill] sm:$0xff] %v13798_v40  ;;  %v17029_v4 = vand.u32 4294901760, %v13785_v8  ;;  %v18089_v28 = vld [vmem:[#allocation12_spill] sm:$0xff]  ;;  %v13819_v12 = vsub.f32 %v1241_v42, %v13796_v29 }
 0x29f   : > { %18083 = vst [vmem:[#allocation219_spill] sm:$0xff] %v13794_v25  ;;  %18087 = vst [vmem:[#allocation226_spill] sm:$0xff] %v13805_v32  ;;  %v1247_v60 = vmul.f32 %v18090_v1, %v18089_v28  ;;  %v13816_v48 = vsub.f32 %v1238_v46, %v13794_v25  ;;  %v13830_v1 = vsub.f32 %v13778_v13, %v18096_v5  ;;  %v18100_v5 = vld [vmem:[#allocation333_spill] sm:$0xff]  ;;  %v18101_v28 = vand.u32 4294901760, %v13792_v30  ;;  %v18159_v29 = vld [vmem:[#allocation212_spill] sm:$0xff] }
 0x2a0   : > { %18093 = vst [vmem:[#allocation227_spill] sm:$0xff] %v13819_v12  ;;  %v13838_v46 = vsub.f32 %v13785_v8, %v17029_v4  ;;  %v18107_v4 = vld [vmem:[#allocation39_spill] sm:$0xff]  ;;  %v18160_v25 = vand.u32 4294901760, %v18159_v29  ;;  %v18169_v29 = vld [vmem:[#allocation178_spill] sm:$0xff] }
 0x2a1   : > { %3329 = vmatmul.mubr.f32.gmra.mrb[90].mxu0 %v13479_v59  ;;  %v13801_v58 = vpop.f32.mrb[30].mxu1  ;;  %2758 = vmatmul.mubr.f32.gmra.mrb[86].mxu1 %v18088_v27  ;;  %v18091_v59 = vld [vmem:[#allocation328_spill] sm:$0xff]  ;;  %18092 = vst [vmem:[#allocation12_spill] sm:$0xff] %v13816_v48  ;;  %v13822_v27 = vsub.f32 %v1244_v35, %v13798_v40  ;;  %v18098_v35 = vand.u32 4294901760, %v13788_v22  ;;  %v18108_v8 = vand.u32 4294901760, %v18107_v4 }
 0x2a2   : > { %18086 = vst [vmem:[#allocation10_spill] sm:$0xff] %v13801_v58  ;;  %3335 = vmatprep.mubr.f32.mxu0 %v13487_v2  ;;  %v1748_v20 = vpop.f32.mrb[31].mxu1  ;;  %2763 = vmatprep.mubr.f32.mxu1 %v18091_v59  ;;  %v18097_v58 = vld [vmem:[#allocation331_spill] sm:$0xff]  ;;  %v13845_v59 = vand.u32 4294901760, %v1247_v60 }
 0x2a3   : > { %18094 = vst [vmem:[#allocation361_spill] sm:$0xff] %v13822_v27  ;;  %v18114_v4 = vand.u32 4294901760, %v13822_v27 }
 0x2a4   : > { %18099 = vst [vmem:[#allocation363_spill] sm:$0xff] %v13845_v59  ;;  %v13877_v21 = vsub.f32 %v1247_v60, %v13845_v59 }
 0x2a5   : > { %3338 = vmatmul.mubr.f32.gmra.mrb[92].mxu0 %v13502_v36  ;;  %v13825_v20 = vpop.f32.mrb[32].mxu1  ;;  %2765 = vmatmul.mubr.f32.gmra.mrb[88].mxu1 %v18097_v58  ;;  %v13851_v58 = vsub.f32 %v13792_v30, %v18101_v28  ;;  %v18103_v28 = vld [vmem:[#allocation334_spill] sm:$0xff]  ;;  %v18109_v36 = vld [vmem:[#allocation40_spill] sm:$0xff]  ;;  %v13894_v60 = vsub.f32 %v13822_v27, %v18114_v4  ;;  %v18120_v4 = vld [vmem:[#allocation229_spill] sm:$0xff] }
 0x2a6   : > { %18095 = vst [vmem:[#allocation362_spill] sm:$0xff] %v13825_v20  ;;  %3344 = vmatprep.mubr.f32.mxu0 %v13509_v19  ;;  %v1763_v42 = vpop.f32.mrb[33].mxu1  ;;  %v13843_v20 = vsub.f32 %v13788_v22, %v18098_v35  ;;  %2770 = vmatprep.mubr.f32.mxu1 %v18100_v5  ;;  %v4992_v22 = vand.u32 4294901760, %v13830_v1  ;;  %v18102_v5 = vand.u32 4294901760, %v13805_v32  ;;  %v18110_v35 = vand.u32 4294901760, %v18109_v36  ;;  %18111 = vst [vmem:[#allocation39_spill] sm:$0xff] %v13877_v21 }
 0x2a7   : > { %v18104_v42 = vld [vmem:[#allocation201_spill] sm:$0xff]  ;;  %v18113_v36 = vand.u32 4294901760, %v13819_v12  ;;  %v18148_v49 = vand.u32 4294901760, %v13877_v21 }
 0x2a8   : > { %v13863_v19 = vsub.f32 %v13805_v32, %v18102_v5  ;;  %v18105_v30 = vand.u32 4294901760, %v18104_v42  ;;  %v8936_v2 = vpack.c.bf16 %v18110_v35, %v18108_v8  ;;  %v18115_v35 = vand.u32 4294901760, %v13512_v26  ;;  %v18122_v32 = vld [vmem:[#allocation231_spill] sm:$0xff] }
 0x2a9   : > { %3347 = vmatmul.mubr.f32.gmra.mrb[94].mxu0 %v13521_v62  ;;  %2772 = vmatmul.mubr.f32.gmra.mrb[90].mxu1 %v18103_v28  ;;  %v13889_v8 = vsub.f32 %v13819_v12, %v18113_v36  ;;  %v18116_v42 = vand.u32 4294901760, %v13514_v17  ;;  %v18119_v12 = vld [vmem:[#allocation29_spill] sm:$0xff]  ;;  %v18136_v28 = vmov 0.0|0.0   ;;  %v18146_v62 = vld [vmem:[#allocation211_spill] sm:$0xff] }
 0x2aa   : > { %3451 = vmatprep.mubr.f32.mxu0 %v18105_v30  ;;  %v13868_v13 = vpop.f32.mrb[34].mxu1  ;;  %2777 = vmatprep.mubr.f32.mxu1 %v13465_v39  ;;  %v18112_v30 = vand.u32 4294901760, %v13816_v48  ;;  %v18117_v39 = vld [vmem:[#allocation202_spill] sm:$0xff]  ;;  %v1250_v27 = vmul.f32 %v18120_v4, %v18119_v12  ;;  %v18129_v4 = vld [vmem:[#allocation336_spill] sm:$0xff] }
 0x2ab   : > { %18106 = vst [vmem:[#allocation201_spill] sm:$0xff] %v13868_v13  ;;  %v1778_v5 = vpop.f32.mrb[35].mxu1  ;;  %v5493_v1 = vsub.f32 %v13514_v17, %v18116_v42  ;;  %v18118_v36 = vand.u32 4294901760, %v18117_v39  ;;  %v18127_v39 = vld [vmem:[#allocation22_spill] sm:$0xff] }
 0x2ac   : > { %v13884_v13 = vsub.f32 %v13816_v48, %v18112_v30  ;;  %v5486_v5 = vsub.f32 %v13512_v26, %v18115_v35  ;;  %v18121_v48 = vld [vmem:[#allocation20_spill] sm:$0xff]  ;;  %v18123_v35 = vld [vmem:[#allocation37_spill] sm:$0xff] }
 0x2ad   : > { %3455 = vmatmul.mubr.f32.vlgmr.msra.gmra.mrb[0].mxu0 %v18118_v36  ;;  %v1253_v9 = vmul.f32 %v18122_v32, %v18121_v48  ;;  %v1256_v15 = vmul.f32 %v18124_v54, %v18123_v35  ;;  %2779 = vmatmul.mubr.f32.gmra.mrb[92].mxu1 %v18125_v56  ;;  %v18128_v36 = vld [vmem:[#allocation165_spill] sm:$0xff]  ;;  %v18130_v48 = vld [vmem:[#allocation206_spill] sm:$0xff]  ;;  %v18132_v35 = vld [vmem:[#allocation43_spill] sm:$0xff]  ;;  %v5494_v41 = vand.u32 4294901760, %v5493_v1 }
 0x2ae   : > { %8937 = vmatpush1.bf16.msra.mxu0 %v8936_v2  ;;  %v13914_v42 = vpop.f32.mrb[36].mxu1  ;;  %v13919_v30 = vmul.f32 %v18128_v36, %v18127_v39  ;;  %2784 = vmatprep.mubr.f32.mxu1 %v18129_v4  ;;  %v18131_v32 = vand.u32 4294901760, %v18130_v48  ;;  %v18133_v2 = vand.u32 4294901760, %v18132_v35  ;;  %v18134_v56 = vld [vmem:[#allocation44_spill] sm:$0xff]  ;;  %v5487_v12 = vand.u32 4294901760, %v5486_v5  ;;  %v18145_v5 = vld [vmem:[#allocation237_spill] sm:$0xff] }
 0x2af   : > { %18126 = vst [vmem:[#allocation40_spill] sm:$0xff] %v13914_v42  ;;  %v1793_v54 = vpop.f32.mrb[37].mxu1  ;;  %v18135_v42 = vand.u32 4294901760, %v18134_v56  ;;  %8938 = vmatprep.subr.bf16.mxu0 %v18136_v28  ;;  %v18137_v4 = vand.u32 4294901760, %v13545_v47  ;;  %v18139_v56 = vld [vmem:[#allocation207_spill] sm:$0xff]  ;;  %v13942_v35 = vand.u32 4294901760, %v1250_v27 }
 0x2b0   : > { %3462 = vmatprep.mubr.f32.mxu0 %v18131_v32  ;;  %v18138_v32 = vand.u32 4294901760, %v13547_v6  ;;  %v13946_v36 = vand.u32 4294901760, %v1256_v15  ;;  %v18144_v39 = vld [vmem:[#allocation68_spill] sm:$0xff] }
 0x2b1   : > { %v8939_v53 = vpack.c.bf16 %v18135_v42, %v18133_v2  ;;  %v5500_v48 = vsub.f32 %v13545_v47, %v18137_v4  ;;  %v18140_v42 = vand.u32 4294901760, %v18139_v56  ;;  %18141 = vst [vmem:[#allocation202_spill] sm:$0xff] %v13942_v35  ;;  %v13944_v2 = vand.u32 4294901760, %v1253_v9  ;;  %2786 = vmatmul.mubr.f32.gmra.mrb[94].mxu1 %v13504_v50 }
 0x2b2   : > { %v5507_v54 = vsub.f32 %v13547_v6, %v18138_v32  ;;  %18143 = vst [vmem:[#allocation229_spill] sm:$0xff] %v13946_v36  ;;  %v1262_v1 = vmul.f32 %v18145_v5, %v18144_v39  ;;  %v18147_v4 = vand.u32 4294901760, %v18146_v62  ;;  %v13956_v32 = vsub.f32 %v13877_v21, %v18148_v49  ;;  %8151 = vmatprep.mubr.f32.mxu1 %v4992_v22  ;;  %v13967_v5 = vpop.f32.mrb[38].mxu1  ;;  %v18155_v22 = vld [vmem:[#allocation48_spill] sm:$0xff] }
 0x2b3   : > { %3466 = vmatmul.mubr.f32.gmra.mrb[2].mxu0 %v18140_v42  ;;  %18142 = vst [vmem:[#allocation29_spill] sm:$0xff] %v13944_v2  ;;  %v13959_v56 = vand.u32 4294901760, %v13919_v30  ;;  %v18150_v42 = vand.u32 4294901760, %v13571_v11  ;;  %v5521_v39 = vsub.f32 %v13573_v52, %v18151_v3  ;;  %18152 = vst [vmem:[#allocation231_spill] sm:$0xff] %v13967_v5  ;;  %v18154_v21 = vand.u32 4294901760, %v13583_v43  ;;  %v1808_v57 = vpop.f32.mrb[39].mxu1 }
 0x2b4   : > { %3473 = vmatprep.mubr.f32.mxu0 %v18147_v4  ;;  %8940 = vmatpush1.bf16.msra.mxu0 %v8939_v53  ;;  %v18153_v4 = vand.u32 4294901760, %v13579_v37  ;;  %v9067_v3 = vpack.c.bf16 %v5494_v41, %v5487_v12  ;;  %v18156_v53 = vand.u32 4294901760, %v18155_v22  ;;  %v18157_v5 = vld [vmem:[#allocation49_spill] sm:$0xff]  ;;  %v5501_v49 = vand.u32 4294901760, %v5500_v48  ;;  %v18166_v12 = vld [vmem:[#allocation47_spill] sm:$0xff] }
 0x2b5   : > { %18149 = vst [vmem:[#allocation20_spill] sm:$0xff] %v13959_v56  ;;  %v5514_v23 = vsub.f32 %v13571_v11, %v18150_v42  ;;  %v13979_v42 = vsub.f32 %v13583_v43, %v18154_v21  ;;  %8941 = vmatprep.subr.bf16.mxu0 %v18136_v28  ;;  %v18158_v62 = vand.u32 4294901760, %v18157_v5  ;;  %v5508_v40 = vand.u32 4294901760, %v5507_v54  ;;  %v18168_v54 = vld [vmem:[#allocation25_spill] sm:$0xff]  ;;  %v18170_v5 = vld [vmem:[#allocation52_spill] sm:$0xff] }
 0x2b6   : > { %v13974_v50 = vsub.f32 %v13579_v37, %v18153_v4  ;;  %v13989_v37 = vsub.f32 %v1250_v27, %v13942_v35  ;;  %v13992_v43 = vsub.f32 %v1253_v9, %v13944_v2  ;;  %v13995_v57 = vsub.f32 %v1256_v15, %v13946_v36  ;;  %v14011_v36 = vpop.f32.mrb[40].mxu1 }
 0x2b7   : > { %v8942_v59 = vpack.c.bf16 %v18158_v62, %v18156_v53  ;;  %3477 = vmatmul.mubr.f32.gmra.mrb[4].mxu0 %v18160_v25  ;;  %v13997_v21 = vand.u32 4294901760, %v1262_v1  ;;  %v18165_v41 = vand.u32 4294901760, %v13838_v46  ;;  %v18167_v48 = vand.u32 4294901760, %v18166_v12  ;;  %v18172_v62 = vld [vmem:[#allocation73_spill] sm:$0xff]  ;;  %18175 = vst [vmem:[#allocation206_spill] sm:$0xff] %v14011_v36 }
 0x2b8   : > { %18161 = vst [vmem:[#allocation37_spill] sm:$0xff] %v13989_v37  ;;  %18162 = vst [vmem:[#allocation148_spill] sm:$0xff] %v13992_v43  ;;  %v1265_v25 = vmul.f32 %v18169_v29, %v18168_v54  ;;  %v18171_v27 = vand.u32 4294901760, %v18170_v5  ;;  %v18173_v4 = vand.u32 4294901760, %v18172_v62  ;;  %v5515_v22 = vand.u32 4294901760, %v5514_v23 }
 0x2b9   : > { %18163 = vst [vmem:[#allocation22_spill] sm:$0xff] %v13995_v57  ;;  %18164 = vst [vmem:[#allocation165_spill] sm:$0xff] %v13997_v21  ;;  %8152 = vmatmul.mubr.f32.vlgmr.msra.gmra.mrb[96].mxu1 %v18165_v41  ;;  %3484 = vmatprep.mubr.f32.mxu0 %v18167_v48  ;;  %v5522_v53 = vand.u32 4294901760, %v5521_v39  ;;  %v18174_v15 = vand.u32 4294901760, %v13843_v20  ;;  %v18176_v46 = vand.u32 4294901760, %v13642_v45  ;;  %v18177_v12 = vand.u32 4294901760, %v13644_v24 }
 0x2ba   : > { %v8945_v9 = vpack.c.bf16 %v18173_v4, %v18171_v27  ;;  %9066 = vmatpush3.bf16.msra.mxu1 %v13682_v16  ;;  %v17075_v54 = vand.u32 4294901760, %v13974_v50  ;;  %v1823_v39 = vpop.f32.mrb[41].mxu1  ;;  %8943 = vmatpush1.bf16.msra.mxu0 %v8942_v59  ;;  %v9071_v29 = vpack.c.bf16 %v5508_v40, %v5501_v49  ;;  %v18178_v16 = vand.u32 4294901760, %v13597_v7  ;;  %v18180_v4 = vld [vmem:[#allocation216_spill] sm:$0xff]  ;;  %v18190_v20 = vld [vmem:[#allocation85_spill] sm:$0xff] }
 0x2bb   : > { %8154 = vmatprep.mubr.f32.mxu1 %v18174_v15  ;;  %v5528_v41 = vsub.f32 %v13642_v45, %v18176_v46  ;;  %v5535_v48 = vsub.f32 %v13644_v24, %v18177_v12  ;;  %9068 = vmatprep.subr.bf16.mxu1 %v9067_v3  ;;  %v18179_v27 = vand.u32 4294901760, %v13611_v38  ;;  %v18181_v15 = vand.u32 4294901760, %v18180_v4  ;;  %v18192_v12 = vld [vmem:[#allocation86_spill] sm:$0xff] }
 0x2bc   : > { %v14026_v5 = vsub.f32 %v13597_v7, %v18178_v16  ;;  %v14039_v59 = vsub.f32 %v13919_v30, %v13959_v56  ;;  %v14042_v40 = vsub.f32 %v1262_v1, %v13997_v21  ;;  %8944 = vmatprep.subr.bf16.mxu0 %v18136_v28  ;;  %v18184_v7 = vand.u32 4294901760, %v13851_v58  ;;  %v18188_v16 = vld [vmem:[#allocation42_spill] sm:$0xff] }
 0x2bd   : > { %v14031_v62 = vsub.f32 %v13611_v38, %v18179_v27  ;;  %3488 = vmatmul.mubr.f32.gmra.mrb[6].mxu0 %v18181_v15  ;;  %v18185_v38 = vld [vmem:[#allocation6_spill] sm:$0xff]  ;;  %v14049_v39 = vand.u32 4294901760, %v1265_v25  ;;  %v18189_v27 = vld [vmem:[#allocation183_spill] sm:$0xff]  ;;  %v9075_v15 = vpack.c.bf16 %v5522_v53, %v5515_v22  ;;  %v18191_v30 = vand.u32 4294901760, %v18190_v20  ;;  %v14065_v22 = vpop.f32.mrb[42].mxu1  ;;  %v18214_v53 = vld [vmem:[#allocation104_spill] sm:$0xff] }
 0x2be   : > { %18182 = vst [vmem:[#allocation43_spill] sm:$0xff] %v14039_v59  ;;  %18183 = vst [vmem:[#allocation44_spill] sm:$0xff] %v14042_v40  ;;  %8155 = vmatmul.mubr.f32.gmra.mrb[98].mxu1 %v18184_v7  ;;  %v18186_v49 = vand.u32 4294901760, %v18185_v38  ;;  %v1268_v4 = vmul.f32 %v18189_v27, %v18188_v16  ;;  %v18193_v46 = vand.u32 4294901760, %v18192_v12  ;;  %v18194_v23 = vand.u32 4294901760, %v13863_v19  ;;  %8946 = vmatpush1.bf16.msra.mxu0 %v8945_v9  ;;  %v1838_v20 = vpop.f32.mrb[43].mxu1 }
 0x2bf   : > { %18187 = vst [vmem:[#allocation207_spill] sm:$0xff] %v14049_v39  ;;  %9070 = vmatpush3.bf16.msra.mxu1 %v9067_v3  ;;  %v5529_v58 = vand.u32 4294901760, %v5528_v41  ;;  %v5536_v7 = vand.u32 4294901760, %v5535_v48  ;;  %v5542_v38 = vsub.f32 %v13974_v50, %v17075_v54  ;;  %18196 = vst [vmem:[#allocation68_spill] sm:$0xff] %v14065_v22  ;;  %v18197_v3 = vand.u32 4294901760, %v13627_v18  ;;  %v18202_v54 = vld [vmem:[#allocation15_spill] sm:$0xff]  ;;  %8947 = vmatprep.subr.bf16.mxu0 %v18136_v28 }
 0x2c0   : > { %3495 = vmatprep.mubr.f32.mxu0 %v18186_v49  ;;  %v8948_v1 = vpack.c.bf16 %v18193_v46, %v18191_v30  ;;  %8157 = vmatprep.mubr.f32.mxu1 %v18194_v23  ;;  %v18195_v49 = vand.u32 4294901760, %v13979_v42  ;;  %v18198_v48 = vand.u32 4294901760, %v13633_v14  ;;  %v18199_v46 = vld [vmem:[#allocation16_spill] sm:$0xff]  ;;  %v18201_v9 = vand.u32 4294901760, %v13989_v37 }
 0x2c1   : > { %9072 = vmatprep.subr.bf16.mxu1 %v9071_v29  ;;  %v14072_v41 = vsub.f32 %v13627_v18, %v18197_v3  ;;  %v18200_v12 = vand.u32 4294901760, %v18199_v46  ;;  %v18203_v18 = vld [vmem:[#allocation186_spill] sm:$0xff]  ;;  %v18209_v30 = vld [vmem:[#allocation88_spill] sm:$0xff]  ;;  %v5543_v22 = vand.u32 4294901760, %v5542_v38  ;;  %v18221_v38 = vand.u32 4294901760, %v13992_v43 }
 0x2c2   : > { %v5549_v16 = vsub.f32 %v13979_v42, %v18195_v49  ;;  %v14077_v23 = vsub.f32 %v13633_v14, %v18198_v48  ;;  %v5081_v27 = vsub.f32 %v13989_v37, %v18201_v9  ;;  %v1271_v3 = vmul.f32 %v18203_v18, %v18202_v54  ;;  %v18205_v48 = vld [vmem:[#allocation59_spill] sm:$0xff]  ;;  %v18210_v49 = vld [vmem:[#allocation246_spill] sm:$0xff]  ;;  %8949 = vmatpush1.bf16.msra.mxu0 %v8948_v1 }
 0x2c3   : > { %3499 = vmatmul.mubr.f32.gmra.mrb[8].mxu0 %v18200_v12  ;;  %v18204_v14 = vand.u32 4294901760, %v13884_v13  ;;  %v18206_v20 = vand.u32 4294901760, %v18205_v48  ;;  %v14095_v12 = vsub.f32 %v1265_v25, %v14049_v39  ;;  %v14097_v9 = vand.u32 4294901760, %v1268_v4  ;;  %9074 = vmatpush3.bf16.msra.mxu1 %v9071_v29  ;;  %v18212_v13 = vld [vmem:[#allocation101_spill] sm:$0xff] }
 0x2c4   : > { %v1274_v19 = vmul.f32 %v18210_v49, %v18209_v30  ;;  %v18211_v54 = vand.u32 4294901760, %v13889_v8  ;;  %v9079_v18 = vpack.c.bf16 %v5536_v7, %v5529_v58  ;;  %v18215_v48 = vand.u32 4294901760, %v18214_v53  ;;  %9076 = vmatprep.subr.bf16.mxu1 %v9075_v15  ;;  %v14115_v7 = vpop.f32.mrb[44].mxu1  ;;  %v18219_v53 = vld [vmem:[#allocation58_spill] sm:$0xff]  ;;  %8950 = vmatprep.subr.bf16.mxu0 %v18136_v28 }
 0x2c5   : > { %8158 = vmatmul.mubr.f32.gmra.mrb[100].mxu1 %v18204_v14  ;;  %3506 = vmatprep.mubr.f32.mxu0 %v18206_v20  ;;  %18207 = vst [vmem:[#allocation237_spill] sm:$0xff] %v14095_v12  ;;  %18208 = vst [vmem:[#allocation211_spill] sm:$0xff] %v14097_v9  ;;  %v18213_v14 = vand.u32 4294901760, %v18212_v13  ;;  %v5550_v46 = vand.u32 4294901760, %v5549_v16  ;;  %v18216_v25 = vand.u32 4294901760, %v14026_v5  ;;  %v18217_v30 = vand.u32 4294901760, %v14031_v62 }
 0x2c6   : > { %8160 = vmatprep.mubr.f32.mxu1 %v18211_v54  ;;  %18218 = vst [vmem:[#allocation48_spill] sm:$0xff] %v14115_v7  ;;  %v18220_v49 = vand.u32 4294901760, %v18219_v53  ;;  %v5091_v1 = vsub.f32 %v13992_v43, %v18221_v38  ;;  %v18222_v16 = vand.u32 4294901760, %v13995_v57  ;;  %v14125_v13 = vand.u32 4294901760, %v1271_v3  ;;  %v18227_v53 = vld [vmem:[#allocation224_spill] sm:$0xff]  ;;  %v18237_v43 = vld [vmem:[#allocation122_spill] sm:$0xff] }
 0x2c7   : > { %v8951_v20 = vpack.c.bf16 %v18215_v48, %v18213_v14  ;;  %v5556_v36 = vsub.f32 %v14026_v5, %v18216_v25  ;;  %v5563_v8 = vsub.f32 %v14031_v62, %v18217_v30  ;;  %v18224_v14 = vld [vmem:[#allocation31_spill] sm:$0xff]  ;;  %v18225_v48 = vld [vmem:[#allocation249_spill] sm:$0xff]  ;;  %v1853_v30 = vpop.f32.mrb[45].mxu1  ;;  %v18226_v58 = vand.u32 4294901760, %v13894_v60  ;;  %9078 = vmatpush3.bf16.msra.mxu1 %v9075_v15 }
 0x2c8   : > { %3510 = vmatmul.mubr.f32.gmra.mrb[10].mxu0 %v18220_v49  ;;  %v5101_v54 = vsub.f32 %v13995_v57, %v18222_v16  ;;  %18223 = vst [vmem:[#allocation49_spill] sm:$0xff] %v14125_v13  ;;  %v1277_v25 = vmul.f32 %v18225_v48, %v18224_v14  ;;  %v18228_v49 = vand.u32 4294901760, %v18227_v53  ;;  %v5082_v29 = vand.u32 4294901760, %v5081_v27  ;;  %v18233_v60 = vld [vmem:[#allocation97_spill] sm:$0xff]  ;;  %v18235_v27 = vld [vmem:[#allocation119_spill] sm:$0xff]  ;;  %9080 = vmatprep.subr.bf16.mxu1 %v9079_v18 }
 0x2c9   : > { %8161 = vmatmul.mubr.f32.gmra.mrb[102].mxu1 %v18226_v58  ;;  %v18229_v38 = vand.u32 4294901760, %v14039_v59  ;;  %v14138_v16 = vsub.f32 %v1268_v4, %v14097_v9  ;;  %v14140_v57 = vand.u32 4294901760, %v1274_v19  ;;  %v18232_v14 = vand.u32 4294901760, %v13956_v32  ;;  %v18234_v58 = vld [vmem:[#allocation252_spill] sm:$0xff]  ;;  %8952 = vmatpush1.bf16.msra.mxu0 %v8951_v20  ;;  %v18242_v15 = vld [vmem:[#allocation225_spill] sm:$0xff]  ;;  %v18247_v20 = vld [vmem:[#allocation255_spill] sm:$0xff] }
 0x2ca   : > { %3517 = vmatprep.mubr.f32.mxu0 %v18228_v49  ;;  %v1280_v30 = vmul.f32 %v18234_v58, %v18233_v60  ;;  %v9083_v53 = vpack.c.bf16 %v5550_v46, %v5543_v22  ;;  %v18236_v49 = vand.u32 4294901760, %v18235_v27  ;;  %v18238_v37 = vand.u32 4294901760, %v18237_v43  ;;  %v14157_v60 = vpop.f32.mrb[46].mxu1  ;;  %8953 = vmatprep.subr.bf16.mxu0 %v18136_v28  ;;  %v18248_v58 = vld [vmem:[#allocation96_spill] sm:$0xff] }
 0x2cb   : > { %v5111_v7 = vsub.f32 %v14039_v59, %v18229_v38  ;;  %18230 = vst [vmem:[#allocation212_spill] sm:$0xff] %v14138_v16  ;;  %18231 = vst [vmem:[#allocation47_spill] sm:$0xff] %v14140_v57  ;;  %8163 = vmatprep.mubr.f32.mxu1 %v18232_v14  ;;  %v5557_v4 = vand.u32 4294901760, %v5556_v36  ;;  %v5564_v59 = vand.u32 4294901760, %v5563_v8  ;;  %v18239_v9 = vand.u32 4294901760, %v14072_v41  ;;  %v18246_v36 = vld [vmem:[#allocation34_spill] sm:$0xff]  ;;  %9082 = vmatpush3.bf16.msra.mxu1 %v9079_v18 }
 0x2cc   : > { %v8954_v38 = vpack.c.bf16 %v18238_v37, %v18236_v49  ;;  %v18240_v14 = vand.u32 4294901760, %v14077_v23  ;;  %18241 = vst [vmem:[#allocation25_spill] sm:$0xff] %v14157_v60  ;;  %v18243_v22 = vand.u32 4294901760, %v18242_v15  ;;  %v5092_v46 = vand.u32 4294901760, %v5091_v1  ;;  %9084 = vmatprep.subr.bf16.mxu1 %v9083_v53  ;;  %v18258_v60 = vld [vmem:[#allocation139_spill] sm:$0xff]  ;;  %v18264_v18 = vld [vmem:[#allocation62_spill] sm:$0xff] }
 0x2cd   : > { %v5570_v32 = vsub.f32 %v14072_v41, %v18239_v9  ;;  %v14162_v37 = vsub.f32 %v1271_v3, %v14125_v13  ;;  %v14164_v43 = vand.u32 4294901760, %v1277_v25  ;;  %v1283_v8 = vmul.f32 %v18247_v20, %v18246_v36  ;;  %v1868_v9 = vpop.f32.mrb[47].mxu1  ;;  %8164 = vmatmul.mubr.f32.gmra.mrb[104].mxu1 %v5082_v29 }
 0x2ce   : > { %v5577_v48 = vsub.f32 %v14077_v23, %v18240_v14  ;;  %3521 = vmatmul.mubr.f32.gmra.mrb[12].mxu0 %v18243_v22  ;;  %v18249_v27 = vand.u32 4294901760, %v18248_v58  ;;  %v5102_v49 = vand.u32 4294901760, %v5101_v54  ;;  %v18250_v14 = vand.u32 4294901760, %v14042_v40  ;;  %8166 = vmatprep.mubr.f32.mxu1 %v5092_v46  ;;  %v18254_v9 = vld [vmem:[#allocation108_spill] sm:$0xff]  ;;  %v18255_v58 = vld [vmem:[#allocation79_spill] sm:$0xff] }
 0x2cf   : > { %18244 = vst [vmem:[#allocation178_spill] sm:$0xff] %v14162_v37  ;;  %18245 = vst [vmem:[#allocation52_spill] sm:$0xff] %v14164_v43  ;;  %v14176_v15 = vsub.f32 %v1274_v19, %v14140_v57  ;;  %v5112_v22 = vand.u32 4294901760, %v5111_v7  ;;  %v18252_v36 = vand.u32 4294901760, %v14095_v12  ;;  %v14181_v29 = vand.u32 4294901760, %v1280_v30  ;;  %8955 = vmatpush1.bf16.msra.mxu0 %v8954_v38  ;;  %v18260_v57 = vld [vmem:[#allocation11_spill] sm:$0xff]  ;;  %9086 = vmatpush3.bf16.msra.mxu1 %v9083_v53 }
 0x2d0   : > { %3528 = vmatprep.mubr.f32.mxu0 %v18249_v27  ;;  %v5121_v1 = vsub.f32 %v14042_v40, %v18250_v14  ;;  %v1286_v54 = vmul.f32 %v18255_v58, %v18254_v9  ;;  %v9087_v27 = vpack.c.bf16 %v5564_v59, %v5557_v4  ;;  %v18256_v14 = vld [vmem:[#allocation138_spill] sm:$0xff]  ;;  %v18259_v19 = vand.u32 4294901760, %v18258_v60  ;;  %8956 = vmatprep.subr.bf16.mxu0 %v18136_v28  ;;  %v18266_v4 = vld [vmem:[#allocation116_spill] sm:$0xff]  ;;  %v18270_v58 = vld [vmem:[#allocation65_spill] sm:$0xff] }
 0x2d1   : > { %18251 = vst [vmem:[#allocation73_spill] sm:$0xff] %v14176_v15  ;;  %v5131_v20 = vsub.f32 %v14095_v12, %v18252_v36  ;;  %18253 = vst [vmem:[#allocation216_spill] sm:$0xff] %v14181_v29  ;;  %v18257_v3 = vand.u32 4294901760, %v18256_v14  ;;  %v5571_v46 = vand.u32 4294901760, %v5570_v32  ;;  %v5578_v7 = vand.u32 4294901760, %v5577_v48  ;;  %v18265_v38 = vld [vmem:[#allocation262_spill] sm:$0xff]  ;;  %8167 = vmatmul.mubr.f32.gmra.mrb[106].mxu1 %v5102_v49 }
 0x2d2   : > { %v18261_v13 = vand.u32 4294901760, %v18260_v57  ;;  %v14193_v12 = vsub.f32 %v1277_v25, %v14164_v43  ;;  %v14195_v9 = vand.u32 4294901760, %v1283_v8  ;;  %v1289_v59 = vmul.f32 %v18265_v38, %v18264_v18  ;;  %8169 = vmatprep.mubr.f32.mxu1 %v5112_v22  ;;  %v18271_v14 = vld [vmem:[#allocation265_spill] sm:$0xff]  ;;  %v18273_v18 = vld [vmem:[#allocation71_spill] sm:$0xff]  ;;  %v18274_v38 = vld [vmem:[#allocation270_spill] sm:$0xff]  ;;  %9088 = vmatprep.subr.bf16.mxu1 %v9087_v27 }
 0x2d3   : > { %v8957_v40 = vpack.c.bf16 %v18259_v19, %v18257_v3  ;;  %v18267_v60 = vand.u32 4294901760, %v18266_v4  ;;  %v18268_v48 = vand.u32 4294901760, %v14138_v16  ;;  %v5122_v25 = vand.u32 4294901760, %v5121_v1  ;;  %v18277_v22 = vld [vmem:[#allocation155_spill] sm:$0xff]  ;;  %v18279_v36 = vld [vmem:[#allocation28_spill] sm:$0xff]  ;;  %9090 = vmatpush3.bf16.msra.mxu1 %v9087_v27 }
 0x2d4   : > { %3532 = vmatmul.mubr.f32.gmra.mrb[14].mxu0 %v18261_v13  ;;  %18262 = vst [vmem:[#allocation6_spill] sm:$0xff] %v14193_v12  ;;  %18263 = vst [vmem:[#allocation42_spill] sm:$0xff] %v14195_v9  ;;  %v5132_v32 = vand.u32 4294901760, %v5131_v20  ;;  %v14207_v3 = vsub.f32 %v1280_v30, %v14181_v29  ;;  %v1292_v19 = vmul.f32 %v18271_v14, %v18270_v58  ;;  %v14211_v49 = vand.u32 4294901760, %v1286_v54 }
 0x2d5   : > { %3539 = vmatprep.mubr.f32.mxu0 %v18267_v60  ;;  %v5141_v57 = vsub.f32 %v14138_v16, %v18268_v48  ;;  %v1295_v4 = vmul.f32 %v18274_v38, %v18273_v18  ;;  %8958 = vmatpush1.bf16.msra.mxu0 %v8957_v40  ;;  %v9091_v60 = vpack.c.bf16 %v5578_v7, %v5571_v46  ;;  %v18275_v48 = vld [vmem:[#allocation151_spill] sm:$0xff]  ;;  %v18278_v1 = vand.u32 4294901760, %v18277_v22  ;;  %v18284_v40 = vld [vmem:[#allocation132_spill] sm:$0xff] }
 0x2d6   : > { %18269 = vst [vmem:[#allocation183_spill] sm:$0xff] %v14207_v3  ;;  %18272 = vst [vmem:[#allocation85_spill] sm:$0xff] %v14211_v49  ;;  %v18276_v13 = vand.u32 4294901760, %v18275_v48  ;;  %v18280_v30 = vand.u32 4294901760, %v18279_v36  ;;  %v18281_v16 = vand.u32 4294901760, %v14162_v37  ;;  %v14226_v14 = vsub.f32 %v1283_v8, %v14195_v9  ;;  %8959 = vmatprep.subr.bf16.mxu0 %v18136_v28  ;;  %8170 = vmatmul.mubr.f32.gmra.mrb[108].mxu1 %v5122_v25  ;;  %v18288_v8 = vld [vmem:[#allocation75_spill] sm:$0xff] }
 0x2d7   : > { %v14228_v18 = vand.u32 4294901760, %v1289_v59  ;;  %v18285_v46 = vand.u32 4294901760, %v18284_v40  ;;  %v5142_v7 = vand.u32 4294901760, %v5141_v57  ;;  %v18286_v36 = vand.u32 4294901760, %v14176_v15  ;;  %8172 = vmatprep.mubr.f32.mxu1 %v5132_v32  ;;  %v18289_v48 = vld [vmem:[#allocation272_spill] sm:$0xff]  ;;  %9092 = vmatprep.subr.bf16.mxu1 %v9091_v60  ;;  %v18294_v40 = vld [vmem:[#allocation162_spill] sm:$0xff] }
 0x2d8   : > { %v8960_v20 = vpack.c.bf16 %v18278_v1, %v18276_v13  ;;  %3543 = vmatmul.mubr.f32.gmra.mrb[16].mxu0 %v18280_v30  ;;  %v5151_v53 = vsub.f32 %v14162_v37, %v18281_v16  ;;  %18282 = vst [vmem:[#allocation86_spill] sm:$0xff] %v14226_v14  ;;  %v14237_v38 = vand.u32 4294901760, %v1292_v19  ;;  %v1298_v22 = vmul.f32 %v18289_v48, %v18288_v8  ;;  %v18290_v1 = vld [vmem:[#allocation80_spill] sm:$0xff]  ;;  %v18298_v48 = vld [vmem:[#allocation18_spill] sm:$0xff] }
 0x2d9   : > { %18283 = vst [vmem:[#allocation16_spill] sm:$0xff] %v14228_v18  ;;  %3550 = vmatprep.mubr.f32.mxu0 %v18285_v46  ;;  %v5161_v13 = vsub.f32 %v14176_v15, %v18286_v36  ;;  %v18291_v30 = vld [vmem:[#allocation256_spill] sm:$0xff]  ;;  %v14244_v25 = vsub.f32 %v1286_v54, %v14211_v49  ;;  %v14246_v57 = vand.u32 4294901760, %v1295_v4  ;;  %v14250_v32 = vpack.c.bf16 %v13607_v33, %v13602_v10  ;;  %v18296_v36 = vld [vmem:[#allocation163_spill] sm:$0xff] }
 0x2da   : > { %18287 = vst [vmem:[#allocation15_spill] sm:$0xff] %v14237_v38  ;;  %v1301_v58 = vmul.f32 %v18291_v30, %v18290_v1  ;;  %8961 = vmatpush1.bf16.msra.mxu0 %v8960_v20  ;;  %v18295_v46 = vand.u32 4294901760, %v18294_v40  ;;  %v18297_v16 = vand.u32 4294901760, %v18296_v36  ;;  %v18299_v15 = vand.u32 4294901760, %v18298_v48  ;;  %8173 = vmatmul.mubr.f32.gmra.mrb[110].mxu1 %v5142_v7  ;;  %v18302_v40 = vld [vmem:[#allocation233_spill] sm:$0xff]  ;;  %v18318_v10 = vld [vmem:[#allocation91_spill] sm:$0xff] }
 0x2db   : > { %18292 = vst [vmem:[#allocation186_spill] sm:$0xff] %v14244_v25  ;;  %18293 = vst [vmem:[#allocation59_spill] sm:$0xff] %v14246_v57  ;;  %v5152_v27 = vand.u32 4294901760, %v5151_v53  ;;  %v18300_v54 = vand.u32 4294901760, %v14193_v12  ;;  %v14263_v20 = vsub.f32 %v1289_v59, %v14228_v18  ;;  %8962 = vmatprep.subr.bf16.mxu0 %v18136_v28  ;;  %v18303_v37 = vand.u32 4294901760, %v18302_v40  ;;  %9094 = vmatpush3.bf16.msra.mxu1 %v9091_v60 }
 0x2dc   : > { %v8963_v8 = vpack.c.bf16 %v18297_v16, %v18295_v46  ;;  %3554 = vmatmul.mubr.f32.gmra.mrb[18].mxu0 %v18299_v15  ;;  %v5162_v16 = vand.u32 4294901760, %v5161_v13  ;;  %v18304_v15 = vand.u32 4294901760, %v14207_v3  ;;  %v14272_v46 = vsub.f32 %v1292_v19, %v14237_v38  ;;  %v18310_v13 = vld [vmem:[#allocation74_spill] sm:$0xff]  ;;  %9096 = vmatprep.subr.bf16.mxu1 %v14250_v32  ;;  %v18313_v19 = vld [vmem:[#allocation169_spill] sm:$0xff] }
 0x2dd   : > { %v5171_v1 = vsub.f32 %v14193_v12, %v18300_v54  ;;  %18301 = vst [vmem:[#allocation88_spill] sm:$0xff] %v14263_v20  ;;  %3561 = vmatprep.mubr.f32.mxu0 %v18303_v37  ;;  %8175 = vmatprep.mubr.f32.mxu1 %v5152_v27  ;;  %v14274_v36 = vand.u32 4294901760, %v1298_v22  ;;  %v14276_v48 = vand.u32 4294901760, %v1301_v58  ;;  %v14280_v7 = vsub.f32 %v1295_v4, %v14246_v57  ;;  %v18309_v37 = vld [vmem:[#allocation83_spill] sm:$0xff] }
 0x2de   : > { %v5181_v53 = vsub.f32 %v14207_v3, %v18304_v15  ;;  %18305 = vst [vmem:[#allocation246_spill] sm:$0xff] %v14272_v46  ;;  %v1304_v27 = vmul.f32 %v18310_v13, %v18309_v37  ;;  %8964 = vmatpush1.bf16.msra.mxu0 %v8963_v8  ;;  %v18311_v54 = vld [vmem:[#allocation167_spill] sm:$0xff]  ;;  %v18314_v15 = vand.u32 4294901760, %v18313_v19  ;;  %v18315_v3 = vld [vmem:[#allocation234_spill] sm:$0xff]  ;;  %v18317_v59 = vand.u32 4294901760, %v14226_v14  ;;  %8176 = vmatmul.mubr.f32.gmra.mrb[112].mxu1 %v5162_v16  ;;  %v18320_v8 = vld [vmem:[#allocation21_spill] sm:$0xff] }
 0x2df   : > { %18306 = vst [vmem:[#allocation101_spill] sm:$0xff] %v14274_v36  ;;  %18307 = vst [vmem:[#allocation104_spill] sm:$0xff] %v14276_v48  ;;  %v18312_v40 = vand.u32 4294901760, %v18311_v54  ;;  %v18316_v12 = vand.u32 4294901760, %v18315_v3  ;;  %v5172_v60 = vand.u32 4294901760, %v5171_v1  ;;  %v18319_v37 = vld [vmem:[#allocation266_spill] sm:$0xff]  ;;  %8965 = vmatprep.subr.bf16.mxu0 %v18136_v28 }
 0x2e0   : > { %18308 = vst [vmem:[#allocation58_spill] sm:$0xff] %v14280_v7  ;;  %v5191_v4 = vsub.f32 %v14226_v14, %v18317_v59  ;;  %v1307_v13 = vmul.f32 %v18319_v37, %v18318_v10  ;;  %v18321_v54 = vand.u32 4294901760, %v18320_v8  ;;  %v18323_v19 = vld [vmem:[#allocation281_spill] sm:$0xff]  ;;  %v14304_v59 = vsub.f32 %v1298_v22, %v14274_v36  ;;  %v18332_v1 = vld [vmem:[#allocation8_spill] sm:$0xff] }
 0x2e1   : > { %v8966_v30 = vpack.c.bf16 %v18314_v15, %v18312_v40  ;;  %3565 = vmatmul.mubr.f32.gmra.mrb[20].mxu0 %v18316_v12  ;;  %v18322_v40 = vld [vmem:[#allocation94_spill] sm:$0xff]  ;;  %8178 = vmatprep.mubr.f32.mxu1 %v5172_v60  ;;  %v5182_v12 = vand.u32 4294901760, %v5181_v53  ;;  %v14307_v15 = vsub.f32 %v1301_v58, %v14276_v48  ;;  %v18326_v10 = vand.u32 4294901760, %v14244_v25  ;;  %v18337_v37 = vld [vmem:[#allocation277_spill] sm:$0xff]  ;;  %v18348_v36 = vld [vmem:[#allocation184_spill] sm:$0xff] }
 0x2e2   : > { %3572 = vmatprep.mubr.f32.mxu0 %v18321_v54  ;;  %v1310_v3 = vmul.f32 %v18323_v19, %v18322_v40  ;;  %18324 = vst [vmem:[#allocation31_spill] sm:$0xff] %v14304_v59  ;;  %v14313_v8 = vand.u32 4294901760, %v1304_v27  ;;  %v18328_v54 = vld [vmem:[#allocation173_spill] sm:$0xff]  ;;  %v18330_v53 = vld [vmem:[#allocation174_spill] sm:$0xff]  ;;  %v18333_v22 = vand.u32 4294901760, %v18332_v1  ;;  %v5192_v33 = vand.u32 4294901760, %v5191_v4 }
 0x2e3   : > { %18325 = vst [vmem:[#allocation249_spill] sm:$0xff] %v14307_v15  ;;  %v5201_v16 = vsub.f32 %v14244_v25, %v18326_v10  ;;  %8967 = vmatpush1.bf16.msra.mxu0 %v8966_v30  ;;  %v18329_v60 = vand.u32 4294901760, %v18328_v54  ;;  %v18331_v40 = vand.u32 4294901760, %v18330_v53  ;;  %v18334_v58 = vand.u32 4294901760, %v14263_v20  ;;  %v18336_v10 = vld [vmem:[#allocation100_spill] sm:$0xff]  ;;  %8179 = vmatmul.mubr.f32.gmra.mrb[114].mxu1 %v5182_v12  ;;  %v18338_v30 = vld [vmem:[#allocation238_spill] sm:$0xff] }
 0x2e4   : > { %18327 = vst [vmem:[#allocation224_spill] sm:$0xff] %v14313_v8  ;;  %v14324_v48 = vand.u32 4294901760, %v1307_v13  ;;  %v1313_v25 = vmul.f32 %v18337_v37, %v18336_v10  ;;  %8968 = vmatprep.subr.bf16.mxu0 %v18136_v28  ;;  %v18339_v54 = vand.u32 4294901760, %v18338_v30  ;;  %8181 = vmatprep.mubr.f32.mxu1 %v5192_v33  ;;  %v18341_v4 = vand.u32 4294901760, %v14272_v46  ;;  %v18346_v33 = vld [vmem:[#allocation181_spill] sm:$0xff]  ;;  %v18350_v53 = vld [vmem:[#allocation239_spill] sm:$0xff] }
 0x2e5   : > { %v8969_v19 = vpack.c.bf16 %v18331_v40, %v18329_v60  ;;  %3576 = vmatmul.mubr.f32.gmra.mrb[22].mxu0 %v18333_v22  ;;  %v5211_v14 = vsub.f32 %v14263_v20, %v18334_v58  ;;  %v14331_v60 = vand.u32 4294901760, %v1310_v3  ;;  %v18342_v22 = vld [vmem:[#allocation105_spill] sm:$0xff]  ;;  %v18343_v58 = vld [vmem:[#allocation99_spill] sm:$0xff]  ;;  %v5202_v10 = vand.u32 4294901760, %v5201_v16 }
 0x2e6   : > { %18335 = vst [vmem:[#allocation97_spill] sm:$0xff] %v14324_v48  ;;  %3583 = vmatprep.mubr.f32.mxu0 %v18339_v54  ;;  %v5221_v1 = vsub.f32 %v14272_v46, %v18341_v4  ;;  %v1316_v37 = vmul.f32 %v18343_v58, %v18342_v22  ;;  %v18344_v12 = vand.u32 4294901760, %v14280_v7  ;;  %v14344_v54 = vsub.f32 %v1304_v27, %v14313_v8  ;;  %v18354_v58 = vld [vmem:[#allocation112_spill] sm:$0xff] }
 0x2e7   : > { %18340 = vst [vmem:[#allocation252_spill] sm:$0xff] %v14331_v60  ;;  %8970 = vmatpush1.bf16.msra.mxu0 %v8969_v19  ;;  %v18347_v20 = vand.u32 4294901760, %v18346_v33  ;;  %v18349_v4 = vand.u32 4294901760, %v18348_v36  ;;  %v18351_v57 = vand.u32 4294901760, %v18350_v53  ;;  %v5212_v40 = vand.u32 4294901760, %v5211_v14  ;;  %8182 = vmatmul.mubr.f32.gmra.mrb[116].mxu1 %v5202_v10  ;;  %v18356_v27 = vld [vmem:[#allocation24_spill] sm:$0xff] }
 0x2e8   : > { %v5231_v30 = vsub.f32 %v14280_v7, %v18344_v12  ;;  %18345 = vst [vmem:[#allocation119_spill] sm:$0xff] %v14344_v54  ;;  %v14353_v22 = vsub.f32 %v1307_v13, %v14324_v48  ;;  %v14355_v16 = vand.u32 4294901760, %v1313_v25  ;;  %v18355_v12 = vld [vmem:[#allocation98_spill] sm:$0xff]  ;;  %8971 = vmatprep.subr.bf16.mxu0 %v18136_v28  ;;  %v18357_v19 = vand.u32 4294901760, %v18356_v27  ;;  %v18368_v48 = vld [vmem:[#allocation13_spill] sm:$0xff]  ;;  %v18372_v10 = vld [vmem:[#allocation120_spill] sm:$0xff] }
 0x2e9   : > { %v8972_v46 = vpack.c.bf16 %v18349_v4, %v18347_v20  ;;  %3587 = vmatmul.mubr.f32.gmra.mrb[24].mxu0 %v18351_v57  ;;  %v1319_v7 = vmul.f32 %v18355_v12, %v18354_v58  ;;  %v14363_v20 = vsub.f32 %v1310_v3, %v14331_v60  ;;  %8184 = vmatprep.mubr.f32.mxu1 %v5212_v40  ;;  %v5222_v57 = vand.u32 4294901760, %v5221_v1  ;;  %v18362_v58 = vld [vmem:[#allocation115_spill] sm:$0xff]  ;;  %v18363_v12 = vld [vmem:[#allocation102_spill] sm:$0xff]  ;;  %v18364_v3 = vld [vmem:[#allocation185_spill] sm:$0xff] }
 0x2ea   : > { %18352 = vst [vmem:[#allocation122_spill] sm:$0xff] %v14353_v22  ;;  %18353 = vst [vmem:[#allocation225_spill] sm:$0xff] %v14355_v16  ;;  %3594 = vmatprep.mubr.f32.mxu0 %v18357_v19  ;;  %v18359_v14 = vand.u32 4294901760, %v14304_v59  ;;  %v18360_v13 = vand.u32 4294901760, %v14307_v15  ;;  %v14371_v33 = vand.u32 4294901760, %v1316_v37  ;;  %v5232_v4 = vand.u32 4294901760, %v5231_v30 }
 0x2eb   : > { %18358 = vst [vmem:[#allocation34_spill] sm:$0xff] %v14363_v20  ;;  %v1322_v27 = vmul.f32 %v18363_v12, %v18362_v58  ;;  %8973 = vmatpush1.bf16.msra.mxu0 %v8972_v46  ;;  %v18365_v40 = vand.u32 4294901760, %v18364_v3  ;;  %v18366_v1 = vld [vmem:[#allocation188_spill] sm:$0xff]  ;;  %v14386_v30 = vand.u32 4294901760, %v1319_v7  ;;  %8185 = vmatmul.mubr.f32.gmra.mrb[118].mxu1 %v5222_v57  ;;  %v18374_v46 = vld [vmem:[#allocation242_spill] sm:$0xff] }
 0x2ec   : > { %v5241_v36 = vsub.f32 %v14304_v59, %v18359_v14  ;;  %v5251_v53 = vsub.f32 %v14307_v15, %v18360_v13  ;;  %18361 = vst [vmem:[#allocation255_spill] sm:$0xff] %v14371_v33  ;;  %v18367_v19 = vand.u32 4294901760, %v18366_v1  ;;  %v18369_v14 = vand.u32 4294901760, %v18368_v48  ;;  %v18373_v15 = vld [vmem:[#allocation291_spill] sm:$0xff]  ;;  %8974 = vmatprep.subr.bf16.mxu0 %v18136_v28  ;;  %8187 = vmatprep.mubr.f32.mxu1 %v5232_v4  ;;  %v18378_v1 = vld [vmem:[#allocation118_spill] sm:$0xff]  ;;  %v18381_v57 = vld [vmem:[#allocation128_spill] sm:$0xff] }
 0x2ed   : > { %v14384_v13 = vsub.f32 %v1313_v25, %v14355_v16  ;;  %18371 = vst [vmem:[#allocation108_spill] sm:$0xff] %v14386_v30  ;;  %v1325_v8 = vmul.f32 %v18373_v15, %v18372_v10  ;;  %v18375_v58 = vand.u32 4294901760, %v18374_v46  ;;  %v18377_v25 = vld [vmem:[#allocation124_spill] sm:$0xff]  ;;  %v14402_v10 = vand.u32 4294901760, %v1322_v27  ;;  %v18382_v46 = vld [vmem:[#allocation117_spill] sm:$0xff]  ;;  %v18383_v12 = vld [vmem:[#allocation190_spill] sm:$0xff] }
 0x2ee   : > { %v8975_v60 = vpack.c.bf16 %v18367_v19, %v18365_v40  ;;  %3598 = vmatmul.mubr.f32.gmra.mrb[26].mxu0 %v18369_v14  ;;  %v5242_v48 = vand.u32 4294901760, %v5241_v36  ;;  %v5252_v3 = vand.u32 4294901760, %v5251_v53  ;;  %v14395_v40 = vsub.f32 %v1316_v37, %v14371_v33  ;;  %v18385_v36 = vld [vmem:[#allocation191_spill] sm:$0xff] }
 0x2ef   : > { %18370 = vst [vmem:[#allocation96_spill] sm:$0xff] %v14384_v13  ;;  %3605 = vmatprep.mubr.f32.mxu0 %v18375_v58  ;;  %v1328_v19 = vmul.f32 %v18378_v1, %v18377_v25  ;;  %v18379_v14 = vand.u32 4294901760, %v14344_v54  ;;  %18380 = vst [vmem:[#allocation138_spill] sm:$0xff] %v14402_v10  ;;  %v1331_v58 = vmul.f32 %v18382_v46, %v18381_v57  ;;  %v18384_v4 = vand.u32 4294901760, %v18383_v12  ;;  %v18387_v37 = vld [vmem:[#allocation243_spill] sm:$0xff] }
 0x2f0   : > { %18376 = vst [vmem:[#allocation79_spill] sm:$0xff] %v14395_v40  ;;  %8976 = vmatpush1.bf16.msra.mxu0 %v8975_v60  ;;  %v18386_v53 = vand.u32 4294901760, %v18385_v36  ;;  %v18388_v33 = vand.u32 4294901760, %v18387_v37  ;;  %v18389_v25 = vand.u32 4294901760, %v14353_v22  ;;  %v14419_v16 = vand.u32 4294901760, %v1325_v8  ;;  %8188 = vmatmul.mubr.f32.gmra.mrb[120].mxu1 %v5242_v48  ;;  %v18392_v60 = vld [vmem:[#allocation14_spill] sm:$0xff] }
 0x2f1   : > { %v5261_v15 = vsub.f32 %v14344_v54, %v18379_v14  ;;  %v14417_v54 = vsub.f32 %v1319_v7, %v14386_v30  ;;  %8977 = vmatprep.subr.bf16.mxu0 %v18136_v28  ;;  %v18393_v12 = vand.u32 4294901760, %v18392_v60  ;;  %v18394_v57 = vand.u32 4294901760, %v14363_v20  ;;  %8190 = vmatprep.mubr.f32.mxu1 %v5252_v3  ;;  %v18396_v36 = vld [vmem:[#allocation131_spill] sm:$0xff]  ;;  %v18398_v37 = vld [vmem:[#allocation136_spill] sm:$0xff]  ;;  %v18404_v3 = vld [vmem:[#allocation193_spill] sm:$0xff] }
 0x2f2   : > { %v8978_v59 = vpack.c.bf16 %v18386_v53, %v18384_v4  ;;  %3609 = vmatmul.mubr.f32.gmra.mrb[28].mxu0 %v18388_v33  ;;  %v5271_v1 = vsub.f32 %v14353_v22, %v18389_v25  ;;  %18391 = vst [vmem:[#allocation11_spill] sm:$0xff] %v14419_v16  ;;  %v14428_v4 = vand.u32 4294901760, %v1328_v19  ;;  %v18397_v7 = vld [vmem:[#allocation127_spill] sm:$0xff]  ;;  %v18399_v25 = vld [vmem:[#allocation125_spill] sm:$0xff]  ;;  %v14435_v48 = vsub.f32 %v1322_v27, %v14402_v10  ;;  %v18406_v30 = vld [vmem:[#allocation26_spill] sm:$0xff] }
 0x2f3   : > { %18390 = vst [vmem:[#allocation139_spill] sm:$0xff] %v14417_v54  ;;  %3616 = vmatprep.mubr.f32.mxu0 %v18393_v12  ;;  %v5281_v33 = vsub.f32 %v14363_v20, %v18394_v57  ;;  %v1334_v53 = vmul.f32 %v18397_v7, %v18396_v36  ;;  %v1337_v14 = vmul.f32 %v18399_v25, %v18398_v37  ;;  %v5262_v22 = vand.u32 4294901760, %v5261_v15  ;;  %v18402_v12 = vld [vmem:[#allocation192_spill] sm:$0xff]  ;;  %v18416_v25 = vld [vmem:[#allocation129_spill] sm:$0xff] }
 0x2f4   : > { %18395 = vst [vmem:[#allocation62_spill] sm:$0xff] %v14428_v4  ;;  %18400 = vst [vmem:[#allocation262_spill] sm:$0xff] %v14435_v48  ;;  %v14437_v60 = vand.u32 4294901760, %v1331_v58  ;;  %8979 = vmatpush1.bf16.msra.mxu0 %v8978_v59  ;;  %v18403_v57 = vand.u32 4294901760, %v18402_v12  ;;  %v18405_v20 = vand.u32 4294901760, %v18404_v3  ;;  %v18407_v38 = vand.u32 4294901760, %v18406_v30 }
 0x2f5   : > { %v5272_v18 = vand.u32 4294901760, %v5271_v1  ;;  %v18408_v36 = vand.u32 4294901760, %v14384_v13  ;;  %v17150_v15 = vand.u32 4294901760, %v14417_v54  ;;  %v14450_v27 = vsub.f32 %v1325_v8, %v14419_v16  ;;  %8980 = vmatprep.subr.bf16.mxu0 %v18136_v28  ;;  %8191 = vmatmul.mubr.f32.gmra.mrb[122].mxu1 %v5262_v22  ;;  %v18410_v59 = vld [vmem:[#allocation247_spill] sm:$0xff]  ;;  %v18415_v1 = vld [vmem:[#allocation141_spill] sm:$0xff] }
 0x2f6   : > { %18401 = vst [vmem:[#allocation116_spill] sm:$0xff] %v14437_v60  ;;  %v8981_v46 = vpack.c.bf16 %v18405_v20, %v18403_v57  ;;  %3620 = vmatmul.mubr.f32.gmra.mrb[30].mxu0 %v18407_v38  ;;  %v18411_v37 = vand.u32 4294901760, %v18410_v59  ;;  %v14456_v20 = vsub.f32 %v1328_v19, %v14428_v4  ;;  %v14458_v38 = vand.u32 4294901760, %v1334_v53 }
 0x2f7   : > { %v5291_v7 = vsub.f32 %v14384_v13, %v18408_v36  ;;  %18409 = vst [vmem:[#allocation65_spill] sm:$0xff] %v14450_v27  ;;  %8193 = vmatprep.mubr.f32.mxu1 %v5272_v18  ;;  %v14460_v30 = vand.u32 4294901760, %v1337_v14  ;;  %v1340_v12 = vmul.f32 %v18416_v25, %v18415_v1  ;;  %v5282_v57 = vand.u32 4294901760, %v5281_v33  ;;  %v18419_v18 = vld [vmem:[#allocation248_spill] sm:$0xff] }
 0x2f8   : > { %3627 = vmatprep.mubr.f32.mxu0 %v18411_v37  ;;  %18412 = vst [vmem:[#allocation265_spill] sm:$0xff] %v14456_v20  ;;  %18413 = vst [vmem:[#allocation71_spill] sm:$0xff] %v14458_v38  ;;  %v18417_v8 = vand.u32 4294901760, %v14395_v40  ;;  %v17156_v22 = vand.u32 4294901760, %v14435_v48  ;;  %v14469_v36 = vsub.f32 %v1331_v58, %v14437_v60  ;;  %8982 = vmatpush1.bf16.msra.mxu0 %v8981_v46  ;;  %v18420_v19 = vand.u32 4294901760, %v18419_v18  ;;  %v18421_v1 = vld [vmem:[#allocation144_spill] sm:$0xff] }
 0x2f9   : > { %18414 = vst [vmem:[#allocation270_spill] sm:$0xff] %v14460_v30  ;;  %v5292_v59 = vand.u32 4294901760, %v5291_v7  ;;  %v5311_v37 = vsub.f32 %v14417_v54, %v17150_v15  ;;  %v17159_v33 = vand.u32 4294901760, %v14450_v27  ;;  %v18422_v25 = vld [vmem:[#allocation140_spill] sm:$0xff]  ;;  %8983 = vmatprep.subr.bf16.mxu0 %v18136_v28  ;;  %8194 = vmatmul.mubr.f32.gmra.mrb[124].mxu1 %v5282_v57  ;;  %v14484_v7 = vsub.f32 %v1334_v53, %v14458_v38 }
 0x2fa   : > { %v5301_v3 = vsub.f32 %v14395_v40, %v18417_v8  ;;  %18418 = vst [vmem:[#allocation151_spill] sm:$0xff] %v14469_v36  ;;  %3631 = vmatmul.mubr.f32.gmra.mrb[32].mxu0 %v18420_v19  ;;  %v1343_v13 = vmul.f32 %v18422_v25, %v18421_v1  ;;  %v18423_v8 = vld [vmem:[#allocation30_spill] sm:$0xff]  ;;  %v14487_v18 = vsub.f32 %v1337_v14, %v14460_v30  ;;  %v14489_v19 = vand.u32 4294901760, %v1340_v12  ;;  %v18428_v25 = vld [vmem:[#allocation147_spill] sm:$0xff] }
 0x2fb   : > { %v18424_v58 = vand.u32 4294901760, %v18423_v8  ;;  %8196 = vmatprep.mubr.f32.mxu1 %v5292_v59  ;;  %18425 = vst [vmem:[#allocation155_spill] sm:$0xff] %v14484_v7  ;;  %v5321_v1 = vsub.f32 %v14435_v48, %v17156_v22  ;;  %v17166_v57 = vand.u32 4294901760, %v14469_v36  ;;  %v18429_v8 = vld [vmem:[#allocation313_spill] sm:$0xff]  ;;  %v5312_v53 = vand.u32 4294901760, %v5311_v37  ;;  %v18434_v40 = vld [vmem:[#allocation142_spill] sm:$0xff] }
 0x2fc   : > { %18426 = vst [vmem:[#allocation28_spill] sm:$0xff] %v14487_v18  ;;  %18427 = vst [vmem:[#allocation132_spill] sm:$0xff] %v14489_v19  ;;  %v5302_v15 = vand.u32 4294901760, %v5301_v3  ;;  %v1346_v59 = vmul.f32 %v18429_v8, %v18428_v25  ;;  %v5331_v14 = vsub.f32 %v14450_v27, %v17159_v33  ;;  %v14502_v54 = vand.u32 4294901760, %v1343_v13  ;;  %v18433_v3 = vld [vmem:[#allocation153_spill] sm:$0xff] }
 0x2fd   : > { %3638 = vmatprep.mubr.f32.mxu0 %v18424_v58  ;;  %v18430_v58 = vld [vmem:[#allocation19_spill] sm:$0xff]  ;;  %v1349_v28 = vmul.f32 %v18434_v40, %v18433_v3  ;;  %v18435_v22 = vld [vmem:[#allocation253_spill] sm:$0xff]  ;;  %v18437_v25 = vand.u32 4294901760, %v14456_v20  ;;  %v5322_v33 = vand.u32 4294901760, %v5321_v1  ;;  %v5351_v40 = vsub.f32 %v14469_v36, %v17166_v57  ;;  %v18441_v3 = vld [vmem:[#allocation254_spill] sm:$0xff] }
 0x2fe   : > { %v18431_v46 = vand.u32 4294901760, %v18430_v58  ;;  %18432 = vst [vmem:[#allocation75_spill] sm:$0xff] %v14502_v54  ;;  %8197 = vmatmul.mubr.f32.gmra.mrb[126].mxu1 %v5302_v15  ;;  %v18436_v48 = vand.u32 4294901760, %v18435_v22  ;;  %v14514_v58 = vsub.f32 %v1340_v12, %v14489_v19  ;;  %v14519_v15 = vand.u32 4294901760, %v1346_v59  ;;  %v18440_v22 = vld [vmem:[#allocation145_spill] sm:$0xff]  ;;  %v18445_v12 = vld [vmem:[#allocation159_spill] sm:$0xff] }
 0x2ff   : > { %8199 = vmatprep.mubr.f32.mxu1 %v5312_v53  ;;  %v5341_v8 = vsub.f32 %v14456_v20, %v18437_v25  ;;  %v18442_v27 = vand.u32 4294901760, %v18441_v3  ;;  %v5332_v25 = vand.u32 4294901760, %v5331_v14  ;;  %v14526_v37 = vsub.f32 %v1343_v13, %v14502_v54  ;;  %v18446_v1 = vld [vmem:[#allocation150_spill] sm:$0xff]  ;;  %v18447_v19 = vld [vmem:[#allocation33_spill] sm:$0xff]  ;;  %v18458_v14 = vld [vmem:[#allocation175_spill] sm:$0xff] }
 0x300   : > { %3642 = vmatmul.mubr.f32.gmra.mrb[34].mxu0 %v18431_v46  ;;  %18438 = vst [vmem:[#allocation272_spill] sm:$0xff] %v14519_v15  ;;  %v14528_v46 = vand.u32 4294901760, %v1349_v28  ;;  %v1355_v20 = vmul.f32 %v18446_v1, %v18445_v12  ;;  %v18448_v57 = vand.u32 4294901760, %v18447_v19  ;;  %v5352_v3 = vand.u32 4294901760, %v5351_v40  ;;  %v18453_v19 = vld [vmem:[#allocation176_spill] sm:$0xff]  ;;  %v18459_v40 = vld [vmem:[#allocation157_spill] sm:$0xff] }
 0x301   : > { %3649 = vmatprep.mubr.f32.mxu0 %v18436_v48  ;;  %v18439_v48 = vld [vmem:[#allocation161_spill] sm:$0xff]  ;;  %18443 = vst [vmem:[#allocation80_spill] sm:$0xff] %v14526_v37  ;;  %v5342_v36 = vand.u32 4294901760, %v5341_v8  ;;  %v14542_v54 = vsub.f32 %v1346_v59, %v14519_v15  ;;  %v18455_v8 = vld [vmem:[#allocation32_spill] sm:$0xff]  ;;  %v18460_v59 = vld [vmem:[#allocation259_spill] sm:$0xff] }
 0x302   : > { %v1352_v53 = vmul.f32 %v18440_v22, %v18439_v48  ;;  %18444 = vst [vmem:[#allocation256_spill] sm:$0xff] %v14528_v46  ;;  %8200 = vmatmul.mubr.f32.gmra.mrb[128].mxu1 %v5322_v33  ;;  %v18449_v48 = vand.u32 4294901760, %v14484_v7  ;;  %v18456_v12 = vand.u32 4294901760, %v18455_v8 }
 0x303   : > { %8202 = vmatprep.mubr.f32.mxu1 %v5332_v25  ;;  %18451 = vst [vmem:[#allocation162_spill] sm:$0xff] %v14542_v54 }
 0x304   : > { %3653 = vmatmul.mubr.f32.gmra.mrb[36].mxu0 %v18442_v27  ;;  %v5361_v22 = vsub.f32 %v14484_v7, %v18449_v48  ;;  %v18450_v27 = vand.u32 4294901760, %v14487_v18  ;;  %v14544_v33 = vand.u32 4294901760, %v1352_v53  ;;  %v14552_v48 = vsub.f32 %v1349_v28, %v14528_v46  ;;  %v18464_v46 = vld [vmem:[#allocation180_spill] sm:$0xff] }
 0x305   : > { %3660 = vmatprep.mubr.f32.mxu0 %v18448_v57  ;;  %v18454_v57 = vld [vmem:[#allocation323_spill] sm:$0xff]  ;;  %v18461_v7 = vand.u32 4294901760, %v18460_v59 }
 0x306   : > { %v5371_v13 = vsub.f32 %v14487_v18, %v18450_v27  ;;  %18452 = vst [vmem:[#allocation163_spill] sm:$0xff] %v14544_v33  ;;  %v1358_v25 = vmul.f32 %v18454_v57, %v18453_v19  ;;  %v14554_v27 = vand.u32 4294901760, %v1355_v20  ;;  %v1361_v18 = vmul.f32 %v18459_v40, %v18458_v14  ;;  %8203 = vmatmul.mubr.f32.gmra.mrb[130].mxu1 %v5342_v36  ;;  %v18465_v14 = vld [vmem:[#allocation332_spill] sm:$0xff] }
 0x307   : > { %8205 = vmatprep.mubr.f32.mxu1 %v5352_v3  ;;  %v5362_v15 = vand.u32 4294901760, %v5361_v22  ;;  %v18462_v57 = vand.u32 4294901760, %v14514_v58  ;;  %v14565_v28 = vsub.f32 %v1352_v53, %v14544_v33  ;;  %v1364_v36 = vmul.f32 %v18465_v14, %v18464_v46  ;;  %v18466_v40 = vld [vmem:[#allocation260_spill] sm:$0xff]  ;;  %v18470_v53 = vld [vmem:[#allocation78_spill] sm:$0xff] }
 0x308   : > { %3664 = vmatmul.mubr.f32.gmra.mrb[38].mxu0 %v18456_v12  ;;  %18457 = vst [vmem:[#allocation18_spill] sm:$0xff] %v14554_v27  ;;  %v5372_v19 = vand.u32 4294901760, %v5371_v13  ;;  %v14567_v1 = vand.u32 4294901760, %v1358_v25  ;;  %v18467_v59 = vand.u32 4294901760, %v18466_v40  ;;  %v14578_v3 = vsub.f32 %v1355_v20, %v14554_v27  ;;  %v18475_v20 = vld [vmem:[#allocation61_spill] sm:$0xff] }
 0x309   : > { %3671 = vmatprep.mubr.f32.mxu0 %v18461_v7  ;;  %v5381_v8 = vsub.f32 %v14514_v58, %v18462_v57  ;;  %v18468_v7 = vand.u32 4294901760, %v14526_v37  ;;  %v14580_v57 = vand.u32 4294901760, %v1361_v18  ;;  %v18471_v12 = vand.u32 4294901760, %v18470_v53 }
 0x30a   : > { %18463 = vst [vmem:[#allocation233_spill] sm:$0xff] %v14567_v1  ;;  %8206 = vmatmul.mubr.f32.gmra.mrb[132].mxu1 %v5362_v15  ;;  %v18472_v14 = vand.u32 4294901760, %v14542_v54  ;;  %v14591_v13 = vand.u32 4294901760, %v1364_v36  ;;  %v18477_v53 = vand.u32 4294901760, %v14552_v48 }
 0x30b   : > { %v5391_v22 = vsub.f32 %v14526_v37, %v18468_v7  ;;  %18469 = vst [vmem:[#allocation83_spill] sm:$0xff] %v14580_v57  ;;  %8208 = vmatprep.mubr.f32.mxu1 %v5372_v19  ;;  %v5382_v46 = vand.u32 4294901760, %v5381_v8  ;;  %v14589_v7 = vsub.f32 %v1358_v25, %v14567_v1  ;;  %v18476_v37 = vand.u32 4294901760, %v18475_v20 }
 0x30c   : > { %3675 = vmatmul.mubr.f32.gmra.mrb[40].mxu0 %v18467_v59  ;;  %v5401_v40 = vsub.f32 %v14542_v54, %v18472_v14  ;;  %18474 = vst [vmem:[#allocation167_spill] sm:$0xff] %v14591_v13  ;;  %v5411_v19 = vsub.f32 %v14552_v48, %v18477_v53  ;;  %v17183_v8 = vand.u32 4294901760, %v14578_v3  ;;  %v18479_v14 = vld [vmem:[#allocation63_spill] sm:$0xff]  ;;  %v18481_v54 = vand.u32 4294901760, %v14565_v28 }
 0x30d   : > { %3682 = vmatprep.mubr.f32.mxu0 %v18471_v12  ;;  %18473 = vst [vmem:[#allocation74_spill] sm:$0xff] %v14589_v7  ;;  %v5392_v15 = vand.u32 4294901760, %v5391_v22  ;;  %v14600_v12 = vsub.f32 %v1361_v18, %v14580_v57  ;;  %v18480_v59 = vand.u32 4294901760, %v18479_v14  ;;  %v17186_v22 = vand.u32 4294901760, %v14589_v7  ;;  %v18485_v14 = vld [vmem:[#allocation271_spill] sm:$0xff] }
 0x30e   : > { %8209 = vmatmul.mubr.f32.gmra.mrb[134].mxu1 %v5382_v46  ;;  %v5402_v25 = vand.u32 4294901760, %v5401_v40  ;;  %v14609_v20 = vsub.f32 %v1364_v36, %v14591_v13  ;;  %v18482_v53 = vand.u32 4294901760, %v17976_v51  ;;  %v5412_v18 = vand.u32 4294901760, %v5411_v19  ;;  %v18483_v40 = vld [vmem:[#allocation90_spill] sm:$0xff] }
 0x30f   : > { %18478 = vst [vmem:[#allocation169_spill] sm:$0xff] %v14600_v12  ;;  %8211 = vmatprep.mubr.f32.mxu1 %v5392_v15  ;;  %v5431_v46 = vsub.f32 %v14578_v3, %v17183_v8  ;;  %v18484_v15 = vand.u32 4294901760, %v18483_v40  ;;  %v5441_v36 = vsub.f32 %v14589_v7, %v17186_v22  ;;  %v18486_v19 = vand.u32 4294901760, %v18485_v14  ;;  %v18488_v40 = vld [vmem:[#allocation274_spill] sm:$0xff] }
 0x310   : > { %3686 = vmatmul.mubr.f32.gmra.mrb[42].mxu0 %v18476_v37  ;;  %v5421_v37 = vsub.f32 %v14565_v28, %v18481_v54  ;;  %v17185_v51 = vand.u32 4294901760, %v14609_v20 }
 0x311   : > { %3693 = vmatprep.mubr.f32.mxu0 %v18480_v59  ;;  %v17184_v59 = vand.u32 4294901760, %v14600_v12 }
 0x312   : > { %8212 = vmatmul.mubr.f32.gmra.mrb[136].mxu1 %v5402_v25  ;;  %v5422_v54 = vand.u32 4294901760, %v5421_v37  ;;  %v18487_v25 = vand.u32 4294901760, %v12895_v63  ;;  %v5442_v37 = vand.u32 4294901760, %v5441_v36  ;;  %v18493_v63 = vld [vmem:[#allocation264_spill] sm:$0xff] }
 0x313   : > { %8214 = vmatprep.mubr.f32.mxu1 %v5412_v18  ;;  %v5451_v8 = vsub.f32 %v14600_v12, %v17184_v59  ;;  %v5461_v18 = vsub.f32 %v14609_v20, %v17185_v51  ;;  %v18494_v36 = vand.u32 4294901760, %v18493_v63  ;;  %v18506_v63 = vld [vmem:[#allocation285_spill] sm:$0xff] }
 0x314   : > { %3697 = vmatmul.mubr.f32.gmra.mrb[44].mxu0 %v18482_v53  ;;  %v5432_v53 = vand.u32 4294901760, %v5431_v46  ;;  %v18490_v46 = vld [vmem:[#allocation82_spill] sm:$0xff] }
 0x315   : > { %3704 = vmatprep.mubr.f32.mxu0 %v18484_v15  ;;  %v18489_v15 = vand.u32 4294901760, %v18488_v40  ;;  %v5452_v14 = vand.u32 4294901760, %v5451_v8  ;;  %v5462_v59 = vand.u32 4294901760, %v5461_v18 }
 0x316   : > { %8215 = vmatmul.mubr.f32.gmra.mrb[138].mxu1 %v5422_v54  ;;  %v18492_v54 = vand.u32 4294901760, %v17979_v61  ;;  %v9103_v61 = vpack.c.bf16 %v13547_v6, %v13545_v47 }
 0x317   : > { %8217 = vmatprep.mubr.f32.mxu1 %v5432_v53  ;;  %v9099_v53 = vpack.c.bf16 %v13514_v17, %v13512_v26 }
 0x318   : > { %3708 = vmatmul.mubr.f32.gmra.mrb[46].mxu0 %v18486_v19  ;;  %v18491_v19 = vand.u32 4294901760, %v18490_v46  ;;  %v9107_v46 = vpack.c.bf16 %v13573_v52, %v13571_v11 }
 0x319   : > { %3715 = vmatprep.mubr.f32.mxu0 %v18487_v25  ;;  %v18495_v25 = vld [vmem:[#allocation69_spill] sm:$0xff] }
 0x31a   : > { %8218 = vmatmul.mubr.f32.gmra.mrb[140].mxu1 %v5442_v37  ;;  %v18496_v8 = vand.u32 4294901760, %v18495_v25  ;;  %v18497_v37 = vld [vmem:[#allocation282_spill] sm:$0xff]  ;;  %v18508_v25 = vld [vmem:[#allocation5_spill] sm:$0xff] }
 0x31b   : > { %8220 = vmatprep.mubr.f32.mxu1 %v5452_v14  ;;  %v18498_v40 = vand.u32 4294901760, %v18497_v37 }
 0x31c   : > { %3719 = vmatmul.mubr.f32.gmra.mrb[48].mxu0 %v18489_v15  ;;  %v18501_v15 = vld [vmem:[#allocation276_spill] sm:$0xff] }
 0x31d   : > { %3726 = vmatprep.mubr.f32.mxu0 %v18491_v19  ;;  %v18502_v14 = vand.u32 4294901760, %v18501_v15  ;;  %v18514_v15 = vld [vmem:[#allocation363_spill] sm:$0xff] }
 0x31e   : > { %8221 = vmatmul.mubr.f32.gmra.mrb[142].mxu1 %v5462_v59  ;;  %v18499_v59 = vld [vmem:[#allocation283_spill] sm:$0xff] }
 0x31f   : > { %8255 = vmatprep.mubr.f32.mxu1 %v13755_v44  ;;  %v18500_v18 = vand.u32 4294901760, %v18499_v59  ;;  %v18512_v59 = vld [vmem:[#allocation287_spill] sm:$0xff]  ;;  %v18731_v44 = vld [vmem:[#allocation76_spill] sm:$0xff] }
 0x320   : > { %3730 = vmatmul.mubr.f32.gmra.mrb[50].mxu0 %v18492_v54  ;;  %v18505_v54 = vld [vmem:[#allocation219_spill] sm:$0xff] }
 0x321   : > { %3737 = vmatprep.mubr.f32.mxu0 %v18494_v36  ;;  %v18507_v36 = vand.u32 4294901760, %v18506_v63 }
 0x322   : > { %8256 = vmatmul.mubr.f32.vlgmr.msra.gmra.mrb[144].mxu1 %v13761_v31  ;;  %v18724_v31 = vld [vmem:[#allocation241_spill] sm:$0xff] }
 0x323   : > { %8258 = vmatprep.mubr.f32.mxu1 %v13763_v34  ;;  %9098 = vmatpush3.bf16.msra.mxu1 %v14250_v32  ;;  %v18503_v32 = vld [vmem:[#allocation93_spill] sm:$0xff]  ;;  %v18717_v34 = vld [vmem:[#allocation66_spill] sm:$0xff] }
 0x324   : > { %3741 = vmatmul.mubr.f32.gmra.mrb[52].mxu0 %v18496_v8  ;;  %9100 = vmatprep.subr.bf16.mxu1 %v9099_v53  ;;  %v18504_v19 = vand.u32 4294901760, %v18503_v32  ;;  %v9111_v8 = vpack.c.bf16 %v13644_v24, %v13642_v45 }
 0x325   : > { %3748 = vmatprep.mubr.f32.mxu0 %v18498_v40  ;;  %v18511_v40 = vld [vmem:[#allocation221_spill] sm:$0xff] }
 0x326   : > { %8259 = vmatmul.mubr.f32.gmra.mrb[146].mxu1 %v13766_v55  ;;  %v18708_v55 = vld [vmem:[#allocation187_spill] sm:$0xff] }
 0x327   : > { %8261 = vmatprep.mubr.f32.mxu1 %v13780_v0  ;;  %9102 = vmatpush3.bf16.msra.mxu1 %v9099_v53  ;;  %v18509_v53 = vld [vmem:[#allocation110_spill] sm:$0xff]  ;;  %v18691_v0 = vld [vmem:[#allocation212_spill] sm:$0xff] }
 0x328   : > { %3752 = vmatmul.mubr.f32.gmra.mrb[54].mxu0 %v18500_v18  ;;  %9104 = vmatprep.subr.bf16.mxu1 %v9103_v61  ;;  %v18510_v37 = vand.u32 4294901760, %v18509_v53  ;;  %v18513_v18 = vand.u32 4294901760, %v18512_v59  ;;  %v18520_v53 = vld [vmem:[#allocation113_spill] sm:$0xff] }
 0x329   : > { %3759 = vmatprep.mubr.f32.mxu0 %v18502_v14  ;;  %v9115_v14 = vpack.c.bf16 %v13979_v42, %v13974_v50 }
 0x32a   : > { %8262 = vmatmul.mubr.f32.gmra.mrb[148].mxu1 %v18505_v54  ;;  %v18686_v54 = vld [vmem:[#allocation345_spill] sm:$0xff] }
 0x32b   : > { %8264 = vmatprep.mubr.f32.mxu1 %v18508_v25  ;;  %9106 = vmatpush3.bf16.msra.mxu1 %v9103_v61  ;;  %v18515_v61 = vld [vmem:[#allocation289_spill] sm:$0xff]  ;;  %v18680_v25 = vld [vmem:[#allocation27_spill] sm:$0xff] }
 0x32c   : > { %3763 = vmatmul.mubr.f32.gmra.mrb[56].mxu0 %v18504_v19  ;;  %9108 = vmatprep.subr.bf16.mxu1 %v9107_v46  ;;  %v18516_v32 = vand.u32 4294901760, %v18515_v61  ;;  %v18517_v19 = vld [vmem:[#allocation114_spill] sm:$0xff]  ;;  %v18523_v61 = vld [vmem:[#allocation292_spill] sm:$0xff] }
 0x32d   : > { %3770 = vmatprep.mubr.f32.mxu0 %v18507_v36  ;;  %v18518_v63 = vand.u32 4294901760, %v18517_v19  ;;  %v9119_v36 = vpack.c.bf16 %v14031_v62, %v14026_v5 }
 0x32e   : > { %8265 = vmatmul.mubr.f32.gmra.mrb[150].mxu1 %v18511_v40  ;;  %v18667_v40 = vld [vmem:[#allocation152_spill] sm:$0xff] }
 0x32f   : > { %8267 = vmatprep.mubr.f32.mxu1 %v18514_v15  ;;  %9110 = vmatpush3.bf16.msra.mxu1 %v9107_v46  ;;  %v14685_v46 = vpop.f32.mrb[48].mxu1  ;;  %v18665_v15 = vld [vmem:[#allocation148_spill] sm:$0xff] }
 0x330   : > { %3774 = vmatmul.mubr.f32.gmra.mrb[58].mxu0 %v18510_v37  ;;  %9112 = vmatprep.subr.bf16.mxu1 %v9111_v8  ;;  %18519 = vst [vmem:[#allocation234_spill] sm:$0xff] %v14685_v46  ;;  %v18521_v37 = vand.u32 4294901760, %v18520_v53  ;;  %v2628_v59 = vpop.f32.mrb[49].mxu1 }
 0x331   : > { %3781 = vmatprep.mubr.f32.mxu0 %v18513_v18  ;;  %v18522_v18 = vld [vmem:[#allocation229_spill] sm:$0xff]  ;;  %v14695_v19 = vpop.f32.mrb[50].mxu1 }
 0x332   : > { %8268 = vmatmul.mubr.f32.gmra.mrb[152].mxu1 %v13942_v35  ;;  %18525 = vst [vmem:[#allocation91_spill] sm:$0xff] %v14695_v19  ;;  %v2635_v53 = vpop.f32.mrb[51].mxu1  ;;  %v18533_v19 = vld [vmem:[#allocation211_spill] sm:$0xff]  ;;  %v18664_v35 = vld [vmem:[#allocation9_spill] sm:$0xff] }
 0x333   : > { %8270 = vmatprep.mubr.f32.mxu1 %v13944_v2  ;;  %9114 = vmatpush3.bf16.msra.mxu1 %v9111_v8  ;;  %v9123_v8 = vpack.c.bf16 %v14077_v23, %v14072_v41  ;;  %v18536_v53 = vld [vmem:[#allocation49_spill] sm:$0xff] }
 0x334   : > { %3785 = vmatmul.mubr.f32.gmra.mrb[60].mxu0 %v18516_v32  ;;  %9116 = vmatprep.subr.bf16.mxu1 %v9115_v14  ;;  %v18524_v32 = vand.u32 4294901760, %v18523_v61  ;;  %v18531_v61 = vld [vmem:[#allocation123_spill] sm:$0xff] }
 0x335   : > { %3792 = vmatprep.mubr.f32.mxu0 %v18518_v63  ;;  %v18526_v63 = vld [vmem:[#allocation295_spill] sm:$0xff] }
 0x336   : > { %8271 = vmatmul.mubr.f32.gmra.mrb[154].mxu1 %v18522_v18  ;;  %v18527_v51 = vand.u32 4294901760, %v18526_v63  ;;  %v18534_v63 = vld [vmem:[#allocation121_spill] sm:$0xff]  ;;  %v18660_v18 = vld [vmem:[#allocation135_spill] sm:$0xff] }
 0x337   : > { %8273 = vmatprep.mubr.f32.mxu1 %v13959_v56  ;;  %9118 = vmatpush3.bf16.msra.mxu1 %v9115_v14  ;;  %v14703_v14 = vpop.f32.mrb[52].mxu1  ;;  %v18659_v56 = vld [vmem:[#allocation343_spill] sm:$0xff] }
 0x338   : > { %3796 = vmatmul.mubr.f32.gmra.mrb[62].mxu0 %v18521_v37  ;;  %9120 = vmatprep.subr.bf16.mxu1 %v9119_v36  ;;  %v18528_v37 = vld [vmem:[#allocation297_spill] sm:$0xff]  ;;  %18530 = vst [vmem:[#allocation266_spill] sm:$0xff] %v14703_v14  ;;  %v2642_v22 = vpop.f32.mrb[53].mxu1 }
 0x339   : > { %3803 = vmatprep.mubr.f32.mxu0 %v18524_v32  ;;  %v18529_v59 = vand.u32 4294901760, %v18528_v37  ;;  %v18532_v32 = vand.u32 4294901760, %v18531_v61  ;;  %v18537_v37 = vld [vmem:[#allocation158_spill] sm:$0xff]  ;;  %v18542_v61 = vld [vmem:[#allocation303_spill] sm:$0xff] }
 0x33a   : > { %8274 = vmatmul.mubr.f32.gmra.mrb[156].mxu1 %v13997_v21  ;;  %v18543_v22 = vand.u32 4294901760, %v18542_v61  ;;  %v18658_v21 = vld [vmem:[#allocation39_spill] sm:$0xff] }
 0x33b   : > { %8276 = vmatprep.mubr.f32.mxu1 %v14049_v39  ;;  %9122 = vmatpush3.bf16.msra.mxu1 %v9119_v36  ;;  %v18539_v36 = vld [vmem:[#allocation301_spill] sm:$0xff]  ;;  %v18541_v39 = vld [vmem:[#allocation47_spill] sm:$0xff] }
 0x33c   : > { %3807 = vmatmul.mubr.f32.gmra.mrb[64].mxu0 %v18527_v51  ;;  %9124 = vmatprep.subr.bf16.mxu1 %v9123_v8  ;;  %v18535_v51 = vand.u32 4294901760, %v18534_v63  ;;  %v18540_v46 = vand.u32 4294901760, %v18539_v36  ;;  %v18545_v63 = vld [vmem:[#allocation305_spill] sm:$0xff] }
 0x33d   : > { %3814 = vmatprep.mubr.f32.mxu0 %v18529_v59  ;;  %v14712_v59 = vpop.f32.mrb[54].mxu1 }
 0x33e   : > { %8277 = vmatmul.mubr.f32.gmra.mrb[158].mxu1 %v18533_v19  ;;  %18538 = vst [vmem:[#allocation21_spill] sm:$0xff] %v14712_v59  ;;  %v2649_v14 = vpop.f32.mrb[55].mxu1  ;;  %v18547_v59 = vld [vmem:[#allocation134_spill] sm:$0xff] }
 0x33f   : > { %8279 = vmatprep.mubr.f32.mxu1 %v18536_v53  ;;  %9126 = vmatpush3.bf16.msra.mxu1 %v9123_v8  ;;  %v18548_v53 = vand.u32 4294901760, %v18547_v59  ;;  %v18550_v14 = vld [vmem:[#allocation133_spill] sm:$0xff]  ;;  %v18657_v19 = vld [vmem:[#allocation222_spill] sm:$0xff] }
 0x340   : > { %3818 = vmatmul.mubr.f32.gmra.mrb[66].mxu0 %v18532_v32  ;;  %9128 = vmatprep.subr.bf16.mxu1 %v18537_v37  ;;  %v14720_v32 = vpop.f32.mrb[56].mxu1  ;;  %v18551_v36 = vand.u32 4294901760, %v18550_v14  ;;  %v18561_v14 = vld [vmem:[#allocation59_spill] sm:$0xff] }
 0x341   : > { %3825 = vmatprep.mubr.f32.mxu0 %v18535_v51  ;;  %18544 = vst [vmem:[#allocation94_spill] sm:$0xff] %v14720_v32  ;;  %v18546_v51 = vand.u32 4294901760, %v18545_v63  ;;  %v2656_v8 = vpop.f32.mrb[57].mxu1  ;;  %v18554_v63 = vld [vmem:[#allocation16_spill] sm:$0xff] }
 0x342   : > { %8280 = vmatmul.mubr.f32.gmra.mrb[160].mxu1 %v18541_v39  ;;  %v18556_v8 = vld [vmem:[#allocation311_spill] sm:$0xff] }
 0x343   : > { %8282 = vmatprep.mubr.f32.mxu1 %v14164_v43  ;;  %v18557_v59 = vand.u32 4294901760, %v18556_v8  ;;  %v18568_v8 = vld [vmem:[#allocation104_spill] sm:$0xff]  ;;  %v18653_v43 = vld [vmem:[#allocation126_spill] sm:$0xff] }
 0x344   : > { %3829 = vmatmul.mubr.f32.gmra.mrb[68].mxu0 %v18540_v46  ;;  %v14728_v46 = vpop.f32.mrb[58].mxu1 }
 0x345   : > { %3836 = vmatprep.mubr.f32.mxu0 %v18543_v22  ;;  %18549 = vst [vmem:[#allocation281_spill] sm:$0xff] %v14728_v46  ;;  %v2663_v61 = vpop.f32.mrb[59].mxu1  ;;  %v18552_v22 = vld [vmem:[#allocation309_spill] sm:$0xff]  ;;  %v18559_v46 = vld [vmem:[#allocation314_spill] sm:$0xff] }
 0x346   : > { %8283 = vmatmul.mubr.f32.gmra.mrb[162].mxu1 %v14181_v29  ;;  %v18553_v32 = vand.u32 4294901760, %v18552_v22  ;;  %v18560_v29 = vand.u32 4294901760, %v18559_v46  ;;  %v18563_v61 = vld [vmem:[#allocation137_spill] sm:$0xff] }
 0x347   : > { %8285 = vmatprep.mubr.f32.mxu1 %v14195_v9  ;;  %v18558_v9 = vld [vmem:[#allocation15_spill] sm:$0xff]  ;;  %v18564_v22 = vand.u32 4294901760, %v18563_v61  ;;  %v18575_v61 = vld [vmem:[#allocation97_spill] sm:$0xff] }
 0x348   : > { %3840 = vmatmul.mubr.f32.gmra.mrb[70].mxu0 %v18546_v51  ;;  %v14736_v51 = vpop.f32.mrb[60].mxu1 }
 0x349   : > { %3847 = vmatprep.mubr.f32.mxu0 %v18548_v53  ;;  %18555 = vst [vmem:[#allocation173_spill] sm:$0xff] %v14736_v51  ;;  %v2670_v53 = vpop.f32.mrb[61].mxu1  ;;  %v18566_v51 = vld [vmem:[#allocation143_spill] sm:$0xff] }
 0x34a   : > { %8286 = vmatmul.mubr.f32.gmra.mrb[164].mxu1 %v14211_v49  ;;  %v18567_v49 = vand.u32 4294901760, %v18566_v51  ;;  %v18570_v53 = vld [vmem:[#allocation146_spill] sm:$0xff] }
 0x34b   : > { %8288 = vmatprep.mubr.f32.mxu1 %v18554_v63  ;;  %v18565_v63 = vld [vmem:[#allocation101_spill] sm:$0xff]  ;;  %v18571_v46 = vand.u32 4294901760, %v18570_v53 }
 0x34c   : > { %3851 = vmatmul.mubr.f32.gmra.mrb[72].mxu0 %v18551_v36  ;;  %v14744_v36 = vpop.f32.mrb[62].mxu1  ;;  %v18582_v53 = vld [vmem:[#allocation225_spill] sm:$0xff] }
 0x34d   : > { %3858 = vmatprep.mubr.f32.mxu0 %v18553_v32  ;;  %18562 = vst [vmem:[#allocation174_spill] sm:$0xff] %v14744_v36  ;;  %v2677_v32 = vpop.f32.mrb[63].mxu1  ;;  %v18573_v36 = vld [vmem:[#allocation318_spill] sm:$0xff] }
 0x34e   : > { %8289 = vmatmul.mubr.f32.gmra.mrb[166].mxu1 %v18558_v9  ;;  %v18574_v9 = vand.u32 4294901760, %v18573_v36  ;;  %v18577_v32 = vld [vmem:[#allocation149_spill] sm:$0xff] }
 0x34f   : > { %8291 = vmatprep.mubr.f32.mxu1 %v18561_v14  ;;  %v18572_v14 = vld [vmem:[#allocation224_spill] sm:$0xff]  ;;  %v18578_v51 = vand.u32 4294901760, %v18577_v32 }
 0x350   : > { %3862 = vmatmul.mubr.f32.gmra.mrb[74].mxu0 %v18557_v59  ;;  %v14752_v59 = vpop.f32.mrb[64].mxu1  ;;  %v18589_v32 = vld [vmem:[#allocation108_spill] sm:$0xff] }
 0x351   : > { %3869 = vmatprep.mubr.f32.mxu0 %v18560_v29  ;;  %18569 = vst [vmem:[#allocation8_spill] sm:$0xff] %v14752_v59  ;;  %v2684_v29 = vpop.f32.mrb[65].mxu1  ;;  %v18580_v59 = vld [vmem:[#allocation321_spill] sm:$0xff] }
 0x352   : > { %8292 = vmatmul.mubr.f32.gmra.mrb[168].mxu1 %v18565_v63  ;;  %v18581_v63 = vand.u32 4294901760, %v18580_v59  ;;  %v18584_v29 = vld [vmem:[#allocation154_spill] sm:$0xff] }
 0x353   : > { %8294 = vmatprep.mubr.f32.mxu1 %v18568_v8  ;;  %v18579_v8 = vld [vmem:[#allocation252_spill] sm:$0xff]  ;;  %v18585_v36 = vand.u32 4294901760, %v18584_v29 }
 0x354   : > { %3873 = vmatmul.mubr.f32.gmra.mrb[76].mxu0 %v18564_v22  ;;  %v14760_v22 = vpop.f32.mrb[66].mxu1 }
 0x355   : > { %3880 = vmatprep.mubr.f32.mxu0 %v18567_v49  ;;  %18576 = vst [vmem:[#allocation100_spill] sm:$0xff] %v14760_v22  ;;  %v2691_v49 = vpop.f32.mrb[67].mxu1  ;;  %v18587_v22 = vld [vmem:[#allocation324_spill] sm:$0xff] }
 0x356   : > { %8295 = vmatmul.mubr.f32.gmra.mrb[170].mxu1 %v18572_v14  ;;  %v18588_v14 = vand.u32 4294901760, %v18587_v22  ;;  %v18591_v49 = vld [vmem:[#allocation326_spill] sm:$0xff] }
 0x357   : > { %8297 = vmatprep.mubr.f32.mxu1 %v18575_v61  ;;  %v18586_v61 = vld [vmem:[#allocation255_spill] sm:$0xff]  ;;  %v18592_v59 = vand.u32 4294901760, %v18591_v49 }
 0x358   : > { %3884 = vmatmul.mubr.f32.gmra.mrb[78].mxu0 %v18571_v46  ;;  %v14768_v46 = vpop.f32.mrb[68].mxu1 }
 0x359   : > { %3891 = vmatprep.mubr.f32.mxu0 %v18574_v9  ;;  %18583 = vst [vmem:[#allocation277_spill] sm:$0xff] %v14768_v46  ;;  %v2698_v9 = vpop.f32.mrb[69].mxu1  ;;  %v18593_v46 = vld [vmem:[#allocation166_spill] sm:$0xff] }
 0x35a   : > { %8298 = vmatmul.mubr.f32.gmra.mrb[172].mxu1 %v18579_v8  ;;  %v18598_v9 = vld [vmem:[#allocation330_spill] sm:$0xff]  ;;  %v18652_v8 = vld [vmem:[#allocation341_spill] sm:$0xff] }
 0x35b   : > { %8300 = vmatprep.mubr.f32.mxu1 %v18582_v53  ;;  %v18594_v53 = vand.u32 4294901760, %v18593_v46 }
 0x35c   : > { %3895 = vmatmul.mubr.f32.gmra.mrb[80].mxu0 %v18578_v51  ;;  %v14776_v51 = vpop.f32.mrb[70].mxu1 }
 0x35d   : > { %3902 = vmatprep.mubr.f32.mxu0 %v18581_v63  ;;  %18590 = vst [vmem:[#allocation238_spill] sm:$0xff] %v14776_v51  ;;  %v2705_v63 = vpop.f32.mrb[71].mxu1  ;;  %v18599_v51 = vand.u32 4294901760, %v18598_v9  ;;  %v18608_v9 = vld [vmem:[#allocation132_spill] sm:$0xff] }
 0x35e   : > { %8301 = vmatmul.mubr.f32.gmra.mrb[174].mxu1 %v18586_v61  ;;  %v14784_v29 = vpop.f32.mrb[72].mxu1  ;;  %v18603_v63 = vld [vmem:[#allocation172_spill] sm:$0xff]  ;;  %v18651_v61 = vld [vmem:[#allocation227_spill] sm:$0xff] }
 0x35f   : > { %8303 = vmatprep.mubr.f32.mxu1 %v18589_v32  ;;  %18595 = vst [vmem:[#allocation105_spill] sm:$0xff] %v14784_v29  ;;  %v18604_v29 = vand.u32 4294901760, %v18603_v63  ;;  %v18650_v32 = vld [vmem:[#allocation51_spill] sm:$0xff] }
 0x360   : > { %3906 = vmatmul.mubr.f32.gmra.mrb[82].mxu0 %v18585_v36  ;;  %v18596_v36 = vld [vmem:[#allocation329_spill] sm:$0xff] }
 0x361   : > { %3913 = vmatprep.mubr.f32.mxu0 %v18588_v14  ;;  %v18597_v22 = vand.u32 4294901760, %v18596_v36  ;;  %v2712_v14 = vpop.f32.mrb[73].mxu1 }
 0x362   : > { %8304 = vmatmul.mubr.f32.gmra.mrb[176].mxu1 %v14402_v10  ;;  %v14792_v49 = vpop.f32.mrb[74].mxu1 }
 0x363   : > { %8306 = vmatprep.mubr.f32.mxu1 %v14419_v16  ;;  %18600 = vst [vmem:[#allocation99_spill] sm:$0xff] %v14792_v49  ;;  %v18609_v49 = vld [vmem:[#allocation177_spill] sm:$0xff]  ;;  %v18646_v16 = vld [vmem:[#allocation111_spill] sm:$0xff] }
 0x364   : > { %3917 = vmatmul.mubr.f32.gmra.mrb[84].mxu0 %v18592_v59  ;;  %v18601_v59 = vld [vmem:[#allocation164_spill] sm:$0xff] }
 0x365   : > { %3924 = vmatprep.mubr.f32.mxu0 %v18594_v53  ;;  %v18602_v46 = vand.u32 4294901760, %v18601_v59  ;;  %v2719_v53 = vpop.f32.mrb[75].mxu1  ;;  %v18611_v59 = vld [vmem:[#allocation75_spill] sm:$0xff] }
 0x366   : > { %8307 = vmatmul.mubr.f32.gmra.mrb[178].mxu1 %v14428_v4  ;;  %v14800_v36 = vpop.f32.mrb[76].mxu1  ;;  %v18613_v53 = vld [vmem:[#allocation337_spill] sm:$0xff] }
 0x367   : > { %8309 = vmatprep.mubr.f32.mxu1 %v14437_v60  ;;  %18605 = vst [vmem:[#allocation181_spill] sm:$0xff] %v14800_v36  ;;  %v18610_v60 = vand.u32 4294901760, %v18609_v49  ;;  %v18614_v63 = vand.u32 4294901760, %v18613_v53  ;;  %v18616_v36 = vld [vmem:[#allocation339_spill] sm:$0xff]  ;;  %v18645_v4 = vld [vmem:[#allocation81_spill] sm:$0xff] }
 0x368   : > { %3928 = vmatmul.mubr.f32.gmra.mrb[86].mxu0 %v18597_v22  ;;  %v18606_v22 = vld [vmem:[#allocation179_spill] sm:$0xff] }
 0x369   : > { %3935 = vmatprep.mubr.f32.mxu0 %v18599_v51  ;;  %v18607_v14 = vand.u32 4294901760, %v18606_v22  ;;  %v2726_v51 = vpop.f32.mrb[77].mxu1  ;;  %v18618_v22 = vld [vmem:[#allocation256_spill] sm:$0xff] }
 0x36a   : > { %8310 = vmatmul.mubr.f32.gmra.mrb[180].mxu1 %v14458_v38  ;;  %v18617_v38 = vand.u32 4294901760, %v18616_v36  ;;  %v18620_v51 = vld [vmem:[#allocation340_spill] sm:$0xff] }
 0x36b   : > { %8312 = vmatprep.mubr.f32.mxu1 %v14460_v30  ;;  %v18615_v30 = vld [vmem:[#allocation272_spill] sm:$0xff]  ;;  %v18621_v49 = vand.u32 4294901760, %v18620_v51  ;;  %v18627_v51 = vmov 0.0|0.0  }
 0x36c   : > { %3939 = vmatmul.mubr.f32.gmra.mrb[88].mxu0 %v18602_v46  ;;  %v14808_v46 = vpop.f32.mrb[78].mxu1 }
 0x36d   : > { %3946 = vmatprep.mubr.f32.mxu0 %v18604_v29  ;;  %18612 = vst [vmem:[#allocation184_spill] sm:$0xff] %v14808_v46  ;;  %v2733_v29 = vpop.f32.mrb[79].mxu1  ;;  %v18622_v46 = vld [vmem:[#allocation198_spill] sm:$0xff] }
 0x36e   : > { %8313 = vmatmul.mubr.f32.gmra.mrb[182].mxu1 %v18608_v9  ;;  %v18626_v29 = vld [vmem:[#allocation203_spill] sm:$0xff]  ;;  %v18644_v9 = vld [vmem:[#allocation226_spill] sm:$0xff] }
 0x36f   : > { %8315 = vmatprep.mubr.f32.mxu1 %v18611_v59  ;;  %v18643_v59 = vld [vmem:[#allocation217_spill] sm:$0xff] }
 0x370   : > { %3950 = vmatmul.mubr.f32.gmra.mrb[90].mxu0 %v18607_v14  ;;  %v14816_v14 = vpop.f32.mrb[80].mxu1 }
 0x371   : > { %3957 = vmatprep.mubr.f32.mxu0 %v18610_v60  ;;  %18619 = vst [vmem:[#allocation239_spill] sm:$0xff] %v14816_v14  ;;  %v2740_v60 = vpop.f32.mrb[81].mxu1 }
 0x372   : > { %8316 = vmatmul.mubr.f32.gmra.mrb[184].mxu1 %v18615_v30  ;;  %v14823_v53 = vpop.f32.mrb[82].mxu1  ;;  %v18629_v60 = vld [vmem:[#allocation204_spill] sm:$0xff]  ;;  %v18641_v30 = vld [vmem:[#allocation214_spill] sm:$0xff] }
 0x373   : > { %8318 = vmatprep.mubr.f32.mxu1 %v18618_v22  ;;  %18623 = vst [vmem:[#allocation112_spill] sm:$0xff] %v14823_v53  ;;  %v2747_v36 = vpop.f32.mrb[83].mxu1  ;;  %v18630_v53 = vld [vmem:[#allocation208_spill] sm:$0xff]  ;;  %v18639_v22 = vld [vmem:[#allocation45_spill] sm:$0xff] }
 0x374   : > { %3961 = vmatmul.mubr.f32.gmra.mrb[92].mxu0 %v18614_v63  ;;  %v18624_v63 = vld [vmem:[#allocation199_spill] sm:$0xff]  ;;  %v18631_v36 = vld [vmem:[#allocation57_spill] sm:$0xff] }
 0x375   : > { %3968 = vmatprep.mubr.f32.mxu0 %v18617_v38  ;;  %v18625_v38 = vld [vmem:[#allocation50_spill] sm:$0xff] }
 0x376   : > { %8319 = vmatmul.mubr.f32.gmra.mrb[186].mxu1 %v14544_v33  ;;  %v18635_v33 = vld [vmem:[#allocation56_spill] sm:$0xff] }
 0x377   : > { %8321 = vmatprep.mubr.f32.mxu1 %v14554_v27 }
 0x378   : > { %3972 = vmatmul.mubr.f32.gmra.mrb[94].mxu0 %v18621_v49  ;;  %v14831_v49 = vpop.f32.mrb[84].mxu1 }
 0x379   : > { %4138 = vmatprep.mubr.f32.mxu0 %v18622_v46  ;;  %18628 = vst [vmem:[#allocation98_spill] sm:$0xff] %v14831_v49  ;;  %v2754_v14 = vpop.f32.mrb[85].mxu1  ;;  %v18636_v49 = vld [vmem:[#allocation213_spill] sm:$0xff] }
 0x37a   : > { %8322 = vmatmul.mubr.f32.gmra.mrb[188].mxu1 %v14567_v1  ;;  %v14839_v1 = vpop.f32.mrb[86].mxu1  ;;  %v18637_v14 = vld [vmem:[#allocation215_spill] sm:$0xff] }
 0x37b   : > { %8324 = vmatprep.mubr.f32.mxu1 %v14580_v57  ;;  %18633 = vst [vmem:[#allocation24_spill] sm:$0xff] %v14839_v1  ;;  %v18634_v57 = vld [vmem:[#allocation209_spill] sm:$0xff]  ;;  %v2761_v27 = vpop.f32.mrb[87].mxu1 }
 0x37c   : > { %4140 = vmatmul.mubr.f32.vlgmr.msra.gmra.mrb[0].mxu0 %v18624_v63  ;;  %v18642_v27 = vld [vmem:[#allocation7_spill] sm:$0xff] }
 0x37d   : > { %8985 = vmatpush1.bf16.msra.mxu0 %v18625_v38  ;;  %4145 = vmatprep.mubr.f32.mxu0 %v18626_v29  ;;  %v18632_v38 = vld [vmem:[#allocation41_spill] sm:$0xff]  ;;  %v18744_v29 = vld [vmem:[#allocation84_spill] sm:$0xff]  ;;  %v18746_v63 = vld [vmem:[#allocation79_spill] sm:$0xff] }
 0x37e   : > { %8986 = vmatprep.subr.bf16.mxu0 %v18627_v51  ;;  %8325 = vmatmul.mubr.f32.gmra.mrb[190].mxu1 %v14591_v13  ;;  %v18638_v13 = vld [vmem:[#allocation267_spill] sm:$0xff] }
 0x37f   : > { %8359 = vmatprep.mubr.f32.mxu1 %v18631_v36 }
 0x380   : > { %4147 = vmatmul.mubr.f32.gmra.mrb[2].mxu0 %v18629_v60  ;;  %v18738_v60 = vld [vmem:[#allocation245_spill] sm:$0xff] }
 0x381   : > { %4152 = vmatprep.mubr.f32.mxu0 %v18630_v53  ;;  %8988 = vmatpush1.bf16.msra.mxu0 %v18632_v38  ;;  %v14848_v38 = vpop.f32.mrb[88].mxu1  ;;  %v18736_v53 = vld [vmem:[#allocation197_spill] sm:$0xff] }
 0x382   : > { %8989 = vmatprep.subr.bf16.mxu0 %v18627_v51  ;;  %8360 = vmatmul.mubr.f32.vlgmr.msra.gmra.mrb[192].mxu1 %v18635_v33  ;;  %18640 = vst [vmem:[#allocation115_spill] sm:$0xff] %v14848_v38  ;;  %v2768_v1 = vpop.f32.mrb[89].mxu1  ;;  %v18648_v38 = vld [vmem:[#allocation218_spill] sm:$0xff] }
 0x383   : > { %8362 = vmatprep.mubr.f32.mxu1 %v18637_v14  ;;  %9130 = vmatpush3.bf16.msra.mxu1 %v18537_v37  ;;  %v18649_v1 = vld [vmem:[#allocation12_spill] sm:$0xff] }
 0x384   : > { %4154 = vmatmul.mubr.f32.gmra.mrb[4].mxu0 %v18634_v57  ;;  %9132 = vmatprep.subr.bf16.mxu1 %v18638_v13  ;;  %v18729_v57 = vld [vmem:[#allocation196_spill] sm:$0xff] }
 0x385   : > { %4159 = vmatprep.mubr.f32.mxu0 %v18636_v49  ;;  %8991 = vmatpush1.bf16.msra.mxu0 %v18639_v22  ;;  %v14858_v22 = vpop.f32.mrb[90].mxu1  ;;  %v18722_v49 = vld [vmem:[#allocation194_spill] sm:$0xff] }
 0x386   : > { %8992 = vmatprep.subr.bf16.mxu0 %v18627_v51  ;;  %8363 = vmatmul.mubr.f32.gmra.mrb[194].mxu1 %v18642_v27  ;;  %18647 = vst [vmem:[#allocation102_spill] sm:$0xff] %v14858_v22  ;;  %v2775_v10 = vpop.f32.mrb[91].mxu1  ;;  %v18655_v22 = vld [vmem:[#allocation220_spill] sm:$0xff] }
 0x387   : > { %8365 = vmatprep.mubr.f32.mxu1 %v18644_v9  ;;  %9134 = vmatpush3.bf16.msra.mxu1 %v18638_v13  ;;  %v18656_v10 = vld [vmem:[#allocation361_spill] sm:$0xff] }
 0x388   : > { %4161 = vmatmul.mubr.f32.gmra.mrb[6].mxu0 %v18641_v30  ;;  %9136 = vmatprep.subr.bf16.mxu1 %v18645_v4  ;;  %v18710_v30 = vld [vmem:[#allocation236_spill] sm:$0xff]  ;;  %v18715_v13 = vld [vmem:[#allocation189_spill] sm:$0xff] }
 0x389   : > { %4166 = vmatprep.mubr.f32.mxu0 %v18643_v59  ;;  %8994 = vmatpush1.bf16.msra.mxu0 %v18646_v16  ;;  %v14868_v16 = vpop.f32.mrb[92].mxu1  ;;  %v18693_v59 = vld [vmem:[#allocation178_spill] sm:$0xff] }
 0x38a   : > { %8995 = vmatprep.subr.bf16.mxu0 %v18627_v51  ;;  %8366 = vmatmul.mubr.f32.gmra.mrb[196].mxu1 %v18649_v1  ;;  %18654 = vst [vmem:[#allocation185_spill] sm:$0xff] %v14868_v16  ;;  %v2782_v39 = vpop.f32.mrb[93].mxu1  ;;  %v18662_v16 = vld [vmem:[#allocation223_spill] sm:$0xff] }
 0x38b   : > { %8368 = vmatprep.mubr.f32.mxu1 %v18651_v61  ;;  %9138 = vmatpush3.bf16.msra.mxu1 %v18645_v4  ;;  %v18663_v39 = vld [vmem:[#allocation37_spill] sm:$0xff] }
 0x38c   : > { %4168 = vmatmul.mubr.f32.gmra.mrb[8].mxu0 %v18648_v38  ;;  %9140 = vmatprep.subr.bf16.mxu1 %v18652_v8 }
 0x38d   : > { %4173 = vmatprep.mubr.f32.mxu0 %v18650_v32  ;;  %8997 = vmatpush1.bf16.msra.mxu0 %v18653_v43  ;;  %v14878_v43 = vpop.f32.mrb[94].mxu1  ;;  %v18683_v32 = vld [vmem:[#allocation168_spill] sm:$0xff] }
 0x38e   : > { %8998 = vmatprep.subr.bf16.mxu0 %v18627_v51  ;;  %8369 = vmatmul.mubr.f32.gmra.mrb[198].mxu1 %v18656_v10  ;;  %18661 = vst [vmem:[#allocation188_spill] sm:$0xff] %v14878_v43  ;;  %v2789_v2 = vpop.f32.mrb[95].mxu1  ;;  %v18669_v43 = vld [vmem:[#allocation23_spill] sm:$0xff] }
 0x38f   : > { %8371 = vmatprep.mubr.f32.mxu1 %v18658_v21  ;;  %9142 = vmatpush3.bf16.msra.mxu1 %v18652_v8  ;;  %v18671_v2 = vld [vmem:[#allocation22_spill] sm:$0xff]  ;;  %v18675_v8 = vld [vmem:[#allocation160_spill] sm:$0xff] }
 0x390   : > { %4175 = vmatmul.mubr.f32.gmra.mrb[10].mxu0 %v18655_v22  ;;  %9144 = vmatprep.subr.bf16.mxu1 %v18659_v56  ;;  %v18672_v22 = vld [vmem:[#allocation60_spill] sm:$0xff] }
 0x391   : > { %4180 = vmatprep.mubr.f32.mxu0 %v18657_v19  ;;  %9000 = vmatpush1.bf16.msra.mxu0 %v18660_v18  ;;  %v18666_v19 = vld [vmem:[#allocation346_spill] sm:$0xff]  ;;  %v14888_v18 = vpop.f32.mrb[96].mxu1 }
 0x392   : > { %9001 = vmatprep.subr.bf16.mxu0 %v18627_v51  ;;  %8372 = vmatmul.mubr.f32.gmra.mrb[200].mxu1 %v18663_v39  ;;  %18668 = vst [vmem:[#allocation13_spill] sm:$0xff] %v14888_v18  ;;  %v18677_v18 = vld [vmem:[#allocation228_spill] sm:$0xff] }
 0x393   : > { %8374 = vmatprep.mubr.f32.mxu1 %v18665_v15  ;;  %9146 = vmatpush3.bf16.msra.mxu1 %v18659_v56  ;;  %v18674_v56 = vld [vmem:[#allocation348_spill] sm:$0xff] }
 0x394   : > { %4182 = vmatmul.mubr.f32.gmra.mrb[12].mxu0 %v18662_v16  ;;  %9148 = vmatprep.subr.bf16.mxu1 %v18666_v19  ;;  %v14892_v16 = vpop.f32.mrb[97].mxu1 }
 0x395   : > { %4187 = vmatprep.mubr.f32.mxu0 %v18664_v35  ;;  %9003 = vmatpush1.bf16.msra.mxu0 %v18667_v40  ;;  %18670 = vst [vmem:[#allocation120_spill] sm:$0xff] %v14892_v16  ;;  %v18673_v35 = vld [vmem:[#allocation43_spill] sm:$0xff]  ;;  %v14900_v40 = vpop.f32.mrb[98].mxu1  ;;  %v18679_v16 = vld [vmem:[#allocation44_spill] sm:$0xff] }
 0x396   : > { %9004 = vmatprep.subr.bf16.mxu0 %v18627_v51  ;;  %8375 = vmatmul.mubr.f32.gmra.mrb[202].mxu1 %v18671_v2  ;;  %18676 = vst [vmem:[#allocation291_spill] sm:$0xff] %v14900_v40 }
 0x397   : > { %8377 = vmatprep.mubr.f32.mxu1 %v18673_v35  ;;  %9150 = vmatpush3.bf16.msra.mxu1 %v18666_v19  ;;  %v18682_v19 = vld [vmem:[#allocation350_spill] sm:$0xff] }
 0x398   : > { %4189 = vmatmul.mubr.f32.gmra.mrb[14].mxu0 %v18669_v43  ;;  %9152 = vmatprep.subr.bf16.mxu1 %v18674_v56  ;;  %v14904_v43 = vpop.f32.mrb[99].mxu1 }
 0x399   : > { %4194 = vmatprep.mubr.f32.mxu0 %v18672_v22  ;;  %9006 = vmatpush1.bf16.msra.mxu0 %v18675_v8  ;;  %18678 = vst [vmem:[#allocation242_spill] sm:$0xff] %v14904_v43  ;;  %v18681_v22 = vld [vmem:[#allocation237_spill] sm:$0xff]  ;;  %v18684_v8 = vld [vmem:[#allocation344_spill] sm:$0xff]  ;;  %v14918_v4 = vpop.f32.mrb[100].mxu1  ;;  %v18689_v43 = vld [vmem:[#allocation230_spill] sm:$0xff] }
 0x39a   : > { %9007 = vmatprep.subr.bf16.mxu0 %v18627_v51  ;;  %8378 = vmatmul.mubr.f32.gmra.mrb[204].mxu1 %v18679_v16  ;;  %v18685_v40 = vand.u32 4294901760, %v18684_v8  ;;  %18688 = vst [vmem:[#allocation124_spill] sm:$0xff] %v14918_v4  ;;  %v18698_v8 = vld [vmem:[#allocation73_spill] sm:$0xff]  ;;  %v18699_v4 = vld [vmem:[#allocation36_spill] sm:$0xff] }
 0x39b   : > { %8380 = vmatprep.mubr.f32.mxu1 %v18681_v22  ;;  %9154 = vmatpush3.bf16.msra.mxu1 %v18674_v56  ;;  %v18692_v56 = vld [vmem:[#allocation17_spill] sm:$0xff] }
 0x39c   : > { %4196 = vmatmul.mubr.f32.gmra.mrb[16].mxu0 %v18677_v18  ;;  %9156 = vmatprep.subr.bf16.mxu1 %v18682_v19  ;;  %v18687_v18 = vand.u32 4294901760, %v18686_v54  ;;  %v18694_v54 = vld [vmem:[#allocation171_spill] sm:$0xff] }
 0x39d   : > { %4201 = vmatprep.mubr.f32.mxu0 %v18680_v25  ;;  %9009 = vmatpush1.bf16.msra.mxu0 %v18683_v32  ;;  %v14922_v25 = vpop.f32.mrb[101].mxu1 }
 0x39e   : > { %v14916_v38 = vpack.c.bf16 %v18687_v18, %v18685_v40  ;;  %9010 = vmatprep.subr.bf16.mxu0 %v18627_v51  ;;  %18690 = vst [vmem:[#allocation118_spill] sm:$0xff] %v14922_v25  ;;  %8381 = vmatmul.mubr.f32.gmra.mrb[206].mxu1 %v18691_v0  ;;  %v14930_v32 = vpop.f32.mrb[102].mxu1  ;;  %v18696_v18 = vld [vmem:[#allocation232_spill] sm:$0xff]  ;;  %v18700_v25 = vld [vmem:[#allocation6_spill] sm:$0xff] }
 0x39f   : > { %8383 = vmatprep.mubr.f32.mxu1 %v18693_v59  ;;  %9158 = vmatpush3.bf16.msra.mxu1 %v18682_v19  ;;  %18695 = vst [vmem:[#allocation128_spill] sm:$0xff] %v14930_v32  ;;  %v14934_v40 = vpop.f32.mrb[103].mxu1  ;;  %v18703_v19 = vld [vmem:[#allocation35_spill] sm:$0xff] }
 0x3a0   : > { %4203 = vmatmul.mubr.f32.gmra.mrb[18].mxu0 %v18689_v43  ;;  %9160 = vmatprep.subr.bf16.mxu1 %v14916_v38  ;;  %18697 = vst [vmem:[#allocation117_spill] sm:$0xff] %v14934_v40  ;;  %v14940_v43 = vpop.f32.mrb[104].mxu1  ;;  %v18705_v32 = vld [vmem:[#allocation183_spill] sm:$0xff]  ;;  %v18707_v40 = vld [vmem:[#allocation86_spill] sm:$0xff] }
 0x3a1   : > { %4208 = vmatprep.mubr.f32.mxu0 %v18692_v56  ;;  %9012 = vmatpush1.bf16.msra.mxu0 %v18694_v54  ;;  %v18701_v56 = vld [vmem:[#allocation182_spill] sm:$0xff]  ;;  %18702 = vst [vmem:[#allocation190_spill] sm:$0xff] %v14940_v43  ;;  %v14944_v54 = vpop.f32.mrb[105].mxu1 }
 0x3a2   : > { %9013 = vmatprep.subr.bf16.mxu0 %v18627_v51  ;;  %8384 = vmatmul.mubr.f32.gmra.mrb[208].mxu1 %v18698_v8  ;;  %18704 = vst [vmem:[#allocation191_spill] sm:$0xff] %v14944_v54  ;;  %v18712_v43 = vld [vmem:[#allocation186_spill] sm:$0xff]  ;;  %v18714_v54 = vld [vmem:[#allocation88_spill] sm:$0xff] }
 0x3a3   : > { %8386 = vmatprep.mubr.f32.mxu1 %v18700_v25 }
 0x3a4   : > { %4210 = vmatmul.mubr.f32.gmra.mrb[20].mxu0 %v18696_v18  ;;  %v18706_v18 = vld [vmem:[#allocation235_spill] sm:$0xff] }
 0x3a5   : > { %4215 = vmatprep.mubr.f32.mxu0 %v18699_v4  ;;  %9015 = vmatpush1.bf16.msra.mxu0 %v18701_v56  ;;  %v14950_v4 = vpop.f32.mrb[106].mxu1 }
 0x3a6   : > { %9016 = vmatprep.subr.bf16.mxu0 %v18627_v51  ;;  %8387 = vmatmul.mubr.f32.gmra.mrb[210].mxu1 %v18705_v32  ;;  %18709 = vst [vmem:[#allocation243_spill] sm:$0xff] %v14950_v4  ;;  %v14954_v56 = vpop.f32.mrb[107].mxu1  ;;  %v18719_v4 = vld [vmem:[#allocation246_spill] sm:$0xff] }
 0x3a7   : > { %8389 = vmatprep.mubr.f32.mxu1 %v18707_v40  ;;  %18711 = vst [vmem:[#allocation14_spill] sm:$0xff] %v14954_v56  ;;  %v18721_v56 = vld [vmem:[#allocation58_spill] sm:$0xff] }
 0x3a8   : > { %4217 = vmatmul.mubr.f32.gmra.mrb[22].mxu0 %v18703_v19  ;;  %v18713_v19 = vld [vmem:[#allocation67_spill] sm:$0xff] }
 0x3a9   : > { %4222 = vmatprep.mubr.f32.mxu0 %v18706_v18  ;;  %9018 = vmatpush1.bf16.msra.mxu0 %v18708_v55  ;;  %v14960_v18 = vpop.f32.mrb[108].mxu1 }
 0x3aa   : > { %9019 = vmatprep.subr.bf16.mxu0 %v18627_v51  ;;  %8390 = vmatmul.mubr.f32.gmra.mrb[212].mxu1 %v18712_v43  ;;  %18716 = vst [vmem:[#allocation131_spill] sm:$0xff] %v14960_v18  ;;  %v14964_v55 = vpop.f32.mrb[109].mxu1  ;;  %v18726_v18 = vld [vmem:[#allocation31_spill] sm:$0xff] }
 0x3ab   : > { %8392 = vmatprep.mubr.f32.mxu1 %v18714_v54  ;;  %18718 = vst [vmem:[#allocation127_spill] sm:$0xff] %v14964_v55  ;;  %v18728_v55 = vld [vmem:[#allocation249_spill] sm:$0xff] }
 0x3ac   : > { %4224 = vmatmul.mubr.f32.gmra.mrb[24].mxu0 %v18710_v30  ;;  %v18720_v30 = vld [vmem:[#allocation240_spill] sm:$0xff] }
 0x3ad   : > { %4229 = vmatprep.mubr.f32.mxu0 %v18713_v19  ;;  %9021 = vmatpush1.bf16.msra.mxu0 %v18715_v13  ;;  %v14970_v19 = vpop.f32.mrb[110].mxu1 }
 0x3ae   : > { %9022 = vmatprep.subr.bf16.mxu0 %v18627_v51  ;;  %8393 = vmatmul.mubr.f32.gmra.mrb[214].mxu1 %v18719_v4  ;;  %18723 = vst [vmem:[#allocation136_spill] sm:$0xff] %v14970_v19  ;;  %v14974_v13 = vpop.f32.mrb[111].mxu1  ;;  %v18733_v19 = vld [vmem:[#allocation119_spill] sm:$0xff] }
 0x3af   : > { %8395 = vmatprep.mubr.f32.mxu1 %v18721_v56  ;;  %18725 = vst [vmem:[#allocation125_spill] sm:$0xff] %v14974_v13  ;;  %v18735_v13 = vld [vmem:[#allocation122_spill] sm:$0xff] }
 0x3b0   : > { %4231 = vmatmul.mubr.f32.gmra.mrb[26].mxu0 %v18717_v34  ;;  %v18727_v34 = vld [vmem:[#allocation77_spill] sm:$0xff] }
 0x3b1   : > { %4236 = vmatprep.mubr.f32.mxu0 %v18720_v30  ;;  %9024 = vmatpush1.bf16.msra.mxu0 %v18722_v49  ;;  %v14980_v30 = vpop.f32.mrb[112].mxu1 }
 0x3b2   : > { %9025 = vmatprep.subr.bf16.mxu0 %v18627_v51  ;;  %8396 = vmatmul.mubr.f32.gmra.mrb[216].mxu1 %v18726_v18  ;;  %18730 = vst [vmem:[#allocation192_spill] sm:$0xff] %v14980_v30  ;;  %v14984_v49 = vpop.f32.mrb[113].mxu1  ;;  %v18740_v30 = vld [vmem:[#allocation34_spill] sm:$0xff] }
 0x3b3   : > { %8398 = vmatprep.mubr.f32.mxu1 %v18728_v55  ;;  %18732 = vst [vmem:[#allocation193_spill] sm:$0xff] %v14984_v49 }
 0x3b4   : > { %4238 = vmatmul.mubr.f32.gmra.mrb[28].mxu0 %v18724_v31  ;;  %v18734_v31 = vld [vmem:[#allocation244_spill] sm:$0xff] }
 0x3b5   : > { %4243 = vmatprep.mubr.f32.mxu0 %v18727_v34  ;;  %9027 = vmatpush1.bf16.msra.mxu0 %v18729_v57 }
 0x3b6   : > { %9028 = vmatprep.subr.bf16.mxu0 %v18627_v51  ;;  %8399 = vmatmul.mubr.f32.gmra.mrb[218].mxu1 %v18733_v19  ;;  %v14990_v34 = vpop.f32.mrb[114].mxu1  ;;  %v18742_v51 = vld [vmem:[#allocation96_spill] sm:$0xff] }
 0x3b7   : > { %8401 = vmatprep.mubr.f32.mxu1 %v18735_v13  ;;  %18737 = vst [vmem:[#allocation26_spill] sm:$0xff] %v14990_v34  ;;  %v14993_v57 = vpop.f32.mrb[115].mxu1  ;;  %v18748_v34 = vld [vmem:[#allocation139_spill] sm:$0xff] }
 0x3b8   : > { %4245 = vmatmul.mubr.f32.gmra.mrb[30].mxu0 %v18731_v44  ;;  %18739 = vst [vmem:[#allocation247_spill] sm:$0xff] %v14993_v57  ;;  %v18741_v44 = vld [vmem:[#allocation87_spill] sm:$0xff] }
 0x3b9   : > { %4250 = vmatprep.mubr.f32.mxu0 %v18734_v31  ;;  %9030 = vmatpush1.bf16.msra.mxu0 %v18736_v53  ;;  %v18747_v53 = vld [vmem:[#allocation250_spill] sm:$0xff]  ;;  %v18750_v57 = vld [vmem:[#allocation251_spill] sm:$0xff] }
 0x3ba   : > { %8402 = vmatmul.mubr.f32.gmra.mrb[220].mxu1 %v18740_v30  ;;  %v14998_v49 = vpop.f32.mrb[116].mxu1 }
 0x3bb   : > { %8404 = vmatprep.mubr.f32.mxu1 %v18742_v51  ;;  %18743 = vst [vmem:[#allocation141_spill] sm:$0xff] %v14998_v49  ;;  %v15001_v31 = vpop.f32.mrb[117].mxu1  ;;  %v18753_v51 = vld [vmem:[#allocation46_spill] sm:$0xff]  ;;  %v18754_v49 = vld [vmem:[#allocation65_spill] sm:$0xff] }
 0x3bc   : > { %4252 = vmatmul.mubr.f32.gmra.mrb[32].mxu0 %v18738_v60  ;;  %18745 = vst [vmem:[#allocation129_spill] sm:$0xff] %v15001_v31  ;;  %v18756_v31 = vld [vmem:[#allocation95_spill] sm:$0xff] }
 0x3bd   : > { %4257 = vmatprep.mubr.f32.mxu0 %v18741_v44  ;;  %v18752_v44 = vld [vmem:[#allocation262_spill] sm:$0xff] }
 0x3be   : > { %8405 = vmatmul.mubr.f32.gmra.mrb[222].mxu1 %v18746_v63  ;;  %v15006_v60 = vpop.f32.mrb[118].mxu1 }
 0x3bf   : > { %8407 = vmatprep.mubr.f32.mxu1 %v18748_v34  ;;  %18749 = vst [vmem:[#allocation248_spill] sm:$0xff] %v15006_v60  ;;  %v15009_v46 = vpop.f32.mrb[119].mxu1  ;;  %v18759_v34 = vld [vmem:[#allocation257_spill] sm:$0xff]  ;;  %v18760_v60 = vld [vmem:[#allocation151_spill] sm:$0xff] }
 0x3c0   : > { %4259 = vmatmul.mubr.f32.gmra.mrb[34].mxu0 %v18744_v29  ;;  %18751 = vst [vmem:[#allocation144_spill] sm:$0xff] %v15009_v46  ;;  %v18762_v46 = vld [vmem:[#allocation258_spill] sm:$0xff] }
 0x3c1   : > { %4264 = vmatprep.mubr.f32.mxu0 %v18747_v53  ;;  %v18758_v53 = vld [vmem:[#allocation265_spill] sm:$0xff] }
 0x3c2   : > { %8408 = vmatmul.mubr.f32.gmra.mrb[224].mxu1 %v18752_v44 }
 0x3c3   : > { %8410 = vmatprep.mubr.f32.mxu1 %v18754_v49  ;;  %v15014_v29 = vpop.f32.mrb[120].mxu1  ;;  %v18765_v49 = vld [vmem:[#allocation107_spill] sm:$0xff] }
 0x3c4   : > { %4266 = vmatmul.mubr.f32.gmra.mrb[36].mxu0 %v18750_v57  ;;  %18755 = vst [vmem:[#allocation140_spill] sm:$0xff] %v15014_v29  ;;  %v15017_v63 = vpop.f32.mrb[121].mxu1  ;;  %v18766_v29 = vld [vmem:[#allocation28_spill] sm:$0xff] }
 0x3c5   : > { %4271 = vmatprep.mubr.f32.mxu0 %v18753_v51  ;;  %18757 = vst [vmem:[#allocation30_spill] sm:$0xff] %v15017_v63  ;;  %v18764_v51 = vld [vmem:[#allocation155_spill] sm:$0xff]  ;;  %v18768_v63 = vld [vmem:[#allocation106_spill] sm:$0xff] }
 0x3c6   : > { %8411 = vmatmul.mubr.f32.gmra.mrb[226].mxu1 %v18758_v53 }
 0x3c7   : > { %8413 = vmatprep.mubr.f32.mxu1 %v18760_v60 }
 0x3c8   : > { %4273 = vmatmul.mubr.f32.gmra.mrb[38].mxu0 %v18756_v31  ;;  %v15022_v57 = vpop.f32.mrb[122].mxu1 }
 0x3c9   : > { %4278 = vmatprep.mubr.f32.mxu0 %v18759_v34  ;;  %18761 = vst [vmem:[#allocation147_spill] sm:$0xff] %v15022_v57  ;;  %v15025_v44 = vpop.f32.mrb[123].mxu1  ;;  %v18770_v34 = vld [vmem:[#allocation38_spill] sm:$0xff]  ;;  %v18771_v57 = vld [vmem:[#allocation80_spill] sm:$0xff] }
 0x3ca   : > { %18763 = vst [vmem:[#allocation313_spill] sm:$0xff] %v15025_v44  ;;  %8414 = vmatmul.mubr.f32.gmra.mrb[228].mxu1 %v18764_v51  ;;  %v18773_v44 = vld [vmem:[#allocation263_spill] sm:$0xff] }
 0x3cb   : > { %8416 = vmatprep.mubr.f32.mxu1 %v18766_v29  ;;  %v18776_v29 = vld [vmem:[#allocation268_spill] sm:$0xff] }
 0x3cc   : > { %4280 = vmatmul.mubr.f32.gmra.mrb[40].mxu0 %v18762_v46  ;;  %v15030_v31 = vpop.f32.mrb[124].mxu1 }
 0x3cd   : > { %4285 = vmatprep.mubr.f32.mxu0 %v18765_v49  ;;  %18767 = vst [vmem:[#allocation19_spill] sm:$0xff] %v15030_v31  ;;  %v15033_v53 = vpop.f32.mrb[125].mxu1  ;;  %v18775_v49 = vld [vmem:[#allocation162_spill] sm:$0xff] }
 0x3ce   : > { %18769 = vst [vmem:[#allocation153_spill] sm:$0xff] %v15033_v53  ;;  %8417 = vmatmul.mubr.f32.gmra.mrb[230].mxu1 %v14514_v58  ;;  %v18778_v53 = vld [vmem:[#allocation269_spill] sm:$0xff] }
 0x3cf   : > { %8419 = vmatprep.mubr.f32.mxu1 %v18771_v57 }
 0x3d0   : > { %4287 = vmatmul.mubr.f32.gmra.mrb[42].mxu0 %v18768_v63 }
 0x3d1   : > { %4292 = vmatprep.mubr.f32.mxu0 %v18770_v34  ;;  %v15038_v46 = vpop.f32.mrb[126].mxu1  ;;  %v18780_v34 = vld [vmem:[#allocation70_spill] sm:$0xff] }
 0x3d2   : > { %18772 = vst [vmem:[#allocation142_spill] sm:$0xff] %v15038_v46  ;;  %v15041_v51 = vpop.f32.mrb[127].mxu1  ;;  %8420 = vmatmul.mubr.f32.gmra.mrb[232].mxu1 %v18775_v49 }
 0x3d3   : > { %18774 = vst [vmem:[#allocation253_spill] sm:$0xff] %v15041_v51  ;;  %8422 = vmatprep.mubr.f32.mxu1 %v14552_v48  ;;  %v18782_v51 = vld [vmem:[#allocation273_spill] sm:$0xff] }
 0x3d4   : > { %4294 = vmatmul.mubr.f32.gmra.mrb[44].mxu0 %v18773_v44 }
 0x3d5   : > { %4299 = vmatprep.mubr.f32.mxu0 %v18776_v29  ;;  %v15046_v31 = vpop.f32.mrb[128].mxu1  ;;  %v18784_v29 = vld [vmem:[#allocation72_spill] sm:$0xff] }
 0x3d6   : > { %18777 = vst [vmem:[#allocation161_spill] sm:$0xff] %v15046_v31  ;;  %v15049_v63 = vpop.f32.mrb[129].mxu1  ;;  %8423 = vmatmul.mubr.f32.gmra.mrb[234].mxu1 %v14565_v28 }
 0x3d7   : > { %18779 = vst [vmem:[#allocation145_spill] sm:$0xff] %v15049_v63  ;;  %8425 = vmatprep.mubr.f32.mxu1 %v14578_v3  ;;  %v18786_v63 = vld [vmem:[#allocation275_spill] sm:$0xff] }
 0x3d8   : > { %4301 = vmatmul.mubr.f32.gmra.mrb[46].mxu0 %v18778_v53 }
 0x3d9   : > { %4306 = vmatprep.mubr.f32.mxu0 %v18780_v34  ;;  %v15054_v46 = vpop.f32.mrb[130].mxu1  ;;  %v18788_v34 = vld [vmem:[#allocation261_spill] sm:$0xff] }
 0x3da   : > { %18781 = vst [vmem:[#allocation254_spill] sm:$0xff] %v15054_v46  ;;  %v15057_v44 = vpop.f32.mrb[131].mxu1  ;;  %8426 = vmatmul.mubr.f32.gmra.mrb[236].mxu1 %v14589_v7  ;;  %v18789_v46 = vand.u32 4294901760, %v18631_v36  ;;  %v18801_v36 = vld [vmem:[#allocation279_spill] sm:$0xff] }
 0x3db   : > { %18783 = vst [vmem:[#allocation159_spill] sm:$0xff] %v15057_v44  ;;  %8428 = vmatprep.mubr.f32.mxu1 %v14600_v12  ;;  %v18790_v44 = vand.u32 4294901760, %v13512_v26  ;;  %v18793_v12 = vld [vmem:[#allocation64_spill] sm:$0xff]  ;;  %v18799_v26 = vand.u32 4294901760, %v13547_v6  ;;  %v18807_v6 = vand.u32 4294901760, %v13573_v52  ;;  %v18815_v52 = vand.u32 4294901760, %v13644_v24 }
 0x3dc   : > { %4308 = vmatmul.mubr.f32.gmra.mrb[48].mxu0 %v18782_v51  ;;  %v18791_v51 = vand.u32 4294901760, %v13514_v17  ;;  %v18798_v17 = vand.u32 4294901760, %v13545_v47  ;;  %v18806_v47 = vand.u32 4294901760, %v13571_v11  ;;  %v18814_v11 = vand.u32 4294901760, %v13642_v45 }
 0x3dd   : > { %4313 = vmatprep.mubr.f32.mxu0 %v18784_v29  ;;  %v15062_v31 = vpop.f32.mrb[132].mxu1  ;;  %v18822_v45 = vand.u32 4294901760, %v13974_v50  ;;  %v18823_v24 = vand.u32 4294901760, %v13979_v42  ;;  %v18830_v50 = vand.u32 4294901760, %v14026_v5  ;;  %v18831_v42 = vand.u32 4294901760, %v14031_v62 }
 0x3de   : > { %18785 = vst [vmem:[#allocation150_spill] sm:$0xff] %v15062_v31  ;;  %v15065_v53 = vpop.f32.mrb[133].mxu1  ;;  %8429 = vmatmul.mubr.f32.gmra.mrb[238].mxu1 %v14609_v20  ;;  %v9163_v29 = vpack.c.bf16 %v18791_v51, %v18790_v44  ;;  %v9167_v44 = vpack.c.bf16 %v18799_v26, %v18798_v17  ;;  %v18809_v17 = vld [vmem:[#allocation280_spill] sm:$0xff]  ;;  %v18838_v5 = vand.u32 4294901760, %v14072_v41  ;;  %v18839_v62 = vand.u32 4294901760, %v14077_v23 }
 0x3df   : > { %18787 = vst [vmem:[#allocation33_spill] sm:$0xff] %v15065_v53  ;;  %8463 = vmatprep.mubr.f32.mxu1 %v18789_v46  ;;  %v18795_v53 = vand.u32 4294901760, %v18635_v33  ;;  %v18803_v33 = vand.u32 4294901760, %v18642_v27  ;;  %v18811_v27 = vand.u32 4294901760, %v18649_v1  ;;  %v18819_v1 = vand.u32 4294901760, %v18656_v10  ;;  %v18847_v23 = vld [vmem:[#allocation296_spill] sm:$0xff] }
 0x3e0   : > { %4315 = vmatmul.mubr.f32.gmra.mrb[50].mxu0 %v18786_v63  ;;  %v18796_v63 = vld [vmem:[#allocation278_spill] sm:$0xff]  ;;  %v18827_v10 = vand.u32 4294901760, %v18663_v39  ;;  %v18835_v39 = vand.u32 4294901760, %v18671_v2  ;;  %v18843_v2 = vand.u32 4294901760, %v18679_v16  ;;  %v18851_v16 = vand.u32 4294901760, %v18693_v59 }
 0x3e1   : > { %4320 = vmatprep.mubr.f32.mxu0 %v18788_v34  ;;  %v15075_v7 = vpop.f32.mrb[134].mxu1  ;;  %v18797_v34 = vand.u32 4294901760, %v18637_v14  ;;  %v9171_v14 = vpack.c.bf16 %v18807_v6, %v18806_v47  ;;  %v18817_v47 = vld [vmem:[#allocation284_spill] sm:$0xff]  ;;  %v18859_v59 = vld [vmem:[#allocation302_spill] sm:$0xff] }
 0x3e2   : > { %18792 = vst [vmem:[#allocation176_spill] sm:$0xff] %v15075_v7  ;;  %v15078_v31 = vpop.f32.mrb[135].mxu1  ;;  %8464 = vmatmul.mubr.f32.vlgmr.msra.gmra.mrb[240].mxu1 %v18795_v53  ;;  %v18804_v53 = vld [vmem:[#allocation89_spill] sm:$0xff]  ;;  %v18886_v7 = vld [vmem:[#allocation316_spill] sm:$0xff] }
 0x3e3   : > { %18794 = vst [vmem:[#allocation323_spill] sm:$0xff] %v15078_v31  ;;  %8466 = vmatprep.mubr.f32.mxu1 %v18797_v34  ;;  %9162 = vmatpush3.bf16.msra.mxu1 %v14916_v38  ;;  %v18805_v34 = vand.u32 4294901760, %v18644_v9  ;;  %v18813_v9 = vand.u32 4294901760, %v18651_v61  ;;  %v18821_v61 = vand.u32 4294901760, %v18658_v21  ;;  %v18829_v21 = vand.u32 4294901760, %v18665_v15 }
 0x3e4   : > { %4322 = vmatmul.mubr.f32.gmra.mrb[52].mxu0 %v18793_v12  ;;  %9164 = vmatprep.subr.bf16.mxu1 %v9163_v29  ;;  %v18837_v15 = vand.u32 4294901760, %v18673_v35  ;;  %v18845_v35 = vand.u32 4294901760, %v18681_v22  ;;  %v18887_v31 = vand.u32 4294901760, %v18735_v13 }
 0x3e5   : > { %4327 = vmatprep.mubr.f32.mxu0 %v18796_v63  ;;  %v15090_v46 = vpop.f32.mrb[136].mxu1 }
 0x3e6   : > { %18800 = vst [vmem:[#allocation32_spill] sm:$0xff] %v15090_v46  ;;  %v15093_v51 = vpop.f32.mrb[137].mxu1  ;;  %8467 = vmatmul.mubr.f32.gmra.mrb[242].mxu1 %v18803_v33  ;;  %v18812_v33 = vld [vmem:[#allocation92_spill] sm:$0xff] }
 0x3e7   : > { %18802 = vst [vmem:[#allocation175_spill] sm:$0xff] %v15093_v51  ;;  %8469 = vmatprep.mubr.f32.mxu1 %v18805_v34  ;;  %9166 = vmatpush3.bf16.msra.mxu1 %v9163_v29  ;;  %v9175_v29 = vpack.c.bf16 %v18815_v52, %v18814_v11  ;;  %v18825_v11 = vld [vmem:[#allocation103_spill] sm:$0xff]  ;;  %v18880_v46 = vld [vmem:[#allocation312_spill] sm:$0xff]  ;;  %v18881_v51 = vand.u32 4294901760, %v18728_v55 }
 0x3e8   : > { %4329 = vmatmul.mubr.f32.gmra.mrb[54].mxu0 %v18801_v36  ;;  %9168 = vmatprep.subr.bf16.mxu1 %v9167_v44 }
 0x3e9   : > { %4334 = vmatprep.mubr.f32.mxu0 %v18804_v53  ;;  %v15104_v38 = vpop.f32.mrb[138].mxu1 }
 0x3ea   : > { %18808 = vst [vmem:[#allocation157_spill] sm:$0xff] %v15104_v38  ;;  %v15107_v26 = vpop.f32.mrb[139].mxu1  ;;  %8470 = vmatmul.mubr.f32.gmra.mrb[244].mxu1 %v18811_v27  ;;  %v18820_v27 = vld [vmem:[#allocation286_spill] sm:$0xff]  ;;  %v18874_v38 = vld [vmem:[#allocation308_spill] sm:$0xff] }
 0x3eb   : > { %18810 = vst [vmem:[#allocation259_spill] sm:$0xff] %v15107_v26  ;;  %8472 = vmatprep.mubr.f32.mxu1 %v18813_v9  ;;  %9170 = vmatpush3.bf16.msra.mxu1 %v9167_v44  ;;  %v9179_v44 = vpack.c.bf16 %v18823_v24, %v18822_v45  ;;  %v18833_v45 = vld [vmem:[#allocation109_spill] sm:$0xff]  ;;  %v18875_v26 = vand.u32 4294901760, %v18721_v56 }
 0x3ec   : > { %4336 = vmatmul.mubr.f32.gmra.mrb[56].mxu0 %v18809_v17  ;;  %9172 = vmatprep.subr.bf16.mxu1 %v9171_v14 }
 0x3ed   : > { %4341 = vmatprep.mubr.f32.mxu0 %v18812_v33  ;;  %v15118_v34 = vpop.f32.mrb[140].mxu1 }
 0x3ee   : > { %18816 = vst [vmem:[#allocation180_spill] sm:$0xff] %v15118_v34  ;;  %v15121_v6 = vpop.f32.mrb[141].mxu1  ;;  %8473 = vmatmul.mubr.f32.gmra.mrb[246].mxu1 %v18819_v1  ;;  %v18828_v1 = vld [vmem:[#allocation288_spill] sm:$0xff]  ;;  %v18868_v34 = vld [vmem:[#allocation306_spill] sm:$0xff] }
 0x3ef   : > { %18818 = vst [vmem:[#allocation332_spill] sm:$0xff] %v15121_v6  ;;  %8475 = vmatprep.mubr.f32.mxu1 %v18821_v61  ;;  %9174 = vmatpush3.bf16.msra.mxu1 %v9171_v14  ;;  %v9183_v14 = vpack.c.bf16 %v18831_v42, %v18830_v50  ;;  %v18841_v50 = vld [vmem:[#allocation293_spill] sm:$0xff]  ;;  %v18869_v6 = vand.u32 4294901760, %v18714_v54 }
 0x3f0   : > { %4343 = vmatmul.mubr.f32.gmra.mrb[58].mxu0 %v18817_v47  ;;  %9176 = vmatprep.subr.bf16.mxu1 %v9175_v29 }
 0x3f1   : > { %4348 = vmatprep.mubr.f32.mxu0 %v18820_v27  ;;  %v15132_v9 = vpop.f32.mrb[142].mxu1 }
 0x3f2   : > { %18824 = vst [vmem:[#allocation260_spill] sm:$0xff] %v15132_v9  ;;  %v15135_v52 = vpop.f32.mrb[143].mxu1  ;;  %8476 = vmatmul.mubr.f32.gmra.mrb[248].mxu1 %v18827_v10  ;;  %v18836_v10 = vld [vmem:[#allocation290_spill] sm:$0xff]  ;;  %v18862_v9 = vld [vmem:[#allocation304_spill] sm:$0xff] }
 0x3f3   : > { %18826 = vst [vmem:[#allocation78_spill] sm:$0xff] %v15135_v52  ;;  %8478 = vmatprep.mubr.f32.mxu1 %v18829_v21  ;;  %9178 = vmatpush3.bf16.msra.mxu1 %v9175_v29  ;;  %v9187_v29 = vpack.c.bf16 %v18839_v62, %v18838_v5  ;;  %v18850_v5 = vld [vmem:[#allocation298_spill] sm:$0xff]  ;;  %v18863_v52 = vand.u32 4294901760, %v18707_v40 }
 0x3f4   : > { %4350 = vmatmul.mubr.f32.gmra.mrb[60].mxu0 %v18825_v11  ;;  %9180 = vmatprep.subr.bf16.mxu1 %v9179_v44 }
 0x3f5   : > { %4355 = vmatprep.mubr.f32.mxu0 %v18828_v1  ;;  %v15146_v61 = vpop.f32.mrb[144].mxu1 }
 0x3f6   : > { %18832 = vst [vmem:[#allocation61_spill] sm:$0xff] %v15146_v61  ;;  %v15149_v24 = vpop.f32.mrb[145].mxu1  ;;  %8479 = vmatmul.mubr.f32.gmra.mrb[250].mxu1 %v18835_v39  ;;  %v18844_v39 = vld [vmem:[#allocation294_spill] sm:$0xff] }
 0x3f7   : > { %18834 = vst [vmem:[#allocation63_spill] sm:$0xff] %v15149_v24  ;;  %8481 = vmatprep.mubr.f32.mxu1 %v18837_v15  ;;  %9182 = vmatpush3.bf16.msra.mxu1 %v9179_v44  ;;  %v18849_v15 = vand.u32 4294901760, %v18691_v0  ;;  %v18857_v0 = vand.u32 4294901760, %v18700_v25 }
 0x3f8   : > { %4357 = vmatmul.mubr.f32.gmra.mrb[62].mxu0 %v18833_v45  ;;  %9184 = vmatprep.subr.bf16.mxu1 %v9183_v14 }
 0x3f9   : > { %4362 = vmatprep.mubr.f32.mxu0 %v18836_v10  ;;  %v15160_v21 = vpop.f32.mrb[146].mxu1 }
 0x3fa   : > { %18840 = vst [vmem:[#allocation90_spill] sm:$0xff] %v15160_v21  ;;  %v15163_v42 = vpop.f32.mrb[147].mxu1  ;;  %8482 = vmatmul.mubr.f32.gmra.mrb[252].mxu1 %v18843_v2  ;;  %v18855_v2 = vand.u32 4294901760, %v18698_v8 }
 0x3fb   : > { %18842 = vst [vmem:[#allocation271_spill] sm:$0xff] %v15163_v42  ;;  %8484 = vmatprep.mubr.f32.mxu1 %v18845_v35  ;;  %9186 = vmatpush3.bf16.msra.mxu1 %v9183_v14  ;;  %v18853_v14 = vld [vmem:[#allocation299_spill] sm:$0xff]  ;;  %v18856_v35 = vld [vmem:[#allocation300_spill] sm:$0xff] }
 0x3fc   : > { %4364 = vmatmul.mubr.f32.gmra.mrb[64].mxu0 %v18841_v50  ;;  %9188 = vmatprep.subr.bf16.mxu1 %v9187_v29 }
 0x3fd   : > { %4369 = vmatprep.mubr.f32.mxu0 %v18844_v39  ;;  %v15170_v41 = vpop.f32.mrb[148].mxu1 }
 0x3fe   : > { %18846 = vst [vmem:[#allocation274_spill] sm:$0xff] %v15170_v41  ;;  %v15173_v44 = vpop.f32.mrb[149].mxu1  ;;  %8485 = vmatmul.mubr.f32.gmra.mrb[254].mxu1 %v18849_v15 }
 0x3ff   : > { %18848 = vst [vmem:[#allocation82_spill] sm:$0xff] %v15173_v44  ;;  %8487 = vmatprep.mubr.f32.mxu1 %v18851_v16  ;;  %9190 = vmatpush3.bf16.msra.mxu1 %v9187_v29  ;;  %v18861_v16 = vand.u32 4294901760, %v18705_v32 }
 0x400   : > { %4371 = vmatmul.mubr.f32.gmra.mrb[66].mxu0 %v18847_v23  ;;  %9192 = vmatprep.subr.bf16.mxu1 %v18537_v37 }
 0x401   : > { %4376 = vmatprep.mubr.f32.mxu0 %v18850_v5  ;;  %v15181_v22 = vpop.f32.mrb[150].mxu1 }
 0x402   : > { %18852 = vst [vmem:[#allocation264_spill] sm:$0xff] %v15181_v22  ;;  %v15184_v62 = vpop.f32.mrb[151].mxu1  ;;  %8488 = vmatmul.mubr.f32.gmra.mrb[0].mxu1 %v18855_v2  ;;  %v18865_v2 = vld [vmem:[#allocation130_spill] sm:$0xff]  ;;  %v18949_v22 = vld [vmem:[#allocation203_spill] sm:$0xff] }
 0x403   : > { %18854 = vst [vmem:[#allocation69_spill] sm:$0xff] %v15184_v62  ;;  %8490 = vmatprep.mubr.f32.mxu1 %v18857_v0  ;;  %v18867_v0 = vand.u32 4294901760, %v18712_v43 }
 0x404   : > { %4378 = vmatmul.mubr.f32.gmra.mrb[68].mxu0 %v18853_v14 }
 0x405   : > { %4383 = vmatprep.mubr.f32.mxu0 %v18856_v35  ;;  %v15191_v15 = vpop.f32.mrb[152].mxu1 }
 0x406   : > { %18858 = vst [vmem:[#allocation282_spill] sm:$0xff] %v15191_v15  ;;  %v15194_v29 = vpop.f32.mrb[153].mxu1  ;;  %8491 = vmatmul.mubr.f32.gmra.mrb[2].mxu1 %v18861_v16  ;;  %v18871_v16 = vld [vmem:[#allocation307_spill] sm:$0xff]  ;;  %v18923_v15 = vld [vmem:[#allocation333_spill] sm:$0xff] }
 0x407   : > { %18860 = vst [vmem:[#allocation283_spill] sm:$0xff] %v15194_v29  ;;  %8493 = vmatprep.mubr.f32.mxu1 %v18863_v52  ;;  %v18873_v52 = vand.u32 4294901760, %v18719_v4 }
 0x408   : > { %4385 = vmatmul.mubr.f32.gmra.mrb[70].mxu0 %v18859_v59 }
 0x409   : > { %4390 = vmatprep.mubr.f32.mxu0 %v18862_v9  ;;  %v15201_v8 = vpop.f32.mrb[154].mxu1 }
 0x40a   : > { %18864 = vst [vmem:[#allocation276_spill] sm:$0xff] %v15201_v8  ;;  %v15204_v25 = vpop.f32.mrb[155].mxu1  ;;  %8494 = vmatmul.mubr.f32.gmra.mrb[4].mxu1 %v18867_v0  ;;  %v18877_v0 = vld [vmem:[#allocation310_spill] sm:$0xff] }
 0x40b   : > { %18866 = vst [vmem:[#allocation93_spill] sm:$0xff] %v15204_v25  ;;  %8496 = vmatprep.mubr.f32.mxu1 %v18869_v6  ;;  %v18879_v6 = vand.u32 4294901760, %v18726_v18  ;;  %v18916_v25 = vld [vmem:[#allocation328_spill] sm:$0xff] }
 0x40c   : > { %4392 = vmatmul.mubr.f32.gmra.mrb[72].mxu0 %v18865_v2 }
 0x40d   : > { %4397 = vmatprep.mubr.f32.mxu0 %v18868_v34  ;;  %v15211_v32 = vpop.f32.mrb[156].mxu1 }
 0x40e   : > { %18870 = vst [vmem:[#allocation285_spill] sm:$0xff] %v15211_v32  ;;  %v15214_v40 = vpop.f32.mrb[157].mxu1  ;;  %8497 = vmatmul.mubr.f32.gmra.mrb[6].mxu1 %v18873_v52  ;;  %v18883_v52 = vld [vmem:[#allocation315_spill] sm:$0xff] }
 0x40f   : > { %18872 = vst [vmem:[#allocation110_spill] sm:$0xff] %v15214_v40  ;;  %8499 = vmatprep.mubr.f32.mxu1 %v18875_v26  ;;  %v18885_v26 = vand.u32 4294901760, %v18733_v19  ;;  %v18908_v40 = vld [vmem:[#allocation325_spill] sm:$0xff] }
 0x410   : > { %4399 = vmatmul.mubr.f32.gmra.mrb[74].mxu0 %v18871_v16 }
 0x411   : > { %4404 = vmatprep.mubr.f32.mxu0 %v18874_v38  ;;  %v15221_v43 = vpop.f32.mrb[158].mxu1 }
 0x412   : > { %18876 = vst [vmem:[#allocation287_spill] sm:$0xff] %v15221_v43  ;;  %v15224_v54 = vpop.f32.mrb[159].mxu1  ;;  %8500 = vmatmul.mubr.f32.gmra.mrb[8].mxu1 %v18879_v6  ;;  %v18889_v6 = vld [vmem:[#allocation317_spill] sm:$0xff] }
 0x413   : > { %18878 = vst [vmem:[#allocation289_spill] sm:$0xff] %v15224_v54  ;;  %8502 = vmatprep.mubr.f32.mxu1 %v18881_v51  ;;  %v18891_v51 = vand.u32 4294901760, %v18740_v30  ;;  %v18900_v54 = vld [vmem:[#allocation322_spill] sm:$0xff] }
 0x414   : > { %4406 = vmatmul.mubr.f32.gmra.mrb[76].mxu0 %v18877_v0 }
 0x415   : > { %4411 = vmatprep.mubr.f32.mxu0 %v18880_v46  ;;  %v15231_v4 = vpop.f32.mrb[160].mxu1 }
 0x416   : > { %18882 = vst [vmem:[#allocation114_spill] sm:$0xff] %v15231_v4  ;;  %v15234_v56 = vpop.f32.mrb[161].mxu1  ;;  %8503 = vmatmul.mubr.f32.gmra.mrb[10].mxu1 %v18885_v26  ;;  %v18892_v4 = vld [vmem:[#allocation319_spill] sm:$0xff]  ;;  %v18896_v26 = vld [vmem:[#allocation320_spill] sm:$0xff] }
 0x417   : > { %18884 = vst [vmem:[#allocation113_spill] sm:$0xff] %v15234_v56  ;;  %8505 = vmatprep.mubr.f32.mxu1 %v18887_v31  ;;  %v18893_v56 = vld [vmem:[#allocation96_spill] sm:$0xff]  ;;  %v18898_v31 = vld [vmem:[#allocation79_spill] sm:$0xff] }
 0x418   : > { %4413 = vmatmul.mubr.f32.gmra.mrb[78].mxu0 %v18883_v52  ;;  %v18894_v43 = vand.u32 4294901760, %v18893_v56  ;;  %v19053_v52 = vld [vmem:[#allocation87_spill] sm:$0xff] }
 0x419   : > { %4418 = vmatprep.mubr.f32.mxu0 %v18886_v7  ;;  %v15241_v18 = vpop.f32.mrb[162].mxu1 }
 0x41a   : > { %18888 = vst [vmem:[#allocation292_spill] sm:$0xff] %v15241_v18  ;;  %v15244_v55 = vpop.f32.mrb[163].mxu1  ;;  %8506 = vmatmul.mubr.f32.gmra.mrb[12].mxu1 %v18891_v51  ;;  %v18899_v18 = vand.u32 4294901760, %v18898_v31  ;;  %v18904_v51 = vld [vmem:[#allocation156_spill] sm:$0xff]  ;;  %v18912_v31 = vld [vmem:[#allocation327_spill] sm:$0xff] }
 0x41b   : > { %18890 = vst [vmem:[#allocation295_spill] sm:$0xff] %v15244_v55  ;;  %8508 = vmatprep.mubr.f32.mxu1 %v18894_v43  ;;  %v18901_v55 = vld [vmem:[#allocation139_spill] sm:$0xff]  ;;  %v18906_v43 = vld [vmem:[#allocation262_spill] sm:$0xff] }
 0x41c   : > { %4420 = vmatmul.mubr.f32.gmra.mrb[80].mxu0 %v18889_v6  ;;  %v18902_v32 = vand.u32 4294901760, %v18901_v55  ;;  %v19047_v6 = vld [vmem:[#allocation244_spill] sm:$0xff] }
 0x41d   : > { %4425 = vmatprep.mubr.f32.mxu0 %v18892_v4  ;;  %v15251_v19 = vpop.f32.mrb[164].mxu1 }
 0x41e   : > { %18895 = vst [vmem:[#allocation297_spill] sm:$0xff] %v15251_v19  ;;  %v15254_v13 = vpop.f32.mrb[165].mxu1  ;;  %8509 = vmatmul.mubr.f32.gmra.mrb[14].mxu1 %v18899_v18  ;;  %v18907_v19 = vand.u32 4294901760, %v18906_v43  ;;  %v18919_v43 = vld [vmem:[#allocation331_spill] sm:$0xff] }
 0x41f   : > { %18897 = vst [vmem:[#allocation123_spill] sm:$0xff] %v15254_v13  ;;  %8511 = vmatprep.mubr.f32.mxu1 %v18902_v32  ;;  %v18909_v13 = vld [vmem:[#allocation65_spill] sm:$0xff] }
 0x420   : > { %4427 = vmatmul.mubr.f32.gmra.mrb[82].mxu0 %v18896_v26  ;;  %v18910_v8 = vand.u32 4294901760, %v18909_v13  ;;  %v18914_v32 = vld [vmem:[#allocation265_spill] sm:$0xff] }
 0x421   : > { %4432 = vmatprep.mubr.f32.mxu0 %v18900_v54  ;;  %v15261_v30 = vpop.f32.mrb[166].mxu1  ;;  %v19041_v26 = vld [vmem:[#allocation77_spill] sm:$0xff] }
 0x422   : > { %18903 = vst [vmem:[#allocation121_spill] sm:$0xff] %v15261_v30  ;;  %v15264_v56 = vpop.f32.mrb[167].mxu1  ;;  %8512 = vmatmul.mubr.f32.gmra.mrb[16].mxu1 %v18907_v19  ;;  %v18915_v30 = vand.u32 4294901760, %v18914_v32  ;;  %v18927_v32 = vld [vmem:[#allocation334_spill] sm:$0xff] }
 0x423   : > { %18905 = vst [vmem:[#allocation158_spill] sm:$0xff] %v15264_v56  ;;  %8514 = vmatprep.mubr.f32.mxu1 %v18910_v8  ;;  %v18917_v56 = vand.u32 4294901760, %v18760_v60  ;;  %v18921_v8 = vld [vmem:[#allocation155_spill] sm:$0xff] }
 0x424   : > { %4434 = vmatmul.mubr.f32.gmra.mrb[84].mxu0 %v18904_v51  ;;  %v19035_v51 = vld [vmem:[#allocation240_spill] sm:$0xff] }
 0x425   : > { %4439 = vmatprep.mubr.f32.mxu0 %v18908_v40  ;;  %v15271_v18 = vpop.f32.mrb[168].mxu1 }
 0x426   : > { %18911 = vst [vmem:[#allocation301_spill] sm:$0xff] %v15271_v18  ;;  %v15274_v55 = vpop.f32.mrb[169].mxu1  ;;  %8515 = vmatmul.mubr.f32.gmra.mrb[18].mxu1 %v18915_v30  ;;  %v18922_v18 = vand.u32 4294901760, %v18921_v8  ;;  %v18933_v8 = vld [vmem:[#allocation335_spill] sm:$0xff] }
 0x427   : > { %18913 = vst [vmem:[#allocation303_spill] sm:$0xff] %v15274_v55  ;;  %8517 = vmatprep.mubr.f32.mxu1 %v18917_v56  ;;  %v18924_v55 = vld [vmem:[#allocation28_spill] sm:$0xff]  ;;  %v18929_v56 = vand.u32 4294901760, %v14514_v58 }
 0x428   : > { %4441 = vmatmul.mubr.f32.gmra.mrb[86].mxu0 %v18912_v31  ;;  %v18925_v29 = vand.u32 4294901760, %v18924_v55  ;;  %v19029_v31 = vld [vmem:[#allocation67_spill] sm:$0xff] }
 0x429   : > { %4446 = vmatprep.mubr.f32.mxu0 %v18916_v25  ;;  %v15281_v19 = vpop.f32.mrb[170].mxu1 }
 0x42a   : > { %18918 = vst [vmem:[#allocation305_spill] sm:$0xff] %v15281_v19  ;;  %v15284_v13 = vpop.f32.mrb[171].mxu1  ;;  %8518 = vmatmul.mubr.f32.gmra.mrb[20].mxu1 %v18922_v18  ;;  %v18930_v19 = vld [vmem:[#allocation170_spill] sm:$0xff] }
 0x42b   : > { %18920 = vst [vmem:[#allocation134_spill] sm:$0xff] %v15284_v13  ;;  %8520 = vmatprep.mubr.f32.mxu1 %v18925_v29  ;;  %v18931_v13 = vand.u32 4294901760, %v18771_v57  ;;  %v18935_v29 = vand.u32 4294901760, %v18775_v49 }
 0x42c   : > { %4448 = vmatmul.mubr.f32.gmra.mrb[88].mxu0 %v18919_v43  ;;  %v19022_v43 = vld [vmem:[#allocation216_spill] sm:$0xff] }
 0x42d   : > { %4453 = vmatprep.mubr.f32.mxu0 %v18923_v15  ;;  %v15291_v30 = vpop.f32.mrb[172].mxu1  ;;  %v19020_v15 = vld [vmem:[#allocation35_spill] sm:$0xff] }
 0x42e   : > { %18926 = vst [vmem:[#allocation133_spill] sm:$0xff] %v15291_v30  ;;  %v15294_v60 = vpop.f32.mrb[173].mxu1  ;;  %8521 = vmatmul.mubr.f32.gmra.mrb[22].mxu1 %v18929_v56  ;;  %v18936_v30 = vld [vmem:[#allocation336_spill] sm:$0xff]  ;;  %v18939_v56 = vld [vmem:[#allocation338_spill] sm:$0xff] }
 0x42f   : > { %18928 = vst [vmem:[#allocation309_spill] sm:$0xff] %v15294_v60  ;;  %8523 = vmatprep.mubr.f32.mxu1 %v18931_v13  ;;  %v18937_v60 = vand.u32 4294901760, %v14552_v48  ;;  %v18941_v13 = vand.u32 4294901760, %v14565_v28 }
 0x430   : > { %4455 = vmatmul.mubr.f32.gmra.mrb[90].mxu0 %v18927_v32  ;;  %v19016_v32 = vld [vmem:[#allocation47_spill] sm:$0xff] }
 0x431   : > { %4460 = vmatprep.mubr.f32.mxu0 %v18930_v19  ;;  %v15301_v18 = vpop.f32.mrb[174].mxu1  ;;  %v19014_v19 = vld [vmem:[#allocation232_spill] sm:$0xff] }
 0x432   : > { %18932 = vst [vmem:[#allocation311_spill] sm:$0xff] %v15301_v18  ;;  %v15304_v55 = vpop.f32.mrb[175].mxu1  ;;  %8524 = vmatmul.mubr.f32.gmra.mrb[24].mxu1 %v18935_v29  ;;  %v18942_v18 = vld [vmem:[#allocation198_spill] sm:$0xff]  ;;  %v18945_v29 = vld [vmem:[#allocation199_spill] sm:$0xff] }
 0x433   : > { %18934 = vst [vmem:[#allocation314_spill] sm:$0xff] %v15304_v55  ;;  %8526 = vmatprep.mubr.f32.mxu1 %v18937_v60  ;;  %v18943_v55 = vand.u32 4294901760, %v14578_v3  ;;  %v18947_v60 = vld [vmem:[#allocation74_spill] sm:$0xff] }
 0x434   : > { %4462 = vmatmul.mubr.f32.gmra.mrb[92].mxu0 %v18933_v8 }
 0x435   : > { %4467 = vmatprep.mubr.f32.mxu0 %v18936_v30  ;;  %v15311_v58 = vpop.f32.mrb[176].mxu1 }
 0x436   : > { %18938 = vst [vmem:[#allocation137_spill] sm:$0xff] %v15311_v58  ;;  %v15314_v57 = vpop.f32.mrb[177].mxu1  ;;  %8527 = vmatmul.mubr.f32.gmra.mrb[26].mxu1 %v18941_v13  ;;  %v18948_v58 = vand.u32 4294901760, %v18947_v60  ;;  %v18956_v13 = vld [vmem:[#allocation208_spill] sm:$0xff] }
 0x437   : > { %18940 = vst [vmem:[#allocation143_spill] sm:$0xff] %v15314_v57  ;;  %8529 = vmatprep.mubr.f32.mxu1 %v18943_v55  ;;  %v18950_v57 = vld [vmem:[#allocation169_spill] sm:$0xff]  ;;  %v18955_v55 = vand.u32 4294901760, %v14609_v20  ;;  %v18964_v20 = vld [vmem:[#allocation267_spill] sm:$0xff] }
 0x438   : > { %4469 = vmatmul.mubr.f32.gmra.mrb[94].mxu0 %v18939_v56  ;;  %v18951_v62 = vand.u32 4294901760, %v18950_v57  ;;  %v18962_v57 = vld [vmem:[#allocation213_spill] sm:$0xff] }
 0x439   : > { %4571 = vmatprep.mubr.f32.mxu0 %v18942_v18  ;;  %v15321_v49 = vpop.f32.mrb[178].mxu1  ;;  %v18953_v18 = vld [vmem:[#allocation204_spill] sm:$0xff] }
 0x43a   : > { %18944 = vst [vmem:[#allocation146_spill] sm:$0xff] %v15321_v49  ;;  %v15324_v48 = vpop.f32.mrb[179].mxu1  ;;  %8530 = vmatmul.mubr.f32.gmra.mrb[28].mxu1 %v18948_v58  ;;  %v18959_v58 = vld [vmem:[#allocation209_spill] sm:$0xff] }
 0x43b   : > { %18946 = vst [vmem:[#allocation318_spill] sm:$0xff] %v15324_v48  ;;  %8532 = vmatprep.mubr.f32.mxu1 %v18951_v62  ;;  %v18961_v62 = vld [vmem:[#allocation54_spill] sm:$0xff] }
 0x43c   : > { %4573 = vmatmul.mubr.f32.vlgmr.msra.gmra.mrb[0].mxu0 %v18945_v29  ;;  %v18957_v29 = vld [vmem:[#allocation195_spill] sm:$0xff] }
 0x43d   : > { %4578 = vmatprep.mubr.f32.mxu0 %v18949_v22  ;;  %v15331_v28 = vpop.f32.mrb[180].mxu1 }
 0x43e   : > { %18952 = vst [vmem:[#allocation149_spill] sm:$0xff] %v15331_v28  ;;  %v15334_v3 = vpop.f32.mrb[181].mxu1  ;;  %8533 = vmatmul.mubr.f32.gmra.mrb[30].mxu1 %v18955_v55 }
 0x43f   : > { %18954 = vst [vmem:[#allocation321_spill] sm:$0xff] %v15334_v3  ;;  %8567 = vmatprep.mubr.f32.mxu1 %v18957_v29 }
 0x440   : > { %4580 = vmatmul.mubr.f32.gmra.mrb[2].mxu0 %v18953_v18  ;;  %v18963_v18 = vld [vmem:[#allocation200_spill] sm:$0xff] }
 0x441   : > { %4585 = vmatprep.mubr.f32.mxu0 %v18956_v13  ;;  %v15340_v60 = vpop.f32.mrb[182].mxu1  ;;  %v18966_v13 = vld [vmem:[#allocation214_spill] sm:$0xff] }
 0x442   : > { %18958 = vst [vmem:[#allocation154_spill] sm:$0xff] %v15340_v60  ;;  %v15343_v22 = vpop.f32.mrb[183].mxu1  ;;  %8568 = vmatmul.mubr.f32.vlgmr.msra.gmra.mrb[32].mxu1 %v18961_v62  ;;  %v18968_v60 = vld [vmem:[#allocation55_spill] sm:$0xff] }
 0x443   : > { %18960 = vst [vmem:[#allocation324_spill] sm:$0xff] %v15343_v22  ;;  %8570 = vmatprep.mubr.f32.mxu1 %v18963_v18  ;;  %9194 = vmatpush3.bf16.msra.mxu1 %v18537_v37  ;;  %v18970_v22 = vld [vmem:[#allocation210_spill] sm:$0xff] }
 0x444   : > { %4587 = vmatmul.mubr.f32.gmra.mrb[4].mxu0 %v18959_v58  ;;  %9196 = vmatprep.subr.bf16.mxu1 %v18964_v20  ;;  %v18969_v58 = vld [vmem:[#allocation217_spill] sm:$0xff]  ;;  %v18973_v37 = vld [vmem:[#allocation218_spill] sm:$0xff] }
 0x445   : > { %4592 = vmatprep.mubr.f32.mxu0 %v18962_v57  ;;  %v15350_v55 = vpop.f32.mrb[184].mxu1  ;;  %v18971_v57 = vld [vmem:[#allocation81_spill] sm:$0xff] }
 0x446   : > { %18965 = vst [vmem:[#allocation326_spill] sm:$0xff] %v15350_v55  ;;  %v15353_v28 = vpop.f32.mrb[185].mxu1  ;;  %8571 = vmatmul.mubr.f32.gmra.mrb[34].mxu1 %v18968_v60  ;;  %v18975_v55 = vld [vmem:[#allocation219_spill] sm:$0xff] }
 0x447   : > { %18967 = vst [vmem:[#allocation166_spill] sm:$0xff] %v15353_v28  ;;  %8573 = vmatprep.mubr.f32.mxu1 %v18970_v22  ;;  %9198 = vmatpush3.bf16.msra.mxu1 %v18964_v20  ;;  %v18977_v28 = vld [vmem:[#allocation5_spill] sm:$0xff]  ;;  %v18980_v20 = vld [vmem:[#allocation220_spill] sm:$0xff] }
 0x448   : > { %4594 = vmatmul.mubr.f32.gmra.mrb[6].mxu0 %v18966_v13  ;;  %9200 = vmatprep.subr.bf16.mxu1 %v18971_v57  ;;  %v18976_v13 = vld [vmem:[#allocation51_spill] sm:$0xff] }
 0x449   : > { %4599 = vmatprep.mubr.f32.mxu0 %v18969_v58  ;;  %v15360_v3 = vpop.f32.mrb[186].mxu1  ;;  %v18978_v58 = vld [vmem:[#allocation341_spill] sm:$0xff] }
 0x44a   : > { %18972 = vst [vmem:[#allocation329_spill] sm:$0xff] %v15360_v3  ;;  %v15363_v49 = vpop.f32.mrb[187].mxu1  ;;  %8574 = vmatmul.mubr.f32.gmra.mrb[36].mxu1 %v18975_v55  ;;  %v18982_v3 = vld [vmem:[#allocation221_spill] sm:$0xff] }
 0x44b   : > { %18974 = vst [vmem:[#allocation330_spill] sm:$0xff] %v15363_v49  ;;  %8576 = vmatprep.mubr.f32.mxu1 %v18977_v28  ;;  %9202 = vmatpush3.bf16.msra.mxu1 %v18971_v57  ;;  %v18984_v49 = vld [vmem:[#allocation363_spill] sm:$0xff] }
 0x44c   : > { %4601 = vmatmul.mubr.f32.gmra.mrb[8].mxu0 %v18973_v37  ;;  %9204 = vmatprep.subr.bf16.mxu1 %v18978_v58  ;;  %v18983_v37 = vld [vmem:[#allocation222_spill] sm:$0xff]  ;;  %v18987_v57 = vld [vmem:[#allocation223_spill] sm:$0xff] }
 0x44d   : > { %4606 = vmatprep.mubr.f32.mxu0 %v18976_v13  ;;  %v15370_v48 = vpop.f32.mrb[188].mxu1  ;;  %v18985_v13 = vld [vmem:[#allocation343_spill] sm:$0xff] }
 0x44e   : > { %18979 = vst [vmem:[#allocation164_spill] sm:$0xff] %v15370_v48  ;;  %v15373_v41 = vpop.f32.mrb[189].mxu1  ;;  %8577 = vmatmul.mubr.f32.gmra.mrb[38].mxu1 %v18982_v3  ;;  %v18989_v48 = vld [vmem:[#allocation202_spill] sm:$0xff] }
 0x44f   : > { %18981 = vst [vmem:[#allocation172_spill] sm:$0xff] %v15373_v41  ;;  %8579 = vmatprep.mubr.f32.mxu1 %v18984_v49  ;;  %9206 = vmatpush3.bf16.msra.mxu1 %v18978_v58  ;;  %v18991_v41 = vld [vmem:[#allocation29_spill] sm:$0xff]  ;;  %v18994_v58 = vld [vmem:[#allocation23_spill] sm:$0xff] }
 0x450   : > { %4608 = vmatmul.mubr.f32.gmra.mrb[10].mxu0 %v18980_v20  ;;  %9208 = vmatprep.subr.bf16.mxu1 %v18985_v13  ;;  %v18990_v20 = vld [vmem:[#allocation9_spill] sm:$0xff] }
 0x451   : > { %4613 = vmatprep.mubr.f32.mxu0 %v18983_v37  ;;  %v15380_v44 = vpop.f32.mrb[190].mxu1  ;;  %v18992_v37 = vld [vmem:[#allocation346_spill] sm:$0xff] }
 0x452   : > { %18986 = vst [vmem:[#allocation179_spill] sm:$0xff] %v15380_v44  ;;  %v15383_v21 = vpop.f32.mrb[191].mxu1  ;;  %8580 = vmatmul.mubr.f32.gmra.mrb[40].mxu1 %v18989_v48  ;;  %v18996_v44 = vld [vmem:[#allocation229_spill] sm:$0xff] }
 0x453   : > { %18988 = vst [vmem:[#allocation177_spill] sm:$0xff] %v15383_v21  ;;  %8582 = vmatprep.mubr.f32.mxu1 %v18991_v41  ;;  %9210 = vmatpush3.bf16.msra.mxu1 %v18985_v13  ;;  %v18998_v21 = vld [vmem:[#allocation20_spill] sm:$0xff] }
 0x454   : > { %4615 = vmatmul.mubr.f32.gmra.mrb[12].mxu0 %v18987_v57  ;;  %9212 = vmatprep.subr.bf16.mxu1 %v18992_v37  ;;  %v18997_v57 = vld [vmem:[#allocation60_spill] sm:$0xff] }
 0x455   : > { %4620 = vmatprep.mubr.f32.mxu0 %v18990_v20  ;;  %v15390_v42 = vpop.f32.mrb[192].mxu1  ;;  %v18999_v20 = vld [vmem:[#allocation348_spill] sm:$0xff] }
 0x456   : > { %18993 = vst [vmem:[#allocation337_spill] sm:$0xff] %v15390_v42  ;;  %v15393_v61 = vpop.f32.mrb[193].mxu1  ;;  %8583 = vmatmul.mubr.f32.gmra.mrb[42].mxu1 %v18996_v44  ;;  %v19001_v13 = vld [vmem:[#allocation228_spill] sm:$0xff]  ;;  %v19003_v42 = vld [vmem:[#allocation165_spill] sm:$0xff] }
 0x457   : > { %18995 = vst [vmem:[#allocation339_spill] sm:$0xff] %v15393_v61  ;;  %8585 = vmatprep.mubr.f32.mxu1 %v18998_v21  ;;  %9214 = vmatpush3.bf16.msra.mxu1 %v18992_v37  ;;  %v19005_v61 = vld [vmem:[#allocation207_spill] sm:$0xff]  ;;  %v19008_v37 = vld [vmem:[#allocation230_spill] sm:$0xff] }
 0x458   : > { %4622 = vmatmul.mubr.f32.gmra.mrb[14].mxu0 %v18994_v58  ;;  %9216 = vmatprep.subr.bf16.mxu1 %v18999_v20  ;;  %v19004_v58 = vld [vmem:[#allocation27_spill] sm:$0xff] }
 0x459   : > { %4627 = vmatprep.mubr.f32.mxu0 %v18997_v57  ;;  %v15400_v24 = vpop.f32.mrb[194].mxu1  ;;  %v19006_v57 = vld [vmem:[#allocation350_spill] sm:$0xff] }
 0x45a   : > { %19000 = vst [vmem:[#allocation340_spill] sm:$0xff] %v15400_v24  ;;  %v15403_v56 = vpop.f32.mrb[195].mxu1  ;;  %8586 = vmatmul.mubr.f32.gmra.mrb[44].mxu1 %v19003_v42  ;;  %v19010_v24 = vld [vmem:[#allocation211_spill] sm:$0xff] }
 0x45b   : > { %19002 = vst [vmem:[#allocation50_spill] sm:$0xff] %v15403_v56  ;;  %8588 = vmatprep.mubr.f32.mxu1 %v19005_v61  ;;  %9218 = vmatpush3.bf16.msra.mxu1 %v18999_v20  ;;  %v19012_v56 = vld [vmem:[#allocation49_spill] sm:$0xff] }
 0x45c   : > { %4629 = vmatmul.mubr.f32.gmra.mrb[16].mxu0 %v19001_v13  ;;  %9220 = vmatprep.subr.bf16.mxu1 %v19006_v57  ;;  %v19011_v13 = vld [vmem:[#allocation17_spill] sm:$0xff] }
 0x45d   : > { %4634 = vmatprep.mubr.f32.mxu0 %v19004_v58  ;;  %v15410_v30 = vpop.f32.mrb[196].mxu1 }
 0x45e   : > { %19007 = vst [vmem:[#allocation57_spill] sm:$0xff] %v15410_v30  ;;  %v15413_v8 = vpop.f32.mrb[197].mxu1  ;;  %8589 = vmatmul.mubr.f32.gmra.mrb[46].mxu1 %v19010_v24  ;;  %v19017_v30 = vld [vmem:[#allocation36_spill] sm:$0xff] }
 0x45f   : > { %19009 = vst [vmem:[#allocation41_spill] sm:$0xff] %v15413_v8  ;;  %8591 = vmatprep.mubr.f32.mxu1 %v19012_v56  ;;  %9222 = vmatpush3.bf16.msra.mxu1 %v19006_v57  ;;  %v19023_v57 = vld [vmem:[#allocation235_spill] sm:$0xff] }
 0x460   : > { %4636 = vmatmul.mubr.f32.gmra.mrb[18].mxu0 %v19008_v37  ;;  %v19018_v37 = vld [vmem:[#allocation52_spill] sm:$0xff] }
 0x461   : > { %4641 = vmatprep.mubr.f32.mxu0 %v19011_v13  ;;  %v15419_v58 = vpop.f32.mrb[198].mxu1 }
 0x462   : > { %19013 = vst [vmem:[#allocation56_spill] sm:$0xff] %v15419_v58  ;;  %v15422_v20 = vpop.f32.mrb[199].mxu1  ;;  %8592 = vmatmul.mubr.f32.gmra.mrb[48].mxu1 %v19016_v32  ;;  %v19024_v58 = vld [vmem:[#allocation42_spill] sm:$0xff] }
 0x463   : > { %19015 = vst [vmem:[#allocation215_spill] sm:$0xff] %v15422_v20  ;;  %8594 = vmatprep.mubr.f32.mxu1 %v19018_v37  ;;  %v19026_v20 = vld [vmem:[#allocation236_spill] sm:$0xff] }
 0x464   : > { %4643 = vmatmul.mubr.f32.gmra.mrb[20].mxu0 %v19014_v19 }
 0x465   : > { %4648 = vmatprep.mubr.f32.mxu0 %v19017_v30  ;;  %v15427_v8 = vpop.f32.mrb[200].mxu1  ;;  %v19028_v30 = vld [vmem:[#allocation85_spill] sm:$0xff] }
 0x466   : > { %19019 = vst [vmem:[#allocation45_spill] sm:$0xff] %v15427_v8  ;;  %v15430_v13 = vpop.f32.mrb[201].mxu1  ;;  %8595 = vmatmul.mubr.f32.gmra.mrb[50].mxu1 %v19022_v43  ;;  %v19030_v8 = vld [vmem:[#allocation16_spill] sm:$0xff] }
 0x467   : > { %19021 = vst [vmem:[#allocation7_spill] sm:$0xff] %v15430_v13  ;;  %8597 = vmatprep.mubr.f32.mxu1 %v19024_v58  ;;  %v19032_v13 = vld [vmem:[#allocation66_spill] sm:$0xff] }
 0x468   : > { %4650 = vmatmul.mubr.f32.gmra.mrb[22].mxu0 %v19020_v15 }
 0x469   : > { %4655 = vmatprep.mubr.f32.mxu0 %v19023_v57  ;;  %v15435_v19 = vpop.f32.mrb[202].mxu1  ;;  %v19034_v57 = vld [vmem:[#allocation15_spill] sm:$0xff] }
 0x46a   : > { %19025 = vst [vmem:[#allocation226_spill] sm:$0xff] %v15435_v19  ;;  %v15438_v25 = vpop.f32.mrb[203].mxu1  ;;  %8598 = vmatmul.mubr.f32.gmra.mrb[52].mxu1 %v19028_v30  ;;  %v19036_v19 = vld [vmem:[#allocation59_spill] sm:$0xff] }
 0x46b   : > { %19027 = vst [vmem:[#allocation111_spill] sm:$0xff] %v15438_v25  ;;  %8600 = vmatprep.mubr.f32.mxu1 %v19030_v8  ;;  %v19038_v25 = vld [vmem:[#allocation241_spill] sm:$0xff] }
 0x46c   : > { %4657 = vmatmul.mubr.f32.gmra.mrb[24].mxu0 %v19026_v20 }
 0x46d   : > { %4662 = vmatprep.mubr.f32.mxu0 %v19029_v31  ;;  %v15443_v15 = vpop.f32.mrb[204].mxu1  ;;  %v19040_v31 = vld [vmem:[#allocation101_spill] sm:$0xff] }
 0x46e   : > { %19031 = vst [vmem:[#allocation12_spill] sm:$0xff] %v15443_v15  ;;  %v15446_v40 = vpop.f32.mrb[205].mxu1  ;;  %8601 = vmatmul.mubr.f32.gmra.mrb[54].mxu1 %v19034_v57  ;;  %v19042_v15 = vld [vmem:[#allocation104_spill] sm:$0xff] }
 0x46f   : > { %19033 = vst [vmem:[#allocation227_spill] sm:$0xff] %v15446_v40  ;;  %8603 = vmatprep.mubr.f32.mxu1 %v19036_v19  ;;  %v19044_v40 = vld [vmem:[#allocation76_spill] sm:$0xff] }
 0x470   : > { %4664 = vmatmul.mubr.f32.gmra.mrb[26].mxu0 %v19032_v13 }
 0x471   : > { %4669 = vmatprep.mubr.f32.mxu0 %v19035_v51  ;;  %v15451_v20 = vpop.f32.mrb[206].mxu1  ;;  %v19046_v51 = vld [vmem:[#allocation224_spill] sm:$0xff] }
 0x472   : > { %19037 = vst [vmem:[#allocation126_spill] sm:$0xff] %v15451_v20  ;;  %v15454_v54 = vpop.f32.mrb[207].mxu1  ;;  %8604 = vmatmul.mubr.f32.gmra.mrb[56].mxu1 %v19040_v31  ;;  %v19048_v20 = vld [vmem:[#allocation97_spill] sm:$0xff] }
 0x473   : > { %19039 = vst [vmem:[#allocation361_spill] sm:$0xff] %v15454_v54  ;;  %8606 = vmatprep.mubr.f32.mxu1 %v19042_v15  ;;  %v19050_v54 = vld [vmem:[#allocation245_spill] sm:$0xff] }
 0x474   : > { %4671 = vmatmul.mubr.f32.gmra.mrb[28].mxu0 %v19038_v25 }
 0x475   : > { %4676 = vmatprep.mubr.f32.mxu0 %v19041_v26  ;;  %v15459_v13 = vpop.f32.mrb[208].mxu1  ;;  %v19052_v26 = vld [vmem:[#allocation252_spill] sm:$0xff] }
 0x476   : > { %19043 = vst [vmem:[#allocation39_spill] sm:$0xff] %v15459_v13  ;;  %v15462_v4 = vpop.f32.mrb[209].mxu1  ;;  %8607 = vmatmul.mubr.f32.gmra.mrb[58].mxu1 %v19046_v51  ;;  %v19054_v13 = vld [vmem:[#allocation225_spill] sm:$0xff] }
 0x477   : > { %19045 = vst [vmem:[#allocation135_spill] sm:$0xff] %v15462_v4  ;;  %8609 = vmatprep.mubr.f32.mxu1 %v19048_v20  ;;  %v19056_v4 = vld [vmem:[#allocation84_spill] sm:$0xff]  ;;  %v19059_v20 = vld [vmem:[#allocation250_spill] sm:$0xff] }
 0x478   : > { %4678 = vmatmul.mubr.f32.gmra.mrb[30].mxu0 %v19044_v40 }
 0x479   : > { %4683 = vmatprep.mubr.f32.mxu0 %v19047_v6  ;;  %v15467_v25 = vpop.f32.mrb[210].mxu1  ;;  %v19058_v6 = vld [vmem:[#allocation255_spill] sm:$0xff] }
 0x47a   : > { %19049 = vst [vmem:[#allocation37_spill] sm:$0xff] %v15467_v25  ;;  %v15470_v7 = vpop.f32.mrb[211].mxu1  ;;  %8610 = vmatmul.mubr.f32.gmra.mrb[60].mxu1 %v19052_v26  ;;  %v19060_v25 = vld [vmem:[#allocation108_spill] sm:$0xff] }
 0x47b   : > { %19051 = vst [vmem:[#allocation148_spill] sm:$0xff] %v15470_v7  ;;  %8612 = vmatprep.mubr.f32.mxu1 %v19054_v13  ;;  %v19062_v7 = vld [vmem:[#allocation251_spill] sm:$0xff]  ;;  %v19065_v13 = vld [vmem:[#allocation46_spill] sm:$0xff] }
 0x47c   : > { %4685 = vmatmul.mubr.f32.gmra.mrb[32].mxu0 %v19050_v54 }
 0x47d   : > { %4690 = vmatprep.mubr.f32.mxu0 %v19053_v52  ;;  %v15475_v40 = vpop.f32.mrb[212].mxu1  ;;  %v19064_v52 = vld [vmem:[#allocation138_spill] sm:$0xff] }
 0x47e   : > { %19055 = vst [vmem:[#allocation152_spill] sm:$0xff] %v15475_v40  ;;  %v15478_v51 = vpop.f32.mrb[213].mxu1  ;;  %8613 = vmatmul.mubr.f32.gmra.mrb[62].mxu1 %v19058_v6  ;;  %v19066_v40 = vld [vmem:[#allocation11_spill] sm:$0xff] }
 0x47f   : > { %19057 = vst [vmem:[#allocation22_spill] sm:$0xff] %v15478_v51  ;;  %8615 = vmatprep.mubr.f32.mxu1 %v19060_v25  ;;  %v19068_v51 = vld [vmem:[#allocation95_spill] sm:$0xff]  ;;  %v19071_v25 = vld [vmem:[#allocation257_spill] sm:$0xff] }
 0x480   : > { %4692 = vmatmul.mubr.f32.gmra.mrb[34].mxu0 %v19056_v4 }
 0x481   : > { %4697 = vmatprep.mubr.f32.mxu0 %v19059_v20  ;;  %v15483_v54 = vpop.f32.mrb[214].mxu1  ;;  %v19070_v20 = vld [vmem:[#allocation62_spill] sm:$0xff] }
 0x482   : > { %19061 = vst [vmem:[#allocation43_spill] sm:$0xff] %v15483_v54  ;;  %v15486_v26 = vpop.f32.mrb[215].mxu1  ;;  %8616 = vmatmul.mubr.f32.gmra.mrb[64].mxu1 %v19064_v52  ;;  %v19072_v54 = vld [vmem:[#allocation116_spill] sm:$0xff] }
 0x483   : > { %19063 = vst [vmem:[#allocation160_spill] sm:$0xff] %v15486_v26  ;;  %8618 = vmatprep.mubr.f32.mxu1 %v19066_v40  ;;  %v19074_v26 = vld [vmem:[#allocation258_spill] sm:$0xff]  ;;  %v19077_v40 = vld [vmem:[#allocation107_spill] sm:$0xff] }
 0x484   : > { %4699 = vmatmul.mubr.f32.gmra.mrb[36].mxu0 %v19062_v7 }
 0x485   : > { %4704 = vmatprep.mubr.f32.mxu0 %v19065_v13  ;;  %v15491_v4 = vpop.f32.mrb[216].mxu1  ;;  %v19076_v13 = vld [vmem:[#allocation71_spill] sm:$0xff] }
 0x486   : > { %19067 = vst [vmem:[#allocation44_spill] sm:$0xff] %v15491_v4  ;;  %v15494_v6 = vpop.f32.mrb[217].mxu1  ;;  %8619 = vmatmul.mubr.f32.gmra.mrb[66].mxu1 %v19070_v20  ;;  %v19078_v4 = vld [vmem:[#allocation270_spill] sm:$0xff] }
 0x487   : > { %19069 = vst [vmem:[#allocation237_spill] sm:$0xff] %v15494_v6  ;;  %8621 = vmatprep.mubr.f32.mxu1 %v19072_v54  ;;  %v19080_v6 = vld [vmem:[#allocation106_spill] sm:$0xff] }
 0x488   : > { %4706 = vmatmul.mubr.f32.gmra.mrb[38].mxu0 %v19068_v51  ;;  %v19083_v54 = vld [vmem:[#allocation38_spill] sm:$0xff] }
 0x489   : > { %4711 = vmatprep.mubr.f32.mxu0 %v19071_v25  ;;  %v15499_v7 = vpop.f32.mrb[218].mxu1  ;;  %v19082_v25 = vld [vmem:[#allocation132_spill] sm:$0xff] }
 0x48a   : > { %19073 = vst [vmem:[#allocation168_spill] sm:$0xff] %v15499_v7  ;;  %v15502_v52 = vpop.f32.mrb[219].mxu1  ;;  %8622 = vmatmul.mubr.f32.gmra.mrb[68].mxu1 %v19076_v13  ;;  %v19084_v7 = vld [vmem:[#allocation75_spill] sm:$0xff] }
 0x48b   : > { %19075 = vst [vmem:[#allocation344_spill] sm:$0xff] %v15502_v52  ;;  %8624 = vmatprep.mubr.f32.mxu1 %v19078_v4  ;;  %v19086_v52 = vld [vmem:[#allocation263_spill] sm:$0xff]  ;;  %v19089_v4 = vld [vmem:[#allocation268_spill] sm:$0xff] }
 0x48c   : > { %4713 = vmatmul.mubr.f32.gmra.mrb[40].mxu0 %v19074_v26 }
 0x48d   : > { %4718 = vmatprep.mubr.f32.mxu0 %v19077_v40  ;;  %v15507_v51 = vpop.f32.mrb[220].mxu1  ;;  %v19088_v40 = vld [vmem:[#allocation272_spill] sm:$0xff] }
 0x48e   : > { %19079 = vst [vmem:[#allocation345_spill] sm:$0xff] %v15507_v51  ;;  %v15510_v20 = vpop.f32.mrb[221].mxu1  ;;  %8625 = vmatmul.mubr.f32.gmra.mrb[70].mxu1 %v19082_v25  ;;  %v19090_v51 = vld [vmem:[#allocation256_spill] sm:$0xff] }
 0x48f   : > { %19081 = vst [vmem:[#allocation212_spill] sm:$0xff] %v15510_v20  ;;  %8627 = vmatprep.mubr.f32.mxu1 %v19084_v7  ;;  %v19092_v20 = vld [vmem:[#allocation269_spill] sm:$0xff]  ;;  %v19095_v7 = vld [vmem:[#allocation70_spill] sm:$0xff] }
 0x490   : > { %4720 = vmatmul.mubr.f32.gmra.mrb[42].mxu0 %v19080_v6 }
 0x491   : > { %4725 = vmatprep.mubr.f32.mxu0 %v19083_v54  ;;  %v15515_v26 = vpop.f32.mrb[222].mxu1  ;;  %v19094_v54 = vld [vmem:[#allocation163_spill] sm:$0xff] }
 0x492   : > { %19085 = vst [vmem:[#allocation178_spill] sm:$0xff] %v15515_v26  ;;  %v15518_v13 = vpop.f32.mrb[223].mxu1  ;;  %8628 = vmatmul.mubr.f32.gmra.mrb[72].mxu1 %v19088_v40  ;;  %v19096_v26 = vld [vmem:[#allocation18_spill] sm:$0xff] }
 0x493   : > { %19087 = vst [vmem:[#allocation171_spill] sm:$0xff] %v15518_v13  ;;  %8630 = vmatprep.mubr.f32.mxu1 %v19090_v51  ;;  %v19098_v13 = vld [vmem:[#allocation273_spill] sm:$0xff]  ;;  %v19101_v51 = vld [vmem:[#allocation72_spill] sm:$0xff] }
 0x494   : > { %4727 = vmatmul.mubr.f32.gmra.mrb[44].mxu0 %v19086_v52 }
 0x495   : > { %4732 = vmatprep.mubr.f32.mxu0 %v19089_v4  ;;  %v15523_v6 = vpop.f32.mrb[224].mxu1  ;;  %v19100_v4 = vld [vmem:[#allocation233_spill] sm:$0xff] }
 0x496   : > { %19091 = vst [vmem:[#allocation73_spill] sm:$0xff] %v15523_v6  ;;  %v15526_v25 = vpop.f32.mrb[225].mxu1  ;;  %8631 = vmatmul.mubr.f32.gmra.mrb[74].mxu1 %v19094_v54  ;;  %v19102_v6 = vld [vmem:[#allocation83_spill] sm:$0xff] }
 0x497   : > { %19093 = vst [vmem:[#allocation6_spill] sm:$0xff] %v15526_v25  ;;  %8633 = vmatprep.mubr.f32.mxu1 %v19096_v26  ;;  %v19104_v25 = vld [vmem:[#allocation275_spill] sm:$0xff]  ;;  %v19107_v26 = vld [vmem:[#allocation261_spill] sm:$0xff] }
 0x498   : > { %4734 = vmatmul.mubr.f32.gmra.mrb[46].mxu0 %v19092_v20 }
 0x499   : > { %4739 = vmatprep.mubr.f32.mxu0 %v19095_v7  ;;  %v15531_v52 = vpop.f32.mrb[226].mxu1  ;;  %v19106_v7 = vld [vmem:[#allocation167_spill] sm:$0xff] }
 0x49a   : > { %19097 = vst [vmem:[#allocation182_spill] sm:$0xff] %v15531_v52  ;;  %v15534_v40 = vpop.f32.mrb[227].mxu1  ;;  %8634 = vmatmul.mubr.f32.gmra.mrb[76].mxu1 %v19100_v4 }
 0x49b   : > { %19099 = vst [vmem:[#allocation183_spill] sm:$0xff] %v15534_v40  ;;  %8636 = vmatprep.mubr.f32.mxu1 %v19102_v6  ;;  %v19219_v40 = vld [vmem:[#allocation226_spill] sm:$0xff] }
 0x49c   : > { %4741 = vmatmul.mubr.f32.gmra.mrb[48].mxu0 %v19098_v13 }
 0x49d   : > { %4746 = vmatprep.mubr.f32.mxu0 %v19101_v51  ;;  %v15539_v20 = vpop.f32.mrb[228].mxu1 }
 0x49e   : > { %19103 = vst [vmem:[#allocation86_spill] sm:$0xff] %v15539_v20  ;;  %v15542_v54 = vpop.f32.mrb[229].mxu1  ;;  %8637 = vmatmul.mubr.f32.gmra.mrb[78].mxu1 %v19106_v7 }
 0x49f   : > { %19105 = vst [vmem:[#allocation187_spill] sm:$0xff] %v15542_v54  ;;  %8671 = vmatprep.mubr.f32.mxu1 %v18957_v29 }
 0x4a0   : > { %4748 = vmatmul.mubr.f32.gmra.mrb[50].mxu0 %v19104_v25 }
 0x4a1   : > { %4753 = vmatprep.mubr.f32.mxu0 %v19107_v26  ;;  %v15547_v13 = vpop.f32.mrb[230].mxu1  ;;  %v19138_v26 = vld [vmem:[#allocation331_spill] sm:$0xff] }
 0x4a2   : > { %19108 = vst [vmem:[#allocation186_spill] sm:$0xff] %v15547_v13  ;;  %v15550_v52 = vpop.f32.mrb[231].mxu1  ;;  %8672 = vmatmul.mubr.f32.vlgmr.msra.gmra.mrb[80].mxu1 %v18961_v62  ;;  %v19131_v62 = vld [vmem:[#allocation138_spill] sm:$0xff] }
 0x4a3   : > { %19109 = vst [vmem:[#allocation88_spill] sm:$0xff] %v15550_v52  ;;  %8674 = vmatprep.mubr.f32.mxu1 %v18963_v18  ;;  %v19132_v18 = vld [vmem:[#allocation325_spill] sm:$0xff] }
 0x4a4   : > { %4755 = vmatmul.mubr.f32.gmra.mrb[52].mxu0 %v18793_v12 }
 0x4a5   : > { %4760 = vmatprep.mubr.f32.mxu0 %v18796_v63  ;;  %v15555_v51 = vpop.f32.mrb[232].mxu1 }
 0x4a6   : > { %19110 = vst [vmem:[#allocation189_spill] sm:$0xff] %v15555_v51  ;;  %v15558_v25 = vpop.f32.mrb[233].mxu1  ;;  %8675 = vmatmul.mubr.f32.gmra.mrb[82].mxu1 %v18968_v60  ;;  %v19130_v60 = vld [vmem:[#allocation156_spill] sm:$0xff] }
 0x4a7   : > { %19111 = vst [vmem:[#allocation246_spill] sm:$0xff] %v15558_v25  ;;  %8677 = vmatprep.mubr.f32.mxu1 %v18970_v22 }
 0x4a8   : > { %4762 = vmatmul.mubr.f32.gmra.mrb[54].mxu0 %v18801_v36 }
 0x4a9   : > { %4767 = vmatprep.mubr.f32.mxu0 %v18804_v53  ;;  %v15563_v12 = vpop.f32.mrb[234].mxu1 }
 0x4aa   : > { %19112 = vst [vmem:[#allocation58_spill] sm:$0xff] %v15563_v12  ;;  %v15566_v29 = vpop.f32.mrb[235].mxu1  ;;  %8678 = vmatmul.mubr.f32.gmra.mrb[84].mxu1 %v18975_v55  ;;  %v19133_v55 = vld [vmem:[#allocation11_spill] sm:$0xff] }
 0x4ab   : > { %19113 = vst [vmem:[#allocation194_spill] sm:$0xff] %v15566_v29  ;;  %8680 = vmatprep.mubr.f32.mxu1 %v18977_v28  ;;  %v19129_v28 = vld [vmem:[#allocation108_spill] sm:$0xff]  ;;  %v19171_v12 = vld [vmem:[#allocation347_spill] sm:$0xff] }
 0x4ac   : > { %4769 = vmatmul.mubr.f32.gmra.mrb[56].mxu0 %v18809_v17 }
 0x4ad   : > { %4774 = vmatprep.mubr.f32.mxu0 %v18812_v33  ;;  %v15571_v63 = vpop.f32.mrb[236].mxu1 }
 0x4ae   : > { %19114 = vst [vmem:[#allocation31_spill] sm:$0xff] %v15571_v63  ;;  %v15574_v36 = vpop.f32.mrb[237].mxu1  ;;  %8681 = vmatmul.mubr.f32.gmra.mrb[86].mxu1 %v18982_v3  ;;  %v19170_v63 = vld [vmem:[#allocation63_spill] sm:$0xff] }
 0x4af   : > { %19115 = vst [vmem:[#allocation249_spill] sm:$0xff] %v15574_v36  ;;  %8683 = vmatprep.mubr.f32.mxu1 %v18984_v49  ;;  %v19127_v49 = vld [vmem:[#allocation255_spill] sm:$0xff] }
 0x4b0   : > { %4776 = vmatmul.mubr.f32.gmra.mrb[58].mxu0 %v18817_v47 }
 0x4b1   : > { %4781 = vmatprep.mubr.f32.mxu0 %v18820_v27  ;;  %v15579_v53 = vpop.f32.mrb[238].mxu1 }
 0x4b2   : > { %19116 = vst [vmem:[#allocation196_spill] sm:$0xff] %v15579_v53  ;;  %v15582_v17 = vpop.f32.mrb[239].mxu1  ;;  %8684 = vmatmul.mubr.f32.gmra.mrb[88].mxu1 %v18989_v48  ;;  %v19128_v48 = vld [vmem:[#allocation322_spill] sm:$0xff] }
 0x4b3   : > { %19117 = vst [vmem:[#allocation119_spill] sm:$0xff] %v15582_v17  ;;  %8686 = vmatprep.mubr.f32.mxu1 %v18991_v41 }
 0x4b4   : > { %4783 = vmatmul.mubr.f32.gmra.mrb[60].mxu0 %v18825_v11 }
 0x4b5   : > { %4788 = vmatprep.mubr.f32.mxu0 %v18828_v1  ;;  %v15587_v33 = vpop.f32.mrb[240].mxu1 }
 0x4b6   : > { %v15590_v47 = vpop.f32.mrb[241].mxu1  ;;  %8687 = vmatmul.mubr.f32.gmra.mrb[90].mxu1 %v18996_v44  ;;  %v19118_v44 = vld [vmem:[#allocation315_spill] sm:$0xff] }
 0x4b7   : > { %8689 = vmatprep.mubr.f32.mxu1 %v18998_v21 }
 0x4b8   : > { %4790 = vmatmul.mubr.f32.gmra.mrb[62].mxu0 %v18833_v45 }
 0x4b9   : > { %4795 = vmatprep.mubr.f32.mxu0 %v18836_v10  ;;  %v15595_v27 = vpop.f32.mrb[242].mxu1 }
 0x4ba   : > { %v15598_v11 = vpop.f32.mrb[243].mxu1  ;;  %8690 = vmatmul.mubr.f32.gmra.mrb[92].mxu1 %v19003_v42 }
 0x4bb   : > { %8692 = vmatprep.mubr.f32.mxu1 %v19005_v61 }
 0x4bc   : > { %4797 = vmatmul.mubr.f32.gmra.mrb[64].mxu0 %v18841_v50 }
 0x4bd   : > { %4802 = vmatprep.mubr.f32.mxu0 %v18844_v39  ;;  %v15603_v1 = vpop.f32.mrb[244].mxu1 }
 0x4be   : > { %v15606_v45 = vpop.f32.mrb[245].mxu1  ;;  %8693 = vmatmul.mubr.f32.gmra.mrb[94].mxu1 %v19010_v24 }
 0x4bf   : > { %8695 = vmatprep.mubr.f32.mxu1 %v19012_v56 }
 0x4c0   : > { %4804 = vmatmul.mubr.f32.gmra.mrb[66].mxu0 %v18847_v23 }
 0x4c1   : > { %4809 = vmatprep.mubr.f32.mxu0 %v18850_v5  ;;  %v15611_v10 = vpop.f32.mrb[246].mxu1 }
 0x4c2   : > { %v15614_v21 = vpop.f32.mrb[247].mxu1  ;;  %8696 = vmatmul.mubr.f32.gmra.mrb[96].mxu1 %v19016_v32 }
 0x4c3   : > { %8698 = vmatprep.mubr.f32.mxu1 %v19018_v37  ;;  %v19134_v37 = vld [vmem:[#allocation327_spill] sm:$0xff] }
 0x4c4   : > { %4811 = vmatmul.mubr.f32.gmra.mrb[68].mxu0 %v18853_v14  ;;  %v19120_v14 = vld [vmem:[#allocation316_spill] sm:$0xff] }
 0x4c5   : > { %4816 = vmatprep.mubr.f32.mxu0 %v18856_v35  ;;  %v15619_v61 = vpop.f32.mrb[248].mxu1  ;;  %v19121_v35 = vld [vmem:[#allocation97_spill] sm:$0xff] }
 0x4c6   : > { %v15622_v24 = vpop.f32.mrb[249].mxu1  ;;  %8699 = vmatmul.mubr.f32.gmra.mrb[98].mxu1 %v19022_v43  ;;  %v19125_v43 = vld [vmem:[#allocation225_spill] sm:$0xff] }
 0x4c7   : > { %8701 = vmatprep.mubr.f32.mxu1 %v19024_v58 }
 0x4c8   : > { %4818 = vmatmul.mubr.f32.gmra.mrb[70].mxu0 %v18859_v59 }
 0x4c9   : > { %4823 = vmatprep.mubr.f32.mxu0 %v18862_v9  ;;  %v15627_v50 = vpop.f32.mrb[250].mxu1 }
 0x4ca   : > { %v15630_v42 = vpop.f32.mrb[251].mxu1  ;;  %8702 = vmatmul.mubr.f32.gmra.mrb[100].mxu1 %v19028_v30  ;;  %v19135_v30 = vld [vmem:[#allocation62_spill] sm:$0xff] }
 0x4cb   : > { %8704 = vmatprep.mubr.f32.mxu1 %v19030_v8  ;;  %v19126_v8 = vld [vmem:[#allocation320_spill] sm:$0xff] }
 0x4cc   : > { %4825 = vmatmul.mubr.f32.gmra.mrb[72].mxu0 %v18865_v2  ;;  %v19122_v2 = vld [vmem:[#allocation317_spill] sm:$0xff] }
 0x4cd   : > { %4830 = vmatprep.mubr.f32.mxu0 %v18868_v34  ;;  %v15635_v39 = vpop.f32.mrb[252].mxu1 }
 0x4ce   : > { %v15638_v41 = vpop.f32.mrb[253].mxu1  ;;  %8705 = vmatmul.mubr.f32.gmra.mrb[102].mxu1 %v19034_v57  ;;  %v19137_v57 = vld [vmem:[#allocation116_spill] sm:$0xff] }
 0x4cf   : > { %8707 = vmatprep.mubr.f32.mxu1 %v19036_v19 }
 0x4d0   : > { %4832 = vmatmul.mubr.f32.gmra.mrb[74].mxu0 %v18871_v16 }
 0x4d1   : > { %4837 = vmatprep.mubr.f32.mxu0 %v18874_v38  ;;  %v15643_v9 = vpop.f32.mrb[254].mxu1  ;;  %v19119_v38 = vld [vmem:[#allocation224_spill] sm:$0xff] }
 0x4d2   : > { %v15646_v23 = vpop.f32.mrb[255].mxu1  ;;  %8708 = vmatmul.mubr.f32.gmra.mrb[104].mxu1 %v19040_v31 }
 0x4d3   : > { %8710 = vmatprep.mubr.f32.mxu1 %v19042_v15  ;;  %v19136_v15 = vld [vmem:[#allocation328_spill] sm:$0xff] }
 0x4d4   : > { %4839 = vmatmul.mubr.f32.gmra.mrb[76].mxu0 %v18877_v0  ;;  %v19124_v0 = vld [vmem:[#allocation319_spill] sm:$0xff] }
 0x4d5   : > { %4844 = vmatprep.mubr.f32.mxu0 %v18880_v46  ;;  %v15651_v34 = vpop.f32.mrb[0].mxu1  ;;  %v19123_v46 = vld [vmem:[#allocation252_spill] sm:$0xff] }
 0x4d6   : > { %v15654_v5 = vpop.f32.mrb[1].mxu1  ;;  %8711 = vmatmul.mubr.f32.gmra.mrb[106].mxu1 %v19119_v38  ;;  %v19139_v38 = vld [vmem:[#allocation71_spill] sm:$0xff] }
 0x4d7   : > { %8713 = vmatprep.mubr.f32.mxu1 %v19121_v35  ;;  %v19141_v35 = vld [vmem:[#allocation270_spill] sm:$0xff] }
 0x4d8   : > { %4846 = vmatmul.mubr.f32.gmra.mrb[78].mxu0 %v19118_v44 }
 0x4d9   : > { %4851 = vmatprep.mubr.f32.mxu0 %v19120_v14  ;;  %v15659_v59 = vpop.f32.mrb[2].mxu1  ;;  %v19140_v14 = vld [vmem:[#allocation333_spill] sm:$0xff] }
 0x4da   : > { %v15662_v16 = vpop.f32.mrb[3].mxu1  ;;  %8714 = vmatmul.mubr.f32.gmra.mrb[108].mxu1 %v19123_v46  ;;  %v19142_v46 = vld [vmem:[#allocation334_spill] sm:$0xff] }
 0x4db   : > { %8716 = vmatprep.mubr.f32.mxu1 %v19125_v43  ;;  %v19143_v43 = vld [vmem:[#allocation132_spill] sm:$0xff] }
 0x4dc   : > { %4853 = vmatmul.mubr.f32.gmra.mrb[80].mxu0 %v19122_v2 }
 0x4dd   : > { %4858 = vmatprep.mubr.f32.mxu0 %v19124_v0  ;;  %v15667_v32 = vpop.f32.mrb[4].mxu1 }
 0x4de   : > { %v15670_v56 = vpop.f32.mrb[5].mxu1  ;;  %8717 = vmatmul.mubr.f32.gmra.mrb[110].mxu1 %v19127_v49  ;;  %v19145_v49 = vld [vmem:[#allocation75_spill] sm:$0xff] }
 0x4df   : > { %8719 = vmatprep.mubr.f32.mxu1 %v19129_v28  ;;  %v19147_v28 = vld [vmem:[#allocation335_spill] sm:$0xff] }
 0x4e0   : > { %4860 = vmatmul.mubr.f32.gmra.mrb[82].mxu0 %v19126_v8  ;;  %v19144_v8 = vld [vmem:[#allocation170_spill] sm:$0xff] }
 0x4e1   : > { %4865 = vmatprep.mubr.f32.mxu0 %v19128_v48  ;;  %v15675_v3 = vpop.f32.mrb[6].mxu1 }
 0x4e2   : > { %v15678_v22 = vpop.f32.mrb[7].mxu1  ;;  %8720 = vmatmul.mubr.f32.gmra.mrb[112].mxu1 %v19131_v62  ;;  %v19148_v62 = vld [vmem:[#allocation272_spill] sm:$0xff] }
 0x4e3   : > { %8722 = vmatprep.mubr.f32.mxu1 %v19133_v55  ;;  %v19150_v55 = vld [vmem:[#allocation256_spill] sm:$0xff] }
 0x4e4   : > { %4867 = vmatmul.mubr.f32.gmra.mrb[84].mxu0 %v19130_v60 }
 0x4e5   : > { %4872 = vmatprep.mubr.f32.mxu0 %v19132_v18  ;;  %v15683_v58 = vpop.f32.mrb[8].mxu1  ;;  %v19149_v18 = vld [vmem:[#allocation336_spill] sm:$0xff] }
 0x4e6   : > { %v15686_v19 = vpop.f32.mrb[9].mxu1  ;;  %8723 = vmatmul.mubr.f32.gmra.mrb[114].mxu1 %v19135_v30  ;;  %v19152_v30 = vld [vmem:[#allocation338_spill] sm:$0xff] }
 0x4e7   : > { %8725 = vmatprep.mubr.f32.mxu1 %v19137_v57  ;;  %v19154_v57 = vld [vmem:[#allocation163_spill] sm:$0xff] }
 0x4e8   : > { %4874 = vmatmul.mubr.f32.gmra.mrb[86].mxu0 %v19134_v37 }
 0x4e9   : > { %4879 = vmatprep.mubr.f32.mxu0 %v19136_v15  ;;  %v15691_v31 = vpop.f32.mrb[10].mxu1 }
 0x4ea   : > { %v15694_v44 = vpop.f32.mrb[11].mxu1  ;;  %8726 = vmatmul.mubr.f32.gmra.mrb[116].mxu1 %v19139_v38 }
 0x4eb   : > { %8728 = vmatprep.mubr.f32.mxu1 %v19141_v35 }
 0x4ec   : > { %4881 = vmatmul.mubr.f32.gmra.mrb[88].mxu0 %v19138_v26  ;;  %v19155_v26 = vld [vmem:[#allocation18_spill] sm:$0xff] }
 0x4ed   : > { %4886 = vmatprep.mubr.f32.mxu0 %v19140_v14  ;;  %v15699_v2 = vpop.f32.mrb[12].mxu1 }
 0x4ee   : > { %v15702_v0 = vpop.f32.mrb[13].mxu1  ;;  %8729 = vmatmul.mubr.f32.gmra.mrb[118].mxu1 %v19143_v43 }
 0x4ef   : > { %8731 = vmatprep.mubr.f32.mxu1 %v19145_v49 }
 0x4f0   : > { %4888 = vmatmul.mubr.f32.gmra.mrb[90].mxu0 %v19142_v46 }
 0x4f1   : > { %4893 = vmatprep.mubr.f32.mxu0 %v19144_v8  ;;  %v15707_v48 = vpop.f32.mrb[14].mxu1 }
 0x4f2   : > { %19146 = vst [vmem:[#allocation122_spill] sm:$0xff] %v15707_v48  ;;  %v15710_v60 = vpop.f32.mrb[15].mxu1  ;;  %8732 = vmatmul.mubr.f32.gmra.mrb[120].mxu1 %v19148_v62 }
 0x4f3   : > { %8734 = vmatprep.mubr.f32.mxu1 %v19150_v55 }
 0x4f4   : > { %4895 = vmatmul.mubr.f32.gmra.mrb[92].mxu0 %v19147_v28 }
 0x4f5   : > { %4900 = vmatprep.mubr.f32.mxu0 %v19149_v18  ;;  %v15715_v37 = vpop.f32.mrb[16].mxu1 }
 0x4f6   : > { %19151 = vst [vmem:[#allocation197_spill] sm:$0xff] %v15715_v37  ;;  %v15718_v15 = vpop.f32.mrb[17].mxu1  ;;  %8735 = vmatmul.mubr.f32.gmra.mrb[122].mxu1 %v19154_v57 }
 0x4f7   : > { %19153 = vst [vmem:[#allocation34_spill] sm:$0xff] %v15718_v15  ;;  %8737 = vmatprep.mubr.f32.mxu1 %v19155_v26 }
 0x4f8   : > { %4902 = vmatmul.mubr.f32.gmra.mrb[94].mxu0 %v19152_v30 }
 0x4f9   : > { %v15722_v38 = vpop.f32.mrb[18].mxu1 }
 0x4fa   : > { %19156 = vst [vmem:[#allocation151_spill] sm:$0xff] %v15722_v38  ;;  %v15724_v14 = vpop.f32.mrb[19].mxu1  ;;  %8738 = vmatmul.mubr.f32.gmra.mrb[124].mxu1 %v19100_v4  ;;  %v19211_v38 = vld [vmem:[#allocation45_spill] sm:$0xff] }
 0x4fb   : > { %19157 = vst [vmem:[#allocation80_spill] sm:$0xff] %v15724_v14  ;;  %8740 = vmatprep.mubr.f32.mxu1 %v19102_v6  ;;  %v19166_v6 = vld [vmem:[#allocation342_spill] sm:$0xff] }
 0x4fd   : > { %v15728_v35 = vpop.f32.mrb[20].mxu1 }
 0x4fe   : > { %19158 = vst [vmem:[#allocation162_spill] sm:$0xff] %v15728_v35  ;;  %v15730_v46 = vpop.f32.mrb[21].mxu1  ;;  %8741 = vmatmul.mubr.f32.gmra.mrb[126].mxu1 %v19106_v7  ;;  %v19169_v7 = vld [vmem:[#allocation120_spill] sm:$0xff] }
 0x4ff   : > { %19159 = vst [vmem:[#allocation64_spill] sm:$0xff] %v15730_v46  ;;  %v19191_v35 = vld [vmem:[#allocation124_spill] sm:$0xff] }
 0x501   : > { %v15733_v43 = vpop.f32.mrb[22].mxu1 }
 0x502   : > { %19160 = vst [vmem:[#allocation278_spill] sm:$0xff] %v15733_v43  ;;  %v15735_v8 = vpop.f32.mrb[23].mxu1 }
 0x503   : > { %19161 = vst [vmem:[#allocation279_spill] sm:$0xff] %v15735_v8  ;;  %v19183_v8 = vld [vmem:[#allocation50_spill] sm:$0xff] }
 0x505   : > { %v15737_v49 = vpop.f32.mrb[24].mxu1 }
 0x506   : > { %19162 = vst [vmem:[#allocation89_spill] sm:$0xff] %v15737_v49  ;;  %v15739_v28 = vpop.f32.mrb[25].mxu1 }
 0x507   : > { %19163 = vst [vmem:[#allocation280_spill] sm:$0xff] %v15739_v28 }
 0x509   : > { %v15741_v62 = vpop.f32.mrb[26].mxu1 }
 0x50a   : > { %19164 = vst [vmem:[#allocation92_spill] sm:$0xff] %v15741_v62  ;;  %v15743_v18 = vpop.f32.mrb[27].mxu1 }
 0x50b   : > { %19165 = vst [vmem:[#allocation284_spill] sm:$0xff] %v15743_v18  ;;  %v19174_v18 = vld [vmem:[#allocation13_spill] sm:$0xff] }
 0x50d   : > { %v15746_v30 = vpop.f32.mrb[28].mxu1 }
 0x50e   : > { %19167 = vst [vmem:[#allocation286_spill] sm:$0xff] %v15746_v30  ;;  %v15748_v26 = vpop.f32.mrb[29].mxu1 }
 0x50f   : > { %v4574_v4 = vpop.f32.mrb[0].mxu0  ;;  %19168 = vst [vmem:[#allocation103_spill] sm:$0xff] %v15748_v26  ;;  %v19177_v26 = vld [vmem:[#allocation349_spill] sm:$0xff] }
 0x510   : > { %v9255_v55 = vadd.f32 %v4574_v4, %v19166_v6  ;;  %v4576_v57 = vpop.f32.mrb[1].mxu0  ;;  %v19175_v4 = vld [vmem:[#allocation339_spill] sm:$0xff] }
 0x511   : > { %v15753_v49 = vpop.f32.mrb[30].mxu1  ;;  %v19176_v57 = vld [vmem:[#allocation61_spill] sm:$0xff] }
 0x512   : > { %v4995_v53 = vadd.f32 %v9255_v55, %v19169_v7  ;;  %19172 = vst [vmem:[#allocation288_spill] sm:$0xff] %v15753_v49  ;;  %v15755_v51 = vpop.f32.mrb[31].mxu1  ;;  %v19179_v49 = vld [vmem:[#allocation337_spill] sm:$0xff] }
 0x513   : > { %v4581_v17 = vpop.f32.mrb[2].mxu0  ;;  %19173 = vst [vmem:[#allocation109_spill] sm:$0xff] %v15755_v51 }
 0x514   : > { %v5616_v36 = vadd.f32 %v19170_v63, %v4995_v53  ;;  %v9256_v29 = vadd.f32 %v4581_v17, %v19171_v12  ;;  %v4583_v62 = vpop.f32.mrb[3].mxu0  ;;  %v19178_v12 = vld [vmem:[#allocation242_spill] sm:$0xff] }
 0x515   : > { %v8569_v55 = vpop.f32.mrb[32].mxu1 }
 0x516   : > { %v5005_v28 = vadd.f32 %v9256_v29, %v19174_v18  ;;  %v6002_v6 = vadd.f32 %v19175_v4, %v5616_v36  ;;  %v6914_v53 = vpop.f32.mrb[33].mxu1  ;;  %v19180_v29 = vld [vmem:[#allocation271_spill] sm:$0xff] }
 0x517   : > { %v4588_v30 = vpop.f32.mrb[4].mxu0  ;;  %v19181_v4 = vld [vmem:[#allocation351_spill] sm:$0xff] }
 0x518   : > { %v5622_v25 = vadd.f32 %v19176_v57, %v5005_v28  ;;  %v9257_v43 = vadd.f32 %v4588_v30, %v19177_v26  ;;  %v4590_v7 = vpop.f32.mrb[5].mxu0  ;;  %v6420_v63 = vadd.f32 %v15590_v47, %v6002_v6  ;;  %v19182_v47 = vld [vmem:[#allocation291_spill] sm:$0xff] }
 0x519   : > { %v8572_v57 = vpop.f32.mrb[34].mxu1 }
 0x51a   : > { %v5015_v17 = vadd.f32 %v9257_v43, %v19178_v12  ;;  %v6009_v62 = vadd.f32 %v19179_v49, %v5622_v25  ;;  %v15764_v13 = vadd.f32 %v6914_v53, %v6420_v63  ;;  %v6926_v26 = vpop.f32.mrb[35].mxu1  ;;  %v19184_v25 = vld [vmem:[#allocation90_spill] sm:$0xff]  ;;  %v19185_v53 = vld [vmem:[#allocation352_spill] sm:$0xff] }
 0x51b   : > { %v4595_v51 = vpop.f32.mrb[6].mxu0 }
 0x51c   : > { %v5628_v18 = vadd.f32 %v19180_v29, %v5015_v17  ;;  %v6428_v36 = vadd.f32 %v15587_v33, %v6009_v62  ;;  %v9258_v28 = vadd.f32 %v4595_v51, %v19181_v4  ;;  %v4597_v30 = vpop.f32.mrb[7].mxu0  ;;  %v19186_v51 = vld [vmem:[#allocation340_spill] sm:$0xff] }
 0x51d   : > { %v8575_v29 = vpop.f32.mrb[36].mxu1 }
 0x51e   : > { %v15769_v7 = vadd.f32 %v8569_v55, %v6428_v36  ;;  %v5025_v6 = vadd.f32 %v9258_v28, %v19182_v47  ;;  %v6016_v43 = vadd.f32 %v19183_v8, %v5628_v18  ;;  %v6938_v62 = vpop.f32.mrb[37].mxu1  ;;  %v19187_v55 = vld [vmem:[#allocation118_spill] sm:$0xff]  ;;  %v19189_v47 = vld [vmem:[#allocation353_spill] sm:$0xff] }
 0x51f   : > { %v4602_v12 = vpop.f32.mrb[8].mxu0  ;;  %v19188_v8 = vld [vmem:[#allocation82_spill] sm:$0xff] }
 0x520   : > { %v5634_v49 = vadd.f32 %v19184_v25, %v5025_v6  ;;  %v6436_v63 = vadd.f32 %v15598_v11, %v6016_v43  ;;  %v9259_v17 = vadd.f32 %v4602_v12, %v19185_v53  ;;  %v4604_v33 = vpop.f32.mrb[9].mxu0  ;;  %v19190_v53 = vld [vmem:[#allocation41_spill] sm:$0xff] }
 0x521   : > { %v8578_v25 = vpop.f32.mrb[38].mxu1 }
 0x522   : > { %v6023_v4 = vadd.f32 %v19186_v51, %v5634_v49  ;;  %v15777_v30 = vadd.f32 %v6926_v26, %v6436_v63  ;;  %v5035_v36 = vadd.f32 %v9259_v17, %v19187_v55  ;;  %v6950_v43 = vpop.f32.mrb[39].mxu1  ;;  %v19192_v17 = vld [vmem:[#allocation274_spill] sm:$0xff] }
 0x523   : > { %v4609_v52 = vpop.f32.mrb[10].mxu0  ;;  %v19193_v55 = vld [vmem:[#allocation354_spill] sm:$0xff] }
 0x524   : > { %v6444_v28 = vadd.f32 %v15595_v27, %v6023_v4  ;;  %v5640_v18 = vadd.f32 %v19188_v8, %v5035_v36  ;;  %v9260_v6 = vadd.f32 %v4609_v52, %v19189_v47  ;;  %v4611_v11 = vpop.f32.mrb[11].mxu0  ;;  %v19194_v47 = vld [vmem:[#allocation117_spill] sm:$0xff] }
 0x525   : > { %v8581_v4 = vpop.f32.mrb[40].mxu1 }
 0x526   : > { %v15783_v12 = vadd.f32 %v8572_v57, %v6444_v28  ;;  %v6030_v33 = vadd.f32 %v19190_v53, %v5640_v18  ;;  %v5045_v49 = vadd.f32 %v9260_v6, %v19191_v35  ;;  %v6962_v8 = vpop.f32.mrb[41].mxu1  ;;  %v19195_v57 = vld [vmem:[#allocation57_spill] sm:$0xff]  ;;  %v19197_v35 = vld [vmem:[#allocation355_spill] sm:$0xff] }
 0x527   : > { %v4616_v26 = vpop.f32.mrb[12].mxu0  ;;  %v19196_v18 = vld [vmem:[#allocation69_spill] sm:$0xff] }
 0x528   : > { %v6452_v63 = vadd.f32 %v15606_v45, %v6030_v33  ;;  %v5646_v51 = vadd.f32 %v19192_v17, %v5045_v49  ;;  %v9261_v27 = vadd.f32 %v4616_v26, %v19193_v55  ;;  %v4618_v36 = vpop.f32.mrb[13].mxu0  ;;  %v19198_v26 = vld [vmem:[#allocation128_spill] sm:$0xff] }
 0x529   : > { %v15796_v46 = vpop.f32.mrb[42].mxu1  ;;  %v19200_v36 = vld [vmem:[#allocation264_spill] sm:$0xff] }
 0x52a   : > { %v15790_v52 = vadd.f32 %v6938_v62, %v6452_v63  ;;  %v5055_v11 = vadd.f32 %v9261_v27, %v19194_v47  ;;  %v6037_v28 = vadd.f32 %v19195_v57, %v5646_v51  ;;  %v6974_v49 = vpop.f32.mrb[43].mxu1  ;;  %v19199_v62 = vld [vmem:[#allocation215_spill] sm:$0xff]  ;;  %v19201_v47 = vld [vmem:[#allocation356_spill] sm:$0xff] }
 0x52b   : > { %v4623_v20 = vpop.f32.mrb[14].mxu0 }
 0x52c   : > { %v5652_v53 = vadd.f32 %v19196_v18, %v5055_v11  ;;  %v9262_v6 = vadd.f32 %v4623_v20, %v19197_v35  ;;  %v4625_v45 = vpop.f32.mrb[15].mxu0  ;;  %v6460_v33 = vadd.f32 %v15603_v1, %v6037_v28  ;;  %v19202_v1 = vld [vmem:[#allocation191_spill] sm:$0xff] }
 0x52d   : > { %v15805_v11 = vpop.f32.mrb[44].mxu1  ;;  %v19203_v45 = vld [vmem:[#allocation56_spill] sm:$0xff] }
 0x52e   : > { %v5065_v17 = vadd.f32 %v9262_v6, %v19198_v26  ;;  %v15800_v55 = vadd.f32 %v8575_v29, %v6460_v33  ;;  %v6044_v63 = vadd.f32 %v19199_v62, %v5652_v53  ;;  %v15808_v35 = vpop.f32.mrb[45].mxu1  ;;  %v19204_v53 = vld [vmem:[#allocation283_spill] sm:$0xff]  ;;  %v19205_v62 = vld [vmem:[#allocation357_spill] sm:$0xff] }
 0x52f   : > { %v4630_v27 = vpop.f32.mrb[16].mxu0 }
 0x530   : > { %v5658_v51 = vadd.f32 %v19200_v36, %v5065_v17  ;;  %v9263_v57 = vadd.f32 %v4630_v27, %v19201_v47  ;;  %v4632_v20 = vpop.f32.mrb[17].mxu0  ;;  %v6468_v18 = vadd.f32 %v15614_v21, %v6044_v63  ;;  %v19206_v21 = vld [vmem:[#allocation190_spill] sm:$0xff] }
 0x531   : > { %v15816_v36 = vpop.f32.mrb[46].mxu1 }
 0x532   : > { %v5075_v28 = vadd.f32 %v9263_v57, %v19202_v1  ;;  %v6051_v6 = vadd.f32 %v19203_v45, %v5658_v51  ;;  %v15812_v29 = vadd.f32 %v6950_v43, %v6468_v18  ;;  %v15819_v20 = vpop.f32.mrb[47].mxu1  ;;  %v19207_v57 = vld [vmem:[#allocation7_spill] sm:$0xff]  ;;  %v19208_v18 = vld [vmem:[#allocation282_spill] sm:$0xff] }
 0x533   : > { %v4637_v33 = vpop.f32.mrb[18].mxu0  ;;  %v19209_v45 = vld [vmem:[#allocation358_spill] sm:$0xff] }
 0x534   : > { %v5664_v26 = vadd.f32 %v19204_v53, %v5075_v28  ;;  %v9264_v17 = vadd.f32 %v4637_v33, %v19205_v62  ;;  %v4639_v27 = vpop.f32.mrb[19].mxu0  ;;  %v6476_v47 = vadd.f32 %v15611_v10, %v6051_v6  ;;  %v19210_v10 = vld [vmem:[#allocation14_spill] sm:$0xff] }
 0x535   : > { %v15827_v53 = vpop.f32.mrb[48].mxu1 }
 0x536   : > { %v5085_v63 = vadd.f32 %v9264_v17, %v19206_v21  ;;  %v15822_v54 = vadd.f32 %v8578_v25, %v6476_v47  ;;  %v6058_v51 = vadd.f32 %v19207_v57, %v5664_v26  ;;  %v15830_v27 = vpop.f32.mrb[49].mxu1  ;;  %v19212_v26 = vld [vmem:[#allocation93_spill] sm:$0xff]  ;;  %v19213_v57 = vld [vmem:[#allocation359_spill] sm:$0xff] }
 0x537   : > { %v4644_v43 = vpop.f32.mrb[20].mxu0 }
 0x538   : > { %v5670_v1 = vadd.f32 %v19208_v18, %v5085_v63  ;;  %v9265_v28 = vadd.f32 %v4644_v43, %v19209_v45  ;;  %v4646_v33 = vpop.f32.mrb[21].mxu0  ;;  %v6484_v62 = vadd.f32 %v15622_v24, %v6058_v51  ;;  %v19214_v24 = vld [vmem:[#allocation243_spill] sm:$0xff] }
 0x539   : > { %v15838_v18 = vpop.f32.mrb[50].mxu1 }
 0x53a   : > { %v5095_v6 = vadd.f32 %v9265_v28, %v19210_v10  ;;  %v6065_v17 = vadd.f32 %v19211_v38, %v5670_v1  ;;  %v15834_v25 = vadd.f32 %v6962_v8, %v6484_v62  ;;  %v15841_v33 = vpop.f32.mrb[51].mxu1  ;;  %v19215_v28 = vld [vmem:[#allocation111_spill] sm:$0xff]  ;;  %v19216_v1 = vld [vmem:[#allocation276_spill] sm:$0xff] }
 0x53b   : > { %v4651_v47 = vpop.f32.mrb[22].mxu0  ;;  %v19217_v10 = vld [vmem:[#allocation360_spill] sm:$0xff] }
 0x53c   : > { %v5676_v21 = vadd.f32 %v19212_v26, %v5095_v6  ;;  %v9266_v63 = vadd.f32 %v4651_v47, %v19213_v57  ;;  %v4653_v43 = vpop.f32.mrb[23].mxu0  ;;  %v6492_v45 = vadd.f32 %v15619_v61, %v6065_v17  ;;  %v19218_v61 = vld [vmem:[#allocation127_spill] sm:$0xff] }
 0x53d   : > { %v15849_v26 = vpop.f32.mrb[52].mxu1 }
 0x53e   : > { %v5105_v51 = vadd.f32 %v9266_v63, %v19214_v24  ;;  %v15844_v14 = vadd.f32 %v8581_v4, %v6492_v45  ;;  %v6072_v38 = vadd.f32 %v19215_v28, %v5676_v21  ;;  %v15852_v43 = vpop.f32.mrb[53].mxu1  ;;  %v19220_v21 = vld [vmem:[#allocation110_spill] sm:$0xff]  ;;  %v19221_v28 = vld [vmem:[#allocation53_spill] sm:$0xff] }
 0x53f   : > { %v4658_v8 = vpop.f32.mrb[24].mxu0 }
 0x540   : > { %v5682_v62 = vadd.f32 %v19216_v1, %v5105_v51  ;;  %v9267_v6 = vadd.f32 %v4658_v8, %v19217_v10  ;;  %v4660_v47 = vpop.f32.mrb[25].mxu0  ;;  %v6500_v57 = vadd.f32 %v15630_v42, %v6072_v38  ;;  %v19222_v42 = vld [vmem:[#allocation131_spill] sm:$0xff] }
 0x541   : > { %v15860_v1 = vpop.f32.mrb[54].mxu1 }
 0x542   : > { %v5115_v17 = vadd.f32 %v9267_v6, %v19218_v61  ;;  %v6079_v63 = vadd.f32 %v19219_v40, %v5682_v62  ;;  %v15856_v4 = vadd.f32 %v6974_v49, %v6500_v57  ;;  %v15863_v47 = vpop.f32.mrb[55].mxu1  ;;  %v19223_v40 = vld [vmem:[#allocation227_spill] sm:$0xff]  ;;  %v19224_v57 = vld [vmem:[#allocation285_spill] sm:$0xff] }
 0x543   : > { %v4665_v45 = vpop.f32.mrb[26].mxu0 }
 0x544   : > { %v5688_v24 = vadd.f32 %v19220_v21, %v5115_v17  ;;  %v9268_v51 = vadd.f32 %v4665_v45, %v19221_v28  ;;  %v4667_v8 = vpop.f32.mrb[27].mxu0  ;;  %v6508_v10 = vadd.f32 %v15627_v50, %v6079_v63  ;;  %v19225_v17 = vld [vmem:[#allocation205_spill] sm:$0xff] }
 0x545   : > { %v15872_v45 = vpop.f32.mrb[56].mxu1  ;;  %v19226_v63 = vld [vmem:[#allocation125_spill] sm:$0xff] }
 0x546   : > { %v5125_v38 = vadd.f32 %v9268_v51, %v19222_v42  ;;  %v15867_v6 = vadd.f32 %v15796_v46, %v6508_v10  ;;  %v6086_v49 = vadd.f32 %v19223_v40, %v5688_v24  ;;  %v15875_v50 = vpop.f32.mrb[57].mxu1  ;;  %v19227_v51 = vld [vmem:[#allocation12_spill] sm:$0xff]  ;;  %v19229_v10 = vld [vmem:[#allocation289_spill] sm:$0xff] }
 0x547   : > { %v4672_v62 = vpop.f32.mrb[28].mxu0 }
 0x548   : > { %v5694_v61 = vadd.f32 %v19224_v57, %v5125_v38  ;;  %v9269_v21 = vadd.f32 %v4672_v62, %v19225_v17  ;;  %v4674_v28 = vpop.f32.mrb[29].mxu0  ;;  %v6516_v8 = vadd.f32 %v15638_v41, %v6086_v49  ;;  %v19230_v38 = vld [vmem:[#allocation10_spill] sm:$0xff]  ;;  %v19231_v49 = vld [vmem:[#allocation136_spill] sm:$0xff] }
 0x549   : > { %v15884_v62 = vpop.f32.mrb[58].mxu1 }
 0x54a   : > { %v5135_v37 = vadd.f32 %v9269_v21, %v19226_v63  ;;  %v6093_v42 = vadd.f32 %v19227_v51, %v5694_v61  ;;  %v15880_v46 = vadd.f32 %v15808_v35, %v6516_v8  ;;  %v15887_v41 = vpop.f32.mrb[59].mxu1  ;;  %v19232_v61 = vld [vmem:[#allocation361_spill] sm:$0xff]  ;;  %v19233_v63 = vld [vmem:[#allocation287_spill] sm:$0xff] }
 0x54b   : > { %v4679_v24 = vpop.f32.mrb[30].mxu0 }
 0x54c   : > { %19228 = vst [vmem:[#allocation290_spill] sm:$0xff] %v15880_v46  ;;  %v5700_v40 = vadd.f32 %v19229_v10, %v5135_v37  ;;  %v9270_v57 = vadd.f32 %v4679_v24, %v19230_v38  ;;  %v4681_v17 = vpop.f32.mrb[31].mxu0  ;;  %v6524_v28 = vadd.f32 %v15635_v39, %v6093_v42  ;;  %v19234_v37 = vld [vmem:[#allocation362_spill] sm:$0xff]  ;;  %v19235_v42 = vld [vmem:[#allocation193_spill] sm:$0xff] }
 0x54d   : > { %v15896_v24 = vpop.f32.mrb[60].mxu1 }
 0x54e   : > { %v5145_v15 = vadd.f32 %v9270_v57, %v19231_v49  ;;  %v15891_v21 = vadd.f32 %v15805_v11, %v6524_v28  ;;  %v6100_v35 = vadd.f32 %v19232_v61, %v5700_v40  ;;  %v15899_v39 = vpop.f32.mrb[61].mxu1  ;;  %v19236_v57 = vld [vmem:[#allocation126_spill] sm:$0xff]  ;;  %v19237_v28 = vld [vmem:[#allocation113_spill] sm:$0xff] }
 0x54f   : > { %v4686_v8 = vpop.f32.mrb[32].mxu0 }
 0x550   : > { %v5706_v51 = vadd.f32 %v19233_v63, %v5145_v15  ;;  %v9271_v10 = vadd.f32 %v4686_v8, %v19234_v37  ;;  %v4688_v38 = vpop.f32.mrb[33].mxu0  ;;  %v6532_v17 = vadd.f32 %v15646_v23, %v6100_v35  ;;  %v19238_v15 = vld [vmem:[#allocation201_spill] sm:$0xff]  ;;  %v19240_v35 = vld [vmem:[#allocation192_spill] sm:$0xff] }
 0x551   : > { %v15908_v8 = vpop.f32.mrb[62].mxu1 }
 0x552   : > { %v5155_v48 = vadd.f32 %v9271_v10, %v19235_v42  ;;  %v6107_v49 = vadd.f32 %v19236_v57, %v5706_v51  ;;  %v15904_v11 = vadd.f32 %v15819_v20, %v6532_v17  ;;  %19239 = vst [vmem:[#allocation293_spill] sm:$0xff] %v15908_v8  ;;  %v15911_v23 = vpop.f32.mrb[63].mxu1  ;;  %v19241_v51 = vld [vmem:[#allocation135_spill] sm:$0xff]  ;;  %v19242_v42 = vld [vmem:[#allocation114_spill] sm:$0xff] }
 0x553   : > { %v4693_v40 = vpop.f32.mrb[34].mxu0 }
 0x554   : > { %v5712_v61 = vadd.f32 %v19237_v28, %v5155_v48  ;;  %v9272_v63 = vadd.f32 %v4693_v40, %v19238_v15  ;;  %v4695_v37 = vpop.f32.mrb[35].mxu0  ;;  %v6540_v38 = vadd.f32 %v15643_v9, %v6107_v49  ;;  %v19243_v48 = vld [vmem:[#allocation40_spill] sm:$0xff]  ;;  %v19245_v49 = vld [vmem:[#allocation247_spill] sm:$0xff] }
 0x555   : > { %v15920_v40 = vpop.f32.mrb[64].mxu1 }
 0x556   : > { %v5165_v46 = vadd.f32 %v9272_v63, %v19240_v35  ;;  %v15915_v10 = vadd.f32 %v15816_v36, %v6540_v38  ;;  %v6114_v20 = vadd.f32 %v19241_v51, %v5712_v61  ;;  %19244 = vst [vmem:[#allocation294_spill] sm:$0xff] %v15920_v40  ;;  %v15923_v9 = vpop.f32.mrb[65].mxu1  ;;  %v19246_v63 = vld [vmem:[#allocation39_spill] sm:$0xff] }
 0x557   : > { %v4700_v17 = vpop.f32.mrb[36].mxu0  ;;  %v19247_v38 = vld [vmem:[#allocation295_spill] sm:$0xff] }
 0x558   : > { %v5718_v57 = vadd.f32 %v19242_v42, %v5165_v46  ;;  %v9273_v28 = vadd.f32 %v4700_v17, %v19243_v48  ;;  %v4702_v15 = vpop.f32.mrb[37].mxu0  ;;  %v6548_v37 = vadd.f32 %v15654_v5, %v6114_v20  ;;  %v19248_v46 = vld [vmem:[#allocation231_spill] sm:$0xff]  ;;  %v19250_v20 = vld [vmem:[#allocation26_spill] sm:$0xff] }
 0x559   : > { %v15932_v17 = vpop.f32.mrb[66].mxu1 }
 0x55a   : > { %v5175_v8 = vadd.f32 %v9273_v28, %v19245_v49  ;;  %v6121_v35 = vadd.f32 %v19246_v63, %v5718_v57  ;;  %v15928_v36 = vadd.f32 %v15830_v27, %v6548_v37  ;;  %19249 = vst [vmem:[#allocation296_spill] sm:$0xff] %v15932_v17  ;;  %v15935_v5 = vpop.f32.mrb[67].mxu1  ;;  %v19251_v57 = vld [vmem:[#allocation148_spill] sm:$0xff] }
 0x55b   : > { %v4707_v61 = vpop.f32.mrb[38].mxu0  ;;  %v19252_v49 = vld [vmem:[#allocation292_spill] sm:$0xff] }
 0x55c   : > { %v5724_v51 = vadd.f32 %v19247_v38, %v5175_v8  ;;  %v9274_v42 = vadd.f32 %v4707_v61, %v19248_v46  ;;  %v4709_v48 = vpop.f32.mrb[39].mxu0  ;;  %v6556_v15 = vadd.f32 %v15651_v34, %v6121_v35  ;;  %v19253_v8 = vld [vmem:[#allocation206_spill] sm:$0xff]  ;;  %v19255_v35 = vld [vmem:[#allocation129_spill] sm:$0xff] }
 0x55d   : > { %v15944_v61 = vpop.f32.mrb[68].mxu1 }
 0x55e   : > { %v5185_v40 = vadd.f32 %v9274_v42, %v19250_v20  ;;  %v15939_v28 = vadd.f32 %v15827_v53, %v6556_v15  ;;  %v6128_v27 = vadd.f32 %v19251_v57, %v5724_v51  ;;  %19254 = vst [vmem:[#allocation298_spill] sm:$0xff] %v15944_v61  ;;  %v15947_v34 = vpop.f32.mrb[69].mxu1  ;;  %v19256_v42 = vld [vmem:[#allocation37_spill] sm:$0xff]  ;;  %v19257_v15 = vld [vmem:[#allocation123_spill] sm:$0xff] }
 0x55f   : > { %v4714_v37 = vpop.f32.mrb[40].mxu0 }
 0x560   : > { %v5730_v63 = vadd.f32 %v19252_v49, %v5185_v40  ;;  %v9275_v38 = vadd.f32 %v4714_v37, %v19253_v8  ;;  %v4716_v46 = vpop.f32.mrb[41].mxu0  ;;  %v6564_v48 = vadd.f32 %v15662_v16, %v6128_v27  ;;  %v19258_v40 = vld [vmem:[#allocation68_spill] sm:$0xff]  ;;  %v19260_v27 = vld [vmem:[#allocation141_spill] sm:$0xff] }
 0x561   : > { %v15956_v37 = vpop.f32.mrb[70].mxu1 }
 0x562   : > { %v5195_v17 = vadd.f32 %v9275_v38, %v19255_v35  ;;  %v6135_v20 = vadd.f32 %v19256_v42, %v5730_v63  ;;  %v15952_v53 = vadd.f32 %v15841_v33, %v6564_v48  ;;  %19259 = vst [vmem:[#allocation299_spill] sm:$0xff] %v15956_v37  ;;  %v15959_v16 = vpop.f32.mrb[71].mxu1  ;;  %v19261_v63 = vld [vmem:[#allocation22_spill] sm:$0xff]  ;;  %v19262_v35 = vld [vmem:[#allocation297_spill] sm:$0xff] }
 0x563   : > { %v4721_v51 = vpop.f32.mrb[42].mxu0 }
 0x564   : > { %v5736_v57 = vadd.f32 %v19257_v15, %v5195_v17  ;;  %v9276_v49 = vadd.f32 %v4721_v51, %v19258_v40  ;;  %v4723_v8 = vpop.f32.mrb[43].mxu0  ;;  %v6572_v46 = vadd.f32 %v15659_v59, %v6135_v20  ;;  %v19263_v17 = vld [vmem:[#allocation48_spill] sm:$0xff] }
 0x565   : > { %v15968_v51 = vpop.f32.mrb[72].mxu1  ;;  %v19265_v20 = vld [vmem:[#allocation144_spill] sm:$0xff] }
 0x566   : > { %v5205_v61 = vadd.f32 %v9276_v49, %v19260_v27  ;;  %v15963_v38 = vadd.f32 %v15838_v18, %v6572_v46  ;;  %v6142_v33 = vadd.f32 %v19261_v63, %v5736_v57  ;;  %19264 = vst [vmem:[#allocation300_spill] sm:$0xff] %v15968_v51  ;;  %v15971_v59 = vpop.f32.mrb[73].mxu1  ;;  %v19266_v49 = vld [vmem:[#allocation152_spill] sm:$0xff]  ;;  %v19267_v46 = vld [vmem:[#allocation158_spill] sm:$0xff] }
 0x567   : > { %v4728_v48 = vpop.f32.mrb[44].mxu0 }
 0x568   : > { %v5742_v42 = vadd.f32 %v19262_v35, %v5205_v61  ;;  %v9277_v15 = vadd.f32 %v4728_v48, %v19263_v17  ;;  %v4730_v40 = vpop.f32.mrb[45].mxu0  ;;  %v6580_v8 = vadd.f32 %v15670_v56, %v6142_v33  ;;  %v19268_v61 = vld [vmem:[#allocation25_spill] sm:$0xff]  ;;  %v19270_v33 = vld [vmem:[#allocation248_spill] sm:$0xff] }
 0x569   : > { %v15980_v48 = vpop.f32.mrb[74].mxu1 }
 0x56a   : > { %v5215_v37 = vadd.f32 %v9277_v15, %v19265_v20  ;;  %v6149_v27 = vadd.f32 %v19266_v49, %v5742_v42  ;;  %v15976_v18 = vadd.f32 %v15852_v43, %v6580_v8  ;;  %19269 = vst [vmem:[#allocation302_spill] sm:$0xff] %v15980_v48  ;;  %v15983_v56 = vpop.f32.mrb[75].mxu1  ;;  %v19271_v42 = vld [vmem:[#allocation160_spill] sm:$0xff]  ;;  %v19272_v20 = vld [vmem:[#allocation121_spill] sm:$0xff] }
 0x56b   : > { %v4735_v57 = vpop.f32.mrb[46].mxu0 }
 0x56c   : > { %v5748_v63 = vadd.f32 %v19267_v46, %v5215_v37  ;;  %v9278_v35 = vadd.f32 %v4735_v57, %v19268_v61  ;;  %v4737_v17 = vpop.f32.mrb[47].mxu0  ;;  %v6588_v40 = vadd.f32 %v15667_v32, %v6149_v27  ;;  %v19273_v37 = vld [vmem:[#allocation234_spill] sm:$0xff] }
 0x56d   : > { %v15992_v57 = vpop.f32.mrb[76].mxu1  ;;  %v19275_v27 = vld [vmem:[#allocation30_spill] sm:$0xff] }
 0x56e   : > { %v5225_v51 = vadd.f32 %v9278_v35, %v19270_v33  ;;  %v15987_v15 = vadd.f32 %v15849_v26, %v6588_v40  ;;  %v6156_v43 = vadd.f32 %v19271_v42, %v5748_v63  ;;  %19274 = vst [vmem:[#allocation304_spill] sm:$0xff] %v15992_v57  ;;  %v15995_v32 = vpop.f32.mrb[77].mxu1  ;;  %v19276_v35 = vld [vmem:[#allocation43_spill] sm:$0xff] }
 0x56f   : > { %v4742_v8 = vpop.f32.mrb[48].mxu0  ;;  %v19277_v33 = vld [vmem:[#allocation303_spill] sm:$0xff] }
 0x570   : > { %v5754_v49 = vadd.f32 %v19272_v20, %v5225_v51  ;;  %v9279_v46 = vadd.f32 %v4742_v8, %v19273_v37  ;;  %v4744_v61 = vpop.f32.mrb[49].mxu0  ;;  %v6596_v17 = vadd.f32 %v15678_v22, %v6156_v43  ;;  %v19278_v42 = vld [vmem:[#allocation91_spill] sm:$0xff] }
 0x571   : > { %v16004_v20 = vpop.f32.mrb[78].mxu1  ;;  %v19279_v61 = vld [vmem:[#allocation140_spill] sm:$0xff] }
 0x572   : > { %v5235_v48 = vadd.f32 %v9279_v46, %v19275_v27  ;;  %v6163_v26 = vadd.f32 %v19276_v35, %v5754_v49  ;;  %v16000_v40 = vadd.f32 %v15863_v47, %v6596_v17  ;;  %v16007_v43 = vpop.f32.mrb[79].mxu1  ;;  %v19280_v49 = vld [vmem:[#allocation237_spill] sm:$0xff] }
 0x573   : > { %v4749_v63 = vpop.f32.mrb[50].mxu0  ;;  %v19281_v35 = vld [vmem:[#allocation301_spill] sm:$0xff] }
 0x574   : > { %v5760_v51 = vadd.f32 %v19277_v33, %v5235_v48  ;;  %v9280_v8 = vadd.f32 %v4749_v63, %v19278_v42  ;;  %v4751_v37 = vpop.f32.mrb[51].mxu0  ;;  %v6604_v22 = vadd.f32 %v15675_v3, %v6163_v26  ;;  %v19282_v48 = vld [vmem:[#allocation266_spill] sm:$0xff]  ;;  %v19283_v42 = vld [vmem:[#allocation313_spill] sm:$0xff] }
 0x575   : > { %v8673_v3 = vpop.f32.mrb[80].mxu1 }
 0x576   : > { %v5245_v46 = vadd.f32 %v9280_v8, %v19279_v61  ;;  %v16011_v27 = vadd.f32 %v15860_v1, %v6604_v22  ;;  %v6170_v47 = vadd.f32 %v19280_v49, %v5760_v51  ;;  %v7290_v63 = vadd.f32 %v8673_v3, %v15769_v7  ;;  %v7283_v51 = vpop.f32.mrb[81].mxu1  ;;  %v19284_v22 = vld [vmem:[#allocation44_spill] sm:$0xff]  ;;  %v19287_v3 = vld [vmem:[#allocation147_spill] sm:$0xff] }
 0x577   : > { %v4756_v17 = vpop.f32.mrb[52].mxu0  ;;  %v7284_v37 = vadd.f32 %v7283_v51, %v15764_v13 }
 0x578   : > { %v5766_v57 = vadd.f32 %v19281_v35, %v5245_v46  ;;  %v9281_v33 = vadd.f32 %v4756_v17, %v19282_v48  ;;  %v4758_v26 = vpop.f32.mrb[53].mxu0  ;;  %v6612_v1 = vadd.f32 %v15686_v19, %v6170_v47  ;;  %7571 = vst.msk [vmem:[%s16021_s4 + $0x8] sm:$0xff] %vm7569_vm0, %v7290_v63  ;;  %v19285_v17 = vld [vmem:[#allocation134_spill] sm:$0xff]  ;;  %v19286_v19 = vld [vmem:[#allocation21_spill] sm:$0xff]  ;;  %v19288_v63 = vld [vmem:[#allocation344_spill] sm:$0xff] }
 0x579   : > { %7570 = vst.msk [vmem:[%s16021_s4] sm:$0xff] %vm7569_vm0, %v7284_v37  ;;  %v8676_v47 = vpop.f32.mrb[82].mxu1 }
 0x57a   : > { %v5255_v8 = vadd.f32 %v9281_v33, %v19283_v42  ;;  %v6177_v61 = vadd.f32 %v19284_v22, %v5766_v57  ;;  %v16029_v46 = vadd.f32 %v15875_v50, %v6612_v1  ;;  %v7302_v57 = vadd.f32 %v8676_v47, %v15783_v12  ;;  %v7295_v33 = vpop.f32.mrb[83].mxu1 }
 0x57b   : > { %v4763_v49 = vpop.f32.mrb[54].mxu0  ;;  %v7296_v26 = vadd.f32 %v7295_v33, %v15777_v30 }
 0x57c   : > { %v5772_v35 = vadd.f32 %v19285_v17, %v5255_v8  ;;  %v9282_v7 = vadd.f32 %v4763_v49, %v19286_v19  ;;  %v4765_v48 = vpop.f32.mrb[55].mxu0  ;;  %v6620_v13 = vadd.f32 %v15683_v58, %v6177_v61  ;;  %7573 = vst.msk [vmem:[%s16021_s4 + $0x18] sm:$0xff] %vm7569_vm0, %v7302_v57  ;;  %v19289_v8 = vld [vmem:[#allocation305_spill] sm:$0xff]  ;;  %v19290_v58 = vld [vmem:[#allocation94_spill] sm:$0xff] }
 0x57d   : > { %7572 = vst.msk [vmem:[%s16021_s4 + $0x10] sm:$0xff] %vm7569_vm0, %v7296_v26  ;;  %v8679_v22 = vpop.f32.mrb[84].mxu1  ;;  %v19291_v17 = vld [vmem:[#allocation153_spill] sm:$0xff] }
 0x57e   : > { %v5265_v50 = vadd.f32 %v9282_v7, %v19287_v3  ;;  %v16042_v1 = vadd.f32 %v15872_v45, %v6620_v13  ;;  %v6184_v51 = vadd.f32 %v19288_v63, %v5772_v35  ;;  %v7314_v45 = vadd.f32 %v8679_v22, %v15800_v55  ;;  %v7307_v49 = vpop.f32.mrb[85].mxu1  ;;  %v19292_v7 = vld [vmem:[#allocation168_spill] sm:$0xff]  ;;  %v19293_v57 = vld [vmem:[#allocation309_spill] sm:$0xff] }
 0x57f   : > { %v4770_v42 = vpop.f32.mrb[56].mxu0  ;;  %v7308_v35 = vadd.f32 %v7307_v49, %v15790_v52  ;;  %v19297_v22 = vld [vmem:[#allocation133_spill] sm:$0xff] }
 0x580   : > { %v5778_v37 = vadd.f32 %v19289_v8, %v5265_v50  ;;  %v9283_v12 = vadd.f32 %v4770_v42, %v19290_v58  ;;  %v4772_v61 = vpop.f32.mrb[57].mxu0  ;;  %v6628_v30 = vadd.f32 %v15694_v44, %v6184_v51  ;;  %7575 = vst.msk [vmem:[%s16021_s4 + $0x28] sm:$0xff] %vm7569_vm0, %v7314_v45  ;;  %v19294_v44 = vld [vmem:[#allocation281_spill] sm:$0xff]  ;;  %v19295_v51 = vld [vmem:[#allocation19_spill] sm:$0xff] }
 0x581   : > { %7574 = vst.msk [vmem:[%s16021_s4 + $0x20] sm:$0xff] %vm7569_vm0, %v7308_v35  ;;  %v8682_v3 = vpop.f32.mrb[86].mxu1 }
 0x582   : > { %v5275_v19 = vadd.f32 %v9283_v12, %v19291_v17  ;;  %v6191_v47 = vadd.f32 %v19292_v7, %v5778_v37  ;;  %v16057_v48 = vadd.f32 %v15887_v41, %v6628_v30  ;;  %v7326_v26 = vadd.f32 %v8682_v3, %v15822_v54  ;;  %v7319_v63 = vpop.f32.mrb[87].mxu1  ;;  %v19296_v37 = vld [vmem:[#allocation212_spill] sm:$0xff]  ;;  %v19298_v54 = vld [vmem:[#allocation173_spill] sm:$0xff] }
 0x583   : > { %v4777_v13 = vpop.f32.mrb[58].mxu0  ;;  %v7320_v42 = vadd.f32 %v7319_v63, %v15812_v29  ;;  %v19299_v17 = vld [vmem:[#allocation253_spill] sm:$0xff] }
 0x584   : > { %v5784_v33 = vadd.f32 %v19293_v57, %v5275_v19  ;;  %v9284_v55 = vadd.f32 %v4777_v13, %v19294_v44  ;;  %v4779_v50 = vpop.f32.mrb[59].mxu0  ;;  %v6636_v52 = vadd.f32 %v15691_v31, %v6191_v47  ;;  %7577 = vst.msk [vmem:[%s16021_s4 + $0x38] sm:$0xff] %vm7569_vm0, %v7326_v26  ;;  %v19300_v7 = vld [vmem:[#allocation345_spill] sm:$0xff]  ;;  %v19303_v26 = vld [vmem:[#allocation142_spill] sm:$0xff] }
 0x585   : > { %7576 = vst.msk [vmem:[%s16021_s4 + $0x30] sm:$0xff] %vm7569_vm0, %v7320_v42  ;;  %v8685_v30 = vpop.f32.mrb[88].mxu1 }
 0x586   : > { %v5285_v41 = vadd.f32 %v9284_v55, %v19295_v51  ;;  %v16070_v8 = vadd.f32 %v15884_v62, %v6636_v52  ;;  %v6198_v58 = vadd.f32 %v19296_v37, %v5784_v33  ;;  %v7338_v62 = vadd.f32 %v8685_v30, %v15844_v14  ;;  %v7331_v49 = vpop.f32.mrb[89].mxu1  ;;  %v19301_v33 = vld [vmem:[#allocation314_spill] sm:$0xff] }
 0x587   : > { %v4784_v12 = vpop.f32.mrb[60].mxu0  ;;  %v7332_v35 = vadd.f32 %v7331_v49, %v15834_v25 }
 0x588   : > { %v5790_v61 = vadd.f32 %v19297_v22, %v5285_v41  ;;  %v9285_v31 = vadd.f32 %v4784_v12, %v19298_v54  ;;  %v4786_v45 = vpop.f32.mrb[61].mxu0  ;;  %v6644_v29 = vadd.f32 %v15702_v0, %v6198_v58  ;;  %7579 = vst.msk [vmem:[%s16021_s4 + $0x48] sm:$0xff] %vm7569_vm0, %v7338_v62  ;;  %v19302_v0 = vld [vmem:[#allocation174_spill] sm:$0xff]  ;;  %v19304_v41 = vld [vmem:[#allocation171_spill] sm:$0xff] }
 0x589   : > { %7578 = vst.msk [vmem:[%s16021_s4 + $0x40] sm:$0xff] %vm7569_vm0, %v7332_v35  ;;  %v8688_v55 = vpop.f32.mrb[90].mxu1  ;;  %v19305_v58 = vld [vmem:[#allocation311_spill] sm:$0xff]  ;;  %v19308_v45 = vld [vmem:[#allocation290_spill] sm:$0xff] }
 0x58a   : > { %v5295_v19 = vadd.f32 %v9285_v31, %v19299_v17  ;;  %v6205_v47 = vadd.f32 %v19300_v7, %v5790_v61  ;;  %v16085_v13 = vadd.f32 %v15899_v39, %v6644_v29  ;;  %v7350_v50 = vadd.f32 %v8688_v55, %v15867_v6  ;;  %v7343_v52 = vpop.f32.mrb[91].mxu1  ;;  %v19307_v31 = vld [vmem:[#allocation145_spill] sm:$0xff]  ;;  %v19309_v62 = vld [vmem:[#allocation178_spill] sm:$0xff]  ;;  %v19310_v35 = vld [vmem:[#allocation143_spill] sm:$0xff] }
 0x58b   : > { %v4791_v57 = vpop.f32.mrb[62].mxu0  ;;  %v7344_v63 = vadd.f32 %v7343_v52, %v15856_v4  ;;  %v19313_v55 = vld [vmem:[#allocation161_spill] sm:$0xff]  ;;  %v19315_v52 = vld [vmem:[#allocation6_spill] sm:$0xff] }
 0x58c   : > { %v5796_v44 = vadd.f32 %v19301_v33, %v5295_v19  ;;  %v9286_v14 = vadd.f32 %v4791_v57, %v19302_v0  ;;  %v4793_v3 = vpop.f32.mrb[63].mxu0  ;;  %v6652_v25 = vadd.f32 %v15699_v2, %v6205_v47  ;;  %7581 = vst.msk [vmem:[%s16021_s4 + $0x58] sm:$0xff] %vm7569_vm0, %v7350_v50  ;;  %v19306_v2 = vld [vmem:[#allocation8_spill] sm:$0xff]  ;;  %v19312_v33 = vld [vmem:[#allocation122_spill] sm:$0xff] }
 0x58d   : > { %7580 = vst.msk [vmem:[%s16021_s4 + $0x50] sm:$0xff] %vm7569_vm0, %v7344_v63  ;;  %v8691_v22 = vpop.f32.mrb[92].mxu1  ;;  %v19316_v63 = vld [vmem:[#allocation137_spill] sm:$0xff] }
 0x58e   : > { %v5305_v39 = vadd.f32 %v9286_v14, %v19303_v26  ;;  %v16098_v51 = vadd.f32 %v15896_v24, %v6652_v25  ;;  %v6212_v42 = vadd.f32 %v19304_v41, %v5796_v44  ;;  %v7362_v24 = vadd.f32 %v8691_v22, %v15891_v21  ;;  %v7355_v54 = vpop.f32.mrb[93].mxu1  ;;  %v19314_v25 = vld [vmem:[#allocation293_spill] sm:$0xff]  ;;  %v19319_v22 = vld [vmem:[#allocation159_spill] sm:$0xff] }
 0x58f   : > { %v4798_v37 = vpop.f32.mrb[64].mxu0  ;;  %v7356_v29 = vadd.f32 %v7355_v54, %v19308_v45  ;;  %v19321_v45 = vld [vmem:[#allocation318_spill] sm:$0xff] }
 0x590   : > { %v5802_v12 = vadd.f32 %v19305_v58, %v5305_v39  ;;  %v9287_v6 = vadd.f32 %v4798_v37, %v19306_v2  ;;  %v4800_v61 = vpop.f32.mrb[65].mxu0  ;;  %v6660_v4 = vadd.f32 %v15710_v60, %v6212_v42  ;;  %7583 = vst.msk [vmem:[%s16021_s4 + $0x68] sm:$0xff] %vm7569_vm0, %v7362_v24  ;;  %v19311_v60 = vld [vmem:[#allocation100_spill] sm:$0xff]  ;;  %v19320_v24 = vld [vmem:[#allocation73_spill] sm:$0xff] }
 0x591   : > { %7582 = vst.msk [vmem:[%s16021_s4 + $0x60] sm:$0xff] %vm7569_vm0, %v7356_v29  ;;  %v8694_v47 = vpop.f32.mrb[94].mxu1 }
 0x592   : > { %v5315_v30 = vadd.f32 %v9287_v6, %v19307_v31  ;;  %v6219_v49 = vadd.f32 %v19309_v62, %v5802_v12  ;;  %v16113_v17 = vadd.f32 %v15911_v23, %v6660_v4  ;;  %v7374_v0 = vadd.f32 %v8694_v47, %v15915_v10  ;;  %v7367_v14 = vpop.f32.mrb[95].mxu1  ;;  %v19317_v10 = vld [vmem:[#allocation277_spill] sm:$0xff]  ;;  %v19318_v12 = vld [vmem:[#allocation34_spill] sm:$0xff] }
 0x593   : > { %v4805_v19 = vpop.f32.mrb[66].mxu0  ;;  %v7368_v3 = vadd.f32 %v7367_v14, %v15904_v11 }
 0x594   : > { %v5808_v7 = vadd.f32 %v19310_v35, %v5315_v30  ;;  %v9288_v21 = vadd.f32 %v4805_v19, %v19311_v60  ;;  %v4807_v57 = vpop.f32.mrb[67].mxu0  ;;  %v6668_v44 = vadd.f32 %v19312_v33, %v6219_v49  ;;  %7585 = vst.msk [vmem:[%s16021_s4 + $0x78] sm:$0xff] %vm7569_vm0, %v7374_v0  ;;  %v19323_v35 = vld [vmem:[#allocation197_spill] sm:$0xff] }
 0x595   : > { %7584 = vst.msk [vmem:[%s16021_s4 + $0x70] sm:$0xff] %vm7569_vm0, %v7368_v3  ;;  %v8697_v37 = vpop.f32.mrb[96].mxu1  ;;  %v19325_v57 = vld [vmem:[#allocation294_spill] sm:$0xff] }
 0x596   : > { %v5325_v23 = vadd.f32 %v9288_v21, %v19313_v55  ;;  %v16126_v50 = vadd.f32 %v19314_v25, %v6668_v44  ;;  %v6226_v26 = vadd.f32 %v19315_v52, %v5808_v7  ;;  %v7386_v2 = vadd.f32 %v8697_v37, %v15939_v28  ;;  %v7379_v6 = vpop.f32.mrb[97].mxu1  ;;  %v19322_v28 = vld [vmem:[#allocation238_spill] sm:$0xff]  ;;  %v19326_v44 = vld [vmem:[#allocation183_spill] sm:$0xff] }
 0x597   : > { %v4812_v39 = vpop.f32.mrb[68].mxu0  ;;  %v7380_v4 = vadd.f32 %v7379_v6, %v15928_v36  ;;  %v19324_v21 = vld [vmem:[#allocation254_spill] sm:$0xff] }
 0x598   : > { %v5814_v41 = vadd.f32 %v19316_v63, %v5325_v23  ;;  %v9289_v42 = vadd.f32 %v4812_v39, %v19317_v10  ;;  %v4814_v58 = vpop.f32.mrb[69].mxu0  ;;  %v6676_v11 = vadd.f32 %v19318_v12, %v6226_v26  ;;  %7587 = vst.msk [vmem:[%s16021_s4 + $0x88] sm:$0xff] %vm7569_vm0, %v7386_v2  ;;  %v19327_v55 = vld [vmem:[#allocation146_spill] sm:$0xff]  ;;  %v19329_v26 = vld [vmem:[#allocation80_spill] sm:$0xff]  ;;  %v19332_v2 = vld [vmem:[#allocation321_spill] sm:$0xff] }
 0x599   : > { %7586 = vst.msk [vmem:[%s16021_s4 + $0x80] sm:$0xff] %vm7569_vm0, %v7380_v4  ;;  %v8700_v49 = vpop.f32.mrb[98].mxu1  ;;  %v19331_v37 = vld [vmem:[#allocation182_spill] sm:$0xff] }
 0x59a   : > { %v5335_v61 = vadd.f32 %v9289_v42, %v19319_v22  ;;  %v6233_v54 = vadd.f32 %v19320_v24, %v5814_v41  ;;  %v16141_v31 = vadd.f32 %v15923_v9, %v6676_v11  ;;  %v7398_v7 = vadd.f32 %v8700_v49, %v15963_v38  ;;  %v7391_v60 = vpop.f32.mrb[99].mxu1  ;;  %v19328_v38 = vld [vmem:[#allocation105_spill] sm:$0xff]  ;;  %v19334_v24 = vld [vmem:[#allocation151_spill] sm:$0xff] }
 0x59b   : > { %v4819_v30 = vpop.f32.mrb[70].mxu0  ;;  %v7392_v47 = vadd.f32 %v7391_v60, %v15952_v53  ;;  %v19330_v41 = vld [vmem:[#allocation33_spill] sm:$0xff]  ;;  %v19337_v49 = vld [vmem:[#allocation187_spill] sm:$0xff] }
 0x59c   : > { %v5820_v29 = vadd.f32 %v19321_v45, %v5335_v61  ;;  %v9290_v62 = vadd.f32 %v4819_v30, %v19322_v28  ;;  %v4821_v19 = vpop.f32.mrb[71].mxu0  ;;  %v6684_v36 = vadd.f32 %v19323_v35, %v6233_v54  ;;  %7589 = vst.msk [vmem:[%s16021_s4 + $0x98] sm:$0xff] %vm7569_vm0, %v7398_v7  ;;  %v19335_v45 = vld [vmem:[#allocation150_spill] sm:$0xff]  ;;  %v19336_v28 = vld [vmem:[#allocation296_spill] sm:$0xff] }
 0x59d   : > { %7588 = vst.msk [vmem:[%s16021_s4 + $0x90] sm:$0xff] %vm7569_vm0, %v7392_v47  ;;  %v8703_v25 = vpop.f32.mrb[100].mxu1  ;;  %v19340_v47 = vld [vmem:[#allocation64_spill] sm:$0xff] }
 0x59e   : > { %v5345_v9 = vadd.f32 %v9290_v62, %v19324_v21  ;;  %v16154_v33 = vadd.f32 %v19325_v57, %v6684_v36  ;;  %v6240_v0 = vadd.f32 %v19326_v44, %v5820_v29  ;;  %v7410_v39 = vadd.f32 %v8703_v25, %v15987_v15  ;;  %v7403_v63 = vpop.f32.mrb[101].mxu1  ;;  %v19333_v15 = vld [vmem:[#allocation99_spill] sm:$0xff]  ;;  %v19338_v36 = vld [vmem:[#allocation149_spill] sm:$0xff] }
 0x59f   : > { %v4826_v14 = vpop.f32.mrb[72].mxu0  ;;  %v7404_v42 = vadd.f32 %v7403_v63, %v15976_v18 }
 0x5a0   : > { %v5826_v23 = vadd.f32 %v19327_v55, %v5345_v9  ;;  %v9291_v3 = vadd.f32 %v4826_v14, %v19328_v38  ;;  %v4828_v52 = vpop.f32.mrb[73].mxu0  ;;  %v6692_v53 = vadd.f32 %v19329_v26, %v6240_v0  ;;  %7591 = vst.msk [vmem:[%s16021_s4 + $0xa8] sm:$0xff] %vm7569_vm0, %v7410_v39  ;;  %v19341_v0 = vld [vmem:[#allocation323_spill] sm:$0xff] }
 0x5a1   : > { %7590 = vst.msk [vmem:[%s16021_s4 + $0xa0] sm:$0xff] %vm7569_vm0, %v7404_v42  ;;  %v8706_v61 = vpop.f32.mrb[102].mxu1  ;;  %v19343_v52 = vld [vmem:[#allocation324_spill] sm:$0xff] }
 0x5a2   : > { %v5355_v10 = vadd.f32 %v9291_v3, %v19330_v41  ;;  %v6247_v58 = vadd.f32 %v19331_v37, %v5826_v23  ;;  %v16169_v12 = vadd.f32 %v15935_v5, %v6692_v53  ;;  %v7422_v54 = vadd.f32 %v8706_v61, %v16011_v27  ;;  %v7415_v30 = vpop.f32.mrb[103].mxu1  ;;  %v19339_v27 = vld [vmem:[#allocation181_spill] sm:$0xff]  ;;  %v19342_v23 = vld [vmem:[#allocation86_spill] sm:$0xff]  ;;  %v19346_v37 = vld [vmem:[#allocation176_spill] sm:$0xff] }
 0x5a3   : > { %v4833_v11 = vpop.f32.mrb[74].mxu0  ;;  %v7416_v29 = vadd.f32 %v7415_v30, %v16000_v40  ;;  %v19345_v41 = vld [vmem:[#allocation162_spill] sm:$0xff]  ;;  %v19351_v30 = vld [vmem:[#allocation279_spill] sm:$0xff] }
 0x5a4   : > { %v5832_v6 = vadd.f32 %v19332_v2, %v5355_v10  ;;  %v9292_v22 = vadd.f32 %v4833_v11, %v19333_v15  ;;  %v4835_v4 = vpop.f32.mrb[75].mxu0  ;;  %v6700_v18 = vadd.f32 %v19334_v24, %v6247_v58  ;;  %7593 = vst.msk [vmem:[%s16021_s4 + $0xb8] sm:$0xff] %vm7569_vm0, %v7422_v54  ;;  %v19347_v11 = vld [vmem:[#allocation298_spill] sm:$0xff] }
 0x5a5   : > { %7592 = vst.msk [vmem:[%s16021_s4 + $0xb0] sm:$0xff] %vm7569_vm0, %v7416_v29  ;;  %v8709_v21 = vpop.f32.mrb[104].mxu1  ;;  %v19349_v61 = vld [vmem:[#allocation154_spill] sm:$0xff]  ;;  %v19352_v29 = vld [vmem:[#allocation175_spill] sm:$0xff] }
 0x5a6   : > { %v5365_v5 = vadd.f32 %v9292_v22, %v19335_v45  ;;  %v16182_v62 = vadd.f32 %v19336_v28, %v6700_v18  ;;  %v6254_v19 = vadd.f32 %v19337_v49, %v5832_v6  ;;  %v7434_v57 = vadd.f32 %v8709_v21, %v16042_v1  ;;  %v7427_v44 = vpop.f32.mrb[105].mxu1  ;;  %v19344_v1 = vld [vmem:[#allocation184_spill] sm:$0xff] }
 0x5a7   : > { %v4840_v35 = vpop.f32.mrb[76].mxu0  ;;  %v7428_v55 = vadd.f32 %v7427_v44, %v16029_v46  ;;  %v19348_v6 = vld [vmem:[#allocation88_spill] sm:$0xff] }
 0x5a8   : > { %v5838_v7 = vadd.f32 %v19338_v36, %v5365_v5  ;;  %v9293_v60 = vadd.f32 %v4840_v35, %v19339_v27  ;;  %v4842_v9 = vpop.f32.mrb[77].mxu0  ;;  %v6708_v40 = vadd.f32 %v19340_v47, %v6254_v19  ;;  %7595 = vst.msk [vmem:[%s16021_s4 + $0xc8] sm:$0xff] %vm7569_vm0, %v7434_v57  ;;  %v19353_v19 = vld [vmem:[#allocation186_spill] sm:$0xff] }
 0x5a9   : > { %7594 = vst.msk [vmem:[%s16021_s4 + $0xc0] sm:$0xff] %vm7569_vm0, %v7428_v55  ;;  %v8712_v39 = vpop.f32.mrb[106].mxu1  ;;  %v19354_v27 = vld [vmem:[#allocation166_spill] sm:$0xff]  ;;  %v19358_v55 = vld [vmem:[#allocation299_spill] sm:$0xff] }
 0x5aa   : > { %v5375_v14 = vadd.f32 %v9293_v60, %v19341_v0  ;;  %v6261_v38 = vadd.f32 %v19342_v23, %v5838_v7  ;;  %v16197_v3 = vadd.f32 %v15947_v34, %v6708_v40  ;;  %v7446_v10 = vadd.f32 %v8712_v39, %v16070_v8  ;;  %v7439_v42 = vpop.f32.mrb[107].mxu1  ;;  %v19350_v8 = vld [vmem:[#allocation239_spill] sm:$0xff]  ;;  %v19356_v40 = vld [vmem:[#allocation278_spill] sm:$0xff]  ;;  %v19357_v0 = vld [vmem:[#allocation32_spill] sm:$0xff] }
 0x5ab   : > { %v4847_v25 = vpop.f32.mrb[78].mxu0  ;;  %v7440_v58 = vadd.f32 %v7439_v42, %v16057_v48  ;;  %v19363_v42 = vld [vmem:[#allocation259_spill] sm:$0xff] }
 0x5ac   : > { %v5844_v26 = vadd.f32 %v19343_v52, %v5375_v14  ;;  %v9294_v53 = vadd.f32 %v4847_v25, %v19344_v1  ;;  %v4849_v63 = vpop.f32.mrb[79].mxu0  ;;  %v6716_v46 = vadd.f32 %v19345_v41, %v6261_v38  ;;  %7597 = vst.msk [vmem:[%s16021_s4 + $0xd8] sm:$0xff] %vm7569_vm0, %v7446_v10  ;;  %v19359_v38 = vld [vmem:[#allocation246_spill] sm:$0xff]  ;;  %v19362_v41 = vld [vmem:[#allocation280_spill] sm:$0xff] }
 0x5ad   : > { %7596 = vst.msk [vmem:[%s16021_s4 + $0xd0] sm:$0xff] %vm7569_vm0, %v7440_v58  ;;  %v8715_v18 = vpop.f32.mrb[108].mxu1  ;;  %v19364_v58 = vld [vmem:[#allocation189_spill] sm:$0xff] }
 0x5ae   : > { %v5385_v34 = vadd.f32 %v9294_v53, %v19346_v37  ;;  %v16210_v2 = vadd.f32 %v19347_v11, %v6716_v46  ;;  %v6268_v15 = vadd.f32 %v19348_v6, %v5844_v26  ;;  %v7458_v45 = vadd.f32 %v8715_v18, %v16098_v51  ;;  %v7451_v5 = vpop.f32.mrb[109].mxu1  ;;  %v19355_v51 = vld [vmem:[#allocation112_spill] sm:$0xff]  ;;  %v19360_v26 = vld [vmem:[#allocation326_spill] sm:$0xff]  ;;  %v19367_v18 = vld [vmem:[#allocation89_spill] sm:$0xff] }
 0x5af   : > { %v4854_v22 = vpop.f32.mrb[80].mxu0  ;;  %v7452_v49 = vadd.f32 %v7451_v5, %v16085_v13  ;;  %v19361_v53 = vld [vmem:[#allocation98_spill] sm:$0xff]  ;;  %v19369_v5 = vld [vmem:[#allocation300_spill] sm:$0xff] }
 0x5b0   : > { %v5850_v4 = vadd.f32 %v19349_v61, %v5385_v34  ;;  %v9295_v24 = vadd.f32 %v4854_v22, %v19350_v8  ;;  %v4856_v54 = vpop.f32.mrb[81].mxu0  ;;  %v6724_v48 = vadd.f32 %v19351_v30, %v6268_v15  ;;  %7599 = vst.msk [vmem:[%s16021_s4 + $0xe8] sm:$0xff] %vm7569_vm0, %v7458_v45  ;;  %v19365_v22 = vld [vmem:[#allocation330_spill] sm:$0xff] }
 0x5b1   : > { %7598 = vst.msk [vmem:[%s16021_s4 + $0xe0] sm:$0xff] %vm7569_vm0, %v7452_v49  ;;  %v8718_v9 = vpop.f32.mrb[110].mxu1 }
 0x5b2   : > { %v5395_v28 = vadd.f32 %v9295_v24, %v19352_v29  ;;  %v6275_v35 = vadd.f32 %v19353_v19, %v5850_v4  ;;  %v16225_v36 = vadd.f32 %v15959_v16, %v6724_v48  ;;  %v7470_v57 = vadd.f32 %v8718_v9, %v16126_v50  ;;  %v7463_v44 = vpop.f32.mrb[111].mxu1  ;;  %v19366_v4 = vld [vmem:[#allocation24_spill] sm:$0xff]  ;;  %v19368_v48 = vld [vmem:[#allocation157_spill] sm:$0xff] }
 0x5b3   : > { %v4861_v7 = vpop.f32.mrb[82].mxu0  ;;  %v7464_v14 = vadd.f32 %v7463_v44, %v16113_v17  ;;  %v19375_v44 = vld [vmem:[#allocation58_spill] sm:$0xff] }
 0x5b4   : > { %v5856_v60 = vadd.f32 %v19354_v27, %v5395_v28  ;;  %v9296_v21 = vadd.f32 %v4861_v7, %v19355_v51  ;;  %v4863_v47 = vpop.f32.mrb[83].mxu0  ;;  %v6732_v13 = vadd.f32 %v19356_v40, %v6275_v35  ;;  %7601 = vst.msk [vmem:[%s16021_s4 + $0xf8] sm:$0xff] %vm7569_vm0, %v7470_v57  ;;  %v19370_v28 = vld [vmem:[#allocation194_spill] sm:$0xff]  ;;  %v19371_v35 = vld [vmem:[#allocation329_spill] sm:$0xff]  ;;  %v19372_v27 = vld [vmem:[#allocation115_spill] sm:$0xff] }
 0x5b5   : > { %7600 = vst.msk [vmem:[%s16021_s4 + $0xf0] sm:$0xff] %vm7569_vm0, %v7464_v14  ;;  %v8721_v39 = vpop.f32.mrb[112].mxu1  ;;  %v19374_v40 = vld [vmem:[#allocation332_spill] sm:$0xff] }
 0x5b6   : > { %v5405_v16 = vadd.f32 %v9296_v21, %v19357_v0  ;;  %v7149_v23 = vadd.f32 %v19358_v55, %v6732_v13  ;;  %v6282_v25 = vadd.f32 %v19359_v38, %v5856_v60  ;;  %v7482_v17 = vadd.f32 %v8721_v39, %v16154_v33  ;;  %v7475_v10 = vpop.f32.mrb[113].mxu1  ;;  %v19373_v21 = vld [vmem:[#allocation284_spill] sm:$0xff] }
 0x5b7   : > { %v4868_v52 = vpop.f32.mrb[84].mxu0  ;;  %v7476_v34 = vadd.f32 %v7475_v10, %v16141_v31  ;;  %v19376_v55 = vld [vmem:[#allocation172_spill] sm:$0xff] }
 0x5b8   : > { %v5862_v1 = vadd.f32 %v19360_v26, %v5405_v16  ;;  %v9297_v50 = vadd.f32 %v4868_v52, %v19361_v53  ;;  %v4870_v63 = vpop.f32.mrb[85].mxu0  ;;  %v6740_v46 = vadd.f32 %v19362_v41, %v6282_v25  ;;  %7603 = vst.msk [vmem:[%s16021_s4 + $0x108] sm:$0xff] %vm7569_vm0, %v7482_v17  ;;  %v19377_v25 = vld [vmem:[#allocation102_spill] sm:$0xff]  ;;  %v19379_v39 = vld [vmem:[#allocation180_spill] sm:$0xff]  ;;  %v19381_v17 = vld [vmem:[#allocation249_spill] sm:$0xff] }
 0x5b9   : > { %7602 = vst.msk [vmem:[%s16021_s4 + $0x100] sm:$0xff] %vm7569_vm0, %v7476_v34  ;;  %v8724_v8 = vpop.f32.mrb[114].mxu1  ;;  %v19380_v41 = vld [vmem:[#allocation302_spill] sm:$0xff] }
 0x5ba   : > { %v5415_v37 = vadd.f32 %v9297_v50, %v19363_v42  ;;  %v6289_v11 = vadd.f32 %v19364_v58, %v5862_v1  ;;  %v7155_v6 = vadd.f32 %v15971_v59, %v6740_v46  ;;  %v7494_v31 = vadd.f32 %v8724_v8, %v16182_v62  ;;  %v7487_v30 = vpop.f32.mrb[115].mxu1  ;;  %v19378_v1 = vld [vmem:[#allocation92_spill] sm:$0xff]  ;;  %v19383_v58 = vld [vmem:[#allocation185_spill] sm:$0xff] }
 0x5bb   : > { %v4875_v15 = vpop.f32.mrb[86].mxu0  ;;  %v7488_v59 = vadd.f32 %v7487_v30, %v16169_v12 }
 0x5bc   : > { %v5868_v61 = vadd.f32 %v19365_v22, %v5415_v37  ;;  %v9298_v33 = vadd.f32 %v4875_v15, %v19366_v4  ;;  %v4877_v24 = vpop.f32.mrb[87].mxu0  ;;  %v6748_v54 = vadd.f32 %v19367_v18, %v6289_v11  ;;  %7605 = vst.msk [vmem:[%s16021_s4 + $0x118] sm:$0xff] %vm7569_vm0, %v7494_v31  ;;  %v19382_v37 = vld [vmem:[#allocation164_spill] sm:$0xff]  ;;  %v19384_v22 = vld [vmem:[#allocation103_spill] sm:$0xff] }
 0x5bd   : > { %7604 = vst.msk [vmem:[%s16021_s4 + $0x110] sm:$0xff] %vm7569_vm0, %v7488_v59  ;;  %v8727_v60 = vpop.f32.mrb[116].mxu1  ;;  %v19386_v18 = vld [vmem:[#allocation31_spill] sm:$0xff]  ;;  %v19388_v59 = vld [vmem:[#allocation188_spill] sm:$0xff] }
 0x5be   : > { %v5425_v45 = vadd.f32 %v9298_v33, %v19368_v48  ;;  %v7161_v29 = vadd.f32 %v19369_v5, %v6748_v54  ;;  %v6296_v49 = vadd.f32 %v19370_v28, %v5868_v61  ;;  %v7506_v12 = vadd.f32 %v8727_v60, %v16210_v2  ;;  %v7499_v47 = vpop.f32.mrb[117].mxu1  ;;  %v19385_v33 = vld [vmem:[#allocation78_spill] sm:$0xff]  ;;  %v19387_v48 = vld [vmem:[#allocation177_spill] sm:$0xff] }
 0x5bf   : > { %v4882_v19 = vpop.f32.mrb[88].mxu0  ;;  %v7500_v57 = vadd.f32 %v7499_v47, %v16197_v3 }
 0x5c0   : > { %v5874_v7 = vadd.f32 %v19371_v35, %v5425_v45  ;;  %v9299_v62 = vadd.f32 %v4882_v19, %v19372_v27  ;;  %v4884_v51 = vpop.f32.mrb[89].mxu0  ;;  %v6756_v9 = vadd.f32 %v19373_v21, %v6296_v49  ;;  %7607 = vst.msk [vmem:[%s16021_s4 + $0x128] sm:$0xff] %vm7569_vm0, %v7506_v12  ;;  %v19389_v49 = vld [vmem:[#allocation286_spill] sm:$0xff] }
 0x5c1   : > { %7606 = vst.msk [vmem:[%s16021_s4 + $0x120] sm:$0xff] %vm7569_vm0, %v7500_v57  ;;  %v8730_v52 = vpop.f32.mrb[118].mxu1  ;;  %v19392_v51 = vld [vmem:[#allocation119_spill] sm:$0xff] }
 0x5c2   : > { %v5435_v13 = vadd.f32 %v9299_v62, %v19374_v40  ;;  %v6303_v0 = vadd.f32 %v19375_v44, %v5874_v7  ;;  %v7167_v16 = vadd.f32 %v15983_v56, %v6756_v9  ;;  %v7518_v3 = vadd.f32 %v8730_v52, %v7149_v23  ;;  %v7511_v50 = vpop.f32.mrb[119].mxu1  ;;  %v19390_v7 = vld [vmem:[#allocation260_spill] sm:$0xff]  ;;  %v19393_v9 = vld [vmem:[#allocation179_spill] sm:$0xff]  ;;  %v19394_v40 = vld [vmem:[#allocation109_spill] sm:$0xff] }
 0x5c3   : > { %v4889_v14 = vpop.f32.mrb[90].mxu0  ;;  %v7512_v56 = vadd.f32 %v7511_v50, %v16225_v36  ;;  %v19391_v62 = vld [vmem:[#allocation304_spill] sm:$0xff] }
 0x5c4   : > { %v5880_v38 = vadd.f32 %v19376_v55, %v5435_v13  ;;  %v9300_v2 = vadd.f32 %v4889_v14, %v19377_v25  ;;  %v4891_v26 = vpop.f32.mrb[91].mxu0  ;;  %v6764_v53 = vadd.f32 %v19378_v1, %v6303_v0  ;;  %7609 = vst.msk [vmem:[%s16021_s4 + $0x138] sm:$0xff] %vm7569_vm0, %v7518_v3  ;;  %v19395_v14 = vld [vmem:[#allocation196_spill] sm:$0xff] }
 0x5c5   : > { %7608 = vst.msk [vmem:[%s16021_s4 + $0x130] sm:$0xff] %vm7569_vm0, %v7512_v56  ;;  %v8733_v11 = vpop.f32.mrb[120].mxu1 }
 0x5c6   : > { %v5445_v63 = vadd.f32 %v9300_v2, %v19379_v39  ;;  %v7173_v46 = vadd.f32 %v19380_v41, %v6764_v53  ;;  %v6310_v10 = vadd.f32 %v19381_v17, %v5880_v38  ;;  %v7530_v36 = vadd.f32 %v8733_v11, %v7161_v29  ;;  %v7523_v4 = vpop.f32.mrb[121].mxu1  ;;  %v19396_v38 = vld [vmem:[#allocation288_spill] sm:$0xff] }
 0x5c7   : > { %v4896_v42 = vpop.f32.mrb[92].mxu0  ;;  %v7524_v24 = vadd.f32 %v7523_v4, %v7155_v6 }
 0x5c8   : > { %v5886_v34 = vadd.f32 %v19382_v37, %v5445_v63  ;;  %v9301_v23 = vadd.f32 %v4896_v42, %v19383_v58  ;;  %v4898_v15 = vpop.f32.mrb[93].mxu0  ;;  %v6772_v61 = vadd.f32 %v19384_v22, %v6310_v10  ;;  %7611 = vst.msk [vmem:[%s16021_s4 + $0x148] sm:$0xff] %vm7569_vm0, %v7530_v36 }
 0x5c9   : > { %7610 = vst.msk [vmem:[%s16021_s4 + $0x140] sm:$0xff] %vm7569_vm0, %v7524_v24  ;;  %v8736_v29 = vpop.f32.mrb[122].mxu1 }
 0x5ca   : > { %v5455_v8 = vadd.f32 %v9301_v23, %v19385_v33  ;;  %v6317_v54 = vadd.f32 %v19386_v18, %v5886_v34  ;;  %v7179_v31 = vadd.f32 %v15995_v32, %v6772_v61  ;;  %v7542_v6 = vadd.f32 %v8736_v29, %v7173_v46  ;;  %v7535_v35 = vpop.f32.mrb[123].mxu1 }
 0x5cb   : > { %v4903_v30 = vpop.f32.mrb[94].mxu0  ;;  %v7536_v27 = vadd.f32 %v7535_v35, %v7167_v16 }
 0x5cc   : > { %v5892_v45 = vadd.f32 %v19387_v48, %v5455_v8  ;;  %v9302_v5 = vadd.f32 %v4903_v30, %v19388_v59  ;;  %v4905_v28 = vpop.f32.mrb[95].mxu0  ;;  %v6780_v19 = vadd.f32 %v19389_v49, %v6317_v54  ;;  %7613 = vst.msk [vmem:[%s16021_s4 + $0x158] sm:$0xff] %vm7569_vm0, %v7542_v6 }
 0x5cd   : > { %7612 = vst.msk [vmem:[%s16021_s4 + $0x150] sm:$0xff] %vm7569_vm0, %v7536_v27  ;;  %v8739_v47 = vpop.f32.mrb[124].mxu1 }
 0x5ce   : > { %v5465_v32 = vadd.f32 %v9302_v5, %v19390_v7  ;;  %v7185_v60 = vadd.f32 %v19391_v62, %v6780_v19  ;;  %v6324_v21 = vadd.f32 %v19392_v51, %v5892_v45  ;;  %v7547_v44 = vpop.f32.mrb[125].mxu1 }
 0x5cf   : > { %v7548_v0 = vadd.f32 %v7547_v44, %v7179_v31 }
 0x5d0   : > { %v5898_v12 = vadd.f32 %v19393_v9, %v5465_v32  ;;  %v6788_v13 = vadd.f32 %v19394_v40, %v6324_v21  ;;  %v7554_v57 = vadd.f32 %v8739_v47, %v7185_v60 }
 0x5d1   : > { %7614 = vst.msk [vmem:[%s16021_s4 + $0x160] sm:$0xff] %vm7569_vm0, %v7548_v0  ;;  %v8742_v2 = vpop.f32.mrb[126].mxu1 }
 0x5d2   : > { %v6331_v16 = vadd.f32 %v19395_v14, %v5898_v12  ;;  %v7191_v55 = vadd.f32 %v16007_v43, %v6788_v13  ;;  %7615 = vst.msk [vmem:[%s16021_s4 + $0x168] sm:$0xff] %vm7569_vm0, %v7554_v57  ;;  %v7559_v52 = vpop.f32.mrb[127].mxu1 }
 0x5d4   : > { %v6796_v25 = vadd.f32 %v19396_v38, %v6331_v16  ;;  %v7560_v1 = vadd.f32 %v7559_v52, %v7191_v55 }
 0x5d6   : > { %v7197_v26 = vadd.f32 %v16004_v20, %v6796_v25  ;;  %7616 = vst.msk [vmem:[%s16021_s4 + $0x170] sm:$0xff] %vm7569_vm0, %v7560_v1 }
 0x5d8   : > { %v7566_v53 = vadd.f32 %v8742_v2, %v7197_v26 }
 0x5da   : > { %7617 = vst.msk [vmem:[%s16021_s4 + $0x178] sm:$0xff] %vm7569_vm0, %v7566_v53 }
 0x5db PF: > { %s15_s14 = sadd.s32 1, %s10282_s14   ;;  %s19397_s9 = smov %s10266_s10 }
 0x5dc   : > { %p12_p9 = scmp.ge.s32.totalorder %s15_s14, 6   ;;  %s19398_s10 = smov %s10270_s11 }
 0x5dd   : > { %s19399_s11 = smov %s10348_s20  ;;  %s19400_s12 = smov %s10278_s13 }
 0x5de   : > { %s19401_s13 = smov %s19403_s16  ;;  %14 = sbr.rel (!%p12_p9) target bundleno = 4 (0x4), region = 71 }
 0x5e5   :  { %7648 = vsyncpa [#allocation3], 1 }
 0x5e6   :  { %7650 = vsyncpa [#allocation3 + $0x1], 1 }

</bundles_post_ra>
